<compile_context>
chip_gen: v7x
topology: tpu7x:2x2x1
jax: 0.10.0
libtpu: 0.0.40
codegen_flags: <defaults>
</compile_context>

<pallas_src>
import functools

import numpy as np

import jax
import jax.numpy as jnp
from jax import lax
from jax.experimental import pallas as pl
from jax.experimental.pallas import tpu as pltpu

LEAKY_SLOPE = 0.01          # PyTorch nn.LeakyReLU() default
BN_EPS = 1e-5
ACT_DTYPE = jnp.bfloat16    # inter-layer activation storage dtype


# ----------------------------------------------------------------------------
# Fused multi-tap conv kernel.
#   out[f, q] = act( sum_t  W[t] @ plane[tap_t.plane][:, q + tap_t.row_off*W_lane]  + bias[f] )
# Planes are whole-resident in VMEM (constant index maps); only the lane-dense output tile
# moves per grid step.  Grid = (batch, spatial row-blocks), both parallel.
# ----------------------------------------------------------------------------
def _conv_taps_kernel(*refs, n_planes, taps, w_lane, tile_lanes, lp_img, act):
    plane_refs = refs[:n_planes]
    w_ref = refs[n_planes]          # (T, Cout, K)  bf16, scale pre-folded
    b_ref = refs[n_planes + 1]      # (Cout, 1)     f32
    o_ref = refs[n_planes + 2]      # (Cout, tile_lanes)

    n = pl.program_id(0)            # image index
    i = pl.program_id(1)            # output row-block index
    base = n * lp_img + i * tile_lanes

    acc = None
    for t, (p_idx, r_off) in enumerate(taps):
        start = pl.multiple_of(base + r_off * w_lane, 128)
        a = plane_refs[p_idx][:, pl.ds(start, tile_lanes)]            # (K, tile_lanes) bf16
        d = jnp.dot(w_ref[t], a, preferred_element_type=jnp.float32)  # f32 accumulate on MXU
        acc = d if acc is None else acc + d

    y = acc + b_ref[...]
    if act == "leaky":
        y = jnp.where(y >= 0, y, LEAKY_SLOPE * y)
    elif act == "relu":
        y = jnp.maximum(y, 0.0)
    o_ref[...] = y.astype(o_ref.dtype)


def _conv_taps_pallas(planes, wt, bias, taps, *, n_rows, w_lane, n_batch, act):
    """planes: list of (K, n_batch*rows_padded*w_lane) bf16 arrays (padded, column-shifted).
    wt: (T, Cout, K); bias: (Cout, 1).  Returns (Cout, n_batch*n_rows*w_lane) bf16."""
    k_dim = planes[0].shape[0]
    n_taps, cout, k_w = wt.shape
    assert k_w == k_dim and n_taps == len(taps)
    lp_img = planes[0].shape[1] // n_batch

    # ~16 grid blocks per image (>= 8 for pipelining / megacore), lane-dense tiles.
    n_blk = 16
    while n_rows % n_blk != 0:
        n_blk //= 2
    th = n_rows // n_blk
    tile_lanes = th * w_lane
    l_out = n_rows * w_lane

    kernel = functools.partial(
        _conv_taps_kernel, n_planes=len(planes), taps=tuple(taps),
        w_lane=w_lane, tile_lanes=tile_lanes, lp_img=lp_img, act=act)

    in_specs = [pl.BlockSpec(p.shape, lambda n, i: (0, 0)) for p in planes]   # resident
    in_specs.append(pl.BlockSpec(wt.shape, lambda n, i: (0, 0, 0)))           # resident
    in_specs.append(pl.BlockSpec(bias.shape, lambda n, i: (0, 0)))            # resident
    out_specs = pl.BlockSpec((cout, tile_lanes),
                             lambda n, i, _nb=n_blk: (0, n * _nb + i))

    flops = 2 * n_taps * cout * k_dim * n_batch * l_out
    bytes_accessed = (sum(int(p.size) * p.dtype.itemsize for p in planes)
                      + int(wt.size) * wt.dtype.itemsize
                      + int(bias.size) * 4 + cout * n_batch * l_out * 2)

    return pl.pallas_call(
        kernel,
        out_shape=jax.ShapeDtypeStruct((cout, n_batch * l_out), ACT_DTYPE),
        grid=(n_batch, n_blk),
        in_specs=in_specs,
        out_specs=out_specs,
        compiler_params=pltpu.CompilerParams(
            dimension_semantics=("parallel", "parallel"),
            vmem_limit_bytes=32 * 1024 * 1024),
        cost_estimate=pl.CostEstimate(flops=flops, transcendentals=0,
                                      bytes_accessed=bytes_accessed),
    )(*planes, wt, bias)


# ----------------------------------------------------------------------------
# Activation-side plane prep (XLA, fuses into a couple of copies).
# Activations flow channel-major: (C, N, H, W).
# ----------------------------------------------------------------------------
def _prep_down_planes(xc):
    """Stride-2 conv input: phase-split padded input, 2 column-shifted flattened copies.
    Returns planes[nw][ (r*2+c)*Ci+ci , n*(Ho+1)*Wo + a*Wo + ow ] = xpad[ci, 2a+r, 2(ow+nw)+c]."""
    ci, n, h, w = xc.shape
    ho, wo = h // 2, w // 2
    xp = jnp.pad(xc, ((0, 0), (0, 0), (1, 1), (1, 1)))
    p = xp.reshape(ci, n, ho + 1, 2, wo + 1, 2)
    p = jnp.transpose(p, (3, 5, 0, 1, 2, 4))                    # (r, c, ci, n, a, b)
    planes = []
    for nw in range(2):
        v = p[..., nw:nw + wo]                                  # (2, 2, ci, n, ho+1, wo)
        planes.append(v.reshape(4 * ci, n * (ho + 1) * wo).astype(ACT_DTYPE))
    return planes


def _prep_up_planes(xc):
    """Stride-1 (phase-decomposed transpose-conv) input: 3 column-shifted padded copies.
    planes[dw][ci, n*(H+2)*W + a*W + b] = xpad1[ci, a, b+dw]."""
    c, n, h, w = xc.shape
    xp = jnp.pad(xc, ((0, 0), (0, 0), (1, 1), (1, 1)))          # (C, N, H+2, W+2)
    planes = []
    for dw in range(3):
        v = xp[..., dw:dw + w]                                  # (C, N, H+2, W)
        planes.append(v.reshape(c, n * (h + 2) * w).astype(ACT_DTYPE))
    return planes


# ----------------------------------------------------------------------------
# One-time weight prep (host-side numpy, outside jit).  BN scale folded into W.
# ----------------------------------------------------------------------------
def _prep_down_weights(w, scale, shift):
    """w: (Co, Ci, 3, 3).  4 merged taps over phase channels K=4*Ci."""
    co, ci = w.shape[0], w.shape[1]
    wk = w * scale.reshape(co, 1, 1, 1)
    wt = np.zeros((2, 2, co, 2, 2, ci), np.float32)             # (mh, nw, co, r, c, ci)
    for mh in range(2):
        for nw in range(2):
            for r in range(2):
                for c in range(2):
                    kh, kw = 2 * mh + r, 2 * nw + c
                    if kh <= 2 and kw <= 2:
                        wt[mh, nw, :, r, c, :] = wk[:, :, kh, kw]
    wt = wt.reshape(4, co, 4 * ci)
    bias = shift.reshape(co, 1).astype(np.float32)
    taps = tuple((nw, mh) for mh in range(2) for nw in range(2))   # (plane, row_off), t = mh*2+nw
    return jnp.asarray(wt, ACT_DTYPE), jnp.asarray(bias, jnp.float32), taps


def _prep_up_weights(w, scale, shift):
    """w: (Ci, Co, 4, 4) torch ConvTranspose layout.  9 taps, 4*Co phase output rows."""
    ci, co = w.shape[0], w.shape[1]
    wf = np.transpose(w[:, :, ::-1, ::-1], (2, 3, 0, 1))        # wf[kh,kw,ci,co] = w[ci,co,3-kh,3-kw]
    wt = np.zeros((3, 3, 2, 2, co, ci), np.float32)             # (dh, dw, ph, pw, co, ci)
    for dh in range(3):
        for dw in range(3):
            for ph in range(2):
                for pw in range(2):
                    m, nn = dh - ph, dw - pw
                    if m in (0, 1) and nn in (0, 1):
                        wt[dh, dw, ph, pw] = wf[2 * m + ph, 2 * nn + pw].T
    wt *= scale.reshape(1, 1, 1, 1, co, 1)
    wt = wt.reshape(9, 4 * co, ci)                              # rows = (ph*2+pw)*Co + co
    bias = np.tile(shift.reshape(-1), 4).reshape(4 * co, 1).astype(np.float32)
    taps = tuple((dw, dh) for dh in range(3) for dw in range(3))   # (plane, row_off), t = dh*3+dw
    return jnp.asarray(wt, ACT_DTYPE), jnp.asarray(bias, jnp.float32), taps


# ----------------------------------------------------------------------------
# Layer application (Pallas path for big layers, XLA fallback for tiny deep stages).
# ----------------------------------------------------------------------------
def _conv_down_ref(x, w):
    return lax.conv_general_dilated(x, w, (2, 2), ((1, 1), (1, 1)),
                                    dimension_numbers=("NCHW", "OIHW", "NCHW"),
                                    precision=lax.Precision.HIGHEST)


def _conv_up_ref(x, w):
    wt = jnp.transpose(w[:, :, ::-1, ::-1], (1, 0, 2, 3))       # flip + (Ci,Co)->(Co,Ci)
    return lax.conv_general_dilated(x, wt, (1, 1), ((2, 2), (2, 2)), lhs_dilation=(2, 2),
                                    dimension_numbers=("NCHW", "OIHW", "NCHW"),
                                    precision=lax.Precision.HIGHEST)


def _apply_down(xc, layer):
    ci, n, h, w = xc.shape
    ho, wo = h // 2, w // 2
    if layer["pallas"]:
        planes = _prep_down_planes(xc)
        out = _conv_taps_pallas(planes, layer["wt"], layer["bias"], layer["taps"],
                                n_rows=ho, w_lane=wo, n_batch=n, act="leaky")
        return out.reshape(layer["Co"], n, ho, wo)
    x_n = jnp.transpose(xc, (1, 0, 2, 3)).astype(jnp.float32)
    y = _conv_down_ref(x_n, layer["w"])
    y = y * layer["scale"].reshape(1, -1, 1, 1) + layer["shift"].reshape(1, -1, 1, 1)
    y = jnp.where(y >= 0, y, LEAKY_SLOPE * y)
    return jnp.transpose(y, (1, 0, 2, 3)).astype(ACT_DTYPE)


def _apply_up(groups, layer):
    # groups = [prev_out, skip]: the concat is only materialized inside the plane prep.
    xc = groups[0] if len(groups) == 1 else jnp.concatenate(groups, axis=0)
    c_in, n, h, w = xc.shape
    co = layer["Co"]
    if layer["pallas"]:
        planes = _prep_up_planes(xc)
        out = _conv_taps_pallas(planes, layer["wt"], layer["bias"], layer["taps"],
                                n_rows=h, w_lane=w, n_batch=n, act=layer["act"])
        out = out.reshape(2, 2, co, n, h, w)                    # (ph, pw, co, n, a, b)
        out = jnp.transpose(out, (2, 3, 4, 0, 5, 1)).reshape(co, n, 2 * h, 2 * w)
        return out
    x_n = jnp.transpose(xc, (1, 0, 2, 3)).astype(jnp.float32)
    y = _conv_up_ref(x_n, layer["w"])
    y = y * layer["scale"].reshape(1, -1, 1, 1) + layer["shift"].reshape(1, -1, 1, 1)
    if layer["act"] == "relu":
        y = jnp.maximum(y, 0.0)
    return jnp.transpose(y, (1, 0, 2, 3)).astype(ACT_DTYPE)


# ----------------------------------------------------------------------------
# Parameters (deterministic, in-script, PyTorch weight layouts).
# ----------------------------------------------------------------------------
def _bn_affine(key, co):
    k1, k2, k3, k4 = jax.random.split(key, 4)
    gamma = 1.0 + 0.1 * jax.random.normal(k1, (co,), jnp.float32)
    beta = 0.1 * jax.random.normal(k2, (co,), jnp.float32)
    mean = 0.1 * jax.random.normal(k3, (co,), jnp.float32)
    var = 1.0 + 0.1 * jax.random.uniform(k4, (co,), jnp.float32)
    scale = gamma / jnp.sqrt(var + BN_EPS)
    return scale, beta - mean * scale


def init_raw_params(key, inly, outly):
    down_cfg = [(inly, 4), (4, 4), (4, 8), (8, 8), (8, 8), (8, 8), (8, 16), (16, 16), (16, 16)]
    up_cfg = [(16, 16, False), (32, 16, False), (32, 8, False), (16, 8, True), (16, 8, True),
              (16, 8, True), (16, 4, True), (8, 4, True), (8, 4, True)]
    raw = {"down": [], "up": []}
    for ci, co in down_cfg:
        key, kw, kb = jax.random.split(key, 3)
        w = jax.random.normal(kw, (co, ci, 3, 3), jnp.float32) / np.sqrt(9.0 * ci)
        scale, shift = _bn_affine(kb, co)
        raw["down"].append({"w": w, "scale": scale, "shift": shift})
    for ci, co, bn in up_cfg:
        key, kw, kb = jax.random.split(key, 3)
        w = jax.random.normal(kw, (ci, co, 4, 4), jnp.float32) / np.sqrt(16.0 * ci)
        if bn:
            scale, shift = _bn_affine(kb, co)
        else:
            scale, shift = jnp.ones((co,), jnp.float32), jnp.zeros((co,), jnp.float32)
        raw["up"].append({"w": w, "scale": scale, "shift": shift})
    key, kw, kb = jax.random.split(key, 3)
    raw["last"] = {"w": jax.random.normal(kw, (8, outly, 4, 4), jnp.float32) / np.sqrt(16.0 * 8),
                   "scale": jnp.ones((outly,), jnp.float32),
                   "shift": 0.1 * jax.random.normal(kb, (outly,), jnp.float32)}  # convT bias
    return raw


def prepare_params(raw, nside):
    """One-time, outside-jit weight prep (kernel flip / phase decomposition / BN fold / bf16)."""
    prepped = {"down": [], "up": [], "last": None}
    sh = sw = nside
    for p in raw["down"]:
        w_np = np.asarray(p["w"], np.float32)
        co = w_np.shape[0]
        ho, wo = sh // 2, sw // 2
        use_pallas = (wo >= 128 and wo % 128 == 0 and ho >= 16 and sh % 2 == 0 and sw % 2 == 0)
        entry = {"pallas": use_pallas, "Co": co, "act": "leaky"}
        if use_pallas:
            wt, bias, taps = _prep_down_weights(w_np, np.asarray(p["scale"], np.float32),
                                                np.asarray(p["shift"], np.float32))
            entry.update(wt=wt, bias=bias, taps=taps)
        else:
            entry.update(w=p["w"], scale=p["scale"], shift=p["shift"])
        prepped["down"].append(entry)
        sh, sw = ho, wo

    for p in raw["up"][:8]:                      # only 8 up layers are consumed (zip with skips)
        w_np = np.asarray(p["w"], np.float32)
        co = w_np.shape[1]
        use_pallas = (sw >= 128 and sw % 128 == 0 and sh >= 16)
        entry = {"pallas": use_pallas, "Co": co, "act": "relu"}
        if use_pallas:
            wt, bias, taps = _prep_up_weights(w_np, np.asarray(p["scale"], np.float32),
                                              np.asarray(p["shift"], np.float32))
            entry.update(wt=wt, bias=bias, taps=taps)
        else:
            entry.update(w=p["w"], scale=p["scale"], shift=p["shift"])
        prepped["up"].append(entry)
        sh, sw = 2 * sh, 2 * sw

    p = raw["last"]
    w_np = np.asarray(p["w"], np.float32)
    co = w_np.shape[1]
    use_pallas = (sw >= 128 and sw % 128 == 0 and sh >= 16)
    entry = {"pallas": use_pallas, "Co": co, "act": "none"}
    if use_pallas:
        wt, bias, taps = _prep_up_weights(w_np, np.asarray(p["scale"], np.float32),
                                          np.asarray(p["shift"], np.float32))
        entry.update(wt=wt, bias=bias, taps=taps)
    else:
        entry.update(w=p["w"], scale=p["scale"], shift=p["shift"])
    prepped["last"] = entry
    return prepped


# ----------------------------------------------------------------------------
# Forward (mirrors the PyTorch module) + float32 lax.conv reference.
# ----------------------------------------------------------------------------
def unet_forward(x, params):
    """x: (N, Cin, H, W) float32 NCHW.  Returns (N, outly, H, W) float32."""
    xc = jnp.transpose(x, (1, 0, 2, 3)).astype(ACT_DTYPE)        # channel-major (C, N, H, W)
    skips = []
    for layer in params["down"]:
        xc = _apply_down(xc, layer)
        skips.append(xc)
    skips = list(reversed(skips[:-1]))
    groups = [xc]
    for layer, skip in zip(params["up"], skips):
        y = _apply_up(groups, layer)
        groups = [y, skip]                                        # torch.cat fused downstream
    y = _apply_up(groups, params["last"])
    return jnp.transpose(y, (1, 0, 2, 3)).astype(jnp.float32)


def unet_reference(x, params):
    """Pure lax.conv float32 reference with identical eval-mode BN / identity-dropout semantics."""
    h = x.astype(jnp.float32)
    skips = []
    for p in params["down"]:
        h = _conv_down_ref(h, p["w"])
        h = h * p["scale"].reshape(1, -1, 1, 1) + p["shift"].reshape(1, -1, 1, 1)
        h = jnp.where(h >= 0, h, LEAKY_SLOPE * h)
        skips.append(h)
    skips = list(reversed(skips[:-1]))
    for p, s in zip(params["up"], skips):
        h = _conv_up_ref(h, p["w"])
        h = h * p["scale"].reshape(1, -1, 1, 1) + p["shift"].reshape(1, -1, 1, 1)
        h = jnp.maximum(h, 0.0)
        h = jnp.concatenate([h, s], axis=1)
    p = params["last"]
    h = _conv_up_ref(h, p["w"]) + p["shift"].reshape(1, -1, 1, 1)
    return h


if __name__ == "__main__":
    key = jax.random.PRNGKey(0)
    # 9 stride-2 downsample stages + skip concats force the spatial size to 2**9 = 512.
    batch, inly, outly, nside = 1, 1, 1, 512
    pkey, xkey = jax.random.split(key)
    raw = init_raw_params(pkey, inly, outly)
    prepped = prepare_params(raw, nside)
    x = jax.random.normal(xkey, (batch, inly, nside, nside), jnp.float32)

    fwd = jax.jit(functools.partial(unet_forward, params=prepped))
    out = fwd(x)
    jax.block_until_ready(out)
    assert out.shape == (batch, outly, nside, nside), out.shape
    assert bool(jnp.isfinite(out).all())

    # Numerical check of the (bf16) Pallas forward against a float32 lax.conv reference.
    ref_fn = jax.jit(functools.partial(unet_reference, params=raw))
    ref = ref_fn(x)
    jax.block_until_ready(ref)
    err = float(jnp.linalg.norm(out - ref)) / (float(jnp.linalg.norm(ref)) + 1e-8)
    assert err < 5e-2, f"relative L2 error vs reference too large: {err:.4f}"

    print("KERNEL_OK")
</pallas_src>

<mosaic_0001>
module attributes {stable_mosaic.version = 11 : i64} {
  func.func @_conv_taps_kernel(%arg0: i32, %arg1: i32, %arg2: memref<4x65792xbf16, #tpu.memory_space<vmem>>, %arg3: memref<4x65792xbf16, #tpu.memory_space<vmem>>, %arg4: memref<4x4x4xbf16, #tpu.memory_space<vmem>>, %arg5: memref<4x1xf32, #tpu.memory_space<vmem>>, %arg6: memref<4x4096xbf16, #tpu.memory_space<vmem>>) attributes {dimension_semantics = [#tpu.dimension_semantics<parallel>, #tpu.dimension_semantics<parallel>], iteration_bounds = array<i64: 1, 16>, scalar_prefetch = 0 : i64, scratch_operands = 0 : i64, tpu.core_type = #tpu.core_type<tc>, window_params = [{pipeline_mode = #tpu.pipeline_mode<synchronous>, transform_indices = @transform_0, window_bounds = array<i64: 4, 65792>}, {pipeline_mode = #tpu.pipeline_mode<synchronous>, transform_indices = @transform_1, window_bounds = array<i64: 4, 65792>}, {pipeline_mode = #tpu.pipeline_mode<synchronous>, transform_indices = @transform_2, window_bounds = array<i64: 4, 4, 4>}, {pipeline_mode = #tpu.pipeline_mode<synchronous>, transform_indices = @transform_3, window_bounds = array<i64: 4, 1>}, {transform_indices = @transform_4, window_bounds = array<i64: 4, 4096>}]} {
    %c65792_i32 = arith.constant 65792 : i32
    %0 = arith.muli %arg0, %c65792_i32 : i32
    %c4096_i32 = arith.constant 4096 : i32
    %1 = arith.muli %arg1, %c4096_i32 : i32
    %2 = arith.addi %0, %1 : i32
    %c0_i32 = arith.constant 0 : i32
    %3 = arith.addi %2, %c0_i32 : i32
    %4 = tpu.assume_multiple %3, 128 : i32
    %c0 = arith.constant 0 : index
    %5 = arith.index_cast %4 : i32 to index
    %6 = vector.load %arg2[%c0, %5] : memref<4x65792xbf16, #tpu.memory_space<vmem>>, vector<4x4096xbf16>
    %c0_0 = arith.constant 0 : index
    %c0_1 = arith.constant 0 : index
    %c0_2 = arith.constant 0 : index
    %7 = vector.load %arg4[%c0_0, %c0_1, %c0_2] : memref<4x4x4xbf16, #tpu.memory_space<vmem>>, vector<1x4x4xbf16>
    %8 = vector.shape_cast %7 : vector<1x4x4xbf16> to vector<4x4xbf16>
    %cst = arith.constant dense<0.000000e+00> : vector<4x4096xf32>
    %9 = tpu.matmul %8, %6, %cst {dimension_numbers = #tpu.dot_dimension_numbers<[1], [0], [0], [1], [0, 0, 1, 1], [], []>} : vector<4x4xbf16>, vector<4x4096xbf16>, vector<4x4096xf32> -> vector<4x4096xf32>
    %c0_i32_3 = arith.constant 0 : i32
    %10 = arith.addi %2, %c0_i32_3 : i32
    %11 = tpu.assume_multiple %10, 128 : i32
    %c0_4 = arith.constant 0 : index
    %12 = arith.index_cast %11 : i32 to index
    %13 = vector.load %arg3[%c0_4, %12] : memref<4x65792xbf16, #tpu.memory_space<vmem>>, vector<4x4096xbf16>
    %c1 = arith.constant 1 : index
    %c0_5 = arith.constant 0 : index
    %c0_6 = arith.constant 0 : index
    %14 = vector.load %arg4[%c1, %c0_5, %c0_6] : memref<4x4x4xbf16, #tpu.memory_space<vmem>>, vector<1x4x4xbf16>
    %15 = vector.shape_cast %14 : vector<1x4x4xbf16> to vector<4x4xbf16>
    %cst_7 = arith.constant dense<0.000000e+00> : vector<4x4096xf32>
    %16 = tpu.matmul %15, %13, %cst_7 {dimension_numbers = #tpu.dot_dimension_numbers<[1], [0], [0], [1], [0, 0, 1, 1], [], []>} : vector<4x4xbf16>, vector<4x4096xbf16>, vector<4x4096xf32> -> vector<4x4096xf32>
    %17 = arith.addf %9, %16 : vector<4x4096xf32>
    %c256_i32 = arith.constant 256 : i32
    %18 = arith.addi %2, %c256_i32 : i32
    %19 = tpu.assume_multiple %18, 128 : i32
    %c0_8 = arith.constant 0 : index
    %20 = arith.index_cast %19 : i32 to index
    %21 = vector.load %arg2[%c0_8, %20] : memref<4x65792xbf16, #tpu.memory_space<vmem>>, vector<4x4096xbf16>
    %c2 = arith.constant 2 : index
    %c0_9 = arith.constant 0 : index
    %c0_10 = arith.constant 0 : index
    %22 = vector.load %arg4[%c2, %c0_9, %c0_10] : memref<4x4x4xbf16, #tpu.memory_space<vmem>>, vector<1x4x4xbf16>
    %23 = vector.shape_cast %22 : vector<1x4x4xbf16> to vector<4x4xbf16>
    %cst_11 = arith.constant dense<0.000000e+00> : vector<4x4096xf32>
    %24 = tpu.matmul %23, %21, %cst_11 {dimension_numbers = #tpu.dot_dimension_numbers<[1], [0], [0], [1], [0, 0, 1, 1], [], []>} : vector<4x4xbf16>, vector<4x4096xbf16>, vector<4x4096xf32> -> vector<4x4096xf32>
    %25 = arith.addf %17, %24 : vector<4x4096xf32>
    %c256_i32_12 = arith.constant 256 : i32
    %26 = arith.addi %2, %c256_i32_12 : i32
    %27 = tpu.assume_multiple %26, 128 : i32
    %c0_13 = arith.constant 0 : index
    %28 = arith.index_cast %27 : i32 to index
    %29 = vector.load %arg3[%c0_13, %28] : memref<4x65792xbf16, #tpu.memory_space<vmem>>, vector<4x4096xbf16>
    %c3 = arith.constant 3 : index
    %c0_14 = arith.constant 0 : index
    %c0_15 = arith.constant 0 : index
    %30 = vector.load %arg4[%c3, %c0_14, %c0_15] : memref<4x4x4xbf16, #tpu.memory_space<vmem>>, vector<1x4x4xbf16>
    %31 = vector.shape_cast %30 : vector<1x4x4xbf16> to vector<4x4xbf16>
    %cst_16 = arith.constant dense<0.000000e+00> : vector<4x4096xf32>
    %32 = tpu.matmul %31, %29, %cst_16 {dimension_numbers = #tpu.dot_dimension_numbers<[1], [0], [0], [1], [0, 0, 1, 1], [], []>} : vector<4x4xbf16>, vector<4x4096xbf16>, vector<4x4096xf32> -> vector<4x4096xf32>
    %33 = arith.addf %25, %32 : vector<4x4096xf32>
    %c0_17 = arith.constant 0 : index
    %c0_18 = arith.constant 0 : index
    %34 = vector.load %arg5[%c0_17, %c0_18] : memref<4x1xf32, #tpu.memory_space<vmem>>, vector<4x1xf32>
    %35 = vector.broadcast %34 : vector<4x1xf32> to vector<4x4096xf32>
    %36 = arith.addf %33, %35 : vector<4x4096xf32>
    %cst_19 = arith.constant 0.000000e+00 : f32
    %37 = vector.broadcast %cst_19 : f32 to vector<4x4096xf32>
    %38 = arith.cmpf oge, %36, %37 : vector<4x4096xf32>
    %cst_20 = arith.constant 0.00999999977 : f32
    %39 = vector.broadcast %cst_20 : f32 to vector<4x4096xf32>
    %40 = arith.mulf %39, %36 : vector<4x4096xf32>
    %41 = arith.select %38, %36, %40 : vector<4x4096xi1>, vector<4x4096xf32>
    %42 = arith.truncf %41 : vector<4x4096xf32> to vector<4x4096xbf16>
    %c0_21 = arith.constant 0 : index
    %c0_22 = arith.constant 0 : index
    %43 = vector.load %arg6[%c0_21, %c0_22] : memref<4x4096xbf16, #tpu.memory_space<vmem>>, vector<4x4096xbf16>
    tpu.vector_store %arg6[%c0_21, %c0_22], %42 {strides = array<i32>} : memref<4x4096xbf16, #tpu.memory_space<vmem>>, vector<4x4096xbf16>,
    return
  }
  func.func @transform_0(%arg0: i32, %arg1: i32) -> (i32, i32) {
    %c0_i32 = arith.constant 0 : i32
    %c0_i32_0 = arith.constant 0 : i32
    %c0_i32_1 = arith.constant 0 : i32
    return %c0_i32, %c0_i32_0 : i32, i32
  }
  func.func @transform_1(%arg0: i32, %arg1: i32) -> (i32, i32) {
    %c0_i32 = arith.constant 0 : i32
    %c0_i32_0 = arith.constant 0 : i32
    %c0_i32_1 = arith.constant 0 : i32
    return %c0_i32, %c0_i32_0 : i32, i32
  }
  func.func @transform_2(%arg0: i32, %arg1: i32) -> (i32, i32, i32) {
    %c0_i32 = arith.constant 0 : i32
    %c0_i32_0 = arith.constant 0 : i32
    %c0_i32_1 = arith.constant 0 : i32
    %c0_i32_2 = arith.constant 0 : i32
    return %c0_i32, %c0_i32_0, %c0_i32_1 : i32, i32, i32
  }
  func.func @transform_3(%arg0: i32, %arg1: i32) -> (i32, i32) {
    %c0_i32 = arith.constant 0 : i32
    %c0_i32_0 = arith.constant 0 : i32
    %c0_i32_1 = arith.constant 0 : i32
    return %c0_i32, %c0_i32_0 : i32, i32
  }
  func.func @transform_4(%arg0: i32, %arg1: i32) -> (i32, i32) {
    %c16_i32 = arith.constant 16 : i32
    %0 = arith.muli %arg0, %c16_i32 : i32
    %1 = arith.addi %0, %arg1 : i32
    %c0_i32 = arith.constant 0 : i32
    %c0_i32_0 = arith.constant 0 : i32
    return %c0_i32, %1 : i32, i32
  }
}

module attributes {stable_mosaic.version = 11 : i64} {
  func.func @_conv_taps_kernel(%arg0: i32, %arg1: i32, %arg2: memref<16x16512xbf16, #tpu.memory_space<vmem>>, %arg3: memref<16x16512xbf16, #tpu.memory_space<vmem>>, %arg4: memref<4x4x16xbf16, #tpu.memory_space<vmem>>, %arg5: memref<4x1xf32, #tpu.memory_space<vmem>>, %arg6: memref<4x1024xbf16, #tpu.memory_space<vmem>>) attributes {dimension_semantics = [#tpu.dimension_semantics<parallel>, #tpu.dimension_semantics<parallel>], iteration_bounds = array<i64: 1, 16>, scalar_prefetch = 0 : i64, scratch_operands = 0 : i64, tpu.core_type = #tpu.core_type<tc>, window_params = [{pipeline_mode = #tpu.pipeline_mode<synchronous>, transform_indices = @transform_0, window_bounds = array<i64: 16, 16512>}, {pipeline_mode = #tpu.pipeline_mode<synchronous>, transform_indices = @transform_1, window_bounds = array<i64: 16, 16512>}, {pipeline_mode = #tpu.pipeline_mode<synchronous>, transform_indices = @transform_2, window_bounds = array<i64: 4, 4, 16>}, {pipeline_mode = #tpu.pipeline_mode<synchronous>, transform_indices = @transform_3, window_bounds = array<i64: 4, 1>}, {transform_indices = @transform_4, window_bounds = array<i64: 4, 1024>}]} {
    %c16512_i32 = arith.constant 16512 : i32
    %0 = arith.muli %arg0, %c16512_i32 : i32
    %c1024_i32 = arith.constant 1024 : i32
    %1 = arith.muli %arg1, %c1024_i32 : i32
    %2 = arith.addi %0, %1 : i32
    %c0_i32 = arith.constant 0 : i32
    %3 = arith.addi %2, %c0_i32 : i32
    %4 = tpu.assume_multiple %3, 128 : i32
    %c0 = arith.constant 0 : index
    %5 = arith.index_cast %4 : i32 to index
    %6 = vector.load %arg2[%c0, %5] : memref<16x16512xbf16, #tpu.memory_space<vmem>>, vector<16x1024xbf16>
    %c0_0 = arith.constant 0 : index
    %c0_1 = arith.constant 0 : index
    %c0_2 = arith.constant 0 : index
    %7 = vector.load %arg4[%c0_0, %c0_1, %c0_2] : memref<4x4x16xbf16, #tpu.memory_space<vmem>>, vector<1x4x16xbf16>
    %8 = vector.shape_cast %7 : vector<1x4x16xbf16> to vector<4x16xbf16>
    %cst = arith.constant dense<0.000000e+00> : vector<4x1024xf32>
    %9 = tpu.matmul %8, %6, %cst {dimension_numbers = #tpu.dot_dimension_numbers<[1], [0], [0], [1], [0, 0, 1, 1], [], []>} : vector<4x16xbf16>, vector<16x1024xbf16>, vector<4x1024xf32> -> vector<4x1024xf32>
    %c0_i32_3 = arith.constant 0 : i32
    %10 = arith.addi %2, %c0_i32_3 : i32
    %11 = tpu.assume_multiple %10, 128 : i32
    %c0_4 = arith.constant 0 : index
    %12 = arith.index_cast %11 : i32 to index
    %13 = vector.load %arg3[%c0_4, %12] : memref<16x16512xbf16, #tpu.memory_space<vmem>>, vector<16x1024xbf16>
    %c1 = arith.constant 1 : index
    %c0_5 = arith.constant 0 : index
    %c0_6 = arith.constant 0 : index
    %14 = vector.load %arg4[%c1, %c0_5, %c0_6] : memref<4x4x16xbf16, #tpu.memory_space<vmem>>, vector<1x4x16xbf16>
    %15 = vector.shape_cast %14 : vector<1x4x16xbf16> to vector<4x16xbf16>
    %cst_7 = arith.constant dense<0.000000e+00> : vector<4x1024xf32>
    %16 = tpu.matmul %15, %13, %cst_7 {dimension_numbers = #tpu.dot_dimension_numbers<[1], [0], [0], [1], [0, 0, 1, 1], [], []>} : vector<4x16xbf16>, vector<16x1024xbf16>, vector<4x1024xf32> -> vector<4x1024xf32>
    %17 = arith.addf %9, %16 : vector<4x1024xf32>
    %c128_i32 = arith.constant 128 : i32
    %18 = arith.addi %2, %c128_i32 : i32
    %19 = tpu.assume_multiple %18, 128 : i32
    %c0_8 = arith.constant 0 : index
    %20 = arith.index_cast %19 : i32 to index
    %21 = vector.load %arg2[%c0_8, %20] : memref<16x16512xbf16, #tpu.memory_space<vmem>>, vector<16x1024xbf16>
    %c2 = arith.constant 2 : index
    %c0_9 = arith.constant 0 : index
    %c0_10 = arith.constant 0 : index
    %22 = vector.load %arg4[%c2, %c0_9, %c0_10] : memref<4x4x16xbf16, #tpu.memory_space<vmem>>, vector<1x4x16xbf16>
    %23 = vector.shape_cast %22 : vector<1x4x16xbf16> to vector<4x16xbf16>
    %cst_11 = arith.constant dense<0.000000e+00> : vector<4x1024xf32>
    %24 = tpu.matmul %23, %21, %cst_11 {dimension_numbers = #tpu.dot_dimension_numbers<[1], [0], [0], [1], [0, 0, 1, 1], [], []>} : vector<4x16xbf16>, vector<16x1024xbf16>, vector<4x1024xf32> -> vector<4x1024xf32>
    %25 = arith.addf %17, %24 : vector<4x1024xf32>
    %c128_i32_12 = arith.constant 128 : i32
    %26 = arith.addi %2, %c128_i32_12 : i32
    %27 = tpu.assume_multiple %26, 128 : i32
    %c0_13 = arith.constant 0 : index
    %28 = arith.index_cast %27 : i32 to index
    %29 = vector.load %arg3[%c0_13, %28] : memref<16x16512xbf16, #tpu.memory_space<vmem>>, vector<16x1024xbf16>
    %c3 = arith.constant 3 : index
    %c0_14 = arith.constant 0 : index
    %c0_15 = arith.constant 0 : index
    %30 = vector.load %arg4[%c3, %c0_14, %c0_15] : memref<4x4x16xbf16, #tpu.memory_space<vmem>>, vector<1x4x16xbf16>
    %31 = vector.shape_cast %30 : vector<1x4x16xbf16> to vector<4x16xbf16>
    %cst_16 = arith.constant dense<0.000000e+00> : vector<4x1024xf32>
    %32 = tpu.matmul %31, %29, %cst_16 {dimension_numbers = #tpu.dot_dimension_numbers<[1], [0], [0], [1], [0, 0, 1, 1], [], []>} : vector<4x16xbf16>, vector<16x1024xbf16>, vector<4x1024xf32> -> vector<4x1024xf32>
    %33 = arith.addf %25, %32 : vector<4x1024xf32>
    %c0_17 = arith.constant 0 : index
    %c0_18 = arith.constant 0 : index
    %34 = vector.load %arg5[%c0_17, %c0_18] : memref<4x1xf32, #tpu.memory_space<vmem>>, vector<4x1xf32>
    %35 = vector.broadcast %34 : vector<4x1xf32> to vector<4x1024xf32>
    %36 = arith.addf %33, %35 : vector<4x1024xf32>
    %cst_19 = arith.constant 0.000000e+00 : f32
    %37 = vector.broadcast %cst_19 : f32 to vector<4x1024xf32>
    %38 = arith.cmpf oge, %36, %37 : vector<4x1024xf32>
    %cst_20 = arith.constant 0.00999999977 : f32
    %39 = vector.broadcast %cst_20 : f32 to vector<4x1024xf32>
    %40 = arith.mulf %39, %36 : vector<4x1024xf32>
    %41 = arith.select %38, %36, %40 : vector<4x1024xi1>, vector<4x1024xf32>
    %42 = arith.truncf %41 : vector<4x1024xf32> to vector<4x1024xbf16>
    %c0_21 = arith.constant 0 : index
    %c0_22 = arith.constant 0 : index
    %43 = vector.load %arg6[%c0_21, %c0_22] : memref<4x1024xbf16, #tpu.memory_space<vmem>>, vector<4x1024xbf16>
    tpu.vector_store %arg6[%c0_21, %c0_22], %42 {strides = array<i32>} : memref<4x1024xbf16, #tpu.memory_space<vmem>>, vector<4x1024xbf16>,
    return
  }
  func.func @transform_0(%arg0: i32, %arg1: i32) -> (i32, i32) {
    %c0_i32 = arith.constant 0 : i32
    %c0_i32_0 = arith.constant 0 : i32
    %c0_i32_1 = arith.constant 0 : i32
    return %c0_i32, %c0_i32_0 : i32, i32
  }
  func.func @transform_1(%arg0: i32, %arg1: i32) -> (i32, i32) {
    %c0_i32 = arith.constant 0 : i32
    %c0_i32_0 = arith.constant 0 : i32
    %c0_i32_1 = arith.constant 0 : i32
    return %c0_i32, %c0_i32_0 : i32, i32
  }
  func.func @transform_2(%arg0: i32, %arg1: i32) -> (i32, i32, i32) {
    %c0_i32 = arith.constant 0 : i32
    %c0_i32_0 = arith.constant 0 : i32
    %c0_i32_1 = arith.constant 0 : i32
    %c0_i32_2 = arith.constant 0 : i32
    return %c0_i32, %c0_i32_0, %c0_i32_1 : i32, i32, i32
  }
  func.func @transform_3(%arg0: i32, %arg1: i32) -> (i32, i32) {
    %c0_i32 = arith.constant 0 : i32
    %c0_i32_0 = arith.constant 0 : i32
    %c0_i32_1 = arith.constant 0 : i32
    return %c0_i32, %c0_i32_0 : i32, i32
  }
  func.func @transform_4(%arg0: i32, %arg1: i32) -> (i32, i32) {
    %c16_i32 = arith.constant 16 : i32
    %0 = arith.muli %arg0, %c16_i32 : i32
    %1 = arith.addi %0, %arg1 : i32
    %c0_i32 = arith.constant 0 : i32
    %c0_i32_0 = arith.constant 0 : i32
    return %c0_i32, %1 : i32, i32
  }
}

module attributes {stable_mosaic.version = 11 : i64} {
  func.func @_conv_taps_kernel(%arg0: i32, %arg1: i32, %arg2: memref<8x16640xbf16, #tpu.memory_space<vmem>>, %arg3: memref<8x16640xbf16, #tpu.memory_space<vmem>>, %arg4: memref<8x16640xbf16, #tpu.memory_space<vmem>>, %arg5: memref<9x16x8xbf16, #tpu.memory_space<vmem>>, %arg6: memref<16x1xf32, #tpu.memory_space<vmem>>, %arg7: memref<16x1024xbf16, #tpu.memory_space<vmem>>) attributes {dimension_semantics = [#tpu.dimension_semantics<parallel>, #tpu.dimension_semantics<parallel>], iteration_bounds = array<i64: 1, 16>, scalar_prefetch = 0 : i64, scratch_operands = 0 : i64, tpu.core_type = #tpu.core_type<tc>, window_params = [{pipeline_mode = #tpu.pipeline_mode<synchronous>, transform_indices = @transform_0, window_bounds = array<i64: 8, 16640>}, {pipeline_mode = #tpu.pipeline_mode<synchronous>, transform_indices = @transform_1, window_bounds = array<i64: 8, 16640>}, {pipeline_mode = #tpu.pipeline_mode<synchronous>, transform_indices = @transform_2, window_bounds = array<i64: 8, 16640>}, {pipeline_mode = #tpu.pipeline_mode<synchronous>, transform_indices = @transform_3, window_bounds = array<i64: 9, 16, 8>}, {pipeline_mode = #tpu.pipeline_mode<synchronous>, transform_indices = @transform_4, window_bounds = array<i64: 16, 1>}, {transform_indices = @transform_5, window_bounds = array<i64: 16, 1024>}]} {
    %c16640_i32 = arith.constant 16640 : i32
    %0 = arith.muli %arg0, %c16640_i32 : i32
    %c1024_i32 = arith.constant 1024 : i32
    %1 = arith.muli %arg1, %c1024_i32 : i32
    %2 = arith.addi %0, %1 : i32
    %c0_i32 = arith.constant 0 : i32
    %3 = arith.addi %2, %c0_i32 : i32
    %4 = tpu.assume_multiple %3, 128 : i32
    %c0 = arith.constant 0 : index
    %5 = arith.index_cast %4 : i32 to index
    %6 = vector.load %arg2[%c0, %5] : memref<8x16640xbf16, #tpu.memory_space<vmem>>, vector<8x1024xbf16>
    %c0_0 = arith.constant 0 : index
    %c0_1 = arith.constant 0 : index
    %c0_2 = arith.constant 0 : index
    %7 = vector.load %arg5[%c0_0, %c0_1, %c0_2] : memref<9x16x8xbf16, #tpu.memory_space<vmem>>, vector<1x16x8xbf16>
    %8 = vector.shape_cast %7 : vector<1x16x8xbf16> to vector<16x8xbf16>
    %cst = arith.constant dense<0.000000e+00> : vector<16x1024xf32>
    %9 = tpu.matmul %8, %6, %cst {dimension_numbers = #tpu.dot_dimension_numbers<[1], [0], [0], [1], [0, 0, 1, 1], [], []>} : vector<16x8xbf16>, vector<8x1024xbf16>, vector<16x1024xf32> -> vector<16x1024xf32>
    %c0_i32_3 = arith.constant 0 : i32
    %10 = arith.addi %2, %c0_i32_3 : i32
    %11 = tpu.assume_multiple %10, 128 : i32
    %c0_4 = arith.constant 0 : index
    %12 = arith.index_cast %11 : i32 to index
    %13 = vector.load %arg3[%c0_4, %12] : memref<8x16640xbf16, #tpu.memory_space<vmem>>, vector<8x1024xbf16>
    %c1 = arith.constant 1 : index
    %c0_5 = arith.constant 0 : index
    %c0_6 = arith.constant 0 : index
    %14 = vector.load %arg5[%c1, %c0_5, %c0_6] : memref<9x16x8xbf16, #tpu.memory_space<vmem>>, vector<1x16x8xbf16>
    %15 = vector.shape_cast %14 : vector<1x16x8xbf16> to vector<16x8xbf16>
    %cst_7 = arith.constant dense<0.000000e+00> : vector<16x1024xf32>
    %16 = tpu.matmul %15, %13, %cst_7 {dimension_numbers = #tpu.dot_dimension_numbers<[1], [0], [0], [1], [0, 0, 1, 1], [], []>} : vector<16x8xbf16>, vector<8x1024xbf16>, vector<16x1024xf32> -> vector<16x1024xf32>
    %17 = arith.addf %9, %16 : vector<16x1024xf32>
    %c0_i32_8 = arith.constant 0 : i32
    %18 = arith.addi %2, %c0_i32_8 : i32
    %19 = tpu.assume_multiple %18, 128 : i32
    %c0_9 = arith.constant 0 : index
    %20 = arith.index_cast %19 : i32 to index
    %21 = vector.load %arg4[%c0_9, %20] : memref<8x16640xbf16, #tpu.memory_space<vmem>>, vector<8x1024xbf16>
    %c2 = arith.constant 2 : index
    %c0_10 = arith.constant 0 : index
    %c0_11 = arith.constant 0 : index
    %22 = vector.load %arg5[%c2, %c0_10, %c0_11] : memref<9x16x8xbf16, #tpu.memory_space<vmem>>, vector<1x16x8xbf16>
    %23 = vector.shape_cast %22 : vector<1x16x8xbf16> to vector<16x8xbf16>
    %cst_12 = arith.constant dense<0.000000e+00> : vector<16x1024xf32>
    %24 = tpu.matmul %23, %21, %cst_12 {dimension_numbers = #tpu.dot_dimension_numbers<[1], [0], [0], [1], [0, 0, 1, 1], [], []>} : vector<16x8xbf16>, vector<8x1024xbf16>, vector<16x1024xf32> -> vector<16x1024xf32>
    %25 = arith.addf %17, %24 : vector<16x1024xf32>
    %c128_i32 = arith.constant 128 : i32
    %26 = arith.addi %2, %c128_i32 : i32
    %27 = tpu.assume_multiple %26, 128 : i32
    %c0_13 = arith.constant 0 : index
    %28 = arith.index_cast %27 : i32 to index
    %29 = vector.load %arg2[%c0_13, %28] : memref<8x16640xbf16, #tpu.memory_space<vmem>>, vector<8x1024xbf16>
    %c3 = arith.constant 3 : index
    %c0_14 = arith.constant 0 : index
    %c0_15 = arith.constant 0 : index
    %30 = vector.load %arg5[%c3, %c0_14, %c0_15] : memref<9x16x8xbf16, #tpu.memory_space<vmem>>, vector<1x16x8xbf16>
    %31 = vector.shape_cast %30 : vector<1x16x8xbf16> to vector<16x8xbf16>
    %cst_16 = arith.constant dense<0.000000e+00> : vector<16x1024xf32>
    %32 = tpu.matmul %31, %29, %cst_16 {dimension_numbers = #tpu.dot_dimension_numbers<[1], [0], [0], [1], [0, 0, 1, 1], [], []>} : vector<16x8xbf16>, vector<8x1024xbf16>, vector<16x1024xf32> -> vector<16x1024xf32>
    %33 = arith.addf %25, %32 : vector<16x1024xf32>
    %c128_i32_17 = arith.constant 128 : i32
    %34 = arith.addi %2, %c128_i32_17 : i32
    %35 = tpu.assume_multiple %34, 128 : i32
    %c0_18 = arith.constant 0 : index
    %36 = arith.index_cast %35 : i32 to index
    %37 = vector.load %arg3[%c0_18, %36] : memref<8x16640xbf16, #tpu.memory_space<vmem>>, vector<8x1024xbf16>
    %c4 = arith.constant 4 : index
    %c0_19 = arith.constant 0 : index
    %c0_20 = arith.constant 0 : index
    %38 = vector.load %arg5[%c4, %c0_19, %c0_20] : memref<9x16x8xbf16, #tpu.memory_space<vmem>>, vector<1x16x8xbf16>
    %39 = vector.shape_cast %38 : vector<1x16x8xbf16> to vector<16x8xbf16>
    %cst_21 = arith.constant dense<0.000000e+00> : vector<16x1024xf32>
    %40 = tpu.matmul %39, %37, %cst_21 {dimension_numbers = #tpu.dot_dimension_numbers<[1], [0], [0], [1], [0, 0, 1, 1], [], []>} : vector<16x8xbf16>, vector<8x1024xbf16>, vector<16x1024xf32> -> vector<16x1024xf32>
    %41 = arith.addf %33, %40 : vector<16x1024xf32>
    %c128_i32_22 = arith.constant 128 : i32
    %42 = arith.addi %2, %c128_i32_22 : i32
    %43 = tpu.assume_multiple %42, 128 : i32
    %c0_23 = arith.constant 0 : index
    %44 = arith.index_cast %43 : i32 to index
    %45 = vector.load %arg4[%c0_23, %44] : memref<8x16640xbf16, #tpu.memory_space<vmem>>, vector<8x1024xbf16>
    %c5 = arith.constant 5 : index
    %c0_24 = arith.constant 0 : index
    %c0_25 = arith.constant 0 : index
    %46 = vector.load %arg5[%c5, %c0_24, %c0_25] : memref<9x16x8xbf16, #tpu.memory_space<vmem>>, vector<1x16x8xbf16>
    %47 = vector.shape_cast %46 : vector<1x16x8xbf16> to vector<16x8xbf16>
    %cst_26 = arith.constant dense<0.000000e+00> : vector<16x1024xf32>
    %48 = tpu.matmul %47, %45, %cst_26 {dimension_numbers = #tpu.dot_dimension_numbers<[1], [0], [0], [1], [0, 0, 1, 1], [], []>} : vector<16x8xbf16>, vector<8x1024xbf16>, vector<16x1024xf32> -> vector<16x1024xf32>
    %49 = arith.addf %41, %48 : vector<16x1024xf32>
    %c256_i32 = arith.constant 256 : i32
    %50 = arith.addi %2, %c256_i32 : i32
    %51 = tpu.assume_multiple %50, 128 : i32
    %c0_27 = arith.constant 0 : index
    %52 = arith.index_cast %51 : i32 to index
    %53 = vector.load %arg2[%c0_27, %52] : memref<8x16640xbf16, #tpu.memory_space<vmem>>, vector<8x1024xbf16>
    %c6 = arith.constant 6 : index
    %c0_28 = arith.constant 0 : index
    %c0_29 = arith.constant 0 : index
    %54 = vector.load %arg5[%c6, %c0_28, %c0_29] : memref<9x16x8xbf16, #tpu.memory_space<vmem>>, vector<1x16x8xbf16>
    %55 = vector.shape_cast %54 : vector<1x16x8xbf16> to vector<16x8xbf16>
    %cst_30 = arith.constant dense<0.000000e+00> : vector<16x1024xf32>
    %56 = tpu.matmul %55, %53, %cst_30 {dimension_numbers = #tpu.dot_dimension_numbers<[1], [0], [0], [1], [0, 0, 1, 1], [], []>} : vector<16x8xbf16>, vector<8x1024xbf16>, vector<16x1024xf32> -> vector<16x1024xf32>
    %57 = arith.addf %49, %56 : vector<16x1024xf32>
    %c256_i32_31 = arith.constant 256 : i32
    %58 = arith.addi %2, %c256_i32_31 : i32
    %59 = tpu.assume_multiple %58, 128 : i32
    %c0_32 = arith.constant 0 : index
    %60 = arith.index_cast %59 : i32 to index
    %61 = vector.load %arg3[%c0_32, %60] : memref<8x16640xbf16, #tpu.memory_space<vmem>>, vector<8x1024xbf16>
    %c7 = arith.constant 7 : index
    %c0_33 = arith.constant 0 : index
    %c0_34 = arith.constant 0 : index
    %62 = vector.load %arg5[%c7, %c0_33, %c0_34] : memref<9x16x8xbf16, #tpu.memory_space<vmem>>, vector<1x16x8xbf16>
    %63 = vector.shape_cast %62 : vector<1x16x8xbf16> to vector<16x8xbf16>
    %cst_35 = arith.constant dense<0.000000e+00> : vector<16x1024xf32>
    %64 = tpu.matmul %63, %61, %cst_35 {dimension_numbers = #tpu.dot_dimension_numbers<[1], [0], [0], [1], [0, 0, 1, 1], [], []>} : vector<16x8xbf16>, vector<8x1024xbf16>, vector<16x1024xf32> -> vector<16x1024xf32>
    %65 = arith.addf %57, %64 : vector<16x1024xf32>
    %c256_i32_36 = arith.constant 256 : i32
    %66 = arith.addi %2, %c256_i32_36 : i32
    %67 = tpu.assume_multiple %66, 128 : i32
    %c0_37 = arith.constant 0 : index
    %68 = arith.index_cast %67 : i32 to index
    %69 = vector.load %arg4[%c0_37, %68] : memref<8x16640xbf16, #tpu.memory_space<vmem>>, vector<8x1024xbf16>
    %c8 = arith.constant 8 : index
    %c0_38 = arith.constant 0 : index
    %c0_39 = arith.constant 0 : index
    %70 = vector.load %arg5[%c8, %c0_38, %c0_39] : memref<9x16x8xbf16, #tpu.memory_space<vmem>>, vector<1x16x8xbf16>
    %71 = vector.shape_cast %70 : vector<1x16x8xbf16> to vector<16x8xbf16>
    %cst_40 = arith.constant dense<0.000000e+00> : vector<16x1024xf32>
    %72 = tpu.matmul %71, %69, %cst_40 {dimension_numbers = #tpu.dot_dimension_numbers<[1], [0], [0], [1], [0, 0, 1, 1], [], []>} : vector<16x8xbf16>, vector<8x1024xbf16>, vector<16x1024xf32> -> vector<16x1024xf32>
    %73 = arith.addf %65, %72 : vector<16x1024xf32>
    %c0_41 = arith.constant 0 : index
    %c0_42 = arith.constant 0 : index
    %74 = vector.load %arg6[%c0_41, %c0_42] : memref<16x1xf32, #tpu.memory_space<vmem>>, vector<16x1xf32>
    %75 = vector.broadcast %74 : vector<16x1xf32> to vector<16x1024xf32>
    %76 = arith.addf %73, %75 : vector<16x1024xf32>
    %cst_43 = arith.constant 0.000000e+00 : f32
    %77 = vector.broadcast %cst_43 : f32 to vector<16x1024xf32>
    %78 = arith.maximumf %76, %77 : vector<16x1024xf32>
    %79 = arith.truncf %78 : vector<16x1024xf32> to vector<16x1024xbf16>
    %c0_44 = arith.constant 0 : index
    %c0_45 = arith.constant 0 : index
    %80 = vector.load %arg7[%c0_44, %c0_45] : memref<16x1024xbf16, #tpu.memory_space<vmem>>, vector<16x1024xbf16>
    tpu.vector_store %arg7[%c0_44, %c0_45], %79 {strides = array<i32>} : memref<16x1024xbf16, #tpu.memory_space<vmem>>, vector<16x1024xbf16>,
    return
  }
  func.func @transform_0(%arg0: i32, %arg1: i32) -> (i32, i32) {
    %c0_i32 = arith.constant 0 : i32
    %c0_i32_0 = arith.constant 0 : i32
    %c0_i32_1 = arith.constant 0 : i32
    return %c0_i32, %c0_i32_0 : i32, i32
  }
  func.func @transform_1(%arg0: i32, %arg1: i32) -> (i32, i32) {
    %c0_i32 = arith.constant 0 : i32
    %c0_i32_0 = arith.constant 0 : i32
    %c0_i32_1 = arith.constant 0 : i32
    return %c0_i32, %c0_i32_0 : i32, i32
  }
  func.func @transform_2(%arg0: i32, %arg1: i32) -> (i32, i32) {
    %c0_i32 = arith.constant 0 : i32
    %c0_i32_0 = arith.constant 0 : i32
    %c0_i32_1 = arith.constant 0 : i32
    return %c0_i32, %c0_i32_0 : i32, i32
  }
  func.func @transform_3(%arg0: i32, %arg1: i32) -> (i32, i32, i32) {
    %c0_i32 = arith.constant 0 : i32
    %c0_i32_0 = arith.constant 0 : i32
    %c0_i32_1 = arith.constant 0 : i32
    %c0_i32_2 = arith.constant 0 : i32
    return %c0_i32, %c0_i32_0, %c0_i32_1 : i32, i32, i32
  }
  func.func @transform_4(%arg0: i32, %arg1: i32) -> (i32, i32) {
    %c0_i32 = arith.constant 0 : i32
    %c0_i32_0 = arith.constant 0 : i32
    %c0_i32_1 = arith.constant 0 : i32
    return %c0_i32, %c0_i32_0 : i32, i32
  }
  func.func @transform_5(%arg0: i32, %arg1: i32) -> (i32, i32) {
    %c16_i32 = arith.constant 16 : i32
    %0 = arith.muli %arg0, %c16_i32 : i32
    %1 = arith.addi %0, %arg1 : i32
    %c0_i32 = arith.constant 0 : i32
    %c0_i32_0 = arith.constant 0 : i32
    return %c0_i32, %1 : i32, i32
  }
}

module attributes {stable_mosaic.version = 11 : i64} {
  func.func @_conv_taps_kernel(%arg0: i32, %arg1: i32, %arg2: memref<8x66048xbf16, #tpu.memory_space<vmem>>, %arg3: memref<8x66048xbf16, #tpu.memory_space<vmem>>, %arg4: memref<8x66048xbf16, #tpu.memory_space<vmem>>, %arg5: memref<9x4x8xbf16, #tpu.memory_space<vmem>>, %arg6: memref<4x1xf32, #tpu.memory_space<vmem>>, %arg7: memref<4x4096xbf16, #tpu.memory_space<vmem>>) attributes {dimension_semantics = [#tpu.dimension_semantics<parallel>, #tpu.dimension_semantics<parallel>], iteration_bounds = array<i64: 1, 16>, scalar_prefetch = 0 : i64, scratch_operands = 0 : i64, tpu.core_type = #tpu.core_type<tc>, window_params = [{pipeline_mode = #tpu.pipeline_mode<synchronous>, transform_indices = @transform_0, window_bounds = array<i64: 8, 66048>}, {pipeline_mode = #tpu.pipeline_mode<synchronous>, transform_indices = @transform_1, window_bounds = array<i64: 8, 66048>}, {pipeline_mode = #tpu.pipeline_mode<synchronous>, transform_indices = @transform_2, window_bounds = array<i64: 8, 66048>}, {pipeline_mode = #tpu.pipeline_mode<synchronous>, transform_indices = @transform_3, window_bounds = array<i64: 9, 4, 8>}, {pipeline_mode = #tpu.pipeline_mode<synchronous>, transform_indices = @transform_4, window_bounds = array<i64: 4, 1>}, {transform_indices = @transform_5, window_bounds = array<i64: 4, 4096>}]} {
    %c66048_i32 = arith.constant 66048 : i32
    %0 = arith.muli %arg0, %c66048_i32 : i32
    %c4096_i32 = arith.constant 4096 : i32
    %1 = arith.muli %arg1, %c4096_i32 : i32
    %2 = arith.addi %0, %1 : i32
    %c0_i32 = arith.constant 0 : i32
    %3 = arith.addi %2, %c0_i32 : i32
    %4 = tpu.assume_multiple %3, 128 : i32
    %c0 = arith.constant 0 : index
    %5 = arith.index_cast %4 : i32 to index
    %6 = vector.load %arg2[%c0, %5] : memref<8x66048xbf16, #tpu.memory_space<vmem>>, vector<8x4096xbf16>
    %c0_0 = arith.constant 0 : index
    %c0_1 = arith.constant 0 : index
    %c0_2 = arith.constant 0 : index
    %7 = vector.load %arg5[%c0_0, %c0_1, %c0_2] : memref<9x4x8xbf16, #tpu.memory_space<vmem>>, vector<1x4x8xbf16>
    %8 = vector.shape_cast %7 : vector<1x4x8xbf16> to vector<4x8xbf16>
    %cst = arith.constant dense<0.000000e+00> : vector<4x4096xf32>
    %9 = tpu.matmul %8, %6, %cst {dimension_numbers = #tpu.dot_dimension_numbers<[1], [0], [0], [1], [0, 0, 1, 1], [], []>} : vector<4x8xbf16>, vector<8x4096xbf16>, vector<4x4096xf32> -> vector<4x4096xf32>
    %c0_i32_3 = arith.constant 0 : i32
    %10 = arith.addi %2, %c0_i32_3 : i32
    %11 = tpu.assume_multiple %10, 128 : i32
    %c0_4 = arith.constant 0 : index
    %12 = arith.index_cast %11 : i32 to index
    %13 = vector.load %arg3[%c0_4, %12] : memref<8x66048xbf16, #tpu.memory_space<vmem>>, vector<8x4096xbf16>
    %c1 = arith.constant 1 : index
    %c0_5 = arith.constant 0 : index
    %c0_6 = arith.constant 0 : index
    %14 = vector.load %arg5[%c1, %c0_5, %c0_6] : memref<9x4x8xbf16, #tpu.memory_space<vmem>>, vector<1x4x8xbf16>
    %15 = vector.shape_cast %14 : vector<1x4x8xbf16> to vector<4x8xbf16>
    %cst_7 = arith.constant dense<0.000000e+00> : vector<4x4096xf32>
    %16 = tpu.matmul %15, %13, %cst_7 {dimension_numbers = #tpu.dot_dimension_numbers<[1], [0], [0], [1], [0, 0, 1, 1], [], []>} : vector<4x8xbf16>, vector<8x4096xbf16>, vector<4x4096xf32> -> vector<4x4096xf32>
    %17 = arith.addf %9, %16 : vector<4x4096xf32>
    %c0_i32_8 = arith.constant 0 : i32
    %18 = arith.addi %2, %c0_i32_8 : i32
    %19 = tpu.assume_multiple %18, 128 : i32
    %c0_9 = arith.constant 0 : index
    %20 = arith.index_cast %19 : i32 to index
    %21 = vector.load %arg4[%c0_9, %20] : memref<8x66048xbf16, #tpu.memory_space<vmem>>, vector<8x4096xbf16>
    %c2 = arith.constant 2 : index
    %c0_10 = arith.constant 0 : index
    %c0_11 = arith.constant 0 : index
    %22 = vector.load %arg5[%c2, %c0_10, %c0_11] : memref<9x4x8xbf16, #tpu.memory_space<vmem>>, vector<1x4x8xbf16>
    %23 = vector.shape_cast %22 : vector<1x4x8xbf16> to vector<4x8xbf16>
    %cst_12 = arith.constant dense<0.000000e+00> : vector<4x4096xf32>
    %24 = tpu.matmul %23, %21, %cst_12 {dimension_numbers = #tpu.dot_dimension_numbers<[1], [0], [0], [1], [0, 0, 1, 1], [], []>} : vector<4x8xbf16>, vector<8x4096xbf16>, vector<4x4096xf32> -> vector<4x4096xf32>
    %25 = arith.addf %17, %24 : vector<4x4096xf32>
    %c256_i32 = arith.constant 256 : i32
    %26 = arith.addi %2, %c256_i32 : i32
    %27 = tpu.assume_multiple %26, 128 : i32
    %c0_13 = arith.constant 0 : index
    %28 = arith.index_cast %27 : i32 to index
    %29 = vector.load %arg2[%c0_13, %28] : memref<8x66048xbf16, #tpu.memory_space<vmem>>, vector<8x4096xbf16>
    %c3 = arith.constant 3 : index
    %c0_14 = arith.constant 0 : index
    %c0_15 = arith.constant 0 : index
    %30 = vector.load %arg5[%c3, %c0_14, %c0_15] : memref<9x4x8xbf16, #tpu.memory_space<vmem>>, vector<1x4x8xbf16>
    %31 = vector.shape_cast %30 : vector<1x4x8xbf16> to vector<4x8xbf16>
    %cst_16 = arith.constant dense<0.000000e+00> : vector<4x4096xf32>
    %32 = tpu.matmul %31, %29, %cst_16 {dimension_numbers = #tpu.dot_dimension_numbers<[1], [0], [0], [1], [0, 0, 1, 1], [], []>} : vector<4x8xbf16>, vector<8x4096xbf16>, vector<4x4096xf32> -> vector<4x4096xf32>
    %33 = arith.addf %25, %32 : vector<4x4096xf32>
    %c256_i32_17 = arith.constant 256 : i32
    %34 = arith.addi %2, %c256_i32_17 : i32
    %35 = tpu.assume_multiple %34, 128 : i32
    %c0_18 = arith.constant 0 : index
    %36 = arith.index_cast %35 : i32 to index
    %37 = vector.load %arg3[%c0_18, %36] : memref<8x66048xbf16, #tpu.memory_space<vmem>>, vector<8x4096xbf16>
    %c4 = arith.constant 4 : index
    %c0_19 = arith.constant 0 : index
    %c0_20 = arith.constant 0 : index
    %38 = vector.load %arg5[%c4, %c0_19, %c0_20] : memref<9x4x8xbf16, #tpu.memory_space<vmem>>, vector<1x4x8xbf16>
    %39 = vector.shape_cast %38 : vector<1x4x8xbf16> to vector<4x8xbf16>
    %cst_21 = arith.constant dense<0.000000e+00> : vector<4x4096xf32>
    %40 = tpu.matmul %39, %37, %cst_21 {dimension_numbers = #tpu.dot_dimension_numbers<[1], [0], [0], [1], [0, 0, 1, 1], [], []>} : vector<4x8xbf16>, vector<8x4096xbf16>, vector<4x4096xf32> -> vector<4x4096xf32>
    %41 = arith.addf %33, %40 : vector<4x4096xf32>
    %c256_i32_22 = arith.constant 256 : i32
    %42 = arith.addi %2, %c256_i32_22 : i32
    %43 = tpu.assume_multiple %42, 128 : i32
    %c0_23 = arith.constant 0 : index
    %44 = arith.index_cast %43 : i32 to index
    %45 = vector.load %arg4[%c0_23, %44] : memref<8x66048xbf16, #tpu.memory_space<vmem>>, vector<8x4096xbf16>
    %c5 = arith.constant 5 : index
    %c0_24 = arith.constant 0 : index
    %c0_25 = arith.constant 0 : index
    %46 = vector.load %arg5[%c5, %c0_24, %c0_25] : memref<9x4x8xbf16, #tpu.memory_space<vmem>>, vector<1x4x8xbf16>
    %47 = vector.shape_cast %46 : vector<1x4x8xbf16> to vector<4x8xbf16>
    %cst_26 = arith.constant dense<0.000000e+00> : vector<4x4096xf32>
    %48 = tpu.matmul %47, %45, %cst_26 {dimension_numbers = #tpu.dot_dimension_numbers<[1], [0], [0], [1], [0, 0, 1, 1], [], []>} : vector<4x8xbf16>, vector<8x4096xbf16>, vector<4x4096xf32> -> vector<4x4096xf32>
    %49 = arith.addf %41, %48 : vector<4x4096xf32>
    %c512_i32 = arith.constant 512 : i32
    %50 = arith.addi %2, %c512_i32 : i32
    %51 = tpu.assume_multiple %50, 128 : i32
    %c0_27 = arith.constant 0 : index
    %52 = arith.index_cast %51 : i32 to index
    %53 = vector.load %arg2[%c0_27, %52] : memref<8x66048xbf16, #tpu.memory_space<vmem>>, vector<8x4096xbf16>
    %c6 = arith.constant 6 : index
    %c0_28 = arith.constant 0 : index
    %c0_29 = arith.constant 0 : index
    %54 = vector.load %arg5[%c6, %c0_28, %c0_29] : memref<9x4x8xbf16, #tpu.memory_space<vmem>>, vector<1x4x8xbf16>
    %55 = vector.shape_cast %54 : vector<1x4x8xbf16> to vector<4x8xbf16>
    %cst_30 = arith.constant dense<0.000000e+00> : vector<4x4096xf32>
    %56 = tpu.matmul %55, %53, %cst_30 {dimension_numbers = #tpu.dot_dimension_numbers<[1], [0], [0], [1], [0, 0, 1, 1], [], []>} : vector<4x8xbf16>, vector<8x4096xbf16>, vector<4x4096xf32> -> vector<4x4096xf32>
    %57 = arith.addf %49, %56 : vector<4x4096xf32>
    %c512_i32_31 = arith.constant 512 : i32
    %58 = arith.addi %2, %c512_i32_31 : i32
    %59 = tpu.assume_multiple %58, 128 : i32
    %c0_32 = arith.constant 0 : index
    %60 = arith.index_cast %59 : i32 to index
    %61 = vector.load %arg3[%c0_32, %60] : memref<8x66048xbf16, #tpu.memory_space<vmem>>, vector<8x4096xbf16>
    %c7 = arith.constant 7 : index
    %c0_33 = arith.constant 0 : index
    %c0_34 = arith.constant 0 : index
    %62 = vector.load %arg5[%c7, %c0_33, %c0_34] : memref<9x4x8xbf16, #tpu.memory_space<vmem>>, vector<1x4x8xbf16>
    %63 = vector.shape_cast %62 : vector<1x4x8xbf16> to vector<4x8xbf16>
    %cst_35 = arith.constant dense<0.000000e+00> : vector<4x4096xf32>
    %64 = tpu.matmul %63, %61, %cst_35 {dimension_numbers = #tpu.dot_dimension_numbers<[1], [0], [0], [1], [0, 0, 1, 1], [], []>} : vector<4x8xbf16>, vector<8x4096xbf16>, vector<4x4096xf32> -> vector<4x4096xf32>
    %65 = arith.addf %57, %64 : vector<4x4096xf32>
    %c512_i32_36 = arith.constant 512 : i32
    %66 = arith.addi %2, %c512_i32_36 : i32
    %67 = tpu.assume_multiple %66, 128 : i32
    %c0_37 = arith.constant 0 : index
    %68 = arith.index_cast %67 : i32 to index
    %69 = vector.load %arg4[%c0_37, %68] : memref<8x66048xbf16, #tpu.memory_space<vmem>>, vector<8x4096xbf16>
    %c8 = arith.constant 8 : index
    %c0_38 = arith.constant 0 : index
    %c0_39 = arith.constant 0 : index
    %70 = vector.load %arg5[%c8, %c0_38, %c0_39] : memref<9x4x8xbf16, #tpu.memory_space<vmem>>, vector<1x4x8xbf16>
    %71 = vector.shape_cast %70 : vector<1x4x8xbf16> to vector<4x8xbf16>
    %cst_40 = arith.constant dense<0.000000e+00> : vector<4x4096xf32>
    %72 = tpu.matmul %71, %69, %cst_40 {dimension_numbers = #tpu.dot_dimension_numbers<[1], [0], [0], [1], [0, 0, 1, 1], [], []>} : vector<4x8xbf16>, vector<8x4096xbf16>, vector<4x4096xf32> -> vector<4x4096xf32>
    %73 = arith.addf %65, %72 : vector<4x4096xf32>
    %c0_41 = arith.constant 0 : index
    %c0_42 = arith.constant 0 : index
    %74 = vector.load %arg6[%c0_41, %c0_42] : memref<4x1xf32, #tpu.memory_space<vmem>>, vector<4x1xf32>
    %75 = vector.broadcast %74 : vector<4x1xf32> to vector<4x4096xf32>
    %76 = arith.addf %73, %75 : vector<4x4096xf32>
    %77 = arith.truncf %76 : vector<4x4096xf32> to vector<4x4096xbf16>
    %c0_43 = arith.constant 0 : index
    %c0_44 = arith.constant 0 : index
    %78 = vector.load %arg7[%c0_43, %c0_44] : memref<4x4096xbf16, #tpu.memory_space<vmem>>, vector<4x4096xbf16>
    tpu.vector_store %arg7[%c0_43, %c0_44], %77 {strides = array<i32>} : memref<4x4096xbf16, #tpu.memory_space<vmem>>, vector<4x4096xbf16>,
    return
  }
  func.func @transform_0(%arg0: i32, %arg1: i32) -> (i32, i32) {
    %c0_i32 = arith.constant 0 : i32
    %c0_i32_0 = arith.constant 0 : i32
    %c0_i32_1 = arith.constant 0 : i32
    return %c0_i32, %c0_i32_0 : i32, i32
  }
  func.func @transform_1(%arg0: i32, %arg1: i32) -> (i32, i32) {
    %c0_i32 = arith.constant 0 : i32
    %c0_i32_0 = arith.constant 0 : i32
    %c0_i32_1 = arith.constant 0 : i32
    return %c0_i32, %c0_i32_0 : i32, i32
  }
  func.func @transform_2(%arg0: i32, %arg1: i32) -> (i32, i32) {
    %c0_i32 = arith.constant 0 : i32
    %c0_i32_0 = arith.constant 0 : i32
    %c0_i32_1 = arith.constant 0 : i32
    return %c0_i32, %c0_i32_0 : i32, i32
  }
  func.func @transform_3(%arg0: i32, %arg1: i32) -> (i32, i32, i32) {
    %c0_i32 = arith.constant 0 : i32
    %c0_i32_0 = arith.constant 0 : i32
    %c0_i32_1 = arith.constant 0 : i32
    %c0_i32_2 = arith.constant 0 : i32
    return %c0_i32, %c0_i32_0, %c0_i32_1 : i32, i32, i32
  }
  func.func @transform_4(%arg0: i32, %arg1: i32) -> (i32, i32) {
    %c0_i32 = arith.constant 0 : i32
    %c0_i32_0 = arith.constant 0 : i32
    %c0_i32_1 = arith.constant 0 : i32
    return %c0_i32, %c0_i32_0 : i32, i32
  }
  func.func @transform_5(%arg0: i32, %arg1: i32) -> (i32, i32) {
    %c16_i32 = arith.constant 16 : i32
    %0 = arith.muli %arg0, %c16_i32 : i32
    %1 = arith.addi %0, %arg1 : i32
    %c0_i32 = arith.constant 0 : i32
    %c0_i32_0 = arith.constant 0 : i32
    return %c0_i32, %1 : i32, i32
  }
}

</mosaic_0001>

<bundles_post_ra>
// kernel: unet_forward.4
= control target key start
LH: loop header
LB: loop body
LE: loop exit
PB: predicated region body
PF: predicated region fallthrough
CT: control target
= control target key end

     0   :  { %s4606_s15 = smov 0   ;;  %s4608_s16 = smov 0   ;;  %s5468_s0 = inlined_call_operand.vmem [shape: bf16[4,65792], index: 0, kind: input, shape index: {}]   ;;  %s5469_s1 = inlined_call_operand.vmem [shape: bf16[4,65792], index: 1, kind: input, shape index: {}]   ;;  %s5470_s2 = inlined_call_operand.vmem [shape: bf16[4,4,4], index: 2, kind: input, shape index: {}]   ;;  %s5471_s3 = inlined_call_operand.vmem [shape: f32[4,1], index: 3, kind: input, shape index: {}]   ;;  %s5472_s4 = inlined_call_operand.vmem [shape: bf16[4,65536], index: 4, kind: output, shape index: {}]  }
   0x1   :  { %s4610_s17 = smov 0  }
   0x2 LB: > { %s23_s18 = sadd.s32 1, %s4573_s16  ;;  %p4339_p0 = scmp.ge.s32.totalorder %s4577_s17, 1  ;;  %s4577_s17 = sphi %s4610_s17, %s14_s17   ;;  %s4573_s16 = sphi %s4608_s16, %s5474_s16   ;;  %s4569_s15 = sphi %s4606_s15, %s5473_s15  }
   0x3   : > { %p24_p1 = scmp.ge.s32.totalorder %s23_s18, 16  ;;  %p168_p2 = scmp.lt.s32.totalorder %s4577_s17, 17 }
   0x5   : > { %s5476_s18 = smov (%p24_p1, %s23_s18), 0  ;;  %p169_p3 = pnand %p4339_p0, %p168_p2 }
   0x6   : > { %s4342_s19 = sshll.u32 (!%p169_p3), %s4569_s15, 12  ;;  %v242_v0 = vlaneseq (!%p169_p3)  ;;  %v4579_v1 = vmov (!%p169_p3), 1983009808   ;;  %v4580_v3 = vmov (!%p169_p3), 0   ;;  %vm378_vm0 = vcmask (!%p169_p3), 1041408   ;;  %s4340_s25 = sshll.u32 (!%p169_p3), %s4569_s15, 5 }
   0x7   : > { %172 = sbr.rel (%p169_p3) target bundleno = 497 (0x1f1), region = 36  ;;  %s4629_s20 = sshra.s32 (!%p169_p3), %s4342_s19, 7  ;;  %v240_v2 = vunpack.c.l.s4 (!%p169_p3), %v4579_v1  ;;  %507 = vmatprep.mubr.bf16.mxu0 (!%p169_p3), %v4580_v3  ;;  %548 = vmatprep.mubr.bf16.mxu1 (!%p169_p3), %v4580_v3  ;;  %v4661_v26 = vld [vmem:[%s5470_s2 + $0x2] sm:$0x3] (!%p169_p3)  ;;  %vm374_vm1 = vcmask (!%p169_p3), 31744  }
   0x8   : > { %s4343_s21 = sshll.u32 (!%p169_p3), %s4629_s20, 1  ;;  %v243_v4 = vshrl.u32 (!%p169_p3), %v242_v0, 7  ;;  %4522 = vset.pattern.permute.xlu0 (!%p169_p3), %v4580_v3  ;;  %s2030_s6 = sadd.s32 (!%p169_p3), 256, %s4342_s19 }
   0x9   : > { %s4640_s24 = scalar_lea.vmem (!%p169_p3), %s5469_s1, %s4343_s21  ;;  %v241_v5 = vunpack.c.0.s8 (!%p169_p3), %v240_v2  ;;  %s4728_s29 = scalar_lea.vmem (!%p169_p3), %s5468_s0, %s4343_s21 }
   0xa   : > { %v220_v6 = vld [vmem:[%s4640_s24] sm:$0xff] (!%p169_p3)  ;;  %v221_v7 = vld [vmem:[%s4640_s24 + $0x8] sm:$0xff] (!%p169_p3)  ;;  %v222_v8 = vld [vmem:[%s4640_s24 + $0x10] sm:$0xff] (!%p169_p3)  ;;  %s2031_s7 = sshra.s32 (!%p169_p3), %s2030_s6, 7  ;;  %p194_p4 = scmp.lt.s32.totalorder (!%p169_p3), %s4340_s25, 511 }
   0xb   : > { %v4645_v9 = vsub.s32 (!%p169_p3), %v241_v5, %v243_v4  ;;  %v238_v10 = vcombine.high (!%p169_p3), %v220_v6, %v220_v6  ;;  %v255_v11 = vcombine.high (!%p169_p3), %v221_v7, %v221_v7  ;;  %v272_v12 = vcombine.high (!%p169_p3), %v222_v8, %v222_v8  ;;  %v223_v25 = vld [vmem:[%s4640_s24 + $0x18] sm:$0xff] (!%p169_p3)  ;;  %v224_v34 = vld [vmem:[%s4640_s24 + $0x20] sm:$0xff] (!%p169_p3)  ;;  %v225_v42 = vld [vmem:[%s4640_s24 + $0x28] sm:$0xff] (!%p169_p3)  ;;  %s4835_s8 = sshll.u32 (!%p169_p3), %s2031_s7, 1 }
   0xc   : > { %v289_v31 = vcombine.high (!%p169_p3), %v223_v25, %v223_v25  ;;  %v306_v39 = vcombine.high (!%p169_p3), %v224_v34, %v224_v34  ;;  %v323_v47 = vcombine.high (!%p169_p3), %v225_v42, %v225_v42  ;;  %v226_v50 = vld [vmem:[%s4640_s24 + $0x30] sm:$0xff] (!%p169_p3)  ;;  %v227_v58 = vld [vmem:[%s4640_s24 + $0x38] sm:$0xff] (!%p169_p3)  ;;  %v209_v2 = vld [vmem:[%s4728_s29] sm:$0xff] (!%p169_p3)  ;;  %s4847_s11 = scalar_lea.vmem (!%p169_p3), %s5468_s0, %s4835_s8  ;;  %s4965_s22 = scalar_lea.vmem (!%p169_p3), %s5469_s1, %s4835_s8 }
   0xd   : > { %v245_v13 = vrot.slane (!%p169_p3), %v220_v6, %v4645_v9  ;;  %v252_v14 = vrot.slane (!%p169_p3), %v238_v10, %v4645_v9  ;;  %v262_v15 = vrot.slane (!%p169_p3), %v221_v7, %v4645_v9  ;;  %v269_v16 = vrot.slane (!%p169_p3), %v255_v11, %v4645_v9 }
   0xe   : > { %v279_v23 = vrot.slane %v222_v8, %v4645_v9  ;;  %v286_v24 = vrot.slane %v272_v12, %v4645_v9  ;;  %v296_v32 = vrot.slane %v223_v25, %v4645_v9  ;;  %v303_v33 = vrot.slane %v289_v31, %v4645_v9  ;;  %v210_v12 = vld [vmem:[%s4728_s29 + $0x8] sm:$0xff]  ;;  %s5478_s25 = smov (!%p194_p4, %s4340_s25), 511 }
   0xf   : > { %v253_v17 = vcombine.high %v245_v13, %v245_v13  ;;  %v254_v18 = vcombine.high %v252_v14, %v252_v14  ;;  %v380_v19 = vsel %vm378_vm0, %v245_v13, 0  ;;  %v386_v20 = vsel %vm378_vm0, %v252_v14, 0  ;;  %s4341_s15 = sshll.u32 %s5478_s25, 1 }
  0x10   : > { %v270_v21 = vcombine.high %v262_v15, %v262_v15  ;;  %v271_v22 = vcombine.high %v269_v16, %v269_v16  ;;  %v392_v27 = vsel %vm378_vm0, %v262_v15, 0  ;;  %v398_v28 = vsel %vm378_vm0, %v269_v16, 0  ;;  %s5387_s28 = scalar_lea.vmem %s5472_s4, %s4341_s15 }
  0x11   : > { %4346 = vmatprep.subr.msk.bf16.mxu0 %vm378_vm0, %v253_v17  ;;  %4348 = vmatprep.subr.msk.bf16.mxu1 %vm378_vm0, %v254_v18  ;;  %v287_v29 = vcombine.high %v279_v23, %v279_v23  ;;  %v288_v30 = vcombine.high %v286_v24, %v286_v24  ;;  %v404_v35 = vsel %vm378_vm0, %v279_v23, 0  ;;  %v410_v36 = vsel %vm378_vm0, %v286_v24, 0 }
  0x12   : > { %476 = vmatpush1.bf16.msra.mxu0 %v380_v19  ;;  %517 = vmatpush1.bf16.msra.mxu1 %v386_v20  ;;  %v304_v37 = vcombine.high %v296_v32, %v296_v32  ;;  %v305_v38 = vcombine.high %v303_v33, %v303_v33  ;;  %v313_v40 = vrot.slane %v224_v34, %v4645_v9  ;;  %v416_v43 = vsel %vm378_vm0, %v296_v32, 0  ;;  %v211_v20 = vld [vmem:[%s4728_s29 + $0x10] sm:$0xff] }
  0x13   : > { %4350 = vmatprep.subr.msk.bf16.mxu0 %vm378_vm0, %v270_v21  ;;  %4352 = vmatprep.subr.msk.bf16.mxu1 %vm378_vm0, %v271_v22  ;;  %v320_v41 = vrot.slane %v306_v39, %v4645_v9  ;;  %v422_v44 = vsel %vm378_vm0, %v303_v33, 0  ;;  %v330_v48 = vrot.slane %v225_v42, %v4645_v9  ;;  %v337_v49 = vrot.slane %v323_v47, %v4645_v9 }
  0x14   : > { %v321_v45 = vcombine.high %v313_v40, %v313_v40  ;;  %v428_v51 = vsel %vm378_vm0, %v313_v40, 0  ;;  %v340_v55 = vcombine.high %v226_v50, %v226_v50  ;;  %v347_v56 = vrot.slane %v226_v50, %v4645_v9 }
  0x15   : > { %4347 = vmatmul.mubr.msk.bf16.vlgmr.msra.gmra.mrb[0].mxu0 %vm374_vm1, %v4661_v26  ;;  %4349 = vmatmul.mubr.msk.bf16.vlgmr.msra.gmra.mrb[0].mxu1 %vm374_vm1, %v4661_v26  ;;  %v322_v46 = vcombine.high %v320_v41, %v320_v41  ;;  %v434_v52 = vsel %vm378_vm0, %v320_v41, 0  ;;  %v338_v53 = vcombine.high %v330_v48, %v330_v48  ;;  %v339_v54 = vcombine.high %v337_v49, %v337_v49 }
  0x16   : > { %558 = vmatpush1.bf16.msra.mxu0 %v392_v27  ;;  %599 = vmatpush1.bf16.msra.mxu1 %v398_v28  ;;  %v354_v57 = vrot.slane %v340_v55, %v4645_v9  ;;  %v440_v59 = vsel %vm378_vm0, %v330_v48, 0  ;;  %v446_v60 = vsel %vm378_vm0, %v337_v49, 0  ;;  %v355_v61 = vcombine.high %v347_v56, %v347_v56 }
  0x17   : > { %589 = vmatprep.mubr.bf16.mxu0 %v4580_v3  ;;  %630 = vmatprep.mubr.bf16.mxu1 %v4580_v3  ;;  %v357_v63 = vcombine.high %v227_v58, %v227_v58  ;;  %v364_v0 = vrot.slane %v227_v58, %v4645_v9  ;;  %v452_v4 = vsel %vm378_vm0, %v347_v56, 0  ;;  %v1139_v8 = vcombine.high %v209_v2, %v209_v2 }
  0x18   : > { %4354 = vmatprep.subr.msk.bf16.mxu0 %vm378_vm0, %v287_v29  ;;  %4356 = vmatprep.subr.msk.bf16.mxu1 %vm378_vm0, %v288_v30  ;;  %v356_v62 = vcombine.high %v354_v57, %v354_v57  ;;  %v458_v5 = vsel %vm378_vm0, %v354_v57, 0  ;;  %v1146_v10 = vrot.slane %v209_v2, %v4645_v9  ;;  %v1156_v17 = vcombine.high %v210_v12, %v210_v12  ;;  %v212_v29 = vld [vmem:[%s4728_s29 + $0x18] sm:$0xff]  ;;  %v4779_v30 = vld [vmem:[%s5470_s2] sm:$0x3] }
  0x19   : > { %v371_v1 = vrot.slane %v357_v63, %v4645_v9  ;;  %v372_v6 = vcombine.high %v364_v0, %v364_v0  ;;  %v1153_v11 = vrot.slane %v1139_v8, %v4645_v9  ;;  %v464_v13 = vsel %vm378_vm0, %v364_v0, 0 }
  0x1a   : > { %v1154_v15 = vcombine.high %v1146_v10, %v1146_v10  ;;  %v1163_v18 = vrot.slane %v210_v12, %v4645_v9  ;;  %v1170_v19 = vrot.slane %v1156_v17, %v4645_v9  ;;  %v1279_v21 = vsel %vm378_vm0, %v1146_v10, 0 }
  0x1b   : > { %v373_v7 = vcombine.high %v371_v1, %v371_v1  ;;  %v470_v14 = vsel %vm378_vm0, %v371_v1, 0  ;;  %v1155_v16 = vcombine.high %v1153_v11, %v1153_v11  ;;  %v1285_v22 = vsel %vm378_vm0, %v1153_v11, 0 }
  0x1c   : > { %v1171_v23 = vcombine.high %v1163_v18, %v1163_v18  ;;  %v1172_v24 = vcombine.high %v1170_v19, %v1170_v19  ;;  %v1173_v25 = vcombine.high %v211_v20, %v211_v20  ;;  %v1180_v27 = vrot.slane %v211_v20, %v4645_v9 }
  0x1d   : > { %4351 = vmatmul.mubr.msk.bf16.vlgmr.msra.gmra.mrb[4].mxu0 %vm374_vm1, %v4661_v26  ;;  %4353 = vmatmul.mubr.msk.bf16.vlgmr.msra.gmra.mrb[4].mxu1 %vm374_vm1, %v4661_v26  ;;  %v1297_v31 = vsel %vm378_vm0, %v1170_v19, 0  ;;  %v1190_v34 = vcombine.high %v212_v29, %v212_v29 }
  0x1e   : > { %640 = vmatpush1.bf16.msra.mxu0 %v404_v35  ;;  %681 = vmatpush1.bf16.msra.mxu1 %v410_v36  ;;  %v1187_v28 = vrot.slane %v1173_v25, %v4645_v9  ;;  %v1188_v32 = vcombine.high %v1180_v27, %v1180_v27  ;;  %v1197_v35 = vrot.slane %v212_v29, %v4645_v9 }
  0x1f   : > { %671 = vmatprep.mubr.bf16.mxu0 %v4580_v3  ;;  %712 = vmatprep.mubr.bf16.mxu1 %v4580_v3  ;;  %v1204_v36 = vrot.slane %v1190_v34, %v4645_v9 }
  0x20   : > { %4358 = vmatprep.subr.msk.bf16.mxu0 %vm378_vm0, %v304_v37  ;;  %4360 = vmatprep.subr.msk.bf16.mxu1 %vm378_vm0, %v305_v38  ;;  %v1189_v33 = vcombine.high %v1187_v28, %v1187_v28  ;;  %v213_v37 = vld [vmem:[%s4728_s29 + $0x20] sm:$0xff]  ;;  %v1303_v38 = vsel %vm378_vm0, %v1180_v27, 0  ;;  %v1309_v39 = vsel %vm378_vm0, %v1187_v28, 0  ;;  %v1205_v40 = vcombine.high %v1197_v35, %v1197_v35 }
  0x21   : > { %v1206_v41 = vcombine.high %v1204_v36, %v1204_v36  ;;  %v1207_v42 = vcombine.high %v213_v37, %v213_v37  ;;  %v1321_v47 = vsel %vm378_vm0, %v1204_v36, 0 }
  0x25   : > { %4355 = vmatmul.mubr.msk.bf16.vlgmr.msra.gmra.mrb[8].mxu0 %vm374_vm1, %v4661_v26  ;;  %4357 = vmatmul.mubr.msk.bf16.vlgmr.msra.gmra.mrb[8].mxu1 %vm374_vm1, %v4661_v26 }
  0x26   : > { %722 = vmatpush1.bf16.msra.mxu0 %v416_v43  ;;  %763 = vmatpush1.bf16.msra.mxu1 %v422_v44  ;;  %v1214_v43 = vrot.slane %v213_v37, %v4645_v9  ;;  %v1221_v44 = vrot.slane %v1207_v42, %v4645_v9 }
  0x27   : > { %753 = vmatprep.mubr.bf16.mxu0 %v4580_v3  ;;  %794 = vmatprep.mubr.bf16.mxu1 %v4580_v3 }
  0x28   : > { %4362 = vmatprep.subr.msk.bf16.mxu0 %vm378_vm0, %v321_v45  ;;  %4364 = vmatprep.subr.msk.bf16.mxu1 %vm378_vm0, %v322_v46  ;;  %v214_v45 = vld [vmem:[%s4728_s29 + $0x28] sm:$0xff]  ;;  %v1315_v46 = vsel %vm378_vm0, %v1197_v35, 0  ;;  %v1222_v48 = vcombine.high %v1214_v43, %v1214_v43  ;;  %v1223_v49 = vcombine.high %v1221_v44, %v1221_v44  ;;  %v1333_v55 = vsel %vm378_vm0, %v1221_v44, 0 }
  0x29   : > { %v1224_v50 = vcombine.high %v214_v45, %v214_v45 }
  0x2d   : > { %4359 = vmatmul.mubr.msk.bf16.vlgmr.msra.gmra.mrb[12].mxu0 %vm374_vm1, %v4661_v26  ;;  %4361 = vmatmul.mubr.msk.bf16.vlgmr.msra.gmra.mrb[12].mxu1 %vm374_vm1, %v4661_v26 }
  0x2e   : > { %804 = vmatpush1.bf16.msra.mxu0 %v428_v51  ;;  %845 = vmatpush1.bf16.msra.mxu1 %v434_v52  ;;  %v1231_v51 = vrot.slane %v214_v45, %v4645_v9  ;;  %v1238_v52 = vrot.slane %v1224_v50, %v4645_v9 }
  0x2f   : > { %835 = vmatprep.mubr.bf16.mxu0 %v4580_v3  ;;  %876 = vmatprep.mubr.bf16.mxu1 %v4580_v3 }
  0x30   : > { %4366 = vmatprep.subr.msk.bf16.mxu0 %vm378_vm0, %v338_v53  ;;  %4368 = vmatprep.subr.msk.bf16.mxu1 %vm378_vm0, %v339_v54  ;;  %v215_v53 = vld [vmem:[%s4728_s29 + $0x30] sm:$0xff]  ;;  %v1327_v54 = vsel %vm378_vm0, %v1214_v43, 0  ;;  %v1239_v56 = vcombine.high %v1231_v51, %v1231_v51  ;;  %v1240_v57 = vcombine.high %v1238_v52, %v1238_v52  ;;  %v1345_v63 = vsel %vm378_vm0, %v1238_v52, 0 }
  0x31   : > { %v1241_v58 = vcombine.high %v215_v53, %v215_v53 }
  0x35   : > { %4363 = vmatmul.mubr.msk.bf16.vlgmr.msra.gmra.mrb[16].mxu0 %vm374_vm1, %v4661_v26  ;;  %4365 = vmatmul.mubr.msk.bf16.vlgmr.msra.gmra.mrb[16].mxu1 %vm374_vm1, %v4661_v26 }
  0x36   : > { %886 = vmatpush1.bf16.msra.mxu0 %v440_v59  ;;  %927 = vmatpush1.bf16.msra.mxu1 %v446_v60  ;;  %v1248_v59 = vrot.slane %v215_v53, %v4645_v9  ;;  %v1255_v60 = vrot.slane %v1241_v58, %v4645_v9 }
  0x37   : > { %917 = vmatprep.mubr.bf16.mxu0 %v4580_v3  ;;  %958 = vmatprep.mubr.bf16.mxu1 %v4580_v3 }
  0x38   : > { %4370 = vmatprep.subr.msk.bf16.mxu0 %vm378_vm0, %v355_v61  ;;  %4372 = vmatprep.subr.msk.bf16.mxu1 %vm378_vm0, %v356_v62  ;;  %v216_v61 = vld [vmem:[%s4728_s29 + $0x38] sm:$0xff]  ;;  %v1339_v62 = vsel %vm378_vm0, %v1231_v51, 0  ;;  %v1256_v0 = vcombine.high %v1248_v59, %v1248_v59  ;;  %v1257_v1 = vcombine.high %v1255_v60, %v1255_v60  ;;  %v1357_v8 = vsel %vm378_vm0, %v1255_v60, 0 }
  0x39   : > { %v1258_v2 = vcombine.high %v216_v61, %v216_v61 }
  0x3d   : > { %4367 = vmatmul.mubr.msk.bf16.vlgmr.msra.gmra.mrb[20].mxu0 %vm374_vm1, %v4661_v26  ;;  %4369 = vmatmul.mubr.msk.bf16.vlgmr.msra.gmra.mrb[20].mxu1 %vm374_vm1, %v4661_v26 }
  0x3e   : > { %968 = vmatpush1.bf16.msra.mxu0 %v452_v4  ;;  %1009 = vmatpush1.bf16.msra.mxu1 %v458_v5  ;;  %v1265_v4 = vrot.slane %v216_v61, %v4645_v9  ;;  %v1272_v5 = vrot.slane %v1258_v2, %v4645_v9 }
  0x3f   : > { %999 = vmatprep.mubr.bf16.mxu0 %v4580_v3  ;;  %1040 = vmatprep.mubr.bf16.mxu1 %v4580_v3 }
  0x40   : > { %4374 = vmatprep.subr.msk.bf16.mxu0 %vm378_vm0, %v372_v6  ;;  %4376 = vmatprep.subr.msk.bf16.mxu1 %vm378_vm0, %v373_v7  ;;  %v2035_v6 = vld [vmem:[%s4847_s11] sm:$0xff]  ;;  %v1351_v7 = vsel %vm378_vm0, %v1248_v59, 0  ;;  %v1273_v10 = vcombine.high %v1265_v4, %v1265_v4  ;;  %v1274_v11 = vcombine.high %v1272_v5, %v1272_v5  ;;  %v1369_v17 = vsel %vm378_vm0, %v1272_v5, 0 }
  0x41   : > { %v2053_v12 = vcombine.high %v2035_v6, %v2035_v6 }
  0x45   : > { %4371 = vmatmul.mubr.msk.bf16.vlgmr.msra.gmra.mrb[24].mxu0 %vm374_vm1, %v4661_v26  ;;  %4373 = vmatmul.mubr.msk.bf16.vlgmr.msra.gmra.mrb[24].mxu1 %vm374_vm1, %v4661_v26 }
  0x46   : > { %1050 = vmatpush1.bf16.msra.mxu0 %v464_v13  ;;  %1091 = vmatpush1.bf16.msra.mxu1 %v470_v14  ;;  %v2060_v13 = vrot.slane %v2035_v6, %v4645_v9  ;;  %v2067_v14 = vrot.slane %v2053_v12, %v4645_v9 }
  0x47   : > { %1081 = vmatprep.mubr.bf16.mxu0 %v4580_v3  ;;  %1122 = vmatprep.mubr.bf16.mxu1 %v4580_v3 }
  0x48   : > { %4378 = vmatprep.subr.msk.bf16.mxu0 %vm378_vm0, %v1154_v15  ;;  %4380 = vmatprep.subr.msk.bf16.mxu1 %vm378_vm0, %v1155_v16  ;;  %v2036_v15 = vld [vmem:[%s4847_s11 + $0x8] sm:$0xff]  ;;  %v1363_v16 = vsel %vm378_vm0, %v1265_v4, 0  ;;  %v2069_v19 = vcombine.high %v2067_v14, %v2067_v14  ;;  %v2199_v25 = vsel %vm378_vm0, %v2067_v14, 0 }
  0x49   : > { %v2070_v20 = vcombine.high %v2036_v15, %v2036_v15 }
  0x4d   : > { %4375 = vmatmul.mubr.msk.bf16.vlgmr.msra.gmra.mrb[28].mxu0 %vm374_vm1, %v4661_v26  ;;  %4377 = vmatmul.mubr.msk.bf16.vlgmr.msra.gmra.mrb[28].mxu1 %vm374_vm1, %v4661_v26  ;;  %v1291_v26 = vsel %vm378_vm0, %v1163_v18, 0  ;;  %v2068_v18 = vcombine.high %v2060_v13, %v2060_v13 }
  0x4e   : > { %1375 = vmatpush1.bf16.msra.mxu0 %v1279_v21  ;;  %1416 = vmatpush1.bf16.msra.mxu1 %v1285_v22  ;;  %v2077_v21 = vrot.slane %v2036_v15, %v4645_v9  ;;  %v2084_v22 = vrot.slane %v2070_v20, %v4645_v9 }
  0x4f   : > { %1406 = vmatprep.mubr.bf16.mxu0 %v4580_v3  ;;  %1447 = vmatprep.mubr.bf16.mxu1 %v4580_v3 }
  0x50   : > { %4382 = vmatprep.subr.msk.bf16.mxu0 %vm378_vm0, %v1171_v23  ;;  %4384 = vmatprep.subr.msk.bf16.mxu1 %vm378_vm0, %v1172_v24  ;;  %v2037_v23 = vld [vmem:[%s4847_s11 + $0x10] sm:$0xff]  ;;  %v2193_v24 = vsel %vm378_vm0, %v2060_v13, 0  ;;  %v2085_v27 = vcombine.high %v2077_v21, %v2077_v21  ;;  %v2086_v28 = vcombine.high %v2084_v22, %v2084_v22  ;;  %v2211_v34 = vsel %vm378_vm0, %v2084_v22, 0 }
  0x51   : > { %v2087_v29 = vcombine.high %v2037_v23, %v2037_v23 }
  0x55   : > { %4379 = vmatmul.mubr.msk.bf16.vlgmr.msra.gmra.mrb[32].mxu0 %vm374_vm1, %v4779_v30  ;;  %4381 = vmatmul.mubr.msk.bf16.vlgmr.msra.gmra.mrb[32].mxu1 %vm374_vm1, %v4779_v30 }
  0x56   : > { %1457 = vmatpush1.bf16.msra.mxu0 %v1291_v26  ;;  %1498 = vmatpush1.bf16.msra.mxu1 %v1297_v31  ;;  %v2094_v26 = vrot.slane %v2037_v23, %v4645_v9  ;;  %v2101_v31 = vrot.slane %v2087_v29, %v4645_v9 }
  0x57   : > { %1488 = vmatprep.mubr.bf16.mxu0 %v4580_v3  ;;  %1529 = vmatprep.mubr.bf16.mxu1 %v4580_v3 }
  0x58   : > { %4386 = vmatprep.subr.msk.bf16.mxu0 %vm378_vm0, %v1188_v32  ;;  %4388 = vmatprep.subr.msk.bf16.mxu1 %vm378_vm0, %v1189_v33  ;;  %v2038_v32 = vld [vmem:[%s4847_s11 + $0x18] sm:$0xff]  ;;  %v4898_v33 = vld [vmem:[%s5470_s2 + $0x4] sm:$0x3]  ;;  %v2102_v35 = vcombine.high %v2094_v26, %v2094_v26  ;;  %v2103_v36 = vcombine.high %v2101_v31, %v2101_v31  ;;  %v2223_v42 = vsel %vm378_vm0, %v2101_v31, 0 }
  0x59   : > { %v2104_v37 = vcombine.high %v2038_v32, %v2038_v32 }
  0x5d   : > { %4383 = vmatmul.mubr.msk.bf16.vlgmr.msra.gmra.mrb[36].mxu0 %vm374_vm1, %v4779_v30  ;;  %4385 = vmatmul.mubr.msk.bf16.vlgmr.msra.gmra.mrb[36].mxu1 %vm374_vm1, %v4779_v30 }
  0x5e   : > { %1539 = vmatpush1.bf16.msra.mxu0 %v1303_v38  ;;  %1580 = vmatpush1.bf16.msra.mxu1 %v1309_v39  ;;  %v2111_v38 = vrot.slane %v2038_v32, %v4645_v9  ;;  %v2118_v39 = vrot.slane %v2104_v37, %v4645_v9  ;;  %v5016_v37 = vld [vmem:[%s5470_s2 + $0x6] sm:$0x3] }
  0x5f   : > { %1570 = vmatprep.mubr.bf16.mxu0 %v4580_v3  ;;  %1611 = vmatprep.mubr.bf16.mxu1 %v4580_v3 }
  0x60   : > { %4390 = vmatprep.subr.msk.bf16.mxu0 %vm378_vm0, %v1205_v40  ;;  %4392 = vmatprep.subr.msk.bf16.mxu1 %vm378_vm0, %v1206_v41  ;;  %v2039_v40 = vld [vmem:[%s4847_s11 + $0x20] sm:$0xff]  ;;  %v2217_v41 = vsel %vm378_vm0, %v2094_v26, 0  ;;  %v2119_v43 = vcombine.high %v2111_v38, %v2111_v38  ;;  %v2120_v44 = vcombine.high %v2118_v39, %v2118_v39  ;;  %v2235_v50 = vsel %vm378_vm0, %v2118_v39, 0 }
  0x61   : > { %v2121_v45 = vcombine.high %v2039_v40, %v2039_v40 }
  0x65   : > { %4387 = vmatmul.mubr.msk.bf16.vlgmr.msra.gmra.mrb[40].mxu0 %vm374_vm1, %v4779_v30  ;;  %4389 = vmatmul.mubr.msk.bf16.vlgmr.msra.gmra.mrb[40].mxu1 %vm374_vm1, %v4779_v30 }
  0x66   : > { %1621 = vmatpush1.bf16.msra.mxu0 %v1315_v46  ;;  %1662 = vmatpush1.bf16.msra.mxu1 %v1321_v47  ;;  %v2128_v46 = vrot.slane %v2039_v40, %v4645_v9  ;;  %v2135_v47 = vrot.slane %v2121_v45, %v4645_v9 }
  0x67   : > { %1652 = vmatprep.mubr.bf16.mxu0 %v4580_v3  ;;  %1693 = vmatprep.mubr.bf16.mxu1 %v4580_v3 }
  0x68   : > { %4394 = vmatprep.subr.msk.bf16.mxu0 %vm378_vm0, %v1222_v48  ;;  %4396 = vmatprep.subr.msk.bf16.mxu1 %vm378_vm0, %v1223_v49  ;;  %v2040_v48 = vld [vmem:[%s4847_s11 + $0x28] sm:$0xff]  ;;  %v2229_v49 = vsel %vm378_vm0, %v2111_v38, 0  ;;  %v2136_v51 = vcombine.high %v2128_v46, %v2128_v46  ;;  %v2137_v52 = vcombine.high %v2135_v47, %v2135_v47  ;;  %v2241_v58 = vsel %vm378_vm0, %v2128_v46, 0 }
  0x69   : > { %v2138_v53 = vcombine.high %v2040_v48, %v2040_v48  ;;  %v2247_v59 = vsel %vm378_vm0, %v2135_v47, 0 }
  0x6d   : > { %4391 = vmatmul.mubr.msk.bf16.vlgmr.msra.gmra.mrb[44].mxu0 %vm374_vm1, %v4779_v30  ;;  %4393 = vmatmul.mubr.msk.bf16.vlgmr.msra.gmra.mrb[44].mxu1 %vm374_vm1, %v4779_v30 }
  0x6e   : > { %1703 = vmatpush1.bf16.msra.mxu0 %v1327_v54  ;;  %1744 = vmatpush1.bf16.msra.mxu1 %v1333_v55  ;;  %v2145_v54 = vrot.slane %v2040_v48, %v4645_v9  ;;  %v2152_v55 = vrot.slane %v2138_v53, %v4645_v9 }
  0x6f   : > { %1734 = vmatprep.mubr.bf16.mxu0 %v4580_v3  ;;  %1775 = vmatprep.mubr.bf16.mxu1 %v4580_v3 }
  0x70   : > { %4398 = vmatprep.subr.msk.bf16.mxu0 %vm378_vm0, %v1239_v56  ;;  %4400 = vmatprep.subr.msk.bf16.mxu1 %vm378_vm0, %v1240_v57  ;;  %v2041_v56 = vld [vmem:[%s4847_s11 + $0x30] sm:$0xff]  ;;  %v3919_v57 = vld [vmem:[%s5471_s3] sm:$0xf]  ;;  %v2153_v60 = vcombine.high %v2145_v54, %v2145_v54  ;;  %v2154_v61 = vcombine.high %v2152_v55, %v2152_v55  ;;  %v2253_v2 = vsel %vm378_vm0, %v2145_v54, 0  ;;  %v2259_v4 = vsel %vm378_vm0, %v2152_v55, 0 }
  0x71   : > { %3922 = vperm.xlu0 %4522, %v3919_v57  }
  0x75   : > { %4395 = vmatmul.mubr.msk.bf16.vlgmr.msra.gmra.mrb[48].mxu0 %vm374_vm1, %v4779_v30  ;;  %4397 = vmatmul.mubr.msk.bf16.vlgmr.msra.gmra.mrb[48].mxu1 %vm374_vm1, %v4779_v30 }
  0x76   : > { %1785 = vmatpush1.bf16.msra.mxu0 %v1339_v62  ;;  %1826 = vmatpush1.bf16.msra.mxu1 %v1345_v63  ;;  %v2155_v62 = vcombine.high %v2041_v56, %v2041_v56  ;;  %v2162_v63 = vrot.slane %v2041_v56, %v4645_v9 }
  0x77   : > { %1816 = vmatprep.mubr.bf16.mxu0 %v4580_v3  ;;  %1857 = vmatprep.mubr.bf16.mxu1 %v4580_v3 }
  0x78   : > { %4402 = vmatprep.subr.msk.bf16.mxu0 %vm378_vm0, %v1256_v0  ;;  %4404 = vmatprep.subr.msk.bf16.mxu1 %vm378_vm0, %v1257_v1  ;;  %v2169_v0 = vrot.slane %v2155_v62, %v4645_v9  ;;  %v2042_v1 = vld [vmem:[%s4847_s11 + $0x38] sm:$0xff]  ;;  %v2170_v5 = vcombine.high %v2162_v63, %v2162_v63  ;;  %v2265_v12 = vsel %vm378_vm0, %v2162_v63, 0 }
  0x7a   : > { %v2171_v6 = vcombine.high %v2169_v0, %v2169_v0  ;;  %v2271_v13 = vsel %vm378_vm0, %v2169_v0, 0  ;;  %v2984_v0 = vld [vmem:[%s4965_s22 + $0x30] sm:$0xff] }
  0x7d   : > { %4399 = vmatmul.mubr.msk.bf16.vlgmr.msra.gmra.mrb[52].mxu0 %vm374_vm1, %v4779_v30  ;;  %4401 = vmatmul.mubr.msk.bf16.vlgmr.msra.gmra.mrb[52].mxu1 %vm374_vm1, %v4779_v30 }
  0x7e   : > { %1867 = vmatpush1.bf16.msra.mxu0 %v1351_v7  ;;  %1908 = vmatpush1.bf16.msra.mxu1 %v1357_v8  ;;  %v2172_v7 = vcombine.high %v2042_v1, %v2042_v1  ;;  %v2179_v8 = vrot.slane %v2042_v1, %v4645_v9 }
  0x7f   : > { %1898 = vmatprep.mubr.bf16.mxu0 %v4580_v3  ;;  %1939 = vmatprep.mubr.bf16.mxu1 %v4580_v3 }
  0x80   : > { %4406 = vmatprep.subr.msk.bf16.mxu0 %vm378_vm0, %v1273_v10  ;;  %4408 = vmatprep.subr.msk.bf16.mxu1 %vm378_vm0, %v1274_v11  ;;  %v2186_v10 = vrot.slane %v2172_v7, %v4645_v9  ;;  %v2978_v11 = vld [vmem:[%s4965_s22] sm:$0xff]  ;;  %v2187_v14 = vcombine.high %v2179_v8, %v2179_v8  ;;  %v2277_v20 = vsel %vm378_vm0, %v2179_v8, 0 }
  0x82   : > { %v2188_v15 = vcombine.high %v2186_v10, %v2186_v10 }
  0x85   : > { %4403 = vmatmul.mubr.msk.bf16.vlgmr.msra.gmra.mrb[56].mxu0 %vm374_vm1, %v4779_v30  ;;  %4405 = vmatmul.mubr.msk.bf16.vlgmr.msra.gmra.mrb[56].mxu1 %vm374_vm1, %v4779_v30 }
  0x86   : > { %1949 = vmatpush1.bf16.msra.mxu0 %v1363_v16  ;;  %1990 = vmatpush1.bf16.msra.mxu1 %v1369_v17  ;;  %v2996_v16 = vcombine.high %v2978_v11, %v2978_v11  ;;  %v3003_v17 = vrot.slane %v2978_v11, %v4645_v9  ;;  %v3098_v11 = vcombine.high %v2984_v0, %v2984_v0 }
  0x87   : > { %1980 = vmatprep.mubr.bf16.mxu0 %v4580_v3  ;;  %2021 = vmatprep.mubr.bf16.mxu1 %v4580_v3 }
  0x88   : > { %4412 = vmatprep.subr.msk.bf16.mxu0 %vm378_vm0, %v2068_v18  ;;  %4414 = vmatprep.subr.msk.bf16.mxu1 %vm378_vm0, %v2069_v19  ;;  %v3010_v18 = vrot.slane %v2996_v16, %v4645_v9  ;;  %v2979_v19 = vld [vmem:[%s4965_s22 + $0x8] sm:$0xff]  ;;  %v3011_v22 = vcombine.high %v3003_v17, %v3003_v17  ;;  %v3136_v29 = vsel %vm378_vm0, %v3003_v17, 0 }
  0x8a   : > { %v3012_v23 = vcombine.high %v3010_v18, %v3010_v18  ;;  %v3142_v26 = vsel %vm378_vm0, %v3010_v18, 0  ;;  %v2985_v18 = vld [vmem:[%s4965_s22 + $0x38] sm:$0xff] }
  0x8d   : > { %4407 = vmatmul.mubr.msk.bf16.vlgmr.msra.gmra.mrb[60].mxu0 %vm374_vm1, %v4779_v30  ;;  %4409 = vmatmul.mubr.msk.bf16.vlgmr.msra.gmra.mrb[60].mxu1 %vm374_vm1, %v4779_v30  ;;  %v2205_v30 = vsel %vm378_vm0, %v2077_v21, 0  ;;  %v2283_v21 = vsel %vm378_vm0, %v2186_v10, 0 }
  0x8e   : > { %2289 = vmatpush1.bf16.msra.mxu0 %v2193_v24  ;;  %2330 = vmatpush1.bf16.msra.mxu1 %v2199_v25  ;;  %v3013_v24 = vcombine.high %v2979_v19, %v2979_v19  ;;  %v3020_v25 = vrot.slane %v2979_v19, %v4645_v9 }
  0x8f   : > { %2320 = vmatprep.mubr.bf16.mxu0 %v4580_v3  ;;  %2361 = vmatprep.mubr.bf16.mxu1 %v4580_v3 }
  0x90   : > { %4416 = vmatprep.subr.msk.bf16.mxu0 %vm378_vm0, %v2085_v27  ;;  %4418 = vmatprep.subr.msk.bf16.mxu1 %vm378_vm0, %v2086_v28  ;;  %v3027_v27 = vrot.slane %v3013_v24, %v4645_v9  ;;  %v2980_v28 = vld [vmem:[%s4965_s22 + $0x10] sm:$0xff]  ;;  %v3028_v31 = vcombine.high %v3020_v25, %v3020_v25 }
  0x92   : > { %v3029_v32 = vcombine.high %v3027_v27, %v3027_v27  ;;  %v3154_v38 = vsel %vm378_vm0, %v3027_v27, 0 }
  0x95   : > { %4413 = vmatmul.mubr.msk.bf16.vlgmr.msra.gmra.mrb[64].mxu0 %vm374_vm1, %v4898_v33  ;;  %4415 = vmatmul.mubr.msk.bf16.vlgmr.msra.gmra.mrb[64].mxu1 %vm374_vm1, %v4898_v33 }
  0x96   : > { %2371 = vmatpush1.bf16.msra.mxu0 %v2205_v30  ;;  %2412 = vmatpush1.bf16.msra.mxu1 %v2211_v34  ;;  %v3030_v30 = vcombine.high %v2980_v28, %v2980_v28  ;;  %v3037_v34 = vrot.slane %v2980_v28, %v4645_v9  ;;  %v3115_v28 = vcombine.high %v2985_v18, %v2985_v18 }
  0x97   : > { %2402 = vmatprep.mubr.bf16.mxu0 %v4580_v3  ;;  %2443 = vmatprep.mubr.bf16.mxu1 %v4580_v3 }
  0x98   : > { %4420 = vmatprep.subr.msk.bf16.mxu0 %vm378_vm0, %v2102_v35  ;;  %4422 = vmatprep.subr.msk.bf16.mxu1 %vm378_vm0, %v2103_v36  ;;  %v3044_v35 = vrot.slane %v3030_v30, %v4645_v9  ;;  %v2981_v36 = vld [vmem:[%s4965_s22 + $0x18] sm:$0xff]  ;;  %v3045_v39 = vcombine.high %v3037_v34, %v3037_v34  ;;  %v3160_v45 = vsel %vm378_vm0, %v3037_v34, 0 }
  0x9a   : > { %v3046_v40 = vcombine.high %v3044_v35, %v3044_v35  ;;  %v3166_v46 = vsel %vm378_vm0, %v3044_v35, 0 }
  0x9d   : > { %4417 = vmatmul.mubr.msk.bf16.vlgmr.msra.gmra.mrb[68].mxu0 %vm374_vm1, %v4898_v33  ;;  %4419 = vmatmul.mubr.msk.bf16.vlgmr.msra.gmra.mrb[68].mxu1 %vm374_vm1, %v4898_v33 }
  0x9e   : > { %2453 = vmatpush1.bf16.msra.mxu0 %v2217_v41  ;;  %2494 = vmatpush1.bf16.msra.mxu1 %v2223_v42  ;;  %v3047_v41 = vcombine.high %v2981_v36, %v2981_v36  ;;  %v3054_v42 = vrot.slane %v2981_v36, %v4645_v9 }
  0x9f   : > { %2484 = vmatprep.mubr.bf16.mxu0 %v4580_v3  ;;  %2525 = vmatprep.mubr.bf16.mxu1 %v4580_v3 }
  0xa0   : > { %4424 = vmatprep.subr.msk.bf16.mxu0 %vm378_vm0, %v2119_v43  ;;  %4426 = vmatprep.subr.msk.bf16.mxu1 %vm378_vm0, %v2120_v44  ;;  %v3061_v43 = vrot.slane %v3047_v41, %v4645_v9  ;;  %v2982_v44 = vld [vmem:[%s4965_s22 + $0x20] sm:$0xff]  ;;  %v3062_v47 = vcombine.high %v3054_v42, %v3054_v42  ;;  %v3172_v53 = vsel %vm378_vm0, %v3054_v42, 0 }
  0xa2   : > { %v3063_v48 = vcombine.high %v3061_v43, %v3061_v43  ;;  %v3178_v54 = vsel %vm378_vm0, %v3061_v43, 0 }
  0xa5   : > { %4421 = vmatmul.mubr.msk.bf16.vlgmr.msra.gmra.mrb[72].mxu0 %vm374_vm1, %v4898_v33  ;;  %4423 = vmatmul.mubr.msk.bf16.vlgmr.msra.gmra.mrb[72].mxu1 %vm374_vm1, %v4898_v33 }
  0xa6   : > { %2535 = vmatpush1.bf16.msra.mxu0 %v2229_v49  ;;  %2576 = vmatpush1.bf16.msra.mxu1 %v2235_v50  ;;  %v3064_v49 = vcombine.high %v2982_v44, %v2982_v44  ;;  %v3071_v50 = vrot.slane %v2982_v44, %v4645_v9 }
  0xa7   : > { %2566 = vmatprep.mubr.bf16.mxu0 %v4580_v3  ;;  %2607 = vmatprep.mubr.bf16.mxu1 %v4580_v3 }
  0xa8   : > { %4428 = vmatprep.subr.msk.bf16.mxu0 %vm378_vm0, %v2136_v51  ;;  %4430 = vmatprep.subr.msk.bf16.mxu1 %vm378_vm0, %v2137_v52  ;;  %v3078_v51 = vrot.slane %v3064_v49, %v4645_v9  ;;  %v2983_v52 = vld [vmem:[%s4965_s22 + $0x28] sm:$0xff]  ;;  %v3079_v55 = vcombine.high %v3071_v50, %v3071_v50 }
  0xa9   : > { %v3081_v57 = vcombine.high %v2983_v52, %v2983_v52 }
  0xaa   : > { %v3080_v56 = vcombine.high %v3078_v51, %v3078_v51  ;;  %v3190_v7 = vsel %vm378_vm0, %v3078_v51, 0 }
  0xad   : > { %4425 = vmatmul.mubr.msk.bf16.vlgmr.msra.gmra.mrb[76].mxu0 %vm374_vm1, %v4898_v33  ;;  %4427 = vmatmul.mubr.msk.bf16.vlgmr.msra.gmra.mrb[76].mxu1 %vm374_vm1, %v4898_v33 }
  0xae   : > { %2617 = vmatpush1.bf16.msra.mxu0 %v2241_v58  ;;  %2658 = vmatpush1.bf16.msra.mxu1 %v2247_v59 }
  0xaf   : > { %2648 = vmatprep.mubr.bf16.mxu0 %v4580_v3  ;;  %2689 = vmatprep.mubr.bf16.mxu1 %v4580_v3 }
  0xb0   : > { %4432 = vmatprep.subr.msk.bf16.mxu0 %vm378_vm0, %v2153_v60  ;;  %4434 = vmatprep.subr.msk.bf16.mxu1 %vm378_vm0, %v2154_v61  ;;  %v3088_v60 = vrot.slane %v2983_v52, %v4645_v9  ;;  %v3095_v61 = vrot.slane %v3081_v57, %v4645_v9 }
  0xb2   : > { %v3096_v8 = vcombine.high %v3088_v60, %v3088_v60  ;;  %v3097_v10 = vcombine.high %v3095_v61, %v3095_v61  ;;  %v3202_v24 = vsel %vm378_vm0, %v3095_v61, 0 }
  0xb5   : > { %4429 = vmatmul.mubr.msk.bf16.vlgmr.msra.gmra.mrb[80].mxu0 %vm374_vm1, %v4898_v33  ;;  %4431 = vmatmul.mubr.msk.bf16.vlgmr.msra.gmra.mrb[80].mxu1 %vm374_vm1, %v4898_v33 }
  0xb6   : > { %2699 = vmatpush1.bf16.msra.mxu0 %v2253_v2  ;;  %2740 = vmatpush1.bf16.msra.mxu1 %v2259_v4 }
  0xb7   : > { %2730 = vmatprep.mubr.bf16.mxu0 %v4580_v3  ;;  %2771 = vmatprep.mubr.bf16.mxu1 %v4580_v3 }
  0xb8   : > { %4436 = vmatprep.subr.msk.bf16.mxu0 %vm378_vm0, %v2170_v5  ;;  %4438 = vmatprep.subr.msk.bf16.mxu1 %vm378_vm0, %v2171_v6  ;;  %v3184_v6 = vsel %vm378_vm0, %v3071_v50, 0 }
  0xbd   : > { %4433 = vmatmul.mubr.msk.bf16.vlgmr.msra.gmra.mrb[84].mxu0 %vm374_vm1, %v4898_v33  ;;  %4435 = vmatmul.mubr.msk.bf16.vlgmr.msra.gmra.mrb[84].mxu1 %vm374_vm1, %v4898_v33 }
  0xbe   : > { %2781 = vmatpush1.bf16.msra.mxu0 %v2265_v12  ;;  %2822 = vmatpush1.bf16.msra.mxu1 %v2271_v13 }
  0xbf   : > { %2812 = vmatprep.mubr.bf16.mxu0 %v4580_v3  ;;  %2853 = vmatprep.mubr.bf16.mxu1 %v4580_v3 }
  0xc0   : > { %4440 = vmatprep.subr.msk.bf16.mxu0 %vm378_vm0, %v2187_v14  ;;  %4442 = vmatprep.subr.msk.bf16.mxu1 %vm378_vm0, %v2188_v15  ;;  %v3105_v14 = vrot.slane %v2984_v0, %v4645_v9  ;;  %v3112_v15 = vrot.slane %v3098_v11, %v4645_v9 }
  0xc2   : > { %v3114_v27 = vcombine.high %v3112_v15, %v3112_v15 }
  0xc5   : > { %4437 = vmatmul.mubr.msk.bf16.vlgmr.msra.gmra.mrb[88].mxu0 %vm374_vm1, %v4898_v33  ;;  %4439 = vmatmul.mubr.msk.bf16.vlgmr.msra.gmra.mrb[88].mxu1 %vm374_vm1, %v4898_v33 }
  0xc6   : > { %2863 = vmatpush1.bf16.msra.mxu0 %v2277_v20  ;;  %2904 = vmatpush1.bf16.msra.mxu1 %v2283_v21 }
  0xc7   : > { %2894 = vmatprep.mubr.bf16.mxu0 %v4580_v3  ;;  %2935 = vmatprep.mubr.bf16.mxu1 %v4580_v3 }
  0xc8   : > { %4446 = vmatprep.subr.msk.bf16.mxu0 %vm378_vm0, %v3011_v22  ;;  %4448 = vmatprep.subr.msk.bf16.mxu1 %vm378_vm0, %v3012_v23  ;;  %v3196_v23 = vsel %vm378_vm0, %v3088_v60, 0 }
  0xcd   : > { %4441 = vmatmul.mubr.msk.bf16.vlgmr.msra.gmra.mrb[92].mxu0 %vm374_vm1, %v4898_v33  ;;  %4443 = vmatmul.mubr.msk.bf16.vlgmr.msra.gmra.mrb[92].mxu1 %vm374_vm1, %v4898_v33  ;;  %v3148_v33 = vsel %vm378_vm0, %v3020_v25, 0  ;;  %v3113_v25 = vcombine.high %v3105_v14, %v3105_v14 }
  0xce   : > { %3232 = vmatpush1.bf16.msra.mxu0 %v3136_v29  ;;  %3273 = vmatpush1.bf16.msra.mxu1 %v3142_v26 }
  0xcf   : > { %3263 = vmatprep.mubr.bf16.mxu0 %v4580_v3  ;;  %3304 = vmatprep.mubr.bf16.mxu1 %v4580_v3 }
  0xd0   : > { %4450 = vmatprep.subr.msk.bf16.mxu0 %vm378_vm0, %v3028_v31  ;;  %4452 = vmatprep.subr.msk.bf16.mxu1 %vm378_vm0, %v3029_v32  ;;  %v3122_v31 = vrot.slane %v2985_v18, %v4645_v9  ;;  %v3129_v32 = vrot.slane %v3115_v28, %v4645_v9 }
  0xd2   : > { %v3130_v41 = vcombine.high %v3122_v31, %v3122_v31  ;;  %v3131_v42 = vcombine.high %v3129_v32, %v3129_v32  ;;  %v3220_v51 = vsel %vm378_vm0, %v3122_v31, 0  ;;  %v3226_v52 = vsel %vm378_vm0, %v3129_v32, 0 }
  0xd5   : > { %4447 = vmatmul.mubr.msk.bf16.vlgmr.msra.gmra.mrb[96].mxu0 %vm374_vm1, %v5016_v37  ;;  %4449 = vmatmul.mubr.msk.bf16.vlgmr.msra.gmra.mrb[96].mxu1 %vm374_vm1, %v5016_v37 }
  0xd6   : > { %3314 = vmatpush1.bf16.msra.mxu0 %v3148_v33  ;;  %3355 = vmatpush1.bf16.msra.mxu1 %v3154_v38 }
  0xd7   : > { %3345 = vmatprep.mubr.bf16.mxu0 %v4580_v3  ;;  %3386 = vmatprep.mubr.bf16.mxu1 %v4580_v3 }
  0xd8   : > { %4454 = vmatprep.subr.msk.bf16.mxu0 %vm378_vm0, %v3045_v39  ;;  %4456 = vmatprep.subr.msk.bf16.mxu1 %vm378_vm0, %v3046_v40  ;;  %v3208_v39 = vsel %vm378_vm0, %v3105_v14, 0  ;;  %v3214_v40 = vsel %vm378_vm0, %v3112_v15, 0 }
  0xdd   : > { %4451 = vmatmul.mubr.msk.bf16.vlgmr.msra.gmra.mrb[100].mxu0 %vm374_vm1, %v5016_v37  ;;  %4453 = vmatmul.mubr.msk.bf16.vlgmr.msra.gmra.mrb[100].mxu1 %vm374_vm1, %v5016_v37 }
  0xde   : > { %3396 = vmatpush1.bf16.msra.mxu0 %v3160_v45  ;;  %3437 = vmatpush1.bf16.msra.mxu1 %v3166_v46 }
  0xdf   : > { %3427 = vmatprep.mubr.bf16.mxu0 %v4580_v3  ;;  %3468 = vmatprep.mubr.bf16.mxu1 %v4580_v3 }
  0xe0   : > { %4458 = vmatprep.subr.msk.bf16.mxu0 %vm378_vm0, %v3062_v47  ;;  %4460 = vmatprep.subr.msk.bf16.mxu1 %vm378_vm0, %v3063_v48 }
  0xe5   : > { %4455 = vmatmul.mubr.msk.bf16.vlgmr.msra.gmra.mrb[104].mxu0 %vm374_vm1, %v5016_v37  ;;  %4457 = vmatmul.mubr.msk.bf16.vlgmr.msra.gmra.mrb[104].mxu1 %vm374_vm1, %v5016_v37 }
  0xe6   : > { %3478 = vmatpush1.bf16.msra.mxu0 %v3172_v53  ;;  %3519 = vmatpush1.bf16.msra.mxu1 %v3178_v54 }
  0xe7   : > { %3509 = vmatprep.mubr.bf16.mxu0 %v4580_v3  ;;  %3550 = vmatprep.mubr.bf16.mxu1 %v4580_v3 }
  0xe8   : > { %v5052_v58 = vpop.f32.mrb[0].mxu0  ;;  %v5054_v59 = vpop.f32.mrb[0].mxu1  ;;  %4462 = vmatprep.subr.msk.bf16.mxu0 %vm378_vm0, %v3079_v55  ;;  %4464 = vmatprep.subr.msk.bf16.mxu1 %vm378_vm0, %v3080_v56 }
  0xe9   : > { %v5060_v62 = vpop.f32.mrb[1].mxu0  ;;  %v5062_v63 = vpop.f32.mrb[1].mxu1 }
  0xea   : > { %v513_v1 = vpop.f32.mrb[2].mxu0  ;;  %v554_v2 = vpop.f32.mrb[2].mxu1 }
  0xeb   : > { %v514_v4 = vpop.f32.mrb[3].mxu0  ;;  %v555_v5 = vpop.f32.mrb[3].mxu1 }
  0xed   : > { %4459 = vmatmul.mubr.msk.bf16.vlgmr.msra.gmra.mrb[108].mxu0 %vm374_vm1, %v5016_v37  ;;  %4461 = vmatmul.mubr.msk.bf16.vlgmr.msra.gmra.mrb[108].mxu1 %vm374_vm1, %v5016_v37 }
  0xee   : > { %3560 = vmatpush1.bf16.msra.mxu0 %v3184_v6  ;;  %3601 = vmatpush1.bf16.msra.mxu1 %v3190_v7 }
  0xef   : > { %3591 = vmatprep.mubr.bf16.mxu0 %v4580_v3  ;;  %3632 = vmatprep.mubr.bf16.mxu1 %v4580_v3 }
  0xf0   : > { %v5073_v12 = vpop.f32.mrb[4].mxu0  ;;  %v5075_v13 = vpop.f32.mrb[4].mxu1  ;;  %4466 = vmatprep.subr.msk.bf16.mxu0 %vm378_vm0, %v3096_v8  ;;  %4468 = vmatprep.subr.msk.bf16.mxu1 %vm378_vm0, %v3097_v10 }
  0xf1   : > { %v5081_v16 = vpop.f32.mrb[5].mxu0  ;;  %v5083_v17 = vpop.f32.mrb[5].mxu1 }
  0xf2   : > { %v595_v19 = vpop.f32.mrb[6].mxu0  ;;  %v636_v20 = vpop.f32.mrb[6].mxu1 }
  0xf3   : > { %v596_v21 = vpop.f32.mrb[7].mxu0  ;;  %v637_v22 = vpop.f32.mrb[7].mxu1 }
  0xf5   : > { %4463 = vmatmul.mubr.msk.bf16.vlgmr.msra.gmra.mrb[112].mxu0 %vm374_vm1, %v5016_v37  ;;  %4465 = vmatmul.mubr.msk.bf16.vlgmr.msra.gmra.mrb[112].mxu1 %vm374_vm1, %v5016_v37 }
  0xf6   : > { %3642 = vmatpush1.bf16.msra.mxu0 %v3196_v23  ;;  %3683 = vmatpush1.bf16.msra.mxu1 %v3202_v24 }
  0xf7   : > { %3673 = vmatprep.mubr.bf16.mxu0 %v4580_v3  ;;  %3714 = vmatprep.mubr.bf16.mxu1 %v4580_v3 }
  0xf8   : > { %v5094_v29 = vpop.f32.mrb[8].mxu0  ;;  %v5096_v26 = vpop.f32.mrb[8].mxu1  ;;  %4470 = vmatprep.subr.msk.bf16.mxu0 %vm378_vm0, %v3113_v25  ;;  %4472 = vmatprep.subr.msk.bf16.mxu1 %vm378_vm0, %v3114_v27 }
  0xf9   : > { %v5102_v30 = vpop.f32.mrb[9].mxu0  ;;  %v5104_v34 = vpop.f32.mrb[9].mxu1 }
  0xfa   : > { %v677_v35 = vpop.f32.mrb[10].mxu0  ;;  %v718_v36 = vpop.f32.mrb[10].mxu1 }
  0xfb   : > { %v678_v33 = vpop.f32.mrb[11].mxu0  ;;  %v719_v38 = vpop.f32.mrb[11].mxu1 }
  0xfd   : > { %4467 = vmatmul.mubr.msk.bf16.vlgmr.msra.gmra.mrb[116].mxu0 %vm374_vm1, %v5016_v37  ;;  %4469 = vmatmul.mubr.msk.bf16.vlgmr.msra.gmra.mrb[116].mxu1 %vm374_vm1, %v5016_v37 }
  0xfe   : > { %3724 = vmatpush1.bf16.msra.mxu0 %v3208_v39  ;;  %3765 = vmatpush1.bf16.msra.mxu1 %v3214_v40 }
  0xff   : > { %3755 = vmatprep.mubr.bf16.mxu0 %v4580_v3  ;;  %3796 = vmatprep.mubr.bf16.mxu1 %v4580_v3 }
 0x100   : > { %v5114_v43 = vpop.f32.mrb[12].mxu0  ;;  %v5116_v44 = vpop.f32.mrb[12].mxu1  ;;  %4474 = vmatprep.subr.msk.bf16.mxu0 %vm378_vm0, %v3130_v41  ;;  %4476 = vmatprep.subr.msk.bf16.mxu1 %vm378_vm0, %v3131_v42 }
 0x101   : > { %v5120_v45 = vpop.f32.mrb[13].mxu0  ;;  %v5122_v46 = vpop.f32.mrb[13].mxu1 }
 0x102   : > { %v759_v47 = vpop.f32.mrb[14].mxu0  ;;  %v800_v48 = vpop.f32.mrb[14].mxu1 }
 0x103   : > { %v760_v49 = vpop.f32.mrb[15].mxu0  ;;  %v801_v50 = vpop.f32.mrb[15].mxu1 }
 0x105   : > { %4471 = vmatmul.mubr.msk.bf16.vlgmr.msra.gmra.mrb[120].mxu0 %vm374_vm1, %v5016_v37  ;;  %4473 = vmatmul.mubr.msk.bf16.vlgmr.msra.gmra.mrb[120].mxu1 %vm374_vm1, %v5016_v37 }
 0x106   : > { %3806 = vmatpush1.bf16.msra.mxu0 %v3220_v51  ;;  %3847 = vmatpush1.bf16.msra.mxu1 %v3226_v52 }
 0x107   : > { %3837 = vmatprep.mubr.bf16.mxu0 %v4580_v3  ;;  %3878 = vmatprep.mubr.bf16.mxu1 %v4580_v3 }
 0x108   : > { %v5132_v53 = vpop.f32.mrb[16].mxu0  ;;  %v5134_v54 = vpop.f32.mrb[16].mxu1 }
 0x109   : > { %v5136_v55 = vpop.f32.mrb[17].mxu0  ;;  %v5138_v56 = vpop.f32.mrb[17].mxu1 }
 0x10a   : > { %v841_v57 = vpop.f32.mrb[18].mxu0  ;;  %v882_v60 = vpop.f32.mrb[18].mxu1 }
 0x10b   : > { %v842_v61 = vpop.f32.mrb[19].mxu0  ;;  %v883_v0 = vpop.f32.mrb[19].mxu1 }
 0x10d   : > { %4475 = vmatmul.mubr.msk.bf16.vlgmr.msra.gmra.mrb[124].mxu0 %vm374_vm1, %v5016_v37  ;;  %4477 = vmatmul.mubr.msk.bf16.vlgmr.msra.gmra.mrb[124].mxu1 %vm374_vm1, %v5016_v37 }
 0x110   : > { %v5144_v1 = vpop.f32.mrb[20].mxu0  ;;  %v5146_v3 = vpop.f32.mrb[20].mxu1 }
 0x111   : > { %v5148_v2 = vpop.f32.mrb[21].mxu0  ;;  %v5150_v4 = vpop.f32.mrb[21].mxu1 }
 0x112   : > { %v923_v5 = vpop.f32.mrb[22].mxu0  ;;  %v964_v6 = vpop.f32.mrb[22].mxu1 }
 0x113   : > { %v924_v7 = vpop.f32.mrb[23].mxu0  ;;  %v965_v8 = vpop.f32.mrb[23].mxu1 }
 0x118   : > { %v5152_v10 = vpop.f32.mrb[24].mxu0  ;;  %v5154_v11 = vpop.f32.mrb[24].mxu1 }
 0x119   : > { %v5156_v14 = vpop.f32.mrb[25].mxu0  ;;  %v5158_v15 = vpop.f32.mrb[25].mxu1 }
 0x11a   : > { %v1005_v37 = vpop.f32.mrb[26].mxu0  ;;  %v1046_v18 = vpop.f32.mrb[26].mxu1 }
 0x11b   : > { %v1006_v19 = vpop.f32.mrb[27].mxu0  ;;  %v1047_v20 = vpop.f32.mrb[27].mxu1 }
 0x120   : > { %v5160_v21 = vpop.f32.mrb[28].mxu0  ;;  %v5162_v22 = vpop.f32.mrb[28].mxu1 }
 0x121   : > { %v5164_v23 = vpop.f32.mrb[29].mxu0  ;;  %v5166_v24 = vpop.f32.mrb[29].mxu1 }
 0x122   : > { %v1087_v25 = vpop.f32.mrb[30].mxu0  ;;  %v1128_v27 = vpop.f32.mrb[30].mxu1 }
 0x123   : > { %v1088_v28 = vpop.f32.mrb[31].mxu0  ;;  %v1129_v31 = vpop.f32.mrb[31].mxu1 }
 0x128   : > { %v1408_v32 = vpop.f32.mrb[32].mxu0  ;;  %v1449_v35 = vpop.f32.mrb[32].mxu1 }
 0x129   : > { %v5169_v36 = vadd.f32 %v1408_v32, %v5052_v58  ;;  %v5172_v33 = vadd.f32 %v1449_v35, %v5054_v59  ;;  %v1410_v38 = vpop.f32.mrb[33].mxu0  ;;  %v1451_v39 = vpop.f32.mrb[33].mxu1 }
 0x12a   : > { %v5175_v40 = vadd.f32 %v1410_v38, %v5060_v62  ;;  %v5178_v41 = vadd.f32 %v1451_v39, %v5062_v63  ;;  %v1412_v42 = vpop.f32.mrb[34].mxu0  ;;  %v1453_v47 = vpop.f32.mrb[34].mxu1 }
 0x12b   : > { %v1413_v48 = vpop.f32.mrb[35].mxu0  ;;  %v1454_v49 = vpop.f32.mrb[35].mxu1 }
 0x130   : > { %v1490_v50 = vpop.f32.mrb[36].mxu0  ;;  %v1531_v51 = vpop.f32.mrb[36].mxu1 }
 0x131   : > { %v5181_v58 = vadd.f32 %v1490_v50, %v5073_v12  ;;  %v5184_v59 = vadd.f32 %v1531_v51, %v5075_v13  ;;  %v1492_v52 = vpop.f32.mrb[37].mxu0  ;;  %v1533_v57 = vpop.f32.mrb[37].mxu1 }
 0x132   : > { %v5187_v62 = vadd.f32 %v1492_v52, %v5081_v16  ;;  %v5190_v63 = vadd.f32 %v1533_v57, %v5083_v17  ;;  %v1494_v60 = vpop.f32.mrb[38].mxu0  ;;  %v1535_v61 = vpop.f32.mrb[38].mxu1 }
 0x133   : > { %v1495_v0 = vpop.f32.mrb[39].mxu0  ;;  %v1536_v5 = vpop.f32.mrb[39].mxu1 }
 0x138   : > { %v1572_v6 = vpop.f32.mrb[40].mxu0  ;;  %v1613_v7 = vpop.f32.mrb[40].mxu1 }
 0x139   : > { %v5193_v12 = vadd.f32 %v1572_v6, %v5094_v29  ;;  %v5196_v13 = vadd.f32 %v1613_v7, %v5096_v26  ;;  %v1574_v8 = vpop.f32.mrb[41].mxu0  ;;  %v1615_v37 = vpop.f32.mrb[41].mxu1 }
 0x13a   : > { %v5199_v16 = vadd.f32 %v1574_v8, %v5102_v30  ;;  %v5202_v17 = vadd.f32 %v1615_v37, %v5104_v34  ;;  %v1576_v18 = vpop.f32.mrb[42].mxu0  ;;  %v1617_v19 = vpop.f32.mrb[42].mxu1 }
 0x13b   : > { %v1577_v20 = vpop.f32.mrb[43].mxu0  ;;  %v1618_v25 = vpop.f32.mrb[43].mxu1 }
 0x140   : > { %v1654_v27 = vpop.f32.mrb[44].mxu0  ;;  %v1695_v28 = vpop.f32.mrb[44].mxu1 }
 0x141   : > { %v5205_v29 = vadd.f32 %v1654_v27, %v5114_v43  ;;  %v5208_v26 = vadd.f32 %v1695_v28, %v5116_v44  ;;  %v1656_v31 = vpop.f32.mrb[45].mxu0  ;;  %v1697_v32 = vpop.f32.mrb[45].mxu1 }
 0x142   : > { %v5211_v30 = vadd.f32 %v1656_v31, %v5120_v45  ;;  %v5214_v34 = vadd.f32 %v1697_v32, %v5122_v46  ;;  %v1658_v35 = vpop.f32.mrb[46].mxu0  ;;  %v1699_v38 = vpop.f32.mrb[46].mxu1 }
 0x143   : > { %v1659_v39 = vpop.f32.mrb[47].mxu0  ;;  %v1700_v42 = vpop.f32.mrb[47].mxu1 }
 0x148   : > { %v1736_v47 = vpop.f32.mrb[48].mxu0  ;;  %v1777_v48 = vpop.f32.mrb[48].mxu1 }
 0x149   : > { %v5217_v43 = vadd.f32 %v1736_v47, %v5132_v53  ;;  %v5220_v44 = vadd.f32 %v1777_v48, %v5134_v54  ;;  %v1738_v49 = vpop.f32.mrb[49].mxu0  ;;  %v1779_v50 = vpop.f32.mrb[49].mxu1 }
 0x14a   : > { %v5223_v45 = vadd.f32 %v1738_v49, %v5136_v55  ;;  %v5226_v46 = vadd.f32 %v1779_v50, %v5138_v56  ;;  %v1740_v51 = vpop.f32.mrb[50].mxu0  ;;  %v1781_v52 = vpop.f32.mrb[50].mxu1 }
 0x14b   : > { %v1741_v57 = vpop.f32.mrb[51].mxu0  ;;  %v1782_v60 = vpop.f32.mrb[51].mxu1 }
 0x150   : > { %v1818_v61 = vpop.f32.mrb[52].mxu0  ;;  %v1859_v0 = vpop.f32.mrb[52].mxu1 }
 0x151   : > { %v5229_v53 = vadd.f32 %v1818_v61, %v5144_v1  ;;  %v5232_v54 = vadd.f32 %v1859_v0, %v5146_v3  ;;  %v1820_v5 = vpop.f32.mrb[53].mxu0  ;;  %v1861_v6 = vpop.f32.mrb[53].mxu1 }
 0x152   : > { %v5235_v55 = vadd.f32 %v1820_v5, %v5148_v2  ;;  %v5238_v56 = vadd.f32 %v1861_v6, %v5150_v4  ;;  %v1822_v7 = vpop.f32.mrb[54].mxu0  ;;  %v1863_v8 = vpop.f32.mrb[54].mxu1 }
 0x153   : > { %v1823_v37 = vpop.f32.mrb[55].mxu0  ;;  %v1864_v18 = vpop.f32.mrb[55].mxu1 }
 0x158   : > { %v1900_v19 = vpop.f32.mrb[56].mxu0  ;;  %v1941_v20 = vpop.f32.mrb[56].mxu1 }
 0x159   : > { %v5241_v1 = vadd.f32 %v1900_v19, %v5152_v10  ;;  %v5244_v3 = vadd.f32 %v1941_v20, %v5154_v11  ;;  %v1902_v25 = vpop.f32.mrb[57].mxu0  ;;  %v1943_v27 = vpop.f32.mrb[57].mxu1 }
 0x15a   : > { %v5247_v2 = vadd.f32 %v1902_v25, %v5156_v14  ;;  %v5250_v4 = vadd.f32 %v1943_v27, %v5158_v15  ;;  %v1904_v28 = vpop.f32.mrb[58].mxu0  ;;  %v1945_v31 = vpop.f32.mrb[58].mxu1 }
 0x15b   : > { %v1905_v32 = vpop.f32.mrb[59].mxu0  ;;  %v1946_v35 = vpop.f32.mrb[59].mxu1 }
 0x160   : > { %v1982_v38 = vpop.f32.mrb[60].mxu0  ;;  %v2023_v39 = vpop.f32.mrb[60].mxu1 }
 0x161   : > { %v5253_v10 = vadd.f32 %v1982_v38, %v5160_v21  ;;  %v5256_v11 = vadd.f32 %v2023_v39, %v5162_v22  ;;  %v1984_v42 = vpop.f32.mrb[61].mxu0  ;;  %v2025_v47 = vpop.f32.mrb[61].mxu1 }
 0x162   : > { %v5259_v14 = vadd.f32 %v1984_v42, %v5164_v23  ;;  %v5262_v15 = vadd.f32 %v2025_v47, %v5166_v24  ;;  %v1986_v48 = vpop.f32.mrb[62].mxu0  ;;  %v2027_v49 = vpop.f32.mrb[62].mxu1 }
 0x163   : > { %v1987_v50 = vpop.f32.mrb[63].mxu0  ;;  %v2028_v51 = vpop.f32.mrb[63].mxu1 }
 0x168   : > { %v2322_v52 = vpop.f32.mrb[64].mxu0  ;;  %v2363_v57 = vpop.f32.mrb[64].mxu1 }
 0x169   : > { %v5265_v21 = vadd.f32 %v2322_v52, %v5169_v36  ;;  %v5268_v22 = vadd.f32 %v2363_v57, %v5172_v33  ;;  %v2324_v60 = vpop.f32.mrb[65].mxu0  ;;  %v2365_v61 = vpop.f32.mrb[65].mxu1 }
 0x16a   : > { %v5271_v23 = vadd.f32 %v2324_v60, %v5175_v40  ;;  %v5274_v24 = vadd.f32 %v2365_v61, %v5178_v41  ;;  %v2326_v0 = vpop.f32.mrb[66].mxu0  ;;  %v2367_v5 = vpop.f32.mrb[66].mxu1 }
 0x16b   : > { %v2327_v6 = vpop.f32.mrb[67].mxu0  ;;  %v2368_v7 = vpop.f32.mrb[67].mxu1 }
 0x170   : > { %v2404_v8 = vpop.f32.mrb[68].mxu0  ;;  %v2445_v37 = vpop.f32.mrb[68].mxu1 }
 0x171   : > { %v5277_v36 = vadd.f32 %v2404_v8, %v5181_v58  ;;  %v5280_v33 = vadd.f32 %v2445_v37, %v5184_v59  ;;  %v2406_v18 = vpop.f32.mrb[69].mxu0  ;;  %v2447_v19 = vpop.f32.mrb[69].mxu1 }
 0x172   : > { %v5283_v40 = vadd.f32 %v2406_v18, %v5187_v62  ;;  %v5286_v41 = vadd.f32 %v2447_v19, %v5190_v63  ;;  %v2408_v20 = vpop.f32.mrb[70].mxu0  ;;  %v2449_v25 = vpop.f32.mrb[70].mxu1 }
 0x173   : > { %v2409_v27 = vpop.f32.mrb[71].mxu0  ;;  %v2450_v28 = vpop.f32.mrb[71].mxu1 }
 0x178   : > { %v2486_v31 = vpop.f32.mrb[72].mxu0  ;;  %v2527_v32 = vpop.f32.mrb[72].mxu1 }
 0x179   : > { %v5289_v58 = vadd.f32 %v2486_v31, %v5193_v12  ;;  %v5292_v59 = vadd.f32 %v2527_v32, %v5196_v13  ;;  %v2488_v35 = vpop.f32.mrb[73].mxu0  ;;  %v2529_v38 = vpop.f32.mrb[73].mxu1 }
 0x17a   : > { %v5295_v62 = vadd.f32 %v2488_v35, %v5199_v16  ;;  %v5298_v63 = vadd.f32 %v2529_v38, %v5202_v17  ;;  %v2490_v39 = vpop.f32.mrb[74].mxu0  ;;  %v2531_v42 = vpop.f32.mrb[74].mxu1 }
 0x17b   : > { %v2491_v47 = vpop.f32.mrb[75].mxu0  ;;  %v2532_v48 = vpop.f32.mrb[75].mxu1 }
 0x180   : > { %v2568_v49 = vpop.f32.mrb[76].mxu0  ;;  %v2609_v50 = vpop.f32.mrb[76].mxu1 }
 0x181   : > { %v5301_v12 = vadd.f32 %v2568_v49, %v5205_v29  ;;  %v5304_v13 = vadd.f32 %v2609_v50, %v5208_v26  ;;  %v2570_v51 = vpop.f32.mrb[77].mxu0  ;;  %v2611_v52 = vpop.f32.mrb[77].mxu1 }
 0x182   : > { %v5307_v16 = vadd.f32 %v2570_v51, %v5211_v30  ;;  %v5310_v17 = vadd.f32 %v2611_v52, %v5214_v34  ;;  %v2572_v57 = vpop.f32.mrb[78].mxu0  ;;  %v2613_v60 = vpop.f32.mrb[78].mxu1 }
 0x183   : > { %v2573_v61 = vpop.f32.mrb[79].mxu0  ;;  %v2614_v0 = vpop.f32.mrb[79].mxu1 }
 0x188   : > { %v2650_v5 = vpop.f32.mrb[80].mxu0  ;;  %v2691_v6 = vpop.f32.mrb[80].mxu1 }
 0x189   : > { %v5313_v29 = vadd.f32 %v2650_v5, %v5217_v43  ;;  %v5316_v26 = vadd.f32 %v2691_v6, %v5220_v44  ;;  %v2652_v7 = vpop.f32.mrb[81].mxu0  ;;  %v2693_v8 = vpop.f32.mrb[81].mxu1 }
 0x18a   : > { %v5319_v30 = vadd.f32 %v2652_v7, %v5223_v45  ;;  %v5322_v34 = vadd.f32 %v2693_v8, %v5226_v46  ;;  %v2654_v37 = vpop.f32.mrb[82].mxu0  ;;  %v2695_v18 = vpop.f32.mrb[82].mxu1 }
 0x18b   : > { %v2655_v19 = vpop.f32.mrb[83].mxu0  ;;  %v2696_v20 = vpop.f32.mrb[83].mxu1 }
 0x18c   : > { %v5360_v18 = vpop.permute.xlu0 %3922 }
 0x190   : > { %v2732_v25 = vpop.f32.mrb[84].mxu0  ;;  %v2773_v27 = vpop.f32.mrb[84].mxu1 }
 0x191   : > { %v5325_v43 = vadd.f32 %v2732_v25, %v5229_v53  ;;  %v5328_v44 = vadd.f32 %v2773_v27, %v5232_v54  ;;  %v2734_v28 = vpop.f32.mrb[85].mxu0  ;;  %v2775_v31 = vpop.f32.mrb[85].mxu1 }
 0x192   : > { %v5331_v45 = vadd.f32 %v2734_v28, %v5235_v55  ;;  %v5334_v46 = vadd.f32 %v2775_v31, %v5238_v56  ;;  %v2736_v32 = vpop.f32.mrb[86].mxu0  ;;  %v2777_v35 = vpop.f32.mrb[86].mxu1 }
 0x193   : > { %v2737_v38 = vpop.f32.mrb[87].mxu0  ;;  %v2778_v39 = vpop.f32.mrb[87].mxu1 }
 0x198   : > { %v2814_v42 = vpop.f32.mrb[88].mxu0  ;;  %v2855_v47 = vpop.f32.mrb[88].mxu1 }
 0x199   : > { %v5337_v53 = vadd.f32 %v2814_v42, %v5241_v1  ;;  %v5340_v54 = vadd.f32 %v2855_v47, %v5244_v3  ;;  %v2816_v48 = vpop.f32.mrb[89].mxu0  ;;  %v2857_v49 = vpop.f32.mrb[89].mxu1 }
 0x19a   : > { %v5343_v55 = vadd.f32 %v2816_v48, %v5247_v2  ;;  %v5346_v56 = vadd.f32 %v2857_v49, %v5250_v4  ;;  %v2818_v50 = vpop.f32.mrb[90].mxu0  ;;  %v2859_v51 = vpop.f32.mrb[90].mxu1 }
 0x19b   : > { %v2819_v52 = vpop.f32.mrb[91].mxu0  ;;  %v2860_v57 = vpop.f32.mrb[91].mxu1 }
 0x1a0   : > { %v2896_v60 = vpop.f32.mrb[92].mxu0  ;;  %v2937_v61 = vpop.f32.mrb[92].mxu1 }
 0x1a1   : > { %v5349_v1 = vadd.f32 %v2896_v60, %v5253_v10  ;;  %v5352_v3 = vadd.f32 %v2937_v61, %v5256_v11  ;;  %v2898_v0 = vpop.f32.mrb[93].mxu0  ;;  %v2939_v5 = vpop.f32.mrb[93].mxu1 }
 0x1a2   : > { %v5355_v2 = vadd.f32 %v2898_v0, %v5259_v14  ;;  %v5358_v4 = vadd.f32 %v2939_v5, %v5262_v15  ;;  %v2900_v6 = vpop.f32.mrb[94].mxu0  ;;  %v2941_v7 = vpop.f32.mrb[94].mxu1 }
 0x1a3   : > { %v2901_v8 = vpop.f32.mrb[95].mxu0  ;;  %v2942_v37 = vpop.f32.mrb[95].mxu1 }
 0x1a8   : > { %v3265_v19 = vpop.f32.mrb[96].mxu0  ;;  %v3306_v10 = vpop.f32.mrb[96].mxu1 }
 0x1a9   : > { %v3887_v11 = vadd.f32 %v3265_v19, %v5265_v21  ;;  %v3889_v20 = vadd.f32 %v3306_v10, %v5268_v22  ;;  %v3267_v25 = vpop.f32.mrb[97].mxu0  ;;  %v3308_v27 = vpop.f32.mrb[97].mxu1 }
 0x1aa   : > { %v3888_v14 = vadd.f32 %v3267_v25, %v5271_v23  ;;  %v3890_v15 = vadd.f32 %v3308_v27, %v5274_v24  ;;  %v3269_v28 = vpop.f32.mrb[98].mxu0  ;;  %v3310_v31 = vpop.f32.mrb[98].mxu1 }
 0x1ab   : > { %v3270_v32 = vpop.f32.mrb[99].mxu0  ;;  %v3311_v35 = vpop.f32.mrb[99].mxu1  ;;  %v3925_v38 = vadd.f32 %v5360_v18, %v3887_v11  ;;  %v3927_v39 = vadd.f32 %v5360_v18, %v3889_v20 }
 0x1ac   : > { %v3926_v42 = vadd.f32 %v5360_v18, %v3888_v14  ;;  %v3928_v21 = vadd.f32 %v5360_v18, %v3890_v15 }
 0x1ad   : > { %vm3957_vm2 = vcmp.ge.f32.partialorder %v3925_v38, 0.0  ;;  %vm3959_vm3 = vcmp.ge.f32.partialorder %v3927_v39, 0.0  ;;  %v3989_v22 = vmul.f32 0.01, %v3925_v38  ;;  %v3991_v47 = vmul.f32 0.01, %v3927_v39 }
 0x1ae   : > { %vm3958_vm4 = vcmp.ge.f32.partialorder %v3926_v42, 0.0  ;;  %vm3960_vm5 = vcmp.ge.f32.partialorder %v3928_v21, 0.0  ;;  %v3990_v23 = vmul.f32 0.01, %v3926_v42  ;;  %v3992_v24 = vmul.f32 0.01, %v3928_v21 }
 0x1af   : > { %v4021_v48 = vsel %vm3957_vm2, %v3925_v38, %v3989_v22  ;;  %v4023_v49 = vsel %vm3959_vm3, %v3927_v39, %v3991_v47 }
 0x1b0   : > { %v3347_v50 = vpop.f32.mrb[100].mxu0  ;;  %v3388_v51 = vpop.f32.mrb[100].mxu1  ;;  %v4022_v52 = vsel %vm3958_vm4, %v3926_v42, %v3990_v23  ;;  %v4024_v57 = vsel %vm3960_vm5, %v3928_v21, %v3992_v24 }
 0x1b1   : > { %v3891_v60 = vadd.f32 %v3347_v50, %v5277_v36  ;;  %v3893_v61 = vadd.f32 %v3388_v51, %v5280_v33  ;;  %v3349_v0 = vpop.f32.mrb[101].mxu0  ;;  %v3390_v5 = vpop.f32.mrb[101].mxu1  ;;  %v4478_v6 = vpack.c.bf16 %v4022_v52, %v4021_v48  ;;  %v4479_v7 = vpack.c.bf16 %v4024_v57, %v4023_v49 }
 0x1b2   : > { %v3892_v8 = vadd.f32 %v3349_v0, %v5283_v40  ;;  %v3894_v37 = vadd.f32 %v3390_v5, %v5286_v41  ;;  %v3351_v19 = vpop.f32.mrb[102].mxu0  ;;  %v3392_v10 = vpop.f32.mrb[102].mxu1 }
 0x1b3   : > { %v3929_v11 = vadd.f32 %v5360_v18, %v3891_v60  ;;  %v3931_v20 = vadd.f32 %v5360_v18, %v3893_v61  ;;  %v4125_v25 = vrot.slane %v4478_v6, %v4645_v9  ;;  %v4132_v36 = vrot.slane %v4479_v7, %v4645_v9  ;;  %v3352_v33 = vpop.f32.mrb[103].mxu0  ;;  %v3393_v27 = vpop.f32.mrb[103].mxu1 }
 0x1b4   : > { %v3930_v14 = vadd.f32 %v5360_v18, %v3892_v8  ;;  %v3932_v15 = vadd.f32 %v5360_v18, %v3894_v37 }
 0x1b5   : > { %vm3961_vm6 = vcmp.ge.f32.partialorder %v3929_v11, 0.0  ;;  %v3993_v40 = vmul.f32 0.01, %v3929_v11  ;;  %vm3963_vm7 = vcmp.ge.f32.partialorder %v3931_v20, 0.0  ;;  %v3995_v41 = vmul.f32 0.01, %v3931_v20 }
 0x1b6   : > { %vm3962_vm8 = vcmp.ge.f32.partialorder %v3930_v14, 0.0  ;;  %v3994_v28 = vmul.f32 0.01, %v3930_v14  ;;  %vm3964_vm9 = vcmp.ge.f32.partialorder %v3932_v15, 0.0  ;;  %v3996_v31 = vmul.f32 0.01, %v3932_v15 }
 0x1b7   : > { %v4025_v32 = vsel %vm3961_vm6, %v3929_v11, %v3993_v40  ;;  %v4027_v35 = vsel %vm3963_vm7, %v3931_v20, %v3995_v41  ;;  %v4133_v38 = vcombine.low %v4125_v25, %v4132_v36 }
 0x1b8   : > { %v4026_v39 = vsel %vm3962_vm8, %v3930_v14, %v3994_v28  ;;  %v4028_v42 = vsel %vm3964_vm9, %v3932_v15, %v3996_v31  ;;  %v3429_v21 = vpop.f32.mrb[104].mxu0  ;;  %v3470_v22 = vpop.f32.mrb[104].mxu1 }
 0x1b9   : > { %v4480_v47 = vpack.c.bf16 %v4026_v39, %v4025_v32  ;;  %v4481_v23 = vpack.c.bf16 %v4028_v42, %v4027_v35  ;;  %4261 = vst [vmem:[%s5387_s28] sm:$0xff] %v4133_v38  ;;  %v3895_v24 = vadd.f32 %v3429_v21, %v5289_v58  ;;  %v3897_v48 = vadd.f32 %v3470_v22, %v5292_v59  ;;  %v3431_v49 = vpop.f32.mrb[105].mxu0  ;;  %v3472_v50 = vpop.f32.mrb[105].mxu1 }
 0x1ba   : > { %v3896_v51 = vadd.f32 %v3431_v49, %v5295_v62  ;;  %v3898_v52 = vadd.f32 %v3472_v50, %v5298_v63  ;;  %v3433_v57 = vpop.f32.mrb[106].mxu0  ;;  %v3474_v60 = vpop.f32.mrb[106].mxu1 }
 0x1bb   : > { %v4142_v61 = vrot.slane %v4480_v47, %v4645_v9  ;;  %v4149_v0 = vrot.slane %v4481_v23, %v4645_v9  ;;  %v3933_v5 = vadd.f32 %v5360_v18, %v3895_v24  ;;  %v3935_v6 = vadd.f32 %v5360_v18, %v3897_v48  ;;  %v3434_v58 = vpop.f32.mrb[107].mxu0  ;;  %v3475_v7 = vpop.f32.mrb[107].mxu1 }
 0x1bc   : > { %v3934_v59 = vadd.f32 %v5360_v18, %v3896_v51  ;;  %v3936_v8 = vadd.f32 %v5360_v18, %v3898_v52 }
 0x1bd   : > { %v4150_v62 = vcombine.low %v4142_v61, %v4149_v0  ;;  %vm3965_vm10 = vcmp.ge.f32.partialorder %v3933_v5, 0.0  ;;  %v3997_v63 = vmul.f32 0.01, %v3933_v5  ;;  %vm3967_vm11 = vcmp.ge.f32.partialorder %v3935_v6, 0.0 }
 0x1be   : > { %v3999_v37 = vmul.f32 0.01, %v3935_v6  ;;  %vm3966_vm12 = vcmp.ge.f32.partialorder %v3934_v59, 0.0  ;;  %v3998_v19 = vmul.f32 0.01, %v3934_v59  ;;  %vm3968_vm13 = vcmp.ge.f32.partialorder %v3936_v8, 0.0 }
 0x1bf   : > { %4262 = vst [vmem:[%s5387_s28 + $0x8] sm:$0xff] %v4150_v62  ;;  %v4029_v10 = vsel %vm3965_vm10, %v3933_v5, %v3997_v63  ;;  %v4000_v11 = vmul.f32 0.01, %v3936_v8 }
 0x1c0   : > { %v4031_v20 = vsel %vm3967_vm11, %v3935_v6, %v3999_v37  ;;  %v4030_v25 = vsel %vm3966_vm12, %v3934_v59, %v3998_v19  ;;  %v3511_v36 = vpop.f32.mrb[108].mxu0  ;;  %v3552_v33 = vpop.f32.mrb[108].mxu1 }
 0x1c1   : > { %v4482_v27 = vpack.c.bf16 %v4030_v25, %v4029_v10  ;;  %v4032_v14 = vsel %vm3968_vm13, %v3936_v8, %v4000_v11  ;;  %v3899_v15 = vadd.f32 %v3511_v36, %v5301_v12  ;;  %v3901_v40 = vadd.f32 %v3552_v33, %v5304_v13  ;;  %v3513_v41 = vpop.f32.mrb[109].mxu0  ;;  %v3554_v28 = vpop.f32.mrb[109].mxu1 }
 0x1c2   : > { %v4483_v31 = vpack.c.bf16 %v4032_v14, %v4031_v20  ;;  %v3900_v32 = vadd.f32 %v3513_v41, %v5307_v16  ;;  %v3902_v35 = vadd.f32 %v3554_v28, %v5310_v17  ;;  %v3515_v38 = vpop.f32.mrb[110].mxu0  ;;  %v3556_v39 = vpop.f32.mrb[110].mxu1 }
 0x1c3   : > { %v4159_v42 = vrot.slane %v4482_v27, %v4645_v9  ;;  %v3937_v21 = vadd.f32 %v5360_v18, %v3899_v15  ;;  %v3939_v22 = vadd.f32 %v5360_v18, %v3901_v40  ;;  %v3516_v47 = vpop.f32.mrb[111].mxu0  ;;  %v3557_v12 = vpop.f32.mrb[111].mxu1 }
 0x1c4   : > { %v4166_v13 = vrot.slane %v4483_v31, %v4645_v9  ;;  %v3938_v23 = vadd.f32 %v5360_v18, %v3900_v32  ;;  %v3940_v24 = vadd.f32 %v5360_v18, %v3902_v35 }
 0x1c5   : > { %vm3969_vm14 = vcmp.ge.f32.partialorder %v3937_v21, 0.0  ;;  %v4001_v16 = vmul.f32 0.01, %v3937_v21  ;;  %vm3971_vm15 = vcmp.ge.f32.partialorder %v3939_v22, 0.0  ;;  %v4003_v17 = vmul.f32 0.01, %v3939_v22 }
 0x1c6   : > { %v4167_v48 = vcombine.low %v4159_v42, %v4166_v13  ;;  %vm3970_vm0 = vcmp.ge.f32.partialorder %v3938_v23, 0.0  ;;  %v4002_v49 = vmul.f32 0.01, %v3938_v23  ;;  %vm3972_vm1 = vcmp.ge.f32.partialorder %v3940_v24, 0.0 }
 0x1c7   : > { %v4033_v50 = vsel %vm3969_vm14, %v3937_v21, %v4001_v16  ;;  %v4035_v51 = vsel %vm3971_vm15, %v3939_v22, %v4003_v17  ;;  %v4004_v52 = vmul.f32 0.01, %v3940_v24 }
 0x1c8   : > { %4263 = vst [vmem:[%s5387_s28 + $0x10] sm:$0xff] %v4167_v48  ;;  %v4034_v57 = vsel %vm3970_vm0, %v3938_v23, %v4002_v49  ;;  %v3593_v60 = vpop.f32.mrb[112].mxu0  ;;  %v3634_v61 = vpop.f32.mrb[112].mxu1 }
 0x1c9   : > { %v4484_v0 = vpack.c.bf16 %v4034_v57, %v4033_v50  ;;  %v4036_v5 = vsel %vm3972_vm1, %v3940_v24, %v4004_v52  ;;  %v3903_v6 = vadd.f32 %v3593_v60, %v5313_v29  ;;  %v3905_v58 = vadd.f32 %v3634_v61, %v5316_v26  ;;  %v3595_v7 = vpop.f32.mrb[113].mxu0  ;;  %v3636_v59 = vpop.f32.mrb[113].mxu1 }
 0x1ca   : > { %v4485_v8 = vpack.c.bf16 %v4036_v5, %v4035_v51  ;;  %v3904_v62 = vadd.f32 %v3595_v7, %v5319_v30  ;;  %v3906_v63 = vadd.f32 %v3636_v59, %v5322_v34  ;;  %v3597_v37 = vpop.f32.mrb[114].mxu0  ;;  %v3638_v19 = vpop.f32.mrb[114].mxu1 }
 0x1cb   : > { %v4176_v10 = vrot.slane %v4484_v0, %v4645_v9  ;;  %v3941_v11 = vadd.f32 %v5360_v18, %v3903_v6  ;;  %v3943_v20 = vadd.f32 %v5360_v18, %v3905_v58  ;;  %v3598_v25 = vpop.f32.mrb[115].mxu0  ;;  %v3639_v29 = vpop.f32.mrb[115].mxu1 }
 0x1cc   : > { %v4183_v26 = vrot.slane %v4485_v8, %v4645_v9  ;;  %v3942_v36 = vadd.f32 %v5360_v18, %v3904_v62  ;;  %v3944_v33 = vadd.f32 %v5360_v18, %v3906_v63 }
 0x1cd   : > { %vm3973_vm2 = vcmp.ge.f32.partialorder %v3941_v11, 0.0  ;;  %v4005_v30 = vmul.f32 0.01, %v3941_v11  ;;  %vm3975_vm3 = vcmp.ge.f32.partialorder %v3943_v20, 0.0  ;;  %v4007_v34 = vmul.f32 0.01, %v3943_v20 }
 0x1ce   : > { %v4184_v27 = vcombine.low %v4176_v10, %v4183_v26  ;;  %vm3974_vm4 = vcmp.ge.f32.partialorder %v3942_v36, 0.0  ;;  %v4006_v14 = vmul.f32 0.01, %v3942_v36  ;;  %vm3976_vm5 = vcmp.ge.f32.partialorder %v3944_v33, 0.0 }
 0x1cf   : > { %v4037_v15 = vsel %vm3973_vm2, %v3941_v11, %v4005_v30  ;;  %v4039_v40 = vsel %vm3975_vm3, %v3943_v20, %v4007_v34  ;;  %v4008_v41 = vmul.f32 0.01, %v3944_v33 }
 0x1d0   : > { %4264 = vst [vmem:[%s5387_s28 + $0x18] sm:$0xff] %v4184_v27  ;;  %v4038_v28 = vsel %vm3974_vm4, %v3942_v36, %v4006_v14  ;;  %v3675_v31 = vpop.f32.mrb[116].mxu0  ;;  %v3716_v32 = vpop.f32.mrb[116].mxu1 }
 0x1d1   : > { %v4486_v35 = vpack.c.bf16 %v4038_v28, %v4037_v15  ;;  %v4040_v38 = vsel %vm3976_vm5, %v3944_v33, %v4008_v41  ;;  %v3907_v39 = vadd.f32 %v3675_v31, %v5325_v43  ;;  %v3909_v42 = vadd.f32 %v3716_v32, %v5328_v44  ;;  %v3677_v21 = vpop.f32.mrb[117].mxu0  ;;  %v3718_v22 = vpop.f32.mrb[117].mxu1 }
 0x1d2   : > { %v4487_v47 = vpack.c.bf16 %v4040_v38, %v4039_v40  ;;  %v3908_v12 = vadd.f32 %v3677_v21, %v5331_v45  ;;  %v3910_v13 = vadd.f32 %v3718_v22, %v5334_v46  ;;  %v3679_v23 = vpop.f32.mrb[118].mxu0  ;;  %v3720_v24 = vpop.f32.mrb[118].mxu1 }
 0x1d3   : > { %v4193_v16 = vrot.slane %v4486_v35, %v4645_v9  ;;  %v3945_v17 = vadd.f32 %v5360_v18, %v3907_v39  ;;  %v3947_v48 = vadd.f32 %v5360_v18, %v3909_v42  ;;  %v3680_v49 = vpop.f32.mrb[119].mxu0  ;;  %v3721_v43 = vpop.f32.mrb[119].mxu1 }
 0x1d4   : > { %v4200_v44 = vrot.slane %v4487_v47, %v4645_v9  ;;  %v3946_v50 = vadd.f32 %v5360_v18, %v3908_v12  ;;  %v3948_v51 = vadd.f32 %v5360_v18, %v3910_v13 }
 0x1d5   : > { %vm3977_vm6 = vcmp.ge.f32.partialorder %v3945_v17, 0.0  ;;  %v4009_v45 = vmul.f32 0.01, %v3945_v17  ;;  %vm3979_vm7 = vcmp.ge.f32.partialorder %v3947_v48, 0.0  ;;  %v4011_v46 = vmul.f32 0.01, %v3947_v48 }
 0x1d6   : > { %v4201_v52 = vcombine.low %v4193_v16, %v4200_v44  ;;  %vm3978_vm8 = vcmp.ge.f32.partialorder %v3946_v50, 0.0  ;;  %v4010_v57 = vmul.f32 0.01, %v3946_v50  ;;  %vm3980_vm9 = vcmp.ge.f32.partialorder %v3948_v51, 0.0 }
 0x1d7   : > { %v4041_v60 = vsel %vm3977_vm6, %v3945_v17, %v4009_v45  ;;  %v4043_v61 = vsel %vm3979_vm7, %v3947_v48, %v4011_v46  ;;  %v4012_v0 = vmul.f32 0.01, %v3948_v51 }
 0x1d8   : > { %4265 = vst [vmem:[%s5387_s28 + $0x20] sm:$0xff] %v4201_v52  ;;  %v4042_v5 = vsel %vm3978_vm8, %v3946_v50, %v4010_v57  ;;  %v3757_v6 = vpop.f32.mrb[120].mxu0  ;;  %v3798_v58 = vpop.f32.mrb[120].mxu1 }
 0x1d9   : > { %v4488_v7 = vpack.c.bf16 %v4042_v5, %v4041_v60  ;;  %v4044_v59 = vsel %vm3980_vm9, %v3948_v51, %v4012_v0  ;;  %v3911_v8 = vadd.f32 %v3757_v6, %v5337_v53  ;;  %v3913_v62 = vadd.f32 %v3798_v58, %v5340_v54  ;;  %v3759_v63 = vpop.f32.mrb[121].mxu0  ;;  %v3800_v37 = vpop.f32.mrb[121].mxu1 }
 0x1da   : > { %v4489_v19 = vpack.c.bf16 %v4044_v59, %v4043_v61  ;;  %v3912_v10 = vadd.f32 %v3759_v63, %v5343_v55  ;;  %v3914_v11 = vadd.f32 %v3800_v37, %v5346_v56  ;;  %v3761_v20 = vpop.f32.mrb[122].mxu0  ;;  %v3802_v25 = vpop.f32.mrb[122].mxu1 }
 0x1db   : > { %v4210_v29 = vrot.slane %v4488_v7, %v4645_v9  ;;  %v3949_v26 = vadd.f32 %v5360_v18, %v3911_v8  ;;  %v3951_v36 = vadd.f32 %v5360_v18, %v3913_v62  ;;  %v3762_v33 = vpop.f32.mrb[123].mxu0  ;;  %v3803_v53 = vpop.f32.mrb[123].mxu1 }
 0x1dc   : > { %v4217_v54 = vrot.slane %v4489_v19, %v4645_v9  ;;  %v3950_v30 = vadd.f32 %v5360_v18, %v3912_v10  ;;  %v3952_v34 = vadd.f32 %v5360_v18, %v3914_v11 }
 0x1dd   : > { %vm3981_vm10 = vcmp.ge.f32.partialorder %v3949_v26, 0.0  ;;  %v4013_v55 = vmul.f32 0.01, %v3949_v26  ;;  %vm3983_vm11 = vcmp.ge.f32.partialorder %v3951_v36, 0.0  ;;  %v4015_v56 = vmul.f32 0.01, %v3951_v36 }
 0x1de   : > { %v4218_v27 = vcombine.low %v4210_v29, %v4217_v54  ;;  %vm3982_vm12 = vcmp.ge.f32.partialorder %v3950_v30, 0.0  ;;  %v4014_v14 = vmul.f32 0.01, %v3950_v30  ;;  %vm3984_vm13 = vcmp.ge.f32.partialorder %v3952_v34, 0.0 }
 0x1df   : > { %v4045_v15 = vsel %vm3981_vm10, %v3949_v26, %v4013_v55  ;;  %v4047_v40 = vsel %vm3983_vm11, %v3951_v36, %v4015_v56  ;;  %v4016_v41 = vmul.f32 0.01, %v3952_v34 }
 0x1e0   : > { %4266 = vst [vmem:[%s5387_s28 + $0x28] sm:$0xff] %v4218_v27  ;;  %v4046_v28 = vsel %vm3982_vm12, %v3950_v30, %v4014_v14  ;;  %v3839_v31 = vpop.f32.mrb[124].mxu0  ;;  %v3880_v32 = vpop.f32.mrb[124].mxu1 }
 0x1e1   : > { %v4490_v35 = vpack.c.bf16 %v4046_v28, %v4045_v15  ;;  %v4048_v38 = vsel %vm3984_vm13, %v3952_v34, %v4016_v41  ;;  %v3915_v39 = vadd.f32 %v3839_v31, %v5349_v1  ;;  %v3917_v42 = vadd.f32 %v3880_v32, %v5352_v3  ;;  %v3841_v21 = vpop.f32.mrb[125].mxu0  ;;  %v3882_v22 = vpop.f32.mrb[125].mxu1 }
 0x1e2   : > { %v4491_v47 = vpack.c.bf16 %v4048_v38, %v4047_v40  ;;  %v3916_v12 = vadd.f32 %v3841_v21, %v5355_v2  ;;  %v3918_v13 = vadd.f32 %v3882_v22, %v5358_v4  ;;  %v3843_v23 = vpop.f32.mrb[126].mxu0  ;;  %v3884_v24 = vpop.f32.mrb[126].mxu1 }
 0x1e3   : > { %v4227_v16 = vrot.slane %v4490_v35, %v4645_v9  ;;  %v3953_v17 = vadd.f32 %v5360_v18, %v3915_v39  ;;  %v3955_v48 = vadd.f32 %v5360_v18, %v3917_v42  ;;  %v3844_v49 = vpop.f32.mrb[127].mxu0  ;;  %v3885_v1 = vpop.f32.mrb[127].mxu1 }
 0x1e4   : > { %v4234_v3 = vrot.slane %v4491_v47, %v4645_v9  ;;  %v3954_v43 = vadd.f32 %v5360_v18, %v3916_v12  ;;  %v3956_v44 = vadd.f32 %v5360_v18, %v3918_v13 }
 0x1e5   : > { %vm3985_vm14 = vcmp.ge.f32.partialorder %v3953_v17, 0.0  ;;  %v4017_v2 = vmul.f32 0.01, %v3953_v17  ;;  %vm3987_vm15 = vcmp.ge.f32.partialorder %v3955_v48, 0.0  ;;  %v4019_v4 = vmul.f32 0.01, %v3955_v48 }
 0x1e6   : > { %v4235_v50 = vcombine.low %v4227_v16, %v4234_v3  ;;  %vm3986_vm0 = vcmp.ge.f32.partialorder %v3954_v43, 0.0  ;;  %v4018_v51 = vmul.f32 0.01, %v3954_v43  ;;  %vm3988_vm1 = vcmp.ge.f32.partialorder %v3956_v44, 0.0 }
 0x1e7   : > { %v4049_v45 = vsel %vm3985_vm14, %v3953_v17, %v4017_v2  ;;  %v4051_v46 = vsel %vm3987_vm15, %v3955_v48, %v4019_v4  ;;  %v4020_v52 = vmul.f32 0.01, %v3956_v44 }
 0x1e8   : > { %4267 = vst [vmem:[%s5387_s28 + $0x30] sm:$0xff] %v4235_v50  ;;  %v4050_v57 = vsel %vm3986_vm0, %v3954_v43, %v4018_v51 }
 0x1e9   : > { %v4492_v60 = vpack.c.bf16 %v4050_v57, %v4049_v45  ;;  %v4052_v61 = vsel %vm3988_vm1, %v3956_v44, %v4020_v52 }
 0x1ea   : > { %v4493_v0 = vpack.c.bf16 %v4052_v61, %v4051_v46 }
 0x1eb   : > { %v4244_v5 = vrot.slane %v4492_v60, %v4645_v9 }
 0x1ec   : > { %v4251_v18 = vrot.slane %v4493_v0, %v4645_v9 }
 0x1ee   : > { %v4252_v6 = vcombine.low %v4244_v5, %v4251_v18 }
 0x1f0   : > { %4268 = vst [vmem:[%s5387_s28 + $0x38] sm:$0xff] %v4252_v6 }
 0x1f1 PF: > { %s14_s17 = sadd.s32 1, %s4577_s17   ;;  %s5473_s15 = smov %s4573_s16 }
 0x1f2   : > { %p11_p5 = scmp.ge.s32.totalorder %s14_s17, 18   ;;  %s5474_s16 = smov %s5476_s18 }
 0x1f4   :  { %13 = sbr.rel (!%p11_p5) target bundleno = 2 (0x2), region = 70 }

// kernel: unet_forward.5
= control target key start
LH: loop header
LB: loop body
LE: loop exit
PB: predicated region body
PF: predicated region fallthrough
CT: control target
= control target key end

     0   :  { %s1455_s15 = smov 0   ;;  %s1457_s16 = smov 0   ;;  %s1588_s0 = inlined_call_operand.vmem [shape: bf16[16,16512], index: 0, kind: input, shape index: {}]   ;;  %s1589_s1 = inlined_call_operand.vmem [shape: bf16[16,16512], index: 1, kind: input, shape index: {}]   ;;  %s1590_s2 = inlined_call_operand.vmem [shape: bf16[4,4,16], index: 2, kind: input, shape index: {}]   ;;  %s1591_s3 = inlined_call_operand.vmem [shape: f32[4,1], index: 3, kind: input, shape index: {}]   ;;  %s1592_s4 = inlined_call_operand.vmem [shape: bf16[4,16384], index: 4, kind: output, shape index: {}]  }
   0x1   :  { %s1459_s17 = smov 0  }
   0x2 LB: > { %s23_s18 = sadd.s32 1, %s1422_s16  ;;  %p1264_p0 = scmp.ge.s32.totalorder %s1426_s17, 1  ;;  %s1426_s17 = sphi %s1459_s17, %s14_s17   ;;  %s1422_s16 = sphi %s1457_s16, %s1595_s16   ;;  %s1418_s15 = sphi %s1455_s15, %s1594_s15  }
   0x3   : > { %p24_p1 = scmp.ge.s32.totalorder %s23_s18, 16  ;;  %p168_p2 = scmp.lt.s32.totalorder %s1426_s17, 17 }
   0x5   : > { %s1597_s18 = smov (%p24_p1, %s23_s18), 0  ;;  %p169_p3 = pnand %p1264_p0, %p168_p2 }
   0x6   : > { %s1267_s19 = sshll.u32 (!%p169_p3), %s1418_s15, 10  ;;  %v1428_v0 = vmov (!%p169_p3), 0   ;;  %v1102_v1 = vld [vmem:[%s1591_s3] sm:$0xf] (!%p169_p3)  ;;  %vm270_vm0 = vcmask (!%p169_p3), 130048   ;;  %s1265_s25 = sshll.u32 (!%p169_p3), %s1418_s15, 3 }
   0x7   : > { %172 = sbr.rel (%p169_p3) target bundleno = 298 (0x12a), region = 36  ;;  %s205_s20 = sshra.s32 (!%p169_p3), %s1267_s19, 7  ;;  %306 = vmatprep.mubr.bf16.mxu0 (!%p169_p3), %v1428_v0  ;;  %347 = vmatprep.mubr.bf16.mxu1 (!%p169_p3), %v1428_v0  ;;  %v1270_v6 = vld [vmem:[%s1590_s2 + $0x2] sm:$0x3] (!%p169_p3)  ;;  %v217_v17 = vld [vmem:[%s1590_s2] sm:$0x3] (!%p169_p3) }
   0x8   : > { %s1268_s21 = sshll.u32 (!%p169_p3), %s205_s20, 2  ;;  %1355 = vset.pattern.permute.xlu0 (!%p169_p3), %v1428_v0  ;;  %s645_s27 = sadd.s32 (!%p169_p3), 128, %s1267_s19  ;;  %v1296_v26 = vld [vmem:[%s1590_s2 + $0x4] sm:$0x3] (!%p169_p3)  ;;  %v1310_v35 = vld [vmem:[%s1590_s2 + $0x6] sm:$0x3] (!%p169_p3) }
   0x9   : > { %s219_s26 = scalar_lea.vmem (!%p169_p3), %s1589_s1, %s1268_s21  ;;  %1105 = vperm.xlu0 (!%p169_p3), %1355, %v1102_v1   ;;  %s1491_s6 = scalar_lea.vmem (!%p169_p3), %s1588_s0, %s1268_s21 }
   0xa   : > { %v1356_v2 = vld [vmem:[%s219_s26 + $0x4] ss:$516 sps:$4 sm:$0xff] (!%p169_p3)   ;;  %v1358_v3 = vld [vmem:[%s219_s26 + $0xc] ss:$516 sps:$4 sm:$0xff] (!%p169_p3)   ;;  %s646_s7 = sshra.s32 (!%p169_p3), %s645_s27, 7  ;;  %p1567_p4 = scmp.lt.s32.totalorder (!%p169_p3), %s1265_s25, 127 }
   0xb   : > { %274 = vmatprep.subr.bf16.mxu0 (!%p169_p3), %v1356_v2  ;;  %v1360_v4 = vld [vmem:[%s219_s26] ss:$516 sps:$4 sm:$0xff] (!%p169_p3)   ;;  %v1361_v5 = vld [vmem:[%s219_s26 + $0x8] ss:$516 sps:$4 sm:$0xff] (!%p169_p3)   ;;  %315 = vmatprep.subr.bf16.mxu1 (!%p169_p3), %v1358_v3  ;;  %v1362_v7 = vld [vmem:[%s219_s26 + $0x10] ss:$516 sps:$4 sm:$0xff] (!%p169_p3)  }
   0xc   : > { %v1364_v8 = vld [vmem:[%s219_s26 + $0x14] ss:$516 sps:$4 sm:$0xff] (!%p169_p3)   ;;  %275 = vmatpush1.bf16.msra.mxu0 (!%p169_p3), %v1360_v4  ;;  %316 = vmatpush1.bf16.msra.mxu1 (!%p169_p3), %v1361_v5  ;;  %v1367_v10 = vld [vmem:[%s219_s26 + $0x1c] ss:$516 sps:$4 sm:$0xff] (!%p169_p3)   ;;  %s1295_s8 = sshll.u32 (!%p169_p3), %s646_s7, 2 }
   0xd   : > { %v1365_v9 = vld [vmem:[%s219_s26 + $0x18] ss:$516 sps:$4 sm:$0xff] (!%p169_p3)   ;;  %356 = vmatprep.subr.bf16.mxu0 (!%p169_p3), %v1364_v8  ;;  %v1370_v11 = vld [vmem:[%s1491_s6 + $0x4] ss:$516 sps:$4 sm:$0xff] (!%p169_p3)   ;;  %v1373_v12 = vld [vmem:[%s1491_s6 + $0xc] ss:$516 sps:$4 sm:$0xff] (!%p169_p3)   ;;  %397 = vmatprep.subr.bf16.mxu1 (!%p169_p3), %v1367_v10  ;;  %s1501_s11 = scalar_lea.vmem (!%p169_p3), %s1588_s0, %s1295_s8  ;;  %s1513_s14 = scalar_lea.vmem (!%p169_p3), %s1589_s1, %s1295_s8 }
   0xe   : > { %v1368_v13 = vld [vmem:[%s1491_s6] ss:$516 sps:$4 sm:$0xff]   ;;  %v1371_v14 = vld [vmem:[%s1491_s6 + $0x8] ss:$516 sps:$4 sm:$0xff]   ;;  %v1376_v15 = vld [vmem:[%s1491_s6 + $0x14] ss:$516 sps:$4 sm:$0xff]  }
   0xf   : > { %1279 = vmatmul.mubr.msk.bf16.vlgmr.msra.gmra.mrb[0].mxu0 %vm270_vm0, %v1270_v6  ;;  %1280 = vmatmul.mubr.msk.bf16.vlgmr.msra.gmra.mrb[0].mxu1 %vm270_vm0, %v1270_v6  ;;  %v1379_v16 = vld [vmem:[%s1491_s6 + $0x1c] ss:$516 sps:$4 sm:$0xff]   ;;  %v1374_v18 = vld [vmem:[%s1491_s6 + $0x10] ss:$516 sps:$4 sm:$0xff]   ;;  %v1382_v20 = vld [vmem:[%s1501_s11 + $0x4] ss:$516 sps:$4 sm:$0xff]  }
  0x10   : > { %357 = vmatpush1.bf16.msra.mxu0 %v1362_v7  ;;  %398 = vmatpush1.bf16.msra.mxu1 %v1365_v9  ;;  %v1377_v19 = vld [vmem:[%s1491_s6 + $0x18] ss:$516 sps:$4 sm:$0xff]   ;;  %v1385_v21 = vld [vmem:[%s1501_s11 + $0xc] ss:$516 sps:$4 sm:$0xff]   ;;  %v1380_v22 = vld [vmem:[%s1501_s11] ss:$516 sps:$4 sm:$0xff]  }
  0x11   : > { %388 = vmatprep.mubr.bf16.mxu0 %v1428_v0  ;;  %429 = vmatprep.mubr.bf16.mxu1 %v1428_v0  ;;  %v1383_v23 = vld [vmem:[%s1501_s11 + $0x8] ss:$516 sps:$4 sm:$0xff]   ;;  %v1388_v24 = vld [vmem:[%s1501_s11 + $0x14] ss:$516 sps:$4 sm:$0xff]   ;;  %v1391_v25 = vld [vmem:[%s1501_s11 + $0x1c] ss:$516 sps:$4 sm:$0xff]  }
  0x12   : > { %481 = vmatprep.subr.bf16.mxu0 %v1370_v11  ;;  %522 = vmatprep.subr.bf16.mxu1 %v1373_v12  ;;  %v1386_v27 = vld [vmem:[%s1501_s11 + $0x10] ss:$516 sps:$4 sm:$0xff]   ;;  %v1389_v28 = vld [vmem:[%s1501_s11 + $0x18] ss:$516 sps:$4 sm:$0xff]   ;;  %v1394_v29 = vld [vmem:[%s1513_s14 + $0x4] ss:$516 sps:$4 sm:$0xff]  }
  0x13   : > { %v1397_v30 = vld [vmem:[%s1513_s14 + $0xc] ss:$516 sps:$4 sm:$0xff]   ;;  %v1392_v31 = vld [vmem:[%s1513_s14] ss:$516 sps:$4 sm:$0xff]   ;;  %v1400_v33 = vld [vmem:[%s1513_s14 + $0x14] ss:$516 sps:$4 sm:$0xff]  }
  0x14   : > { %v1395_v32 = vld [vmem:[%s1513_s14 + $0x8] ss:$516 sps:$4 sm:$0xff]   ;;  %v1403_v34 = vld [vmem:[%s1513_s14 + $0x1c] ss:$516 sps:$4 sm:$0xff]   ;;  %v1398_v36 = vld [vmem:[%s1513_s14 + $0x10] ss:$516 sps:$4 sm:$0xff]  }
  0x15   : > { %v1401_v37 = vld [vmem:[%s1513_s14 + $0x18] ss:$516 sps:$4 sm:$0xff]   ;;  %s1599_s25 = smov (!%p1567_p4, %s1265_s25), 127 }
  0x16   : > { %s1266_s15 = sshll.u32 %s1599_s25, 1 }
  0x17   : > { %1281 = vmatmul.mubr.msk.bf16.vlgmr.msra.gmra.mrb[4].mxu0 %vm270_vm0, %v1270_v6  ;;  %1282 = vmatmul.mubr.msk.bf16.vlgmr.msra.gmra.mrb[4].mxu1 %vm270_vm0, %v1270_v6  ;;  %s197_s29 = scalar_lea.vmem %s1592_s4, %s1266_s15 }
  0x18   : > { %482 = vmatpush1.bf16.msra.mxu0 %v1368_v13  ;;  %523 = vmatpush1.bf16.msra.mxu1 %v1371_v14 }
  0x19   : > { %513 = vmatprep.mubr.bf16.mxu0 %v1428_v0  ;;  %554 = vmatprep.mubr.bf16.mxu1 %v1428_v0 }
  0x1a   : > { %563 = vmatprep.subr.bf16.mxu0 %v1376_v15  ;;  %604 = vmatprep.subr.bf16.mxu1 %v1379_v16 }
  0x1f   : > { %1291 = vmatmul.mubr.msk.bf16.vlgmr.msra.gmra.mrb[8].mxu0 %vm270_vm0, %v217_v17  ;;  %1292 = vmatmul.mubr.msk.bf16.vlgmr.msra.gmra.mrb[8].mxu1 %vm270_vm0, %v217_v17 }
  0x20   : > { %564 = vmatpush1.bf16.msra.mxu0 %v1374_v18  ;;  %605 = vmatpush1.bf16.msra.mxu1 %v1377_v19 }
  0x21   : > { %595 = vmatprep.mubr.bf16.mxu0 %v1428_v0  ;;  %636 = vmatprep.mubr.bf16.mxu1 %v1428_v0 }
  0x22   : > { %703 = vmatprep.subr.bf16.mxu0 %v1382_v20  ;;  %744 = vmatprep.subr.bf16.mxu1 %v1385_v21 }
  0x27   : > { %1293 = vmatmul.mubr.msk.bf16.vlgmr.msra.gmra.mrb[12].mxu0 %vm270_vm0, %v217_v17  ;;  %1294 = vmatmul.mubr.msk.bf16.vlgmr.msra.gmra.mrb[12].mxu1 %vm270_vm0, %v217_v17 }
  0x28   : > { %704 = vmatpush1.bf16.msra.mxu0 %v1380_v22  ;;  %745 = vmatpush1.bf16.msra.mxu1 %v1383_v23 }
  0x29   : > { %735 = vmatprep.mubr.bf16.mxu0 %v1428_v0  ;;  %776 = vmatprep.mubr.bf16.mxu1 %v1428_v0 }
  0x2a   : > { %785 = vmatprep.subr.bf16.mxu0 %v1388_v24  ;;  %826 = vmatprep.subr.bf16.mxu1 %v1391_v25 }
  0x2f   : > { %1305 = vmatmul.mubr.msk.bf16.vlgmr.msra.gmra.mrb[16].mxu0 %vm270_vm0, %v1296_v26  ;;  %1306 = vmatmul.mubr.msk.bf16.vlgmr.msra.gmra.mrb[16].mxu1 %vm270_vm0, %v1296_v26 }
  0x30   : > { %786 = vmatpush1.bf16.msra.mxu0 %v1386_v27  ;;  %827 = vmatpush1.bf16.msra.mxu1 %v1389_v28 }
  0x31   : > { %817 = vmatprep.mubr.bf16.mxu0 %v1428_v0  ;;  %858 = vmatprep.mubr.bf16.mxu1 %v1428_v0 }
  0x32   : > { %930 = vmatprep.subr.bf16.mxu0 %v1394_v29  ;;  %971 = vmatprep.subr.bf16.mxu1 %v1397_v30 }
  0x37   : > { %1307 = vmatmul.mubr.msk.bf16.vlgmr.msra.gmra.mrb[20].mxu0 %vm270_vm0, %v1296_v26  ;;  %1308 = vmatmul.mubr.msk.bf16.vlgmr.msra.gmra.mrb[20].mxu1 %vm270_vm0, %v1296_v26 }
  0x38   : > { %931 = vmatpush1.bf16.msra.mxu0 %v1392_v31  ;;  %972 = vmatpush1.bf16.msra.mxu1 %v1395_v32 }
  0x39   : > { %962 = vmatprep.mubr.bf16.mxu0 %v1428_v0  ;;  %1003 = vmatprep.mubr.bf16.mxu1 %v1428_v0 }
  0x3a   : > { %1012 = vmatprep.subr.bf16.mxu0 %v1400_v33  ;;  %1053 = vmatprep.subr.bf16.mxu1 %v1403_v34 }
  0x3f   : > { %1319 = vmatmul.mubr.msk.bf16.vlgmr.msra.gmra.mrb[24].mxu0 %vm270_vm0, %v1310_v35  ;;  %1320 = vmatmul.mubr.msk.bf16.vlgmr.msra.gmra.mrb[24].mxu1 %vm270_vm0, %v1310_v35 }
  0x40   : > { %1013 = vmatpush1.bf16.msra.mxu0 %v1398_v36  ;;  %1054 = vmatpush1.bf16.msra.mxu1 %v1401_v37 }
  0x41   : > { %1044 = vmatprep.mubr.bf16.mxu0 %v1428_v0  ;;  %1085 = vmatprep.mubr.bf16.mxu1 %v1428_v0 }
  0x47   : > { %1321 = vmatmul.mubr.msk.bf16.vlgmr.msra.gmra.mrb[28].mxu0 %vm270_vm0, %v1310_v35  ;;  %1322 = vmatmul.mubr.msk.bf16.vlgmr.msra.gmra.mrb[28].mxu1 %vm270_vm0, %v1310_v35 }
  0xe2   : > { %v308_v38 = vpop.f32.mrb[0].mxu0  ;;  %v349_v39 = vpop.f32.mrb[0].mxu1 }
  0xe3   : > { %v310_v40 = vpop.f32.mrb[1].mxu0  ;;  %v351_v41 = vpop.f32.mrb[1].mxu1 }
  0xe4   : > { %v312_v42 = vpop.f32.mrb[2].mxu0  ;;  %v353_v43 = vpop.f32.mrb[2].mxu1 }
  0xe5   : > { %v313_v44 = vpop.f32.mrb[3].mxu0  ;;  %v354_v45 = vpop.f32.mrb[3].mxu1 }
  0xea   : > { %v390_v46 = vpop.f32.mrb[4].mxu0  ;;  %v431_v47 = vpop.f32.mrb[4].mxu1 }
  0xeb   : > { %v392_v48 = vpop.f32.mrb[5].mxu0  ;;  %v433_v49 = vpop.f32.mrb[5].mxu1 }
  0xec   : > { %v394_v50 = vpop.f32.mrb[6].mxu0  ;;  %v435_v51 = vpop.f32.mrb[6].mxu1 }
  0xed   : > { %v395_v52 = vpop.f32.mrb[7].mxu0  ;;  %v436_v53 = vpop.f32.mrb[7].mxu1 }
  0xf2   : > { %v515_v54 = vpop.f32.mrb[8].mxu0  ;;  %v556_v55 = vpop.f32.mrb[8].mxu1 }
  0xf3   : > { %v516_v56 = vadd.f32 %v515_v54, %v308_v38  ;;  %v557_v57 = vadd.f32 %v556_v55, %v349_v39  ;;  %v517_v58 = vpop.f32.mrb[9].mxu0  ;;  %v558_v59 = vpop.f32.mrb[9].mxu1  ;;  %v1429_v39 = vmov 1983009808  }
  0xf4   : > { %v518_v60 = vadd.f32 %v517_v58, %v310_v40  ;;  %v559_v61 = vadd.f32 %v558_v59, %v351_v41  ;;  %v519_v62 = vpop.f32.mrb[10].mxu0  ;;  %v560_v63 = vpop.f32.mrb[10].mxu1  ;;  %v1159_v40 = vunpack.c.l.s4 %v1429_v39  ;;  %v1161_v41 = vlaneseq }
  0xf5   : > { %v520_v0 = vpop.f32.mrb[11].mxu0  ;;  %v561_v1 = vpop.f32.mrb[11].mxu1 }
  0xf6   : > { %v1106_v38 = vpop.permute.xlu0 %1105 }
  0xfa   : > { %v597_v2 = vpop.f32.mrb[12].mxu0  ;;  %v638_v3 = vpop.f32.mrb[12].mxu1 }
  0xfb   : > { %v598_v4 = vadd.f32 %v597_v2, %v390_v46  ;;  %v639_v5 = vadd.f32 %v638_v3, %v431_v47  ;;  %v599_v6 = vpop.f32.mrb[13].mxu0  ;;  %v640_v7 = vpop.f32.mrb[13].mxu1 }
  0xfc   : > { %v600_v8 = vadd.f32 %v599_v6, %v392_v48  ;;  %v641_v9 = vadd.f32 %v640_v7, %v433_v49  ;;  %v601_v10 = vpop.f32.mrb[14].mxu0  ;;  %v642_v11 = vpop.f32.mrb[14].mxu1 }
  0xfd   : > { %v602_v12 = vpop.f32.mrb[15].mxu0  ;;  %v643_v13 = vpop.f32.mrb[15].mxu1 }
 0x102   : > { %v737_v14 = vpop.f32.mrb[16].mxu0  ;;  %v778_v15 = vpop.f32.mrb[16].mxu1 }
 0x103   : > { %v867_v16 = vadd.f32 %v737_v14, %v516_v56  ;;  %v869_v17 = vadd.f32 %v778_v15, %v557_v57  ;;  %v739_v18 = vpop.f32.mrb[17].mxu0  ;;  %v780_v19 = vpop.f32.mrb[17].mxu1  ;;  %v1160_v56 = vunpack.c.0.s8 %v1159_v40  ;;  %v1162_v57 = vshrl.u32 %v1161_v41, 7 }
 0x104   : > { %v868_v20 = vadd.f32 %v739_v18, %v518_v60  ;;  %v870_v21 = vadd.f32 %v780_v19, %v559_v61  ;;  %v741_v22 = vpop.f32.mrb[18].mxu0  ;;  %v782_v23 = vpop.f32.mrb[18].mxu1 }
 0x105   : > { %v742_v24 = vpop.f32.mrb[19].mxu0  ;;  %v783_v25 = vpop.f32.mrb[19].mxu1  ;;  %v1163_v2 = vsub.s32 %v1160_v56, %v1162_v57 }
 0x10a   : > { %v819_v26 = vpop.f32.mrb[20].mxu0  ;;  %v860_v27 = vpop.f32.mrb[20].mxu1 }
 0x10b   : > { %v871_v28 = vadd.f32 %v819_v26, %v598_v4  ;;  %v873_v29 = vadd.f32 %v860_v27, %v639_v5  ;;  %v821_v30 = vpop.f32.mrb[21].mxu0  ;;  %v862_v31 = vpop.f32.mrb[21].mxu1 }
 0x10c   : > { %v872_v32 = vadd.f32 %v821_v30, %v600_v8  ;;  %v874_v33 = vadd.f32 %v862_v31, %v641_v9  ;;  %v823_v34 = vpop.f32.mrb[22].mxu0  ;;  %v864_v35 = vpop.f32.mrb[22].mxu1 }
 0x10d   : > { %v824_v36 = vpop.f32.mrb[23].mxu0  ;;  %v865_v37 = vpop.f32.mrb[23].mxu1 }
 0x112   : > { %v964_v42 = vpop.f32.mrb[24].mxu0  ;;  %v1005_v43 = vpop.f32.mrb[24].mxu1 }
 0x113   : > { %v1094_v44 = vadd.f32 %v964_v42, %v867_v16  ;;  %v1096_v45 = vadd.f32 %v1005_v43, %v869_v17  ;;  %v966_v46 = vpop.f32.mrb[25].mxu0  ;;  %v1007_v47 = vpop.f32.mrb[25].mxu1 }
 0x114   : > { %v1095_v48 = vadd.f32 %v966_v46, %v868_v20  ;;  %v1097_v49 = vadd.f32 %v1007_v47, %v870_v21  ;;  %v968_v50 = vpop.f32.mrb[26].mxu0  ;;  %v1009_v51 = vpop.f32.mrb[26].mxu1 }
 0x115   : > { %v1108_v52 = vadd.f32 %v1106_v38, %v1094_v44  ;;  %v1110_v53 = vadd.f32 %v1106_v38, %v1096_v45  ;;  %v969_v54 = vpop.f32.mrb[27].mxu0  ;;  %v1010_v55 = vpop.f32.mrb[27].mxu1 }
 0x116   : > { %v1109_v58 = vadd.f32 %v1106_v38, %v1095_v48  ;;  %v1111_v59 = vadd.f32 %v1106_v38, %v1097_v49 }
 0x117   : > { %vm1116_vm1 = vcmp.ge.f32.partialorder %v1108_v52, 0.0  ;;  %vm1118_vm2 = vcmp.ge.f32.partialorder %v1110_v53, 0.0  ;;  %v1124_v60 = vmul.f32 0.01, %v1108_v52  ;;  %v1126_v61 = vmul.f32 0.01, %v1110_v53 }
 0x118   : > { %vm1117_vm3 = vcmp.ge.f32.partialorder %v1109_v58, 0.0  ;;  %vm1119_vm4 = vcmp.ge.f32.partialorder %v1111_v59, 0.0  ;;  %v1125_v62 = vmul.f32 0.01, %v1109_v58  ;;  %v1127_v63 = vmul.f32 0.01, %v1111_v59 }
 0x119   : > { %v1132_v0 = vsel %vm1116_vm1, %v1108_v52, %v1124_v60  ;;  %v1134_v1 = vsel %vm1118_vm2, %v1110_v53, %v1126_v61 }
 0x11a   : > { %v1133_v3 = vsel %vm1117_vm3, %v1109_v58, %v1125_v62  ;;  %v1135_v4 = vsel %vm1119_vm4, %v1111_v59, %v1127_v63  ;;  %v1046_v5 = vpop.f32.mrb[28].mxu0  ;;  %v1087_v6 = vpop.f32.mrb[28].mxu1 }
 0x11b   : > { %v1323_v7 = vpack.c.bf16 %v1133_v3, %v1132_v0  ;;  %v1324_v8 = vpack.c.bf16 %v1135_v4, %v1134_v1  ;;  %v1098_v9 = vadd.f32 %v1046_v5, %v871_v28  ;;  %v1100_v10 = vadd.f32 %v1087_v6, %v873_v29  ;;  %v1048_v11 = vpop.f32.mrb[29].mxu0  ;;  %v1089_v12 = vpop.f32.mrb[29].mxu1 }
 0x11c   : > { %v1099_v13 = vadd.f32 %v1048_v11, %v872_v32  ;;  %v1101_v14 = vadd.f32 %v1089_v12, %v874_v33  ;;  %v1050_v15 = vpop.f32.mrb[30].mxu0  ;;  %v1091_v16 = vpop.f32.mrb[30].mxu1 }
 0x11d   : > { %v1112_v17 = vadd.f32 %v1106_v38, %v1098_v9  ;;  %v1114_v18 = vadd.f32 %v1106_v38, %v1100_v10  ;;  %v1164_v19 = vrot.slane %v1323_v7, %v1163_v2  ;;  %v1171_v20 = vrot.slane %v1324_v8, %v1163_v2  ;;  %v1051_v21 = vpop.f32.mrb[31].mxu0  ;;  %v1092_v22 = vpop.f32.mrb[31].mxu1 }
 0x11e   : > { %v1113_v23 = vadd.f32 %v1106_v38, %v1099_v13  ;;  %v1115_v24 = vadd.f32 %v1106_v38, %v1101_v14 }
 0x11f   : > { %vm1120_vm5 = vcmp.ge.f32.partialorder %v1112_v17, 0.0  ;;  %v1128_v25 = vmul.f32 0.01, %v1112_v17  ;;  %vm1122_vm6 = vcmp.ge.f32.partialorder %v1114_v18, 0.0  ;;  %v1130_v26 = vmul.f32 0.01, %v1114_v18 }
 0x120   : > { %vm1121_vm7 = vcmp.ge.f32.partialorder %v1113_v23, 0.0  ;;  %v1129_v27 = vmul.f32 0.01, %v1113_v23  ;;  %vm1123_vm8 = vcmp.ge.f32.partialorder %v1115_v24, 0.0  ;;  %v1131_v28 = vmul.f32 0.01, %v1115_v24 }
 0x121   : > { %v1136_v29 = vsel %vm1120_vm5, %v1112_v17, %v1128_v25  ;;  %v1138_v30 = vsel %vm1122_vm6, %v1114_v18, %v1130_v26  ;;  %v1172_v31 = vcombine.low %v1164_v19, %v1171_v20 }
 0x122   : > { %v1137_v32 = vsel %vm1121_vm7, %v1113_v23, %v1129_v27  ;;  %v1139_v33 = vsel %vm1123_vm8, %v1115_v24, %v1131_v28 }
 0x123   : > { %v1325_v34 = vpack.c.bf16 %v1137_v32, %v1136_v29  ;;  %v1326_v35 = vpack.c.bf16 %v1139_v33, %v1138_v30  ;;  %1192 = vst [vmem:[%s197_s29] sm:$0xff] %v1172_v31 }
 0x125   : > { %v1181_v36 = vrot.slane %v1325_v34, %v1163_v2  ;;  %v1188_v37 = vrot.slane %v1326_v35, %v1163_v2 }
 0x127   : > { %v1189_v38 = vcombine.low %v1181_v36, %v1188_v37 }
 0x129   : > { %1193 = vst [vmem:[%s197_s29 + $0x8] sm:$0xff] %v1189_v38 }
 0x12a PF: > { %s14_s17 = sadd.s32 1, %s1426_s17   ;;  %s1594_s15 = smov %s1422_s16 }
 0x12b   : > { %p11_p5 = scmp.ge.s32.totalorder %s14_s17, 18   ;;  %s1595_s16 = smov %s1597_s18 }
 0x12d   :  { %13 = sbr.rel (!%p11_p5) target bundleno = 2 (0x2), region = 70 }

// kernel: unet_forward.6
= control target key start
LH: loop header
LB: loop body
LE: loop exit
PB: predicated region body
PF: predicated region fallthrough
CT: control target
= control target key end

     0   :  { %s3178_s18 = smov 0   ;;  %s3180_s19 = smov 0   ;;  %s3499_s0 = inlined_call_operand.vmem [shape: bf16[8,16640], index: 0, kind: input, shape index: {}]   ;;  %s3500_s1 = inlined_call_operand.vmem [shape: bf16[8,16640], index: 1, kind: input, shape index: {}]   ;;  %s3501_s2 = inlined_call_operand.vmem [shape: bf16[8,16640], index: 2, kind: input, shape index: {}]   ;;  %s3502_s3 = inlined_call_operand.vmem [shape: bf16[9,16,8], index: 3, kind: input, shape index: {}]   ;;  %s3503_s4 = inlined_call_operand.vmem [shape: f32[16,1], index: 4, kind: input, shape index: {}]   ;;  %s3504_s5 = inlined_call_operand.vmem [shape: bf16[16,16384], index: 5, kind: output, shape index: {}]  }
   0x1   :  { %s3182_s20 = smov 0   ;;  %s3184_s21 = smov 0  }
   0x2   :  { %s3186_s22 = smov 0  }
   0x3 LB: > { %s2650_s23 = sadd.s32 4294967295, %s3145_s22   ;;  %s24_s24 = sadd.s32 1, %s3141_s21  ;;  %s3145_s22 = sphi %s3186_s22, %s15_s22   ;;  %s3141_s21 = sphi %s3184_s21, %s3509_s21   ;;  %s3137_s20 = sphi %s3182_s20, %s3508_s20   ;;  %s3133_s19 = sphi %s3180_s19, %s3507_s19   ;;  %s3129_s18 = sphi %s3178_s18, %s3506_s18  }
   0x4   : > { %p25_p0 = scmp.ge.s32.totalorder %s24_s24, 16  ;;  %s143_s25 = sadd.s32 1, %s3133_s19 }
   0x5   : > { %p153_p1 = scmp.ne.s32.totalorder %s3133_s19, %s3129_s18  ;;  %p154_p2 = scmp.eq.s32.totalorder %s2650_s23, 15 }
   0x6   : > { %s3511_s24 = smov (%p25_p0, %s24_s24), 0  ;;  %p2653_p4 = scmp.ge.s32.totalorder %s3145_s22, 1 }
   0x7   : > { %p3210_p3 = por %p154_p2, %p153_p1  ;;  %s140_s27 = ssub.s32 %s3141_s21, %s3511_s24 }
   0x8   : > { %p193_p5 = scmp.lt.s32.totalorder %s3145_s22, 17  ;;  %p141_p6 = scmp.eq.s32.totalorder %s140_s27, 0 }
   0xa   : > { %p194_p7 = pnand %p2653_p4, %p193_p5 }
   0xb   : > { %s3219_s28 = scalar_select %p141_p6, %s3133_s19, %s143_s25  }
   0xc   : > { %197 = sbr.rel (%p194_p7) target bundleno = 389 (0x185), region = 40  ;;  %s3222_s29 = sshll.u32 (!%p194_p7), %s3137_s20, 10  ;;  %v3147_v0 = vmov (!%p194_p7), 0   ;;  %vm270_vm0 = vcmask (!%p194_p7), 1043456   ;;  %v3030_v15 = vld [vmem:[%s3502_s3 + $0x8] sm:$0xff] (!%p194_p7)   ;;  %vm266_vm1 = vcmask (!%p194_p7), 64512  }
   0xd   : > { %s222_s30 = sshra.s32 (!%p194_p7), %s3222_s29, 7  ;;  %327 = vmatprep.mubr.bf16.mxu0 (!%p194_p7), %v3147_v0  ;;  %370 = vmatprep.mubr.bf16.mxu1 (!%p194_p7), %v3147_v0  ;;  %v2440_v32 = vld [vmem:[%s3503_s4] sm:$0xff] (!%p194_p7)  ;;  %v2441_v40 = vld [vmem:[%s3503_s4 + $0x8] sm:$0xff] (!%p194_p7)  ;;  %v3048_v51 = vld [vmem:[%s3502_s3 + $0x10] sm:$0xff] (!%p194_p7)  }
   0xe   : > { %s3227_s6 = sshll.u32 (!%p194_p7), %s222_s30, 2  ;;  %3025 = vset.pattern.permute.xlu0 (!%p194_p7), %v3147_v0  ;;  %v3039_v33 = vld [vmem:[%s3502_s3] sm:$0xff] (!%p194_p7)  }
   0xf   : > { %s233_s9 = scalar_lea.vmem (!%p194_p7), %s3500_s1, %s3227_s6  ;;  %s3238_s12 = scalar_lea.vmem (!%p194_p7), %s3499_s0, %s3227_s6  ;;  %2444 = vperm.xlu0 (!%p194_p7), %3025, %v2440_v32  }
  0x10   : > { %v234_v1 = vld [vmem:[%s233_s9] sm:$0xff] (!%p194_p7)  ;;  %v235_v2 = vld [vmem:[%s233_s9 + $0x8] sm:$0xff] (!%p194_p7)  ;;  %v236_v3 = vld [vmem:[%s233_s9 + $0x10] sm:$0xff] (!%p194_p7)  ;;  %s3269_s17 = scalar_lea.vmem (!%p194_p7), %s3501_s2, %s3227_s6  ;;  %s940_s6 = sadd.s32 (!%p194_p7), 128, %s3222_s29 }
  0x11   : > { %v2662_v4 = vcombine.high (!%p194_p7), %v234_v1, %v234_v1  ;;  %v2664_v5 = vcombine.high (!%p194_p7), %v235_v2, %v235_v2  ;;  %v2661_v6 = vcombine.low (!%p194_p7), %v234_v1, %v234_v1  ;;  %v2663_v7 = vcombine.low (!%p194_p7), %v235_v2, %v235_v2  ;;  %v237_v8 = vld [vmem:[%s233_s9 + $0x18] sm:$0xff] (!%p194_p7)  ;;  %v226_v16 = vld [vmem:[%s3238_s12] sm:$0xff] (!%p194_p7)  ;;  %v227_v17 = vld [vmem:[%s3238_s12 + $0x8] sm:$0xff] (!%p194_p7)  ;;  %s941_s9 = sshra.s32 (!%p194_p7), %s940_s6, 7 }
  0x12   : > { %v2666_v9 = vcombine.high (!%p194_p7), %v236_v3, %v236_v3  ;;  %v2668_v10 = vcombine.high (!%p194_p7), %v237_v8, %v237_v8  ;;  %v2665_v11 = vcombine.low (!%p194_p7), %v236_v3, %v236_v3  ;;  %v2667_v12 = vcombine.low (!%p194_p7), %v237_v8, %v237_v8  ;;  %v228_v24 = vld [vmem:[%s3238_s12 + $0x10] sm:$0xff] (!%p194_p7)  ;;  %v229_v25 = vld [vmem:[%s3238_s12 + $0x18] sm:$0xff] (!%p194_p7)  ;;  %v693_v34 = vld [vmem:[%s3269_s17] sm:$0xff] (!%p194_p7)  ;;  %s3297_s10 = sshll.u32 (!%p194_p7), %s941_s9, 2  ;;  %s212_s12 = sand.u32 (!%p194_p7), 1, %s3129_s18  }
  0x13   : > { %2669 = vmatprep.subr.msk.bf16.mxu0 %vm270_vm0, %v2662_v4  ;;  %2671 = vmatprep.subr.msk.bf16.mxu1 %vm270_vm0, %v2664_v5  ;;  %v272_v13 = vsel %vm270_vm0, %v2661_v6, 0  ;;  %v278_v14 = vsel %vm270_vm0, %v2663_v7, 0  ;;  %v2679_v20 = vcombine.high %v226_v16, %v226_v16  ;;  %v2681_v21 = vcombine.high %v227_v17, %v227_v17  ;;  %v694_v35 = vld [vmem:[%s3269_s17 + $0x8] sm:$0xff]  ;;  %v695_v43 = vld [vmem:[%s3269_s17 + $0x10] sm:$0xff]  ;;  %v696_v44 = vld [vmem:[%s3269_s17 + $0x18] sm:$0xff]  ;;  %s944_s13 = scalar_lea.vmem %s3499_s0, %s3297_s10  ;;  %s1193_s23 = scalar_lea.vmem %s3500_s1, %s3297_s10 }
  0x14   : > { %296 = vmatpush1.bf16.msra.mxu0 %v272_v13  ;;  %339 = vmatpush1.bf16.msra.mxu1 %v278_v14  ;;  %v284_v18 = vsel %vm270_vm0, %v2665_v11, 0  ;;  %v290_v19 = vsel %vm270_vm0, %v2667_v12, 0  ;;  %v2678_v22 = vcombine.low %v226_v16, %v226_v16  ;;  %v2680_v23 = vcombine.low %v227_v17, %v227_v17  ;;  %v945_v52 = vld [vmem:[%s944_s13] sm:$0xff]  ;;  %v946_v53 = vld [vmem:[%s944_s13 + $0x8] sm:$0xff]  ;;  %v947_v60 = vld [vmem:[%s944_s13 + $0x10] sm:$0xff]  ;;  %s1442_s7 = scalar_lea.vmem %s3501_s2, %s3297_s10  ;;  %s1690_s10 = sadd.s32 256, %s3222_s29 }
  0x15   : > { %2673 = vmatprep.subr.msk.bf16.mxu0 %vm270_vm0, %v2666_v9  ;;  %2675 = vmatprep.subr.msk.bf16.mxu1 %vm270_vm0, %v2668_v10  ;;  %v2683_v28 = vcombine.high %v228_v24, %v228_v24  ;;  %v2685_v29 = vcombine.high %v229_v25, %v229_v25  ;;  %v2682_v30 = vcombine.low %v228_v24, %v228_v24  ;;  %v948_v61 = vld [vmem:[%s944_s13 + $0x18] sm:$0xff]  ;;  %v1194_v6 = vld [vmem:[%s1193_s23] sm:$0xff]  ;;  %v1195_v7 = vld [vmem:[%s1193_s23 + $0x8] sm:$0xff]  ;;  %s1691_s11 = sshra.s32 %s1690_s10, 7  ;;  %s2654_s13 = sshll.u32 %s212_s12, 6 }
  0x16   : > { %v496_v26 = vsel %vm270_vm0, %v2678_v22, 0  ;;  %v502_v27 = vsel %vm270_vm0, %v2680_v23, 0  ;;  %v2684_v31 = vcombine.low %v229_v25, %v229_v25  ;;  %v2699_v38 = vcombine.high %v693_v34, %v693_v34  ;;  %2449 = vperm.xlu0 %3025, %v2441_v40   ;;  %v3057_v5 = vld [vmem:[%s3502_s3 + $0x18] sm:$0xff]   ;;  %v1196_v14 = vld [vmem:[%s1193_s23 + $0x10] sm:$0xff]  ;;  %v3066_v22 = vld [vmem:[%s3502_s3 + $0x20] sm:$0xff]   ;;  %s3369_s29 = sshll.u32 %s1691_s11, 2 }
  0x17   : > { %2670 = vmatmul.mubr.msk.bf16.vlgmr.msra.gmra.mrb[0].mxu0 %vm266_vm1, %v3030_v15  ;;  %2672 = vmatmul.mubr.msk.bf16.vlgmr.msra.gmra.mrb[0].mxu1 %vm266_vm1, %v3030_v15  ;;  %v508_v36 = vsel %vm270_vm0, %v2682_v30, 0  ;;  %v2701_v39 = vcombine.high %v694_v35, %v694_v35  ;;  %v2698_v41 = vcombine.low %v693_v34, %v693_v34  ;;  %v2700_v42 = vcombine.low %v694_v35, %v694_v35  ;;  %v1443_v23 = vld [vmem:[%s1442_s7] sm:$0xff]  ;;  %v1444_v24 = vld [vmem:[%s1442_s7 + $0x8] sm:$0xff]  ;;  %v1446_v32 = vld [vmem:[%s1442_s7 + $0x18] sm:$0xff]  ;;  %s1694_s14 = scalar_lea.vmem %s3499_s0, %s3369_s29  ;;  %s1943_s25 = scalar_lea.vmem %s3500_s1, %s3369_s29 }
  0x18   : > { %382 = vmatpush1.bf16.msra.mxu0 %v284_v18  ;;  %425 = vmatpush1.bf16.msra.mxu1 %v290_v19  ;;  %v514_v37 = vsel %vm270_vm0, %v2684_v31, 0  ;;  %v2703_v47 = vcombine.high %v695_v43, %v695_v43  ;;  %v2705_v48 = vcombine.high %v696_v44, %v696_v44  ;;  %v2702_v49 = vcombine.low %v695_v43, %v695_v43  ;;  %v1445_v31 = vld [vmem:[%s1442_s7 + $0x10] sm:$0xff]  ;;  %v1695_v40 = vld [vmem:[%s1694_s14] sm:$0xff]  ;;  %s2192_s8 = scalar_lea.vmem %s3501_s2, %s3369_s29  ;;  %s3460_s18 = scalar_lea.vmem [#allocation2], %s2654_s13 }
  0x19   : > { %413 = vmatprep.mubr.bf16.mxu0 %v3147_v0  ;;  %456 = vmatprep.mubr.bf16.mxu1 %v3147_v0  ;;  %v729_v45 = vsel %vm270_vm0, %v2698_v41, 0  ;;  %v735_v46 = vsel %vm270_vm0, %v2700_v42, 0  ;;  %v2704_v50 = vcombine.low %v696_v44, %v696_v44  ;;  %v2719_v56 = vcombine.high %v945_v52, %v945_v52  ;;  %v1696_v41 = vld [vmem:[%s1694_s14 + $0x8] sm:$0xff] }
  0x1a   : > { %2686 = vmatprep.subr.msk.bf16.mxu0 %vm270_vm0, %v2679_v20  ;;  %2688 = vmatprep.subr.msk.bf16.mxu1 %vm270_vm0, %v2681_v21  ;;  %v741_v54 = vsel %vm270_vm0, %v2702_v49, 0  ;;  %v2721_v57 = vcombine.high %v946_v53, %v946_v53  ;;  %v2718_v58 = vcombine.low %v945_v52, %v945_v52  ;;  %v2720_v59 = vcombine.low %v946_v53, %v946_v53  ;;  %v1698_v49 = vld [vmem:[%s1694_s14 + $0x18] sm:$0xff] }
  0x1b   : > { %v747_v55 = vsel %vm270_vm0, %v2704_v50, 0  ;;  %v2723_v1 = vcombine.high %v947_v60, %v947_v60  ;;  %v2725_v2 = vcombine.high %v948_v61, %v948_v61  ;;  %v2722_v3 = vcombine.low %v947_v60, %v947_v60 }
  0x1c   : > { %v981_v62 = vsel %vm270_vm0, %v2718_v58, 0  ;;  %v987_v63 = vsel %vm270_vm0, %v2720_v59, 0  ;;  %v2724_v4 = vcombine.low %v948_v61, %v948_v61  ;;  %v2739_v10 = vcombine.high %v1194_v6, %v1194_v6  ;;  %v1945_v58 = vld [vmem:[%s1943_s25 + $0x8] sm:$0xff] }
  0x1d   : > { %v993_v8 = vsel %vm270_vm0, %v2722_v3, 0  ;;  %v2741_v11 = vcombine.high %v1195_v7, %v1195_v7  ;;  %v2738_v12 = vcombine.low %v1194_v6, %v1194_v6  ;;  %v2740_v13 = vcombine.low %v1195_v7, %v1195_v7  ;;  %v1947_v3 = vld [vmem:[%s1943_s25 + $0x18] sm:$0xff] }
  0x1e   : > { %v999_v9 = vsel %vm270_vm0, %v2724_v4, 0  ;;  %v2743_v18 = vcombine.high %v1196_v14, %v1196_v14  ;;  %v2742_v20 = vcombine.low %v1196_v14, %v1196_v14  ;;  %v2760_v30 = vcombine.low %v1444_v24, %v1444_v24 }
  0x1f   : > { %2674 = vmatmul.mubr.msk.bf16.vlgmr.msra.gmra.mrb[4].mxu0 %vm266_vm1, %v3030_v15  ;;  %2676 = vmatmul.mubr.msk.bf16.vlgmr.msra.gmra.mrb[4].mxu1 %vm266_vm1, %v3030_v15  ;;  %v1197_v15 = vld [vmem:[%s1193_s23 + $0x18] sm:$0xff]  ;;  %v1230_v16 = vsel %vm270_vm0, %v2738_v12, 0  ;;  %v1236_v17 = vsel %vm270_vm0, %v2740_v13, 0  ;;  %v2763_v35 = vcombine.high %v1445_v31, %v1445_v31  ;;  %v2779_v44 = vcombine.high %v1695_v40, %v1695_v40  ;;  %v2194_v12 = vld [vmem:[%s2192_s8 + $0x8] sm:$0xff] }
  0x20   : > { %520 = vmatpush1.bf16.msra.mxu0 %v496_v26  ;;  %563 = vmatpush1.bf16.msra.mxu1 %v502_v27  ;;  %v2745_v19 = vcombine.high %v1197_v15, %v1197_v15  ;;  %v2744_v21 = vcombine.low %v1197_v15, %v1197_v15  ;;  %v1242_v25 = vsel %vm270_vm0, %v2742_v20, 0  ;;  %v2759_v27 = vcombine.high %v1443_v23, %v1443_v23  ;;  %v2196_v20 = vld [vmem:[%s2192_s8 + $0x18] sm:$0xff] }
  0x21   : > { %551 = vmatprep.mubr.bf16.mxu0 %v3147_v0  ;;  %594 = vmatprep.mubr.bf16.mxu1 %v3147_v0  ;;  %v1485_v34 = vsel %vm270_vm0, %v2760_v30, 0  ;;  %v2785_v53 = vcombine.high %v1698_v49, %v1698_v49  ;;  %v2805_v7 = vcombine.high %v1947_v3, %v1947_v3 }
  0x22   : > { %2690 = vmatprep.subr.msk.bf16.mxu0 %vm270_vm0, %v2683_v28  ;;  %2692 = vmatprep.subr.msk.bf16.mxu1 %vm270_vm0, %v2685_v29  ;;  %v1248_v26 = vsel %vm270_vm0, %v2744_v21, 0  ;;  %v2761_v28 = vcombine.high %v1444_v24, %v1444_v24  ;;  %v2758_v29 = vcombine.low %v1443_v23, %v1443_v23  ;;  %v2825_v24 = vcombine.high %v2196_v20, %v2196_v20 }
  0x27   : > { %2687 = vmatmul.mubr.msk.bf16.vlgmr.msra.gmra.mrb[0].mxu0 %vm266_vm1, %v3039_v33  ;;  %2689 = vmatmul.mubr.msk.bf16.vlgmr.msra.gmra.mrb[0].mxu1 %vm266_vm1, %v3039_v33 }
  0x28   : > { %606 = vmatpush1.bf16.msra.mxu0 %v508_v36  ;;  %649 = vmatpush1.bf16.msra.mxu1 %v514_v37  ;;  %v2765_v36 = vcombine.high %v1446_v32, %v1446_v32  ;;  %v2762_v37 = vcombine.low %v1445_v31, %v1445_v31 }
  0x29   : > { %637 = vmatprep.mubr.bf16.mxu0 %v3147_v0  ;;  %680 = vmatprep.mubr.bf16.mxu1 %v3147_v0 }
  0x2a   : > { %2706 = vmatprep.subr.msk.bf16.mxu0 %vm270_vm0, %v2699_v38  ;;  %2708 = vmatprep.subr.msk.bf16.mxu1 %vm270_vm0, %v2701_v39  ;;  %v2764_v38 = vcombine.low %v1446_v32, %v1446_v32  ;;  %v3075_v39 = vld [vmem:[%s3502_s3 + $0x28] sm:$0xff]   ;;  %v1491_v42 = vsel %vm270_vm0, %v2762_v37, 0 }
  0x2c   : > { %v1497_v43 = vsel %vm270_vm0, %v2764_v38, 0 }
  0x2f   : > { %2691 = vmatmul.mubr.msk.bf16.vlgmr.msra.gmra.mrb[4].mxu0 %vm266_vm1, %v3039_v33  ;;  %2693 = vmatmul.mubr.msk.bf16.vlgmr.msra.gmra.mrb[4].mxu1 %vm266_vm1, %v3039_v33  ;;  %v1479_v33 = vsel %vm270_vm0, %v2758_v29, 0 }
  0x30   : > { %753 = vmatpush1.bf16.msra.mxu0 %v729_v45  ;;  %796 = vmatpush1.bf16.msra.mxu1 %v735_v46  ;;  %v2781_v45 = vcombine.high %v1696_v41, %v1696_v41  ;;  %v2778_v46 = vcombine.low %v1695_v40, %v1695_v40 }
  0x31   : > { %784 = vmatprep.mubr.bf16.mxu0 %v3147_v0  ;;  %827 = vmatprep.mubr.bf16.mxu1 %v3147_v0 }
  0x32   : > { %2710 = vmatprep.subr.msk.bf16.mxu0 %vm270_vm0, %v2703_v47  ;;  %2712 = vmatprep.subr.msk.bf16.mxu1 %vm270_vm0, %v2705_v48  ;;  %v2780_v47 = vcombine.low %v1696_v41, %v1696_v41  ;;  %v1697_v48 = vld [vmem:[%s1694_s14 + $0x10] sm:$0xff]  ;;  %v1731_v50 = vsel %vm270_vm0, %v2778_v46, 0  ;;  %s2855_s14 = sshll.u32 (%p3210_p3), %s3137_s20, 5 }
  0x33   : > { %v2783_v52 = vcombine.high %v1697_v48, %v1697_v48  ;;  %s2551_s17 = scalar_lea.vmem (%p3210_p3), %s3504_s5, %s2855_s14 }
  0x37   : > { %2707 = vmatmul.mubr.msk.bf16.vlgmr.msra.gmra.mrb[0].mxu0 %vm266_vm1, %v3048_v51  ;;  %2709 = vmatmul.mubr.msk.bf16.vlgmr.msra.gmra.mrb[0].mxu1 %vm266_vm1, %v3048_v51 }
  0x38   : > { %839 = vmatpush1.bf16.msra.mxu0 %v741_v54  ;;  %882 = vmatpush1.bf16.msra.mxu1 %v747_v55  ;;  %v2782_v54 = vcombine.low %v1697_v48, %v1697_v48  ;;  %v2784_v55 = vcombine.low %v1698_v49, %v1698_v49 }
  0x39   : > { %870 = vmatprep.mubr.bf16.mxu0 %v3147_v0  ;;  %913 = vmatprep.mubr.bf16.mxu1 %v3147_v0 }
  0x3a   : > { %2726 = vmatprep.subr.msk.bf16.mxu0 %vm270_vm0, %v2719_v56  ;;  %2728 = vmatprep.subr.msk.bf16.mxu1 %vm270_vm0, %v2721_v57  ;;  %v3084_v56 = vld [vmem:[%s3502_s3 + $0x30] sm:$0xff]   ;;  %v1944_v57 = vld [vmem:[%s1943_s25] sm:$0xff]  ;;  %v1743_v59 = vsel %vm270_vm0, %v2782_v54, 0  ;;  %v1749_v60 = vsel %vm270_vm0, %v2784_v55, 0 }
  0x3b   : > { %v2799_v61 = vcombine.high %v1944_v57, %v1944_v57 }
  0x3f   : > { %2711 = vmatmul.mubr.msk.bf16.vlgmr.msra.gmra.mrb[4].mxu0 %vm266_vm1, %v3048_v51  ;;  %2713 = vmatmul.mubr.msk.bf16.vlgmr.msra.gmra.mrb[4].mxu1 %vm266_vm1, %v3048_v51  ;;  %v1737_v51 = vsel %vm270_vm0, %v2780_v47, 0 }
  0x40   : > { %1005 = vmatpush1.bf16.msra.mxu0 %v981_v62  ;;  %1048 = vmatpush1.bf16.msra.mxu1 %v987_v63  ;;  %v2801_v62 = vcombine.high %v1945_v58, %v1945_v58  ;;  %v2798_v63 = vcombine.low %v1944_v57, %v1944_v57 }
  0x41   : > { %1036 = vmatprep.mubr.bf16.mxu0 %v3147_v0  ;;  %1079 = vmatprep.mubr.bf16.mxu1 %v3147_v0 }
  0x42   : > { %2730 = vmatprep.subr.msk.bf16.mxu0 %vm270_vm0, %v2723_v1  ;;  %2732 = vmatprep.subr.msk.bf16.mxu1 %vm270_vm0, %v2725_v2  ;;  %v2800_v1 = vcombine.low %v1945_v58, %v1945_v58  ;;  %v1946_v2 = vld [vmem:[%s1943_s25 + $0x10] sm:$0xff]  ;;  %v1980_v4 = vsel %vm270_vm0, %v2798_v63, 0 }
  0x43   : > { %v2803_v6 = vcombine.high %v1946_v2, %v1946_v2 }
  0x47   : > { %2727 = vmatmul.mubr.msk.bf16.vlgmr.msra.gmra.mrb[0].mxu0 %vm266_vm1, %v3057_v5  ;;  %2729 = vmatmul.mubr.msk.bf16.vlgmr.msra.gmra.mrb[0].mxu1 %vm266_vm1, %v3057_v5 }
  0x48   : > { %1091 = vmatpush1.bf16.msra.mxu0 %v993_v8  ;;  %1134 = vmatpush1.bf16.msra.mxu1 %v999_v9  ;;  %v2802_v8 = vcombine.low %v1946_v2, %v1946_v2  ;;  %v2804_v9 = vcombine.low %v1947_v3, %v1947_v3 }
  0x49   : > { %1122 = vmatprep.mubr.bf16.mxu0 %v3147_v0  ;;  %1165 = vmatprep.mubr.bf16.mxu1 %v3147_v0 }
  0x4a   : > { %2746 = vmatprep.subr.msk.bf16.mxu0 %vm270_vm0, %v2739_v10  ;;  %2748 = vmatprep.subr.msk.bf16.mxu1 %vm270_vm0, %v2741_v11  ;;  %v3093_v10 = vld [vmem:[%s3502_s3 + $0x38] sm:$0xff]   ;;  %v2193_v11 = vld [vmem:[%s2192_s8] sm:$0xff]  ;;  %v1992_v13 = vsel %vm270_vm0, %v2802_v8, 0  ;;  %v1998_v14 = vsel %vm270_vm0, %v2804_v9, 0 }
  0x4b   : > { %v2819_v15 = vcombine.high %v2193_v11, %v2193_v11 }
  0x4f   : > { %2731 = vmatmul.mubr.msk.bf16.vlgmr.msra.gmra.mrb[4].mxu0 %vm266_vm1, %v3057_v5  ;;  %2733 = vmatmul.mubr.msk.bf16.vlgmr.msra.gmra.mrb[4].mxu1 %vm266_vm1, %v3057_v5  ;;  %v1986_v5 = vsel %vm270_vm0, %v2800_v1, 0 }
  0x50   : > { %1254 = vmatpush1.bf16.msra.mxu0 %v1230_v16  ;;  %1297 = vmatpush1.bf16.msra.mxu1 %v1236_v17  ;;  %v2821_v16 = vcombine.high %v2194_v12, %v2194_v12  ;;  %v2818_v17 = vcombine.low %v2193_v11, %v2193_v11 }
  0x51   : > { %1285 = vmatprep.mubr.bf16.mxu0 %v3147_v0  ;;  %1328 = vmatprep.mubr.bf16.mxu1 %v3147_v0 }
  0x52   : > { %2750 = vmatprep.subr.msk.bf16.mxu0 %vm270_vm0, %v2743_v18  ;;  %2752 = vmatprep.subr.msk.bf16.mxu1 %vm270_vm0, %v2745_v19  ;;  %v2820_v18 = vcombine.low %v2194_v12, %v2194_v12  ;;  %v2195_v19 = vld [vmem:[%s2192_s8 + $0x10] sm:$0xff]  ;;  %v2229_v21 = vsel %vm270_vm0, %v2818_v17, 0 }
  0x53   : > { %v2823_v23 = vcombine.high %v2195_v19, %v2195_v19 }
  0x57   : > { %2747 = vmatmul.mubr.msk.bf16.vlgmr.msra.gmra.mrb[0].mxu0 %vm266_vm1, %v3066_v22  ;;  %2749 = vmatmul.mubr.msk.bf16.vlgmr.msra.gmra.mrb[0].mxu1 %vm266_vm1, %v3066_v22 }
  0x58   : > { %1340 = vmatpush1.bf16.msra.mxu0 %v1242_v25  ;;  %1383 = vmatpush1.bf16.msra.mxu1 %v1248_v26  ;;  %v2822_v25 = vcombine.low %v2195_v19, %v2195_v19  ;;  %v2824_v26 = vcombine.low %v2196_v20, %v2196_v20 }
  0x59   : > { %1371 = vmatprep.mubr.bf16.mxu0 %v3147_v0  ;;  %1414 = vmatprep.mubr.bf16.mxu1 %v3147_v0 }
  0x5a   : > { %2766 = vmatprep.subr.msk.bf16.mxu0 %vm270_vm0, %v2759_v27  ;;  %2768 = vmatprep.subr.msk.bf16.mxu1 %vm270_vm0, %v2761_v28  ;;  %v3102_v27 = vld [vmem:[%s3502_s3 + $0x40] sm:$0xff]   ;;  %v2241_v28 = vsel %vm270_vm0, %v2822_v25, 0  ;;  %v2247_v29 = vsel %vm270_vm0, %v2824_v26, 0 }
  0x5f   : > { %2751 = vmatmul.mubr.msk.bf16.vlgmr.msra.gmra.mrb[4].mxu0 %vm266_vm1, %v3066_v22  ;;  %2753 = vmatmul.mubr.msk.bf16.vlgmr.msra.gmra.mrb[4].mxu1 %vm266_vm1, %v3066_v22  ;;  %v2235_v22 = vsel %vm270_vm0, %v2820_v18, 0 }
  0x60   : > { %1503 = vmatpush1.bf16.msra.mxu0 %v1479_v33  ;;  %1546 = vmatpush1.bf16.msra.mxu1 %v1485_v34 }
  0x61   : > { %1534 = vmatprep.mubr.bf16.mxu0 %v3147_v0  ;;  %1577 = vmatprep.mubr.bf16.mxu1 %v3147_v0 }
  0x62   : > { %2770 = vmatprep.subr.msk.bf16.mxu0 %vm270_vm0, %v2763_v35  ;;  %2772 = vmatprep.subr.msk.bf16.mxu1 %vm270_vm0, %v2765_v36 }
  0x67   : > { %2767 = vmatmul.mubr.msk.bf16.vlgmr.msra.gmra.mrb[0].mxu0 %vm266_vm1, %v3075_v39  ;;  %2769 = vmatmul.mubr.msk.bf16.vlgmr.msra.gmra.mrb[0].mxu1 %vm266_vm1, %v3075_v39 }
  0x68   : > { %1589 = vmatpush1.bf16.msra.mxu0 %v1491_v42  ;;  %1632 = vmatpush1.bf16.msra.mxu1 %v1497_v43 }
  0x69   : > { %1620 = vmatprep.mubr.bf16.mxu0 %v3147_v0  ;;  %1663 = vmatprep.mubr.bf16.mxu1 %v3147_v0 }
  0x6a   : > { %2786 = vmatprep.subr.msk.bf16.mxu0 %vm270_vm0, %v2779_v44  ;;  %2788 = vmatprep.subr.msk.bf16.mxu1 %vm270_vm0, %v2781_v45 }
  0x6f   : > { %2771 = vmatmul.mubr.msk.bf16.vlgmr.msra.gmra.mrb[4].mxu0 %vm266_vm1, %v3075_v39  ;;  %2773 = vmatmul.mubr.msk.bf16.vlgmr.msra.gmra.mrb[4].mxu1 %vm266_vm1, %v3075_v39 }
  0x70   : > { %1755 = vmatpush1.bf16.msra.mxu0 %v1731_v50  ;;  %1798 = vmatpush1.bf16.msra.mxu1 %v1737_v51 }
  0x71   : > { %1786 = vmatprep.mubr.bf16.mxu0 %v3147_v0  ;;  %1829 = vmatprep.mubr.bf16.mxu1 %v3147_v0 }
  0x72   : > { %2790 = vmatprep.subr.msk.bf16.mxu0 %vm270_vm0, %v2783_v52  ;;  %2792 = vmatprep.subr.msk.bf16.mxu1 %vm270_vm0, %v2785_v53 }
  0x77   : > { %2787 = vmatmul.mubr.msk.bf16.vlgmr.msra.gmra.mrb[0].mxu0 %vm266_vm1, %v3084_v56  ;;  %2789 = vmatmul.mubr.msk.bf16.vlgmr.msra.gmra.mrb[0].mxu1 %vm266_vm1, %v3084_v56 }
  0x78   : > { %1841 = vmatpush1.bf16.msra.mxu0 %v1743_v59  ;;  %1884 = vmatpush1.bf16.msra.mxu1 %v1749_v60 }
  0x79   : > { %1872 = vmatprep.mubr.bf16.mxu0 %v3147_v0  ;;  %1915 = vmatprep.mubr.bf16.mxu1 %v3147_v0 }
  0x7a   : > { %2806 = vmatprep.subr.msk.bf16.mxu0 %vm270_vm0, %v2799_v61  ;;  %2808 = vmatprep.subr.msk.bf16.mxu1 %vm270_vm0, %v2801_v62 }
  0x7f   : > { %2791 = vmatmul.mubr.msk.bf16.vlgmr.msra.gmra.mrb[4].mxu0 %vm266_vm1, %v3084_v56  ;;  %2793 = vmatmul.mubr.msk.bf16.vlgmr.msra.gmra.mrb[4].mxu1 %vm266_vm1, %v3084_v56 }
  0x80   : > { %2004 = vmatpush1.bf16.msra.mxu0 %v1980_v4  ;;  %2047 = vmatpush1.bf16.msra.mxu1 %v1986_v5 }
  0x81   : > { %2035 = vmatprep.mubr.bf16.mxu0 %v3147_v0  ;;  %2078 = vmatprep.mubr.bf16.mxu1 %v3147_v0 }
  0x82   : > { %2810 = vmatprep.subr.msk.bf16.mxu0 %vm270_vm0, %v2803_v6  ;;  %2812 = vmatprep.subr.msk.bf16.mxu1 %vm270_vm0, %v2805_v7 }
  0x87   : > { %2807 = vmatmul.mubr.msk.bf16.vlgmr.msra.gmra.mrb[0].mxu0 %vm266_vm1, %v3093_v10  ;;  %2809 = vmatmul.mubr.msk.bf16.vlgmr.msra.gmra.mrb[0].mxu1 %vm266_vm1, %v3093_v10 }
  0x88   : > { %2090 = vmatpush1.bf16.msra.mxu0 %v1992_v13  ;;  %2133 = vmatpush1.bf16.msra.mxu1 %v1998_v14 }
  0x89   : > { %2121 = vmatprep.mubr.bf16.mxu0 %v3147_v0  ;;  %2164 = vmatprep.mubr.bf16.mxu1 %v3147_v0 }
  0x8a   : > { %2826 = vmatprep.subr.msk.bf16.mxu0 %vm270_vm0, %v2819_v15  ;;  %2828 = vmatprep.subr.msk.bf16.mxu1 %vm270_vm0, %v2821_v16 }
  0x8e   : > { %v2445_v30 = vpop.permute.xlu0 %2444 }
  0x8f   : > { %2811 = vmatmul.mubr.msk.bf16.vlgmr.msra.gmra.mrb[4].mxu0 %vm266_vm1, %v3093_v10  ;;  %2813 = vmatmul.mubr.msk.bf16.vlgmr.msra.gmra.mrb[4].mxu1 %vm266_vm1, %v3093_v10 }
  0x90   : > { %2253 = vmatpush1.bf16.msra.mxu0 %v2229_v21  ;;  %2296 = vmatpush1.bf16.msra.mxu1 %v2235_v22 }
  0x91   : > { %2284 = vmatprep.mubr.bf16.mxu0 %v3147_v0  ;;  %2327 = vmatprep.mubr.bf16.mxu1 %v3147_v0 }
  0x92   : > { %2830 = vmatprep.subr.msk.bf16.mxu0 %vm270_vm0, %v2823_v23  ;;  %2832 = vmatprep.subr.msk.bf16.mxu1 %vm270_vm0, %v2825_v24 }
  0x95   : > { %v2450_v31 = vpop.permute.xlu0 %2449 }
  0x97   : > { %2827 = vmatmul.mubr.msk.bf16.vlgmr.msra.gmra.mrb[0].mxu0 %vm266_vm1, %v3102_v27  ;;  %2829 = vmatmul.mubr.msk.bf16.vlgmr.msra.gmra.mrb[0].mxu1 %vm266_vm1, %v3102_v27 }
  0x98   : > { %2339 = vmatpush1.bf16.msra.mxu0 %v2241_v28  ;;  %2382 = vmatpush1.bf16.msra.mxu1 %v2247_v29 }
  0x99   : > { %2370 = vmatprep.mubr.bf16.mxu0 %v3147_v0  ;;  %2413 = vmatprep.mubr.bf16.mxu1 %v3147_v0 }
  0x9f   : > { %2831 = vmatmul.mubr.msk.bf16.vlgmr.msra.gmra.mrb[4].mxu0 %vm266_vm1, %v3102_v27  ;;  %2833 = vmatmul.mubr.msk.bf16.vlgmr.msra.gmra.mrb[4].mxu1 %vm266_vm1, %v3102_v27 }
 0x16a   : > { %v2286_v32 = vpop.f32.mrb[0].mxu0  ;;  %v2329_v33 = vpop.f32.mrb[0].mxu1 }
 0x16b   : > { %v2452_v34 = vadd.f32 %v2445_v30, %v2286_v32  ;;  %v2454_v35 = vadd.f32 %v2445_v30, %v2329_v33  ;;  %v2288_v36 = vpop.f32.mrb[1].mxu0  ;;  %v2331_v37 = vpop.f32.mrb[1].mxu1 }
 0x16c   : > { %v2453_v38 = vadd.f32 %v2445_v30, %v2288_v36  ;;  %v2455_v39 = vadd.f32 %v2445_v30, %v2331_v37  ;;  %v2290_v40 = vpop.f32.mrb[2].mxu0  ;;  %v2333_v41 = vpop.f32.mrb[2].mxu1 }
 0x16d   : > { %v2468_v42 = vmax.f32 %v2452_v34, 0.0  ;;  %v2470_v0 = vmax.f32 %v2454_v35, 0.0  ;;  %v2460_v43 = vadd.f32 %v2450_v31, %v2290_v40  ;;  %v2462_v44 = vadd.f32 %v2450_v31, %v2333_v41  ;;  %v2292_v45 = vpop.f32.mrb[3].mxu0  ;;  %v2335_v46 = vpop.f32.mrb[3].mxu1 }
 0x16e   : > { %v2469_v47 = vmax.f32 %v2453_v38, 0.0  ;;  %v2471_v48 = vmax.f32 %v2455_v39, 0.0  ;;  %v2461_v49 = vadd.f32 %v2450_v31, %v2292_v45  ;;  %v2463_v50 = vadd.f32 %v2450_v31, %v2335_v46 }
 0x16f   : > { %v2476_v51 = vmax.f32 %v2460_v43, 0.0  ;;  %v2478_v52 = vmax.f32 %v2462_v44, 0.0 }
 0x170   : > { %v2847_v53 = vpack.c.bf16 %v2469_v47, %v2468_v42  ;;  %v2848_v54 = vpack.c.bf16 %v2471_v48, %v2470_v0  ;;  %v2477_v55 = vmax.f32 %v2461_v49, 0.0  ;;  %v2479_v56 = vmax.f32 %v2463_v50, 0.0 }
 0x172   : > { %2532 = vst [vmem:[%s3460_s18] sm:$0xff] %v2847_v53  ;;  %2533 = vst [vmem:[%s3460_s18 + $0x8] sm:$0xff] %v2848_v54  ;;  %v2851_v57 = vpack.c.bf16 %v2477_v55, %v2476_v51  ;;  %v2852_v58 = vpack.c.bf16 %v2479_v56, %v2478_v52  ;;  %v2372_v59 = vpop.f32.mrb[4].mxu0  ;;  %v2415_v60 = vpop.f32.mrb[4].mxu1 }
 0x173   : > { %v2456_v61 = vadd.f32 %v2445_v30, %v2372_v59  ;;  %v2458_v62 = vadd.f32 %v2445_v30, %v2415_v60  ;;  %v2374_v63 = vpop.f32.mrb[5].mxu0  ;;  %v2417_v1 = vpop.f32.mrb[5].mxu1 }
 0x174   : > { %2536 = vst [vmem:[%s3460_s18 + $0x20] sm:$0xff] %v2851_v57  ;;  %2537 = vst [vmem:[%s3460_s18 + $0x28] sm:$0xff] %v2852_v58  ;;  %v2457_v2 = vadd.f32 %v2445_v30, %v2374_v63  ;;  %v2459_v3 = vadd.f32 %v2445_v30, %v2417_v1  ;;  %v2376_v4 = vpop.f32.mrb[6].mxu0  ;;  %v2419_v5 = vpop.f32.mrb[6].mxu1 }
 0x175   : > { %v2472_v6 = vmax.f32 %v2456_v61, 0.0  ;;  %v2474_v7 = vmax.f32 %v2458_v62, 0.0  ;;  %v2464_v8 = vadd.f32 %v2450_v31, %v2376_v4  ;;  %v2466_v9 = vadd.f32 %v2450_v31, %v2419_v5  ;;  %v2378_v10 = vpop.f32.mrb[7].mxu0  ;;  %v2421_v11 = vpop.f32.mrb[7].mxu1 }
 0x176   : > { %v2473_v12 = vmax.f32 %v2457_v2, 0.0  ;;  %v2475_v13 = vmax.f32 %v2459_v3, 0.0  ;;  %v2465_v14 = vadd.f32 %v2450_v31, %v2378_v10  ;;  %v2467_v15 = vadd.f32 %v2450_v31, %v2421_v11  ;;  %2546 = sbr.rel (!%p3210_p3) target bundleno = 389 (0x185), region = 44 }
 0x177   : > { %v2480_v16 = vmax.f32 %v2464_v8, 0.0  ;;  %v2482_v17 = vmax.f32 %v2466_v9, 0.0 }
 0x178   : > { %v2849_v18 = vpack.c.bf16 %v2473_v12, %v2472_v6  ;;  %v2850_v19 = vpack.c.bf16 %v2475_v13, %v2474_v7  ;;  %v2481_v20 = vmax.f32 %v2465_v14, 0.0  ;;  %v2483_v21 = vmax.f32 %v2467_v15, 0.0 }
 0x179   : > { %v2564_v24 = vld [vmem:[%s3460_s18] sm:$0xff] (%p3210_p3)  ;;  %v2566_v25 = vld [vmem:[%s3460_s18 + $0x8] sm:$0xff] (%p3210_p3) }
 0x17a   : > { %2534 = vst [vmem:[%s3460_s18 + $0x10] sm:$0xff] %v2849_v18  ;;  %2535 = vst [vmem:[%s3460_s18 + $0x18] sm:$0xff] %v2850_v19  ;;  %v2853_v22 = vpack.c.bf16 %v2481_v20, %v2480_v16  ;;  %v2854_v23 = vpack.c.bf16 %v2483_v21, %v2482_v17 }
 0x17b   : > { %v2572_v28 = vld [vmem:[%s3460_s18 + $0x20] sm:$0xff] (%p3210_p3)  ;;  %v2574_v29 = vld [vmem:[%s3460_s18 + $0x28] sm:$0xff] (%p3210_p3)  ;;  %2565 = vst [vmem:[%s2551_s17] sm:$0xff] (%p3210_p3), %v2564_v24  ;;  %2567 = vst [vmem:[%s2551_s17 + $0x8] sm:$0xff] (%p3210_p3), %v2566_v25 }
 0x17c   : > { %2538 = vst [vmem:[%s3460_s18 + $0x30] sm:$0xff] %v2853_v22  ;;  %2539 = vst [vmem:[%s3460_s18 + $0x38] sm:$0xff] %v2854_v23 }
 0x17d   : > { %2573 = vst [vmem:[%s2551_s17 + $0x200] sm:$0xff] %v2572_v28  ;;  %2575 = vst [vmem:[%s2551_s17 + $0x208] sm:$0xff] %v2574_v29 }
 0x181   : > { %v2568_v26 = vld [vmem:[%s3460_s18 + $0x10] sm:$0xff]  ;;  %v2570_v27 = vld [vmem:[%s3460_s18 + $0x18] sm:$0xff] }
 0x182   : > { %2569 = vst [vmem:[%s2551_s17 + $0x10] sm:$0xff] %v2568_v26  ;;  %2571 = vst [vmem:[%s2551_s17 + $0x18] sm:$0xff] %v2570_v27 }
 0x183   : > { %v2576_v30 = vld [vmem:[%s3460_s18 + $0x30] sm:$0xff]  ;;  %v2578_v31 = vld [vmem:[%s3460_s18 + $0x38] sm:$0xff] }
 0x184   : > { %2577 = vst [vmem:[%s2551_s17 + $0x210] sm:$0xff] %v2576_v30  ;;  %2579 = vst [vmem:[%s2551_s17 + $0x218] sm:$0xff] %v2578_v31 }
 0x185 PF: > { %s15_s22 = sadd.s32 1, %s3145_s22   ;;  %s3506_s18 = smov %s3133_s19 }
 0x186   : > { %p12_p8 = scmp.ge.s32.totalorder %s15_s22, 18   ;;  %s3507_s19 = smov %s3219_s28 }
 0x187   : > { %s3508_s20 = smov %s3141_s21  ;;  %s3509_s21 = smov %s3511_s24 }
 0x188   :  { %14 = sbr.rel (!%p12_p8) target bundleno = 3 (0x3), region = 107 }

// kernel: unet_forward.7
= control target key start
LH: loop header
LB: loop body
LE: loop exit
PB: predicated region body
PF: predicated region fallthrough
CT: control target
= control target key end

     0   :  { %s9480_s18 = smov 0   ;;  %s9482_s19 = smov 0   ;;  %s11328_s0 = inlined_call_operand.vmem [shape: bf16[8,66048], index: 0, kind: input, shape index: {}]   ;;  %s11329_s1 = inlined_call_operand.vmem [shape: bf16[8,66048], index: 1, kind: input, shape index: {}]   ;;  %s11330_s2 = inlined_call_operand.vmem [shape: bf16[8,66048], index: 2, kind: input, shape index: {}]   ;;  %s11331_s3 = inlined_call_operand.vmem [shape: bf16[9,4,8], index: 3, kind: input, shape index: {}]   ;;  %s11332_s4 = inlined_call_operand.vmem [shape: f32[4,1], index: 4, kind: input, shape index: {}]   ;;  %s11333_s5 = inlined_call_operand.vmem [shape: bf16[4,65536], index: 5, kind: output, shape index: {}]  }
   0x1   :  { %s9484_s20 = smov 0  }
   0x2 LB: > { %s24_s21 = sadd.s32 1, %s9442_s19  ;;  %p8494_p0 = scmp.ge.s32.totalorder %s9446_s20, 1  ;;  %s9446_s20 = sphi %s9484_s20, %s15_s20   ;;  %s9442_s19 = sphi %s9482_s19, %s11336_s19   ;;  %s9438_s18 = sphi %s9480_s18, %s11335_s18  }
   0x3   : > { %p25_p1 = scmp.ge.s32.totalorder %s24_s21, 16  ;;  %p193_p2 = scmp.lt.s32.totalorder %s9446_s20, 17 }
   0x5   : > { %s11338_s21 = smov (%p25_p1, %s24_s21), 0  ;;  %p194_p3 = pnand %p8494_p0, %p193_p2 }
   0x6   : > { %s9501_s22 = sshll.u32 (!%p194_p3), %s9438_s18, 12  ;;  %v9448_v0 = vmov (!%p194_p3), 0   ;;  %vm357_vm0 = vcmask (!%p194_p3), 1043456   ;;  %v9528_v17 = vld [vmem:[%s11331_s3 + $0x2] sm:$0x3] (!%p194_p3)  ;;  %vm353_vm1 = vcmask (!%p194_p3), 64512  }
   0x7   : > { %197 = sbr.rel (%p194_p3) target bundleno = 809 (0x329), region = 40  ;;  %s232_s23 = sshra.s32 (!%p194_p3), %s9501_s22, 7  ;;  %486 = vmatprep.mubr.bf16.mxu0 (!%p194_p3), %v9448_v0  ;;  %527 = vmatprep.mubr.bf16.mxu1 (!%p194_p3), %v9448_v0 }
   0x8   : > { %s9506_s24 = sshll.u32 (!%p194_p3), %s232_s23, 2  ;;  %9135 = vset.pattern.permute.xlu0 (!%p194_p3), %v9448_v0  ;;  %s2832_s15 = sadd.s32 (!%p194_p3), 256, %s9501_s22 }
   0x9   : > { %s9513_s27 = scalar_lea.vmem (!%p194_p3), %s11329_s1, %s9506_s24  ;;  %s9602_s7 = scalar_lea.vmem (!%p194_p3), %s11328_s0, %s9506_s24 }
   0xa   : > { %v255_v1 = vld [vmem:[%s9513_s27] sm:$0xff] (!%p194_p3)  ;;  %v256_v2 = vld [vmem:[%s9513_s27 + $0x8] sm:$0xff] (!%p194_p3)  ;;  %v257_v3 = vld [vmem:[%s9513_s27 + $0x10] sm:$0xff] (!%p194_p3)  ;;  %s9709_s12 = scalar_lea.vmem (!%p194_p3), %s11330_s2, %s9506_s24  ;;  %s2833_s16 = sshra.s32 (!%p194_p3), %s2832_s15, 7 }
   0xb   : > { %v8502_v4 = vcombine.high (!%p194_p3), %v255_v1, %v255_v1  ;;  %v8504_v5 = vcombine.high (!%p194_p3), %v256_v2, %v256_v2  ;;  %v8501_v6 = vcombine.low (!%p194_p3), %v255_v1, %v255_v1  ;;  %v8503_v7 = vcombine.low (!%p194_p3), %v256_v2, %v256_v2  ;;  %v258_v8 = vld [vmem:[%s9513_s27 + $0x18] sm:$0xff] (!%p194_p3)  ;;  %v259_v15 = vld [vmem:[%s9513_s27 + $0x20] sm:$0xff] (!%p194_p3)  ;;  %v260_v16 = vld [vmem:[%s9513_s27 + $0x28] sm:$0xff] (!%p194_p3)  ;;  %s9807_s17 = sshll.u32 (!%p194_p3), %s2833_s16, 2  ;;  %s5496_s13 = sadd.s32 (!%p194_p3), 512, %s9501_s22 }
   0xc   : > { %v8506_v9 = vcombine.high (!%p194_p3), %v257_v3, %v257_v3  ;;  %v8508_v10 = vcombine.high (!%p194_p3), %v258_v8, %v258_v8  ;;  %v8505_v11 = vcombine.low (!%p194_p3), %v257_v3, %v257_v3  ;;  %v8507_v12 = vcombine.low (!%p194_p3), %v258_v8, %v258_v8  ;;  %v261_v24 = vld [vmem:[%s9513_s27 + $0x30] sm:$0xff] (!%p194_p3)  ;;  %v262_v25 = vld [vmem:[%s9513_s27 + $0x38] sm:$0xff] (!%p194_p3)  ;;  %v263_v32 = vld [vmem:[%s9513_s27 + $0x40] sm:$0xff] (!%p194_p3)  ;;  %s9819_s25 = scalar_lea.vmem (!%p194_p3), %s11328_s0, %s9807_s17  ;;  %s9950_s30 = scalar_lea.vmem (!%p194_p3), %s11329_s1, %s9807_s17 }
   0xd   : > { %8533 = vmatprep.subr.msk.bf16.mxu0 (!%p194_p3), %vm357_vm0, %v8502_v4  ;;  %8535 = vmatprep.subr.msk.bf16.mxu1 (!%p194_p3), %vm357_vm0, %v8504_v5  ;;  %v359_v13 = vsel (!%p194_p3), %vm357_vm0, %v8501_v6, 0  ;;  %v365_v14 = vsel (!%p194_p3), %vm357_vm0, %v8503_v7, 0  ;;  %v8510_v20 = vcombine.high (!%p194_p3), %v259_v15, %v259_v15  ;;  %v8512_v21 = vcombine.high (!%p194_p3), %v260_v16, %v260_v16  ;;  %v264_v33 = vld [vmem:[%s9513_s27 + $0x48] sm:$0xff] (!%p194_p3)  ;;  %v265_v40 = vld [vmem:[%s9513_s27 + $0x50] sm:$0xff] (!%p194_p3)  ;;  %v266_v41 = vld [vmem:[%s9513_s27 + $0x58] sm:$0xff] (!%p194_p3)  ;;  %s10133_s10 = scalar_lea.vmem (!%p194_p3), %s11330_s2, %s9807_s17  ;;  %s5497_s14 = sshra.s32 (!%p194_p3), %s5496_s13, 7 }
   0xe   : > { %455 = vmatpush1.bf16.msra.mxu0 %v359_v13  ;;  %496 = vmatpush1.bf16.msra.mxu1 %v365_v14  ;;  %v371_v18 = vsel %vm357_vm0, %v8505_v11, 0  ;;  %v377_v19 = vsel %vm357_vm0, %v8507_v12, 0  ;;  %v8509_v22 = vcombine.low %v259_v15, %v259_v15  ;;  %v8511_v23 = vcombine.low %v260_v16, %v260_v16  ;;  %v267_v48 = vld [vmem:[%s9513_s27 + $0x60] sm:$0xff]  ;;  %v268_v49 = vld [vmem:[%s9513_s27 + $0x68] sm:$0xff]  ;;  %v269_v56 = vld [vmem:[%s9513_s27 + $0x70] sm:$0xff]  ;;  %s10327_s22 = sshll.u32 %s5497_s14, 2 }
   0xf   : > { %8537 = vmatprep.subr.msk.bf16.mxu0 %vm357_vm0, %v8506_v9  ;;  %8539 = vmatprep.subr.msk.bf16.mxu1 %vm357_vm0, %v8508_v10  ;;  %v8514_v28 = vcombine.high %v261_v24, %v261_v24  ;;  %v8516_v29 = vcombine.high %v262_v25, %v262_v25  ;;  %v8513_v30 = vcombine.low %v261_v24, %v261_v24  ;;  %v270_v57 = vld [vmem:[%s9513_s27 + $0x78] sm:$0xff]  ;;  %v236_v1 = vld [vmem:[%s9602_s7] sm:$0xff]  ;;  %v237_v2 = vld [vmem:[%s9602_s7 + $0x8] sm:$0xff]  ;;  %s10339_s17 = scalar_lea.vmem %s11328_s0, %s10327_s22  ;;  %s10542_s27 = scalar_lea.vmem %s11329_s1, %s10327_s22 }
  0x10   : > { %v383_v26 = vsel %vm357_vm0, %v8509_v22, 0  ;;  %v389_v27 = vsel %vm357_vm0, %v8511_v23, 0  ;;  %v8515_v31 = vcombine.low %v262_v25, %v262_v25  ;;  %v8518_v36 = vcombine.high %v263_v32, %v263_v32  ;;  %v238_v9 = vld [vmem:[%s9602_s7 + $0x10] sm:$0xff]  ;;  %v239_v10 = vld [vmem:[%s9602_s7 + $0x18] sm:$0xff]  ;;  %s10748_s9 = scalar_lea.vmem %s11330_s2, %s10327_s22 }
  0x11   : > { %8534 = vmatmul.mubr.msk.bf16.vlgmr.msra.gmra.mrb[0].mxu0 %vm353_vm1, %v9528_v17  ;;  %8536 = vmatmul.mubr.msk.bf16.vlgmr.msra.gmra.mrb[0].mxu1 %vm353_vm1, %v9528_v17  ;;  %v395_v34 = vsel %vm357_vm0, %v8513_v30, 0  ;;  %v8520_v37 = vcombine.high %v264_v33, %v264_v33  ;;  %v8517_v38 = vcombine.low %v263_v32, %v263_v32  ;;  %v8519_v39 = vcombine.low %v264_v33, %v264_v33 }
  0x12   : > { %537 = vmatpush1.bf16.msra.mxu0 %v371_v18  ;;  %578 = vmatpush1.bf16.msra.mxu1 %v377_v19  ;;  %v401_v35 = vsel %vm357_vm0, %v8515_v31, 0  ;;  %v8522_v44 = vcombine.high %v265_v40, %v265_v40  ;;  %v8524_v45 = vcombine.high %v266_v41, %v266_v41  ;;  %v8521_v46 = vcombine.low %v265_v40, %v265_v40  ;;  %v240_v18 = vld [vmem:[%s9602_s7 + $0x20] sm:$0xff]  ;;  %v241_v19 = vld [vmem:[%s9602_s7 + $0x28] sm:$0xff] }
  0x13   : > { %568 = vmatprep.mubr.bf16.mxu0 %v9448_v0  ;;  %609 = vmatprep.mubr.bf16.mxu1 %v9448_v0  ;;  %v407_v42 = vsel %vm357_vm0, %v8517_v38, 0  ;;  %v413_v43 = vsel %vm357_vm0, %v8519_v39, 0  ;;  %v8523_v47 = vcombine.low %v266_v41, %v266_v41  ;;  %v8526_v52 = vcombine.high %v267_v48, %v267_v48 }
  0x14   : > { %8541 = vmatprep.subr.msk.bf16.mxu0 %vm357_vm0, %v8510_v20  ;;  %8543 = vmatprep.subr.msk.bf16.mxu1 %vm357_vm0, %v8512_v21  ;;  %v419_v50 = vsel %vm357_vm0, %v8521_v46, 0  ;;  %v8528_v53 = vcombine.high %v268_v49, %v268_v49  ;;  %v8525_v54 = vcombine.low %v267_v48, %v267_v48  ;;  %v8527_v55 = vcombine.low %v268_v49, %v268_v49  ;;  %v9637_v20 = vld [vmem:[%s11331_s3] sm:$0x3] }
  0x15   : > { %v425_v51 = vsel %vm357_vm0, %v8523_v47, 0  ;;  %v8530_v60 = vcombine.high %v269_v56, %v269_v56  ;;  %v8532_v61 = vcombine.high %v270_v57, %v270_v57  ;;  %v8529_v62 = vcombine.low %v269_v56, %v269_v56 }
  0x16   : > { %v431_v58 = vsel %vm357_vm0, %v8525_v54, 0  ;;  %v437_v59 = vsel %vm357_vm0, %v8527_v55, 0  ;;  %v8531_v63 = vcombine.low %v270_v57, %v270_v57  ;;  %v8566_v5 = vcombine.high %v236_v1, %v236_v1 }
  0x17   : > { %v443_v3 = vsel %vm357_vm0, %v8529_v62, 0  ;;  %v8568_v6 = vcombine.high %v237_v2, %v237_v2  ;;  %v8565_v7 = vcombine.low %v236_v1, %v236_v1  ;;  %v8567_v8 = vcombine.low %v237_v2, %v237_v2 }
  0x18   : > { %v449_v4 = vsel %vm357_vm0, %v8531_v63, 0  ;;  %v8570_v13 = vcombine.high %v238_v9, %v238_v9  ;;  %v8572_v14 = vcombine.high %v239_v10, %v239_v10  ;;  %v8569_v15 = vcombine.low %v238_v9, %v238_v9 }
  0x19   : > { %8538 = vmatmul.mubr.msk.bf16.vlgmr.msra.gmra.mrb[4].mxu0 %vm353_vm1, %v9528_v17  ;;  %8540 = vmatmul.mubr.msk.bf16.vlgmr.msra.gmra.mrb[4].mxu1 %vm353_vm1, %v9528_v17  ;;  %v1194_v11 = vsel %vm357_vm0, %v8565_v7, 0  ;;  %v1200_v12 = vsel %vm357_vm0, %v8567_v8, 0  ;;  %v8571_v16 = vcombine.low %v239_v10, %v239_v10  ;;  %v8574_v22 = vcombine.high %v240_v18, %v240_v18 }
  0x1a   : > { %619 = vmatpush1.bf16.msra.mxu0 %v383_v26  ;;  %660 = vmatpush1.bf16.msra.mxu1 %v389_v27  ;;  %v8576_v23 = vcombine.high %v241_v19, %v241_v19  ;;  %v8573_v24 = vcombine.low %v240_v18, %v240_v18  ;;  %v8575_v25 = vcombine.low %v241_v19, %v241_v19  ;;  %v242_v26 = vld [vmem:[%s9602_s7 + $0x30] sm:$0xff]  ;;  %v243_v27 = vld [vmem:[%s9602_s7 + $0x38] sm:$0xff] }
  0x1b   : > { %650 = vmatprep.mubr.bf16.mxu0 %v9448_v0  ;;  %691 = vmatprep.mubr.bf16.mxu1 %v9448_v0  ;;  %v1212_v21 = vsel %vm357_vm0, %v8571_v16, 0  ;;  %v8578_v30 = vcombine.high %v242_v26, %v242_v26  ;;  %v8580_v31 = vcombine.high %v243_v27, %v243_v27  ;;  %v8577_v32 = vcombine.low %v242_v26, %v242_v26 }
  0x1c   : > { %8545 = vmatprep.subr.msk.bf16.mxu0 %vm357_vm0, %v8514_v28  ;;  %8547 = vmatprep.subr.msk.bf16.mxu1 %vm357_vm0, %v8516_v29  ;;  %v1218_v28 = vsel %vm357_vm0, %v8573_v24, 0  ;;  %v1224_v29 = vsel %vm357_vm0, %v8575_v25, 0  ;;  %v8579_v33 = vcombine.low %v243_v27, %v243_v27 }
  0x21   : > { %8542 = vmatmul.mubr.msk.bf16.vlgmr.msra.gmra.mrb[8].mxu0 %vm353_vm1, %v9528_v17  ;;  %8544 = vmatmul.mubr.msk.bf16.vlgmr.msra.gmra.mrb[8].mxu1 %vm353_vm1, %v9528_v17 }
  0x22   : > { %701 = vmatpush1.bf16.msra.mxu0 %v395_v34  ;;  %742 = vmatpush1.bf16.msra.mxu1 %v401_v35  ;;  %v244_v34 = vld [vmem:[%s9602_s7 + $0x40] sm:$0xff]  ;;  %v245_v35 = vld [vmem:[%s9602_s7 + $0x48] sm:$0xff] }
  0x23   : > { %732 = vmatprep.mubr.bf16.mxu0 %v9448_v0  ;;  %773 = vmatprep.mubr.bf16.mxu1 %v9448_v0  ;;  %v8582_v38 = vcombine.high %v244_v34, %v244_v34  ;;  %v8584_v39 = vcombine.high %v245_v35, %v245_v35  ;;  %v8581_v40 = vcombine.low %v244_v34, %v244_v34 }
  0x24   : > { %8549 = vmatprep.subr.msk.bf16.mxu0 %vm357_vm0, %v8518_v36  ;;  %8551 = vmatprep.subr.msk.bf16.mxu1 %vm357_vm0, %v8520_v37  ;;  %v1230_v36 = vsel %vm357_vm0, %v8577_v32, 0  ;;  %v1236_v37 = vsel %vm357_vm0, %v8579_v33, 0  ;;  %v8583_v41 = vcombine.low %v245_v35, %v245_v35 }
  0x29   : > { %8546 = vmatmul.mubr.msk.bf16.vlgmr.msra.gmra.mrb[12].mxu0 %vm353_vm1, %v9528_v17  ;;  %8548 = vmatmul.mubr.msk.bf16.vlgmr.msra.gmra.mrb[12].mxu1 %vm353_vm1, %v9528_v17 }
  0x2a   : > { %783 = vmatpush1.bf16.msra.mxu0 %v407_v42  ;;  %824 = vmatpush1.bf16.msra.mxu1 %v413_v43  ;;  %v246_v42 = vld [vmem:[%s9602_s7 + $0x50] sm:$0xff]  ;;  %v247_v43 = vld [vmem:[%s9602_s7 + $0x58] sm:$0xff] }
  0x2b   : > { %814 = vmatprep.mubr.bf16.mxu0 %v9448_v0  ;;  %855 = vmatprep.mubr.bf16.mxu1 %v9448_v0  ;;  %v8586_v46 = vcombine.high %v246_v42, %v246_v42  ;;  %v8588_v47 = vcombine.high %v247_v43, %v247_v43  ;;  %v8585_v48 = vcombine.low %v246_v42, %v246_v42 }
  0x2c   : > { %8553 = vmatprep.subr.msk.bf16.mxu0 %vm357_vm0, %v8522_v44  ;;  %8555 = vmatprep.subr.msk.bf16.mxu1 %vm357_vm0, %v8524_v45  ;;  %v1242_v44 = vsel %vm357_vm0, %v8581_v40, 0  ;;  %v1248_v45 = vsel %vm357_vm0, %v8583_v41, 0  ;;  %v8587_v49 = vcombine.low %v247_v43, %v247_v43 }
  0x31   : > { %8550 = vmatmul.mubr.msk.bf16.vlgmr.msra.gmra.mrb[16].mxu0 %vm353_vm1, %v9528_v17  ;;  %8552 = vmatmul.mubr.msk.bf16.vlgmr.msra.gmra.mrb[16].mxu1 %vm353_vm1, %v9528_v17 }
  0x32   : > { %865 = vmatpush1.bf16.msra.mxu0 %v419_v50  ;;  %906 = vmatpush1.bf16.msra.mxu1 %v425_v51  ;;  %v248_v50 = vld [vmem:[%s9602_s7 + $0x60] sm:$0xff]  ;;  %v249_v51 = vld [vmem:[%s9602_s7 + $0x68] sm:$0xff] }
  0x33   : > { %896 = vmatprep.mubr.bf16.mxu0 %v9448_v0  ;;  %937 = vmatprep.mubr.bf16.mxu1 %v9448_v0  ;;  %v8590_v54 = vcombine.high %v248_v50, %v248_v50  ;;  %v8592_v55 = vcombine.high %v249_v51, %v249_v51  ;;  %v8589_v56 = vcombine.low %v248_v50, %v248_v50 }
  0x34   : > { %8557 = vmatprep.subr.msk.bf16.mxu0 %vm357_vm0, %v8526_v52  ;;  %8559 = vmatprep.subr.msk.bf16.mxu1 %vm357_vm0, %v8528_v53  ;;  %v1254_v52 = vsel %vm357_vm0, %v8585_v48, 0  ;;  %v1260_v53 = vsel %vm357_vm0, %v8587_v49, 0  ;;  %v8591_v57 = vcombine.low %v249_v51, %v249_v51 }
  0x39   : > { %8554 = vmatmul.mubr.msk.bf16.vlgmr.msra.gmra.mrb[20].mxu0 %vm353_vm1, %v9528_v17  ;;  %8556 = vmatmul.mubr.msk.bf16.vlgmr.msra.gmra.mrb[20].mxu1 %vm353_vm1, %v9528_v17 }
  0x3a   : > { %947 = vmatpush1.bf16.msra.mxu0 %v431_v58  ;;  %988 = vmatpush1.bf16.msra.mxu1 %v437_v59  ;;  %v250_v58 = vld [vmem:[%s9602_s7 + $0x70] sm:$0xff]  ;;  %v251_v59 = vld [vmem:[%s9602_s7 + $0x78] sm:$0xff] }
  0x3b   : > { %978 = vmatprep.mubr.bf16.mxu0 %v9448_v0  ;;  %1019 = vmatprep.mubr.bf16.mxu1 %v9448_v0  ;;  %v8594_v62 = vcombine.high %v250_v58, %v250_v58  ;;  %v8596_v63 = vcombine.high %v251_v59, %v251_v59  ;;  %v8593_v1 = vcombine.low %v250_v58, %v250_v58 }
  0x3c   : > { %8561 = vmatprep.subr.msk.bf16.mxu0 %vm357_vm0, %v8530_v60  ;;  %8563 = vmatprep.subr.msk.bf16.mxu1 %vm357_vm0, %v8532_v61  ;;  %v1266_v60 = vsel %vm357_vm0, %v8589_v56, 0  ;;  %v1272_v61 = vsel %vm357_vm0, %v8591_v57, 0  ;;  %v8595_v2 = vcombine.low %v251_v59, %v251_v59 }
  0x41   : > { %8558 = vmatmul.mubr.msk.bf16.vlgmr.msra.gmra.mrb[24].mxu0 %vm353_vm1, %v9528_v17  ;;  %8560 = vmatmul.mubr.msk.bf16.vlgmr.msra.gmra.mrb[24].mxu1 %vm353_vm1, %v9528_v17 }
  0x42   : > { %1029 = vmatpush1.bf16.msra.mxu0 %v443_v3  ;;  %1070 = vmatpush1.bf16.msra.mxu1 %v449_v4  ;;  %v1947_v3 = vld [vmem:[%s9709_s12] sm:$0xff]  ;;  %v1948_v4 = vld [vmem:[%s9709_s12 + $0x8] sm:$0xff] }
  0x43   : > { %1060 = vmatprep.mubr.bf16.mxu0 %v9448_v0  ;;  %1101 = vmatprep.mubr.bf16.mxu1 %v9448_v0  ;;  %v8632_v7 = vcombine.high %v1947_v3, %v1947_v3  ;;  %v8634_v8 = vcombine.high %v1948_v4, %v1948_v4  ;;  %v8631_v9 = vcombine.low %v1947_v3, %v1947_v3 }
  0x44   : > { %8597 = vmatprep.subr.msk.bf16.mxu0 %vm357_vm0, %v8566_v5  ;;  %8599 = vmatprep.subr.msk.bf16.mxu1 %vm357_vm0, %v8568_v6  ;;  %v1278_v5 = vsel %vm357_vm0, %v8593_v1, 0  ;;  %v1284_v6 = vsel %vm357_vm0, %v8595_v2, 0  ;;  %v8633_v10 = vcombine.low %v1948_v4, %v1948_v4 }
  0x49   : > { %8562 = vmatmul.mubr.msk.bf16.vlgmr.msra.gmra.mrb[28].mxu0 %vm353_vm1, %v9528_v17  ;;  %8564 = vmatmul.mubr.msk.bf16.vlgmr.msra.gmra.mrb[28].mxu1 %vm353_vm1, %v9528_v17  ;;  %v1206_v17 = vsel %vm357_vm0, %v8569_v15, 0 }
  0x4a   : > { %1290 = vmatpush1.bf16.msra.mxu0 %v1194_v11  ;;  %1331 = vmatpush1.bf16.msra.mxu1 %v1200_v12  ;;  %v1949_v11 = vld [vmem:[%s9709_s12 + $0x10] sm:$0xff]  ;;  %v1950_v12 = vld [vmem:[%s9709_s12 + $0x18] sm:$0xff] }
  0x4b   : > { %1321 = vmatprep.mubr.bf16.mxu0 %v9448_v0  ;;  %1362 = vmatprep.mubr.bf16.mxu1 %v9448_v0  ;;  %v8636_v15 = vcombine.high %v1949_v11, %v1949_v11  ;;  %v8638_v16 = vcombine.high %v1950_v12, %v1950_v12  ;;  %v8635_v18 = vcombine.low %v1949_v11, %v1949_v11 }
  0x4c   : > { %8601 = vmatprep.subr.msk.bf16.mxu0 %vm357_vm0, %v8570_v13  ;;  %8603 = vmatprep.subr.msk.bf16.mxu1 %vm357_vm0, %v8572_v14  ;;  %v2049_v13 = vsel %vm357_vm0, %v8631_v9, 0  ;;  %v2055_v14 = vsel %vm357_vm0, %v8633_v10, 0  ;;  %v8637_v19 = vcombine.low %v1950_v12, %v1950_v12 }
  0x51   : > { %8598 = vmatmul.mubr.msk.bf16.vlgmr.msra.gmra.mrb[32].mxu0 %vm353_vm1, %v9637_v20  ;;  %8600 = vmatmul.mubr.msk.bf16.vlgmr.msra.gmra.mrb[32].mxu1 %vm353_vm1, %v9637_v20 }
  0x52   : > { %1372 = vmatpush1.bf16.msra.mxu0 %v1206_v17  ;;  %1413 = vmatpush1.bf16.msra.mxu1 %v1212_v21  ;;  %v1951_v17 = vld [vmem:[%s9709_s12 + $0x20] sm:$0xff]  ;;  %v1952_v21 = vld [vmem:[%s9709_s12 + $0x28] sm:$0xff] }
  0x53   : > { %1403 = vmatprep.mubr.bf16.mxu0 %v9448_v0  ;;  %1444 = vmatprep.mubr.bf16.mxu1 %v9448_v0  ;;  %v8640_v24 = vcombine.high %v1951_v17, %v1951_v17  ;;  %v8642_v25 = vcombine.high %v1952_v21, %v1952_v21  ;;  %v8639_v26 = vcombine.low %v1951_v17, %v1951_v17 }
  0x54   : > { %8605 = vmatprep.subr.msk.bf16.mxu0 %vm357_vm0, %v8574_v22  ;;  %8607 = vmatprep.subr.msk.bf16.mxu1 %vm357_vm0, %v8576_v23  ;;  %v9744_v22 = vld [vmem:[%s11331_s3 + $0x4] sm:$0x3]  ;;  %v2067_v23 = vsel %vm357_vm0, %v8637_v19, 0  ;;  %v8641_v27 = vcombine.low %v1952_v21, %v1952_v21 }
  0x59   : > { %8602 = vmatmul.mubr.msk.bf16.vlgmr.msra.gmra.mrb[36].mxu0 %vm353_vm1, %v9637_v20  ;;  %8604 = vmatmul.mubr.msk.bf16.vlgmr.msra.gmra.mrb[36].mxu1 %vm353_vm1, %v9637_v20 }
  0x5a   : > { %1454 = vmatpush1.bf16.msra.mxu0 %v1218_v28  ;;  %1495 = vmatpush1.bf16.msra.mxu1 %v1224_v29  ;;  %v1953_v28 = vld [vmem:[%s9709_s12 + $0x30] sm:$0xff]  ;;  %v1954_v29 = vld [vmem:[%s9709_s12 + $0x38] sm:$0xff] }
  0x5b   : > { %1485 = vmatprep.mubr.bf16.mxu0 %v9448_v0  ;;  %1526 = vmatprep.mubr.bf16.mxu1 %v9448_v0  ;;  %v8644_v32 = vcombine.high %v1953_v28, %v1953_v28  ;;  %v8646_v33 = vcombine.high %v1954_v29, %v1954_v29  ;;  %v8643_v34 = vcombine.low %v1953_v28, %v1953_v28 }
  0x5c   : > { %8609 = vmatprep.subr.msk.bf16.mxu0 %vm357_vm0, %v8578_v30  ;;  %8611 = vmatprep.subr.msk.bf16.mxu1 %vm357_vm0, %v8580_v31  ;;  %v2073_v30 = vsel %vm357_vm0, %v8639_v26, 0  ;;  %v2079_v31 = vsel %vm357_vm0, %v8641_v27, 0  ;;  %v8645_v35 = vcombine.low %v1954_v29, %v1954_v29 }
  0x61   : > { %8606 = vmatmul.mubr.msk.bf16.vlgmr.msra.gmra.mrb[40].mxu0 %vm353_vm1, %v9637_v20  ;;  %8608 = vmatmul.mubr.msk.bf16.vlgmr.msra.gmra.mrb[40].mxu1 %vm353_vm1, %v9637_v20 }
  0x62   : > { %1536 = vmatpush1.bf16.msra.mxu0 %v1230_v36  ;;  %1577 = vmatpush1.bf16.msra.mxu1 %v1236_v37  ;;  %v1955_v36 = vld [vmem:[%s9709_s12 + $0x40] sm:$0xff]  ;;  %v1956_v37 = vld [vmem:[%s9709_s12 + $0x48] sm:$0xff] }
  0x63   : > { %1567 = vmatprep.mubr.bf16.mxu0 %v9448_v0  ;;  %1608 = vmatprep.mubr.bf16.mxu1 %v9448_v0  ;;  %v8648_v40 = vcombine.high %v1955_v36, %v1955_v36  ;;  %v8650_v41 = vcombine.high %v1956_v37, %v1956_v37  ;;  %v8647_v42 = vcombine.low %v1955_v36, %v1955_v36 }
  0x64   : > { %8613 = vmatprep.subr.msk.bf16.mxu0 %vm357_vm0, %v8582_v38  ;;  %8615 = vmatprep.subr.msk.bf16.mxu1 %vm357_vm0, %v8584_v39  ;;  %v2085_v38 = vsel %vm357_vm0, %v8643_v34, 0  ;;  %v2091_v39 = vsel %vm357_vm0, %v8645_v35, 0  ;;  %v8649_v43 = vcombine.low %v1956_v37, %v1956_v37 }
  0x69   : > { %8610 = vmatmul.mubr.msk.bf16.vlgmr.msra.gmra.mrb[44].mxu0 %vm353_vm1, %v9637_v20  ;;  %8612 = vmatmul.mubr.msk.bf16.vlgmr.msra.gmra.mrb[44].mxu1 %vm353_vm1, %v9637_v20 }
  0x6a   : > { %1618 = vmatpush1.bf16.msra.mxu0 %v1242_v44  ;;  %1659 = vmatpush1.bf16.msra.mxu1 %v1248_v45  ;;  %v1957_v44 = vld [vmem:[%s9709_s12 + $0x50] sm:$0xff]  ;;  %v1958_v45 = vld [vmem:[%s9709_s12 + $0x58] sm:$0xff] }
  0x6b   : > { %1649 = vmatprep.mubr.bf16.mxu0 %v9448_v0  ;;  %1690 = vmatprep.mubr.bf16.mxu1 %v9448_v0  ;;  %v8652_v48 = vcombine.high %v1957_v44, %v1957_v44  ;;  %v8654_v49 = vcombine.high %v1958_v45, %v1958_v45  ;;  %v8651_v50 = vcombine.low %v1957_v44, %v1957_v44 }
  0x6c   : > { %8617 = vmatprep.subr.msk.bf16.mxu0 %vm357_vm0, %v8586_v46  ;;  %8619 = vmatprep.subr.msk.bf16.mxu1 %vm357_vm0, %v8588_v47  ;;  %v2097_v46 = vsel %vm357_vm0, %v8647_v42, 0  ;;  %v2103_v47 = vsel %vm357_vm0, %v8649_v43, 0  ;;  %v8653_v51 = vcombine.low %v1958_v45, %v1958_v45 }
  0x71   : > { %8614 = vmatmul.mubr.msk.bf16.vlgmr.msra.gmra.mrb[48].mxu0 %vm353_vm1, %v9637_v20  ;;  %8616 = vmatmul.mubr.msk.bf16.vlgmr.msra.gmra.mrb[48].mxu1 %vm353_vm1, %v9637_v20 }
  0x72   : > { %1700 = vmatpush1.bf16.msra.mxu0 %v1254_v52  ;;  %1741 = vmatpush1.bf16.msra.mxu1 %v1260_v53  ;;  %v1959_v52 = vld [vmem:[%s9709_s12 + $0x60] sm:$0xff]  ;;  %v1960_v53 = vld [vmem:[%s9709_s12 + $0x68] sm:$0xff] }
  0x73   : > { %1731 = vmatprep.mubr.bf16.mxu0 %v9448_v0  ;;  %1772 = vmatprep.mubr.bf16.mxu1 %v9448_v0  ;;  %v8656_v56 = vcombine.high %v1959_v52, %v1959_v52  ;;  %v8658_v57 = vcombine.high %v1960_v53, %v1960_v53  ;;  %v8655_v58 = vcombine.low %v1959_v52, %v1959_v52 }
  0x74   : > { %8621 = vmatprep.subr.msk.bf16.mxu0 %vm357_vm0, %v8590_v54  ;;  %8623 = vmatprep.subr.msk.bf16.mxu1 %vm357_vm0, %v8592_v55  ;;  %v2109_v54 = vsel %vm357_vm0, %v8651_v50, 0  ;;  %v2115_v55 = vsel %vm357_vm0, %v8653_v51, 0  ;;  %v8657_v59 = vcombine.low %v1960_v53, %v1960_v53  ;;  %v2847_v50 = vld [vmem:[%s9819_s25 + $0x50] sm:$0xff]  ;;  %v2848_v51 = vld [vmem:[%s9819_s25 + $0x58] sm:$0xff] }
  0x79   : > { %8618 = vmatmul.mubr.msk.bf16.vlgmr.msra.gmra.mrb[52].mxu0 %vm353_vm1, %v9637_v20  ;;  %8620 = vmatmul.mubr.msk.bf16.vlgmr.msra.gmra.mrb[52].mxu1 %vm353_vm1, %v9637_v20 }
  0x7a   : > { %1782 = vmatpush1.bf16.msra.mxu0 %v1266_v60  ;;  %1823 = vmatpush1.bf16.msra.mxu1 %v1272_v61  ;;  %v1961_v60 = vld [vmem:[%s9709_s12 + $0x70] sm:$0xff]  ;;  %v1962_v61 = vld [vmem:[%s9709_s12 + $0x78] sm:$0xff]  ;;  %s8495_s12 = sshll.u32 %s9438_s18, 5 }
  0x7b   : > { %1813 = vmatprep.mubr.bf16.mxu0 %v9448_v0  ;;  %1854 = vmatprep.mubr.bf16.mxu1 %v9448_v0  ;;  %v8660_v1 = vcombine.high %v1961_v60, %v1961_v60  ;;  %v8662_v2 = vcombine.high %v1962_v61, %v1962_v61  ;;  %v8659_v3 = vcombine.low %v1961_v60, %v1961_v60  ;;  %p11216_p4 = scmp.lt.s32.totalorder %s8495_s12, 511 }
  0x7c   : > { %8625 = vmatprep.subr.msk.bf16.mxu0 %vm357_vm0, %v8594_v62  ;;  %8627 = vmatprep.subr.msk.bf16.mxu1 %vm357_vm0, %v8596_v63  ;;  %v2121_v62 = vsel %vm357_vm0, %v8655_v58, 0  ;;  %v2127_v63 = vsel %vm357_vm0, %v8657_v59, 0  ;;  %v8661_v4 = vcombine.low %v1962_v61, %v1962_v61  ;;  %v8718_v58 = vcombine.high %v2847_v50, %v2847_v50 }
  0x7d   : > { %v8720_v59 = vcombine.high %v2848_v51, %v2848_v51  ;;  %v8717_v60 = vcombine.low %v2847_v50, %v2847_v50  ;;  %v8719_v61 = vcombine.low %v2848_v51, %v2848_v51  ;;  %s11340_s12 = smov (!%p11216_p4, %s8495_s12), 511 }
  0x7e   : > { %s8496_s18 = sshll.u32 %s11340_s12, 1 }
  0x7f   : > { %s11241_s15 = scalar_lea.vmem %s11333_s5, %s8496_s18 }
  0x81   : > { %8622 = vmatmul.mubr.msk.bf16.vlgmr.msra.gmra.mrb[56].mxu0 %vm353_vm1, %v9637_v20  ;;  %8624 = vmatmul.mubr.msk.bf16.vlgmr.msra.gmra.mrb[56].mxu1 %vm353_vm1, %v9637_v20 }
  0x82   : > { %1864 = vmatpush1.bf16.msra.mxu0 %v1278_v5  ;;  %1905 = vmatpush1.bf16.msra.mxu1 %v1284_v6  ;;  %v2837_v5 = vld [vmem:[%s9819_s25] sm:$0xff]  ;;  %v2838_v6 = vld [vmem:[%s9819_s25 + $0x8] sm:$0xff] }
  0x83   : > { %1895 = vmatprep.mubr.bf16.mxu0 %v9448_v0  ;;  %1936 = vmatprep.mubr.bf16.mxu1 %v9448_v0  ;;  %v8698_v9 = vcombine.high %v2837_v5, %v2837_v5  ;;  %v8700_v10 = vcombine.high %v2838_v6, %v2838_v6  ;;  %v8697_v11 = vcombine.low %v2837_v5, %v2837_v5 }
  0x84   : > { %8663 = vmatprep.subr.msk.bf16.mxu0 %vm357_vm0, %v8632_v7  ;;  %8665 = vmatprep.subr.msk.bf16.mxu1 %vm357_vm0, %v8634_v8  ;;  %v2133_v7 = vsel %vm357_vm0, %v8659_v3, 0  ;;  %v2139_v8 = vsel %vm357_vm0, %v8661_v4, 0  ;;  %v8699_v12 = vcombine.low %v2838_v6, %v2838_v6  ;;  %v2849_v3 = vld [vmem:[%s9819_s25 + $0x60] sm:$0xff]  ;;  %v2850_v4 = vld [vmem:[%s9819_s25 + $0x68] sm:$0xff] }
  0x89   : > { %8626 = vmatmul.mubr.msk.bf16.vlgmr.msra.gmra.mrb[60].mxu0 %vm353_vm1, %v9637_v20  ;;  %8628 = vmatmul.mubr.msk.bf16.vlgmr.msra.gmra.mrb[60].mxu1 %vm353_vm1, %v9637_v20  ;;  %v2061_v20 = vsel %vm357_vm0, %v8635_v18, 0 }
  0x8a   : > { %2145 = vmatpush1.bf16.msra.mxu0 %v2049_v13  ;;  %2186 = vmatpush1.bf16.msra.mxu1 %v2055_v14  ;;  %v2839_v13 = vld [vmem:[%s9819_s25 + $0x10] sm:$0xff]  ;;  %v2840_v14 = vld [vmem:[%s9819_s25 + $0x18] sm:$0xff] }
  0x8b   : > { %2176 = vmatprep.mubr.bf16.mxu0 %v9448_v0  ;;  %2217 = vmatprep.mubr.bf16.mxu1 %v9448_v0  ;;  %v8702_v18 = vcombine.high %v2839_v13, %v2839_v13  ;;  %v8704_v19 = vcombine.high %v2840_v14, %v2840_v14  ;;  %v8701_v17 = vcombine.low %v2839_v13, %v2839_v13 }
  0x8c   : > { %8667 = vmatprep.subr.msk.bf16.mxu0 %vm357_vm0, %v8636_v15  ;;  %8669 = vmatprep.subr.msk.bf16.mxu1 %vm357_vm0, %v8638_v16  ;;  %v2939_v15 = vsel %vm357_vm0, %v8697_v11, 0  ;;  %v2945_v16 = vsel %vm357_vm0, %v8699_v12, 0  ;;  %v8703_v21 = vcombine.low %v2840_v14, %v2840_v14  ;;  %v8722_v11 = vcombine.high %v2849_v3, %v2849_v3 }
  0x8d   : > { %v8724_v12 = vcombine.high %v2850_v4, %v2850_v4  ;;  %v8721_v13 = vcombine.low %v2849_v3, %v2849_v3  ;;  %v8723_v14 = vcombine.low %v2850_v4, %v2850_v4 }
  0x91   : > { %8664 = vmatmul.mubr.msk.bf16.vlgmr.msra.gmra.mrb[64].mxu0 %vm353_vm1, %v9744_v22  ;;  %8666 = vmatmul.mubr.msk.bf16.vlgmr.msra.gmra.mrb[64].mxu1 %vm353_vm1, %v9744_v22 }
  0x92   : > { %2227 = vmatpush1.bf16.msra.mxu0 %v2061_v20  ;;  %2268 = vmatpush1.bf16.msra.mxu1 %v2067_v23  ;;  %v2841_v20 = vld [vmem:[%s9819_s25 + $0x20] sm:$0xff]  ;;  %v2842_v23 = vld [vmem:[%s9819_s25 + $0x28] sm:$0xff] }
  0x93   : > { %2258 = vmatprep.mubr.bf16.mxu0 %v9448_v0  ;;  %2299 = vmatprep.mubr.bf16.mxu1 %v9448_v0  ;;  %v8706_v26 = vcombine.high %v2841_v20, %v2841_v20  ;;  %v8708_v27 = vcombine.high %v2842_v23, %v2842_v23  ;;  %v8705_v28 = vcombine.low %v2841_v20, %v2841_v20 }
  0x94   : > { %8671 = vmatprep.subr.msk.bf16.mxu0 %vm357_vm0, %v8640_v24  ;;  %8673 = vmatprep.subr.msk.bf16.mxu1 %vm357_vm0, %v8642_v25  ;;  %v9854_v24 = vld [vmem:[%s11331_s3 + $0x6] sm:$0x3]  ;;  %v2957_v25 = vsel %vm357_vm0, %v8703_v21, 0  ;;  %v8707_v29 = vcombine.low %v2842_v23, %v2842_v23  ;;  %v2852_v21 = vld [vmem:[%s9819_s25 + $0x78] sm:$0xff] }
  0x99   : > { %8668 = vmatmul.mubr.msk.bf16.vlgmr.msra.gmra.mrb[68].mxu0 %vm353_vm1, %v9744_v22  ;;  %8670 = vmatmul.mubr.msk.bf16.vlgmr.msra.gmra.mrb[68].mxu1 %vm353_vm1, %v9744_v22 }
  0x9a   : > { %2309 = vmatpush1.bf16.msra.mxu0 %v2073_v30  ;;  %2350 = vmatpush1.bf16.msra.mxu1 %v2079_v31  ;;  %v2843_v30 = vld [vmem:[%s9819_s25 + $0x30] sm:$0xff]  ;;  %v2844_v31 = vld [vmem:[%s9819_s25 + $0x38] sm:$0xff] }
  0x9b   : > { %2340 = vmatprep.mubr.bf16.mxu0 %v9448_v0  ;;  %2381 = vmatprep.mubr.bf16.mxu1 %v9448_v0  ;;  %v8710_v34 = vcombine.high %v2843_v30, %v2843_v30  ;;  %v8712_v35 = vcombine.high %v2844_v31, %v2844_v31  ;;  %v8709_v36 = vcombine.low %v2843_v30, %v2843_v30 }
  0x9c   : > { %8675 = vmatprep.subr.msk.bf16.mxu0 %vm357_vm0, %v8644_v32  ;;  %8677 = vmatprep.subr.msk.bf16.mxu1 %vm357_vm0, %v8646_v33  ;;  %v2963_v32 = vsel %vm357_vm0, %v8705_v28, 0  ;;  %v2969_v33 = vsel %vm357_vm0, %v8707_v29, 0  ;;  %v8711_v37 = vcombine.low %v2844_v31, %v2844_v31  ;;  %v8728_v29 = vcombine.high %v2852_v21, %v2852_v21 }
  0x9d   : > { %v8727_v31 = vcombine.low %v2852_v21, %v2852_v21  ;;  %v10009_v21 = vld [vmem:[%s11331_s3 + $0x8] sm:$0x3] }
  0xa1   : > { %8672 = vmatmul.mubr.msk.bf16.vlgmr.msra.gmra.mrb[72].mxu0 %vm353_vm1, %v9744_v22  ;;  %8674 = vmatmul.mubr.msk.bf16.vlgmr.msra.gmra.mrb[72].mxu1 %vm353_vm1, %v9744_v22 }
  0xa2   : > { %2391 = vmatpush1.bf16.msra.mxu0 %v2085_v38  ;;  %2432 = vmatpush1.bf16.msra.mxu1 %v2091_v39  ;;  %v2845_v38 = vld [vmem:[%s9819_s25 + $0x40] sm:$0xff]  ;;  %v2846_v39 = vld [vmem:[%s9819_s25 + $0x48] sm:$0xff] }
  0xa3   : > { %2422 = vmatprep.mubr.bf16.mxu0 %v9448_v0  ;;  %2463 = vmatprep.mubr.bf16.mxu1 %v9448_v0  ;;  %v8714_v42 = vcombine.high %v2845_v38, %v2845_v38  ;;  %v8716_v43 = vcombine.high %v2846_v39, %v2846_v39  ;;  %v8713_v44 = vcombine.low %v2845_v38, %v2845_v38 }
  0xa4   : > { %8679 = vmatprep.subr.msk.bf16.mxu0 %vm357_vm0, %v8648_v40  ;;  %8681 = vmatprep.subr.msk.bf16.mxu1 %vm357_vm0, %v8650_v41  ;;  %v2975_v40 = vsel %vm357_vm0, %v8709_v36, 0  ;;  %v2981_v41 = vsel %vm357_vm0, %v8711_v37, 0  ;;  %v8715_v45 = vcombine.low %v2846_v39, %v2846_v39  ;;  %v3724_v36 = vld [vmem:[%s9950_s30] sm:$0xff]  ;;  %v3725_v37 = vld [vmem:[%s9950_s30 + $0x8] sm:$0xff] }
  0xa5   : > { %v8763_v50 = vcombine.low %v3724_v36, %v3724_v36  ;;  %v8765_v51 = vcombine.low %v3725_v37, %v3725_v37 }
  0xa7   : > { %v3826_v3 = vsel %vm357_vm0, %v8763_v50, 0  ;;  %v3832_v4 = vsel %vm357_vm0, %v8765_v51, 0 }
  0xa9   : > { %8676 = vmatmul.mubr.msk.bf16.vlgmr.msra.gmra.mrb[76].mxu0 %vm353_vm1, %v9744_v22  ;;  %8678 = vmatmul.mubr.msk.bf16.vlgmr.msra.gmra.mrb[76].mxu1 %vm353_vm1, %v9744_v22 }
  0xaa   : > { %2473 = vmatpush1.bf16.msra.mxu0 %v2097_v46  ;;  %2514 = vmatpush1.bf16.msra.mxu1 %v2103_v47 }
  0xab   : > { %2504 = vmatprep.mubr.bf16.mxu0 %v9448_v0  ;;  %2545 = vmatprep.mubr.bf16.mxu1 %v9448_v0 }
  0xac   : > { %8683 = vmatprep.subr.msk.bf16.mxu0 %vm357_vm0, %v8652_v48  ;;  %8685 = vmatprep.subr.msk.bf16.mxu1 %vm357_vm0, %v8654_v49 }
  0xb1   : > { %8680 = vmatmul.mubr.msk.bf16.vlgmr.msra.gmra.mrb[80].mxu0 %vm353_vm1, %v9744_v22  ;;  %8682 = vmatmul.mubr.msk.bf16.vlgmr.msra.gmra.mrb[80].mxu1 %vm353_vm1, %v9744_v22 }
  0xb2   : > { %2555 = vmatpush1.bf16.msra.mxu0 %v2109_v54  ;;  %2596 = vmatpush1.bf16.msra.mxu1 %v2115_v55 }
  0xb3   : > { %2586 = vmatprep.mubr.bf16.mxu0 %v9448_v0  ;;  %2627 = vmatprep.mubr.bf16.mxu1 %v9448_v0 }
  0xb4   : > { %8687 = vmatprep.subr.msk.bf16.mxu0 %vm357_vm0, %v8656_v56  ;;  %8689 = vmatprep.subr.msk.bf16.mxu1 %vm357_vm0, %v8658_v57  ;;  %v2987_v56 = vsel %vm357_vm0, %v8713_v44, 0  ;;  %v2993_v57 = vsel %vm357_vm0, %v8715_v45, 0  ;;  %v8764_v44 = vcombine.high %v3724_v36, %v3724_v36  ;;  %v8766_v45 = vcombine.high %v3725_v37, %v3725_v37 }
  0xb9   : > { %8684 = vmatmul.mubr.msk.bf16.vlgmr.msra.gmra.mrb[84].mxu0 %vm353_vm1, %v9744_v22  ;;  %8686 = vmatmul.mubr.msk.bf16.vlgmr.msra.gmra.mrb[84].mxu1 %vm353_vm1, %v9744_v22 }
  0xba   : > { %2637 = vmatpush1.bf16.msra.mxu0 %v2121_v62  ;;  %2678 = vmatpush1.bf16.msra.mxu1 %v2127_v63 }
  0xbb   : > { %2668 = vmatprep.mubr.bf16.mxu0 %v9448_v0  ;;  %2709 = vmatprep.mubr.bf16.mxu1 %v9448_v0 }
  0xbc   : > { %8691 = vmatprep.subr.msk.bf16.mxu0 %vm357_vm0, %v8660_v1  ;;  %8693 = vmatprep.subr.msk.bf16.mxu1 %vm357_vm0, %v8662_v2 }
  0xc1   : > { %8688 = vmatmul.mubr.msk.bf16.vlgmr.msra.gmra.mrb[88].mxu0 %vm353_vm1, %v9744_v22  ;;  %8690 = vmatmul.mubr.msk.bf16.vlgmr.msra.gmra.mrb[88].mxu1 %vm353_vm1, %v9744_v22 }
  0xc2   : > { %2719 = vmatpush1.bf16.msra.mxu0 %v2133_v7  ;;  %2760 = vmatpush1.bf16.msra.mxu1 %v2139_v8 }
  0xc3   : > { %2750 = vmatprep.mubr.bf16.mxu0 %v9448_v0  ;;  %2791 = vmatprep.mubr.bf16.mxu1 %v9448_v0 }
  0xc4   : > { %8729 = vmatprep.subr.msk.bf16.mxu0 %vm357_vm0, %v8698_v9  ;;  %8731 = vmatprep.subr.msk.bf16.mxu1 %vm357_vm0, %v8700_v10  ;;  %v2999_v9 = vsel %vm357_vm0, %v8717_v60, 0  ;;  %v3005_v10 = vsel %vm357_vm0, %v8719_v61, 0 }
  0xc9   : > { %8692 = vmatmul.mubr.msk.bf16.vlgmr.msra.gmra.mrb[92].mxu0 %vm353_vm1, %v9744_v22  ;;  %8694 = vmatmul.mubr.msk.bf16.vlgmr.msra.gmra.mrb[92].mxu1 %vm353_vm1, %v9744_v22  ;;  %v2951_v22 = vsel %vm357_vm0, %v8701_v17, 0  ;;  %v2851_v17 = vld [vmem:[%s9819_s25 + $0x70] sm:$0xff] }
  0xca   : > { %3035 = vmatpush1.bf16.msra.mxu0 %v2939_v15  ;;  %3076 = vmatpush1.bf16.msra.mxu1 %v2945_v16  ;;  %v8726_v28 = vcombine.high %v2851_v17, %v2851_v17  ;;  %v8725_v30 = vcombine.low %v2851_v17, %v2851_v17 }
  0xcb   : > { %3066 = vmatprep.mubr.bf16.mxu0 %v9448_v0  ;;  %3107 = vmatprep.mubr.bf16.mxu1 %v9448_v0 }
  0xcc   : > { %8733 = vmatprep.subr.msk.bf16.mxu0 %vm357_vm0, %v8702_v18  ;;  %8735 = vmatprep.subr.msk.bf16.mxu1 %vm357_vm0, %v8704_v19 }
  0xd1   : > { %8730 = vmatmul.mubr.msk.bf16.vlgmr.msra.gmra.mrb[96].mxu0 %vm353_vm1, %v9854_v24  ;;  %8732 = vmatmul.mubr.msk.bf16.vlgmr.msra.gmra.mrb[96].mxu1 %vm353_vm1, %v9854_v24 }
  0xd2   : > { %3117 = vmatpush1.bf16.msra.mxu0 %v2951_v22  ;;  %3158 = vmatpush1.bf16.msra.mxu1 %v2957_v25 }
  0xd3   : > { %3148 = vmatprep.mubr.bf16.mxu0 %v9448_v0  ;;  %3189 = vmatprep.mubr.bf16.mxu1 %v9448_v0 }
  0xd4   : > { %8737 = vmatprep.subr.msk.bf16.mxu0 %vm357_vm0, %v8706_v26  ;;  %8739 = vmatprep.subr.msk.bf16.mxu1 %vm357_vm0, %v8708_v27  ;;  %v3011_v26 = vsel %vm357_vm0, %v8721_v13, 0  ;;  %v3017_v27 = vsel %vm357_vm0, %v8723_v14, 0  ;;  %v3729_v13 = vld [vmem:[%s9950_s30 + $0x28] sm:$0xff] }
  0xd9   : > { %8734 = vmatmul.mubr.msk.bf16.vlgmr.msra.gmra.mrb[100].mxu0 %vm353_vm1, %v9854_v24  ;;  %8736 = vmatmul.mubr.msk.bf16.vlgmr.msra.gmra.mrb[100].mxu1 %vm353_vm1, %v9854_v24 }
  0xda   : > { %3199 = vmatpush1.bf16.msra.mxu0 %v2963_v32  ;;  %3240 = vmatpush1.bf16.msra.mxu1 %v2969_v33 }
  0xdb   : > { %3230 = vmatprep.mubr.bf16.mxu0 %v9448_v0  ;;  %3271 = vmatprep.mubr.bf16.mxu1 %v9448_v0 }
  0xdc   : > { %8741 = vmatprep.subr.msk.bf16.mxu0 %vm357_vm0, %v8710_v34  ;;  %8743 = vmatprep.subr.msk.bf16.mxu1 %vm357_vm0, %v8712_v35 }
  0xe1   : > { %8738 = vmatmul.mubr.msk.bf16.vlgmr.msra.gmra.mrb[104].mxu0 %vm353_vm1, %v9854_v24  ;;  %8740 = vmatmul.mubr.msk.bf16.vlgmr.msra.gmra.mrb[104].mxu1 %vm353_vm1, %v9854_v24 }
  0xe2   : > { %3281 = vmatpush1.bf16.msra.mxu0 %v2975_v40  ;;  %3322 = vmatpush1.bf16.msra.mxu1 %v2981_v41 }
  0xe3   : > { %3312 = vmatprep.mubr.bf16.mxu0 %v9448_v0  ;;  %3353 = vmatprep.mubr.bf16.mxu1 %v9448_v0 }
  0xe4   : > { %v9888_v46 = vpop.f32.mrb[0].mxu0  ;;  %v9890_v47 = vpop.f32.mrb[0].mxu1  ;;  %8745 = vmatprep.subr.msk.bf16.mxu0 %vm357_vm0, %v8714_v42  ;;  %8747 = vmatprep.subr.msk.bf16.mxu1 %vm357_vm0, %v8716_v43  ;;  %v3023_v42 = vsel %vm357_vm0, %v8725_v30, 0  ;;  %v3029_v43 = vsel %vm357_vm0, %v8727_v31, 0 }
  0xe5   : > { %v9894_v48 = vpop.f32.mrb[1].mxu0  ;;  %v9896_v49 = vpop.f32.mrb[1].mxu1 }
  0xe6   : > { %v492_v52 = vpop.f32.mrb[2].mxu0  ;;  %v533_v53 = vpop.f32.mrb[2].mxu1 }
  0xe7   : > { %v493_v54 = vpop.f32.mrb[3].mxu0  ;;  %v534_v55 = vpop.f32.mrb[3].mxu1 }
  0xe9   : > { %8742 = vmatmul.mubr.msk.bf16.vlgmr.msra.gmra.mrb[108].mxu0 %vm353_vm1, %v9854_v24  ;;  %8744 = vmatmul.mubr.msk.bf16.vlgmr.msra.gmra.mrb[108].mxu1 %vm353_vm1, %v9854_v24 }
  0xea   : > { %3363 = vmatpush1.bf16.msra.mxu0 %v2987_v56  ;;  %3404 = vmatpush1.bf16.msra.mxu1 %v2993_v57  ;;  %v3726_v56 = vld [vmem:[%s9950_s30 + $0x10] sm:$0xff]  ;;  %v3727_v57 = vld [vmem:[%s9950_s30 + $0x18] sm:$0xff] }
  0xeb   : > { %3394 = vmatprep.mubr.bf16.mxu0 %v9448_v0  ;;  %3435 = vmatprep.mubr.bf16.mxu1 %v9448_v0 }
  0xec   : > { %v9908_v62 = vpop.f32.mrb[4].mxu0  ;;  %v9910_v63 = vpop.f32.mrb[4].mxu1  ;;  %8749 = vmatprep.subr.msk.bf16.mxu0 %vm357_vm0, %v8718_v58  ;;  %8751 = vmatprep.subr.msk.bf16.mxu1 %vm357_vm0, %v8720_v59 }
  0xed   : > { %v9914_v1 = vpop.f32.mrb[5].mxu0  ;;  %v9916_v2 = vpop.f32.mrb[5].mxu1 }
  0xee   : > { %v574_v5 = vpop.f32.mrb[6].mxu0  ;;  %v615_v6 = vpop.f32.mrb[6].mxu1 }
  0xef   : > { %v575_v7 = vpop.f32.mrb[7].mxu0  ;;  %v616_v8 = vpop.f32.mrb[7].mxu1  ;;  %v8768_v5 = vcombine.high %v3726_v56, %v3726_v56  ;;  %v8770_v6 = vcombine.high %v3727_v57, %v3727_v57 }
  0xf0   : > { %v8767_v7 = vcombine.low %v3726_v56, %v3726_v56  ;;  %v8769_v8 = vcombine.low %v3727_v57, %v3727_v57 }
  0xf1   : > { %8746 = vmatmul.mubr.msk.bf16.vlgmr.msra.gmra.mrb[112].mxu0 %vm353_vm1, %v9854_v24  ;;  %8748 = vmatmul.mubr.msk.bf16.vlgmr.msra.gmra.mrb[112].mxu1 %vm353_vm1, %v9854_v24 }
  0xf2   : > { %3445 = vmatpush1.bf16.msra.mxu0 %v2999_v9  ;;  %3486 = vmatpush1.bf16.msra.mxu1 %v3005_v10 }
  0xf3   : > { %3476 = vmatprep.mubr.bf16.mxu0 %v9448_v0  ;;  %3517 = vmatprep.mubr.bf16.mxu1 %v9448_v0 }
  0xf4   : > { %v9928_v15 = vpop.f32.mrb[8].mxu0  ;;  %v9930_v16 = vpop.f32.mrb[8].mxu1  ;;  %8753 = vmatprep.subr.msk.bf16.mxu0 %vm357_vm0, %v8722_v11  ;;  %8755 = vmatprep.subr.msk.bf16.mxu1 %vm357_vm0, %v8724_v12 }
  0xf5   : > { %v9934_v18 = vpop.f32.mrb[9].mxu0  ;;  %v9936_v19 = vpop.f32.mrb[9].mxu1 }
  0xf6   : > { %v656_v20 = vpop.f32.mrb[10].mxu0  ;;  %v697_v23 = vpop.f32.mrb[10].mxu1 }
  0xf7   : > { %v657_v22 = vpop.f32.mrb[11].mxu0  ;;  %v698_v25 = vpop.f32.mrb[11].mxu1 }
  0xf8   : > { %v3838_v22 = vsel %vm357_vm0, %v8767_v7, 0  ;;  %v3844_v25 = vsel %vm357_vm0, %v8769_v8, 0 }
  0xf9   : > { %8750 = vmatmul.mubr.msk.bf16.vlgmr.msra.gmra.mrb[116].mxu0 %vm353_vm1, %v9854_v24  ;;  %8752 = vmatmul.mubr.msk.bf16.vlgmr.msra.gmra.mrb[116].mxu1 %vm353_vm1, %v9854_v24 }
  0xfa   : > { %3527 = vmatpush1.bf16.msra.mxu0 %v3011_v26  ;;  %3568 = vmatpush1.bf16.msra.mxu1 %v3017_v27  ;;  %v8774_v27 = vcombine.high %v3729_v13, %v3729_v13 }
  0xfb   : > { %3558 = vmatprep.mubr.bf16.mxu0 %v9448_v0  ;;  %3599 = vmatprep.mubr.bf16.mxu1 %v9448_v0 }
  0xfc   : > { %v9954_v32 = vpop.f32.mrb[12].mxu0  ;;  %v9956_v33 = vpop.f32.mrb[12].mxu1  ;;  %8757 = vmatprep.subr.msk.bf16.mxu0 %vm357_vm0, %v8726_v28  ;;  %8759 = vmatprep.subr.msk.bf16.mxu1 %vm357_vm0, %v8728_v29  ;;  %v8773_v29 = vcombine.low %v3729_v13, %v3729_v13 }
  0xfd   : > { %v9960_v34 = vpop.f32.mrb[13].mxu0  ;;  %v9962_v35 = vpop.f32.mrb[13].mxu1 }
  0xfe   : > { %v738_v38 = vpop.f32.mrb[14].mxu0  ;;  %v779_v39 = vpop.f32.mrb[14].mxu1 }
  0xff   : > { %v739_v40 = vpop.f32.mrb[15].mxu0  ;;  %v780_v41 = vpop.f32.mrb[15].mxu1  ;;  %v3730_v38 = vld [vmem:[%s9950_s30 + $0x30] sm:$0xff]  ;;  %v3731_v39 = vld [vmem:[%s9950_s30 + $0x38] sm:$0xff] }
 0x100   : > { %v8776_v50 = vcombine.high %v3730_v38, %v3730_v38  ;;  %v8778_v51 = vcombine.high %v3731_v39, %v3731_v39  ;;  %v8775_v56 = vcombine.low %v3730_v38, %v3730_v38  ;;  %v8777_v57 = vcombine.low %v3731_v39, %v3731_v39  ;;  %v3734_v38 = vld [vmem:[%s9950_s30 + $0x50] sm:$0xff]  ;;  %v3735_v39 = vld [vmem:[%s9950_s30 + $0x58] sm:$0xff] }
 0x101   : > { %8754 = vmatmul.mubr.msk.bf16.vlgmr.msra.gmra.mrb[120].mxu0 %vm353_vm1, %v9854_v24  ;;  %8756 = vmatmul.mubr.msk.bf16.vlgmr.msra.gmra.mrb[120].mxu1 %vm353_vm1, %v9854_v24 }
 0x102   : > { %3609 = vmatpush1.bf16.msra.mxu0 %v3023_v42  ;;  %3650 = vmatpush1.bf16.msra.mxu1 %v3029_v43  ;;  %v3868_v13 = vsel %vm357_vm0, %v8777_v57, 0 }
 0x103   : > { %3640 = vmatprep.mubr.bf16.mxu0 %v9448_v0  ;;  %3681 = vmatprep.mubr.bf16.mxu1 %v9448_v0 }
 0x104   : > { %v9974_v52 = vpop.f32.mrb[16].mxu0  ;;  %v9976_v53 = vpop.f32.mrb[16].mxu1  ;;  %8795 = vmatprep.subr.msk.bf16.mxu0 %vm357_vm0, %v8764_v44  ;;  %8797 = vmatprep.subr.msk.bf16.mxu1 %vm357_vm0, %v8766_v45  ;;  %v3856_v45 = vsel %vm357_vm0, %v8773_v29, 0 }
 0x105   : > { %v9980_v54 = vpop.f32.mrb[17].mxu0  ;;  %v9982_v55 = vpop.f32.mrb[17].mxu1 }
 0x106   : > { %v820_v58 = vpop.f32.mrb[18].mxu0  ;;  %v861_v59 = vpop.f32.mrb[18].mxu1 }
 0x107   : > { %v821_v60 = vpop.f32.mrb[19].mxu0  ;;  %v862_v61 = vpop.f32.mrb[19].mxu1 }
 0x109   : > { %8758 = vmatmul.mubr.msk.bf16.vlgmr.msra.gmra.mrb[124].mxu0 %vm353_vm1, %v9854_v24  ;;  %8760 = vmatmul.mubr.msk.bf16.vlgmr.msra.gmra.mrb[124].mxu1 %vm353_vm1, %v9854_v24  ;;  %v3728_v24 = vld [vmem:[%s9950_s30 + $0x20] sm:$0xff] }
 0x10a   : > { %3922 = vmatpush1.bf16.msra.mxu0 %v3826_v3  ;;  %3963 = vmatpush1.bf16.msra.mxu1 %v3832_v4  ;;  %v8772_v26 = vcombine.high %v3728_v24, %v3728_v24  ;;  %v8771_v28 = vcombine.low %v3728_v24, %v3728_v24  ;;  %v3732_v3 = vld [vmem:[%s9950_s30 + $0x40] sm:$0xff]  ;;  %v3733_v4 = vld [vmem:[%s9950_s30 + $0x48] sm:$0xff]  ;;  %v3862_v24 = vsel %vm357_vm0, %v8775_v56, 0 }
 0x10b   : > { %3953 = vmatprep.mubr.bf16.mxu0 %v9448_v0  ;;  %3994 = vmatprep.mubr.bf16.mxu1 %v9448_v0 }
 0x10c   : > { %v9994_v9 = vpop.f32.mrb[20].mxu0  ;;  %v9996_v10 = vpop.f32.mrb[20].mxu1  ;;  %8799 = vmatprep.subr.msk.bf16.mxu0 %vm357_vm0, %v8768_v5  ;;  %8801 = vmatprep.subr.msk.bf16.mxu1 %vm357_vm0, %v8770_v6  ;;  %v3850_v44 = vsel %vm357_vm0, %v8771_v28, 0 }
 0x10d   : > { %v10000_v11 = vpop.f32.mrb[21].mxu0  ;;  %v10002_v12 = vpop.f32.mrb[21].mxu1 }
 0x10e   : > { %v902_v14 = vpop.f32.mrb[22].mxu0  ;;  %v943_v17 = vpop.f32.mrb[22].mxu1 }
 0x10f   : > { %v903_v20 = vpop.f32.mrb[23].mxu0  ;;  %v944_v23 = vpop.f32.mrb[23].mxu1  ;;  %v8780_v14 = vcombine.high %v3732_v3, %v3732_v3  ;;  %v8782_v17 = vcombine.high %v3733_v4, %v3733_v4 }
 0x110   : > { %v8779_v20 = vcombine.low %v3732_v3, %v3732_v3  ;;  %v8781_v23 = vcombine.low %v3733_v4, %v3733_v4 }
 0x111   : > { %8796 = vmatmul.mubr.msk.bf16.vlgmr.msra.gmra.mrb[128].mxu0 %vm353_vm1, %v10009_v21  ;;  %8798 = vmatmul.mubr.msk.bf16.vlgmr.msra.gmra.mrb[128].mxu1 %vm353_vm1, %v10009_v21 }
 0x112   : > { %4004 = vmatpush1.bf16.msra.mxu0 %v3838_v22  ;;  %4045 = vmatpush1.bf16.msra.mxu1 %v3844_v25 }
 0x113   : > { %4035 = vmatprep.mubr.bf16.mxu0 %v9448_v0  ;;  %4076 = vmatprep.mubr.bf16.mxu1 %v9448_v0 }
 0x114   : > { %v10019_v30 = vpop.f32.mrb[24].mxu0  ;;  %v10021_v31 = vpop.f32.mrb[24].mxu1  ;;  %8803 = vmatprep.subr.msk.bf16.mxu0 %vm357_vm0, %v8772_v26  ;;  %8805 = vmatprep.subr.msk.bf16.mxu1 %vm357_vm0, %v8774_v27 }
 0x115   : > { %v10025_v36 = vpop.f32.mrb[25].mxu0  ;;  %v10027_v37 = vpop.f32.mrb[25].mxu1 }
 0x116   : > { %v984_v40 = vpop.f32.mrb[26].mxu0  ;;  %v1025_v41 = vpop.f32.mrb[26].mxu1 }
 0x117   : > { %v985_v42 = vpop.f32.mrb[27].mxu0  ;;  %v1026_v43 = vpop.f32.mrb[27].mxu1 }
 0x119   : > { %8800 = vmatmul.mubr.msk.bf16.vlgmr.msra.gmra.mrb[132].mxu0 %vm353_vm1, %v10009_v21  ;;  %8802 = vmatmul.mubr.msk.bf16.vlgmr.msra.gmra.mrb[132].mxu1 %vm353_vm1, %v10009_v21 }
 0x11a   : > { %4086 = vmatpush1.bf16.msra.mxu0 %v3850_v44  ;;  %4127 = vmatpush1.bf16.msra.mxu1 %v3856_v45 }
 0x11b   : > { %4117 = vmatprep.mubr.bf16.mxu0 %v9448_v0  ;;  %4158 = vmatprep.mubr.bf16.mxu1 %v9448_v0 }
 0x11c   : > { %v10039_v58 = vpop.f32.mrb[28].mxu0  ;;  %v10041_v59 = vpop.f32.mrb[28].mxu1  ;;  %8807 = vmatprep.subr.msk.bf16.mxu0 %vm357_vm0, %v8776_v50  ;;  %8809 = vmatprep.subr.msk.bf16.mxu1 %vm357_vm0, %v8778_v51  ;;  %v3880_v50 = vsel %vm357_vm0, %v8781_v23, 0  ;;  %v8786_v51 = vcombine.high %v3735_v39, %v3735_v39 }
 0x11d   : > { %v10045_v60 = vpop.f32.mrb[29].mxu0  ;;  %v10047_v61 = vpop.f32.mrb[29].mxu1 }
 0x11e   : > { %v1066_v5 = vpop.f32.mrb[30].mxu0  ;;  %v1107_v6 = vpop.f32.mrb[30].mxu1 }
 0x11f   : > { %v1067_v7 = vpop.f32.mrb[31].mxu0  ;;  %v1108_v8 = vpop.f32.mrb[31].mxu1 }
 0x120   : > { %v3736_v7 = vld [vmem:[%s9950_s30 + $0x60] sm:$0xff]  ;;  %v3737_v8 = vld [vmem:[%s9950_s30 + $0x68] sm:$0xff] }
 0x121   : > { %8804 = vmatmul.mubr.msk.bf16.vlgmr.msra.gmra.mrb[136].mxu0 %vm353_vm1, %v10009_v21  ;;  %8806 = vmatmul.mubr.msk.bf16.vlgmr.msra.gmra.mrb[136].mxu1 %vm353_vm1, %v10009_v21 }
 0x122   : > { %4168 = vmatpush1.bf16.msra.mxu0 %v3862_v24  ;;  %4209 = vmatpush1.bf16.msra.mxu1 %v3868_v13 }
 0x123   : > { %4199 = vmatprep.mubr.bf16.mxu0 %v9448_v0  ;;  %4240 = vmatprep.mubr.bf16.mxu1 %v9448_v0 }
 0x124   : > { %v1323_v22 = vpop.f32.mrb[32].mxu0  ;;  %v1364_v25 = vpop.f32.mrb[32].mxu1  ;;  %8811 = vmatprep.subr.msk.bf16.mxu0 %vm357_vm0, %v8780_v14  ;;  %8813 = vmatprep.subr.msk.bf16.mxu1 %vm357_vm0, %v8782_v17 }
 0x125   : > { %v10062_v26 = vadd.f32 %v1323_v22, %v9888_v46  ;;  %v10065_v27 = vadd.f32 %v1364_v25, %v9890_v47  ;;  %v1325_v28 = vpop.f32.mrb[33].mxu0  ;;  %v1366_v29 = vpop.f32.mrb[33].mxu1  ;;  %v3874_v46 = vsel %vm357_vm0, %v8779_v20, 0  ;;  %v8784_v47 = vcombine.high %v3734_v38, %v3734_v38 }
 0x126   : > { %v10070_v40 = vadd.f32 %v1325_v28, %v9894_v48  ;;  %v10073_v41 = vadd.f32 %v1366_v29, %v9896_v49  ;;  %v1327_v42 = vpop.f32.mrb[34].mxu0  ;;  %v1368_v43 = vpop.f32.mrb[34].mxu1  ;;  %v8783_v48 = vcombine.low %v3734_v38, %v3734_v38  ;;  %v8785_v49 = vcombine.low %v3735_v39, %v3735_v39 }
 0x127   : > { %v1328_v44 = vpop.f32.mrb[35].mxu0  ;;  %v1369_v45 = vpop.f32.mrb[35].mxu1  ;;  %v8790_v25 = vcombine.high %v3737_v8, %v3737_v8 }
 0x128   : > { %v3892_v22 = vsel %vm357_vm0, %v8785_v49, 0  ;;  %v3738_v44 = vld [vmem:[%s9950_s30 + $0x70] sm:$0xff]  ;;  %v3739_v45 = vld [vmem:[%s9950_s30 + $0x78] sm:$0xff] }
 0x129   : > { %8808 = vmatmul.mubr.msk.bf16.vlgmr.msra.gmra.mrb[140].mxu0 %vm353_vm1, %v10009_v21  ;;  %8810 = vmatmul.mubr.msk.bf16.vlgmr.msra.gmra.mrb[140].mxu1 %vm353_vm1, %v10009_v21 }
 0x12a   : > { %4250 = vmatpush1.bf16.msra.mxu0 %v3874_v46  ;;  %4291 = vmatpush1.bf16.msra.mxu1 %v3880_v50 }
 0x12b   : > { %4281 = vmatprep.mubr.bf16.mxu0 %v9448_v0  ;;  %4322 = vmatprep.mubr.bf16.mxu1 %v9448_v0 }
 0x12c   : > { %v1405_v56 = vpop.f32.mrb[36].mxu0  ;;  %v1446_v57 = vpop.f32.mrb[36].mxu1  ;;  %8815 = vmatprep.subr.msk.bf16.mxu0 %vm357_vm0, %v8784_v47  ;;  %8817 = vmatprep.subr.msk.bf16.mxu1 %vm357_vm0, %v8786_v51 }
 0x12d   : > { %v10086_v3 = vadd.f32 %v1405_v56, %v9908_v62  ;;  %v10089_v4 = vadd.f32 %v1446_v57, %v9910_v63  ;;  %v1407_v5 = vpop.f32.mrb[37].mxu0  ;;  %v1448_v6 = vpop.f32.mrb[37].mxu1  ;;  %v3886_v62 = vsel %vm357_vm0, %v8783_v48, 0  ;;  %v8788_v63 = vcombine.high %v3736_v7, %v3736_v7 }
 0x12e   : > { %v10094_v24 = vadd.f32 %v1407_v5, %v9914_v1  ;;  %v10097_v13 = vadd.f32 %v1448_v6, %v9916_v2  ;;  %v1409_v14 = vpop.f32.mrb[38].mxu0  ;;  %v1450_v17 = vpop.f32.mrb[38].mxu1  ;;  %v8787_v1 = vcombine.low %v3736_v7, %v3736_v7  ;;  %v8789_v2 = vcombine.low %v3737_v8, %v3737_v8 }
 0x12f   : > { %v1410_v20 = vpop.f32.mrb[39].mxu0  ;;  %v1451_v23 = vpop.f32.mrb[39].mxu1  ;;  %v8792_v56 = vcombine.high %v3738_v44, %v3738_v44  ;;  %v8794_v57 = vcombine.high %v3739_v45, %v3739_v45 }
 0x130   : > { %v4611_v20 = vld [vmem:[%s10133_s10] sm:$0xff]  ;;  %v4612_v23 = vld [vmem:[%s10133_s10 + $0x8] sm:$0xff] }
 0x131   : > { %8812 = vmatmul.mubr.msk.bf16.vlgmr.msra.gmra.mrb[144].mxu0 %vm353_vm1, %v10009_v21  ;;  %8814 = vmatmul.mubr.msk.bf16.vlgmr.msra.gmra.mrb[144].mxu1 %vm353_vm1, %v10009_v21 }
 0x132   : > { %4332 = vmatpush1.bf16.msra.mxu0 %v3886_v62  ;;  %4373 = vmatpush1.bf16.msra.mxu1 %v3892_v22 }
 0x133   : > { %4363 = vmatprep.mubr.bf16.mxu0 %v9448_v0  ;;  %4404 = vmatprep.mubr.bf16.mxu1 %v9448_v0 }
 0x134   : > { %v1487_v28 = vpop.f32.mrb[40].mxu0  ;;  %v1528_v29 = vpop.f32.mrb[40].mxu1  ;;  %8819 = vmatprep.subr.msk.bf16.mxu0 %vm357_vm0, %v8788_v63  ;;  %8821 = vmatprep.subr.msk.bf16.mxu1 %vm357_vm0, %v8790_v25 }
 0x135   : > { %v10110_v38 = vadd.f32 %v1487_v28, %v9928_v15  ;;  %v10113_v39 = vadd.f32 %v1528_v29, %v9930_v16  ;;  %v1489_v42 = vpop.f32.mrb[41].mxu0  ;;  %v1530_v43 = vpop.f32.mrb[41].mxu1  ;;  %v3898_v15 = vsel %vm357_vm0, %v8787_v1, 0  ;;  %v3904_v16 = vsel %vm357_vm0, %v8789_v2, 0 }
 0x136   : > { %v10118_v46 = vadd.f32 %v1489_v42, %v9934_v18  ;;  %v10121_v50 = vadd.f32 %v1530_v43, %v9936_v19  ;;  %v1491_v47 = vpop.f32.mrb[42].mxu0  ;;  %v1532_v51 = vpop.f32.mrb[42].mxu1  ;;  %v8791_v18 = vcombine.low %v3738_v44, %v3738_v44  ;;  %v8793_v19 = vcombine.low %v3739_v45, %v3739_v45 }
 0x137   : > { %v1492_v48 = vpop.f32.mrb[43].mxu0  ;;  %v1533_v49 = vpop.f32.mrb[43].mxu1  ;;  %v8832_v29 = vcombine.high %v4612_v23, %v4612_v23 }
 0x138   : > { %v3916_v28 = vsel %vm357_vm0, %v8793_v19, 0  ;;  %v4613_v48 = vld [vmem:[%s10133_s10 + $0x10] sm:$0xff]  ;;  %v4614_v49 = vld [vmem:[%s10133_s10 + $0x18] sm:$0xff] }
 0x139   : > { %8816 = vmatmul.mubr.msk.bf16.vlgmr.msra.gmra.mrb[148].mxu0 %vm353_vm1, %v10009_v21  ;;  %8818 = vmatmul.mubr.msk.bf16.vlgmr.msra.gmra.mrb[148].mxu1 %vm353_vm1, %v10009_v21 }
 0x13a   : > { %4414 = vmatpush1.bf16.msra.mxu0 %v3898_v15  ;;  %4455 = vmatpush1.bf16.msra.mxu1 %v3904_v16 }
 0x13b   : > { %4445 = vmatprep.mubr.bf16.mxu0 %v9448_v0  ;;  %4486 = vmatprep.mubr.bf16.mxu1 %v9448_v0 }
 0x13c   : > { %v1569_v5 = vpop.f32.mrb[44].mxu0  ;;  %v1610_v6 = vpop.f32.mrb[44].mxu1  ;;  %8823 = vmatprep.subr.msk.bf16.mxu0 %vm357_vm0, %v8792_v56  ;;  %8825 = vmatprep.subr.msk.bf16.mxu1 %vm357_vm0, %v8794_v57 }
 0x13d   : > { %v10140_v7 = vadd.f32 %v1569_v5, %v9954_v32  ;;  %v10143_v8 = vadd.f32 %v1610_v6, %v9956_v33  ;;  %v1571_v14 = vpop.f32.mrb[45].mxu0  ;;  %v1612_v17 = vpop.f32.mrb[45].mxu1  ;;  %v3910_v32 = vsel %vm357_vm0, %v8791_v18, 0  ;;  %v8830_v33 = vcombine.high %v4611_v20, %v4611_v20 }
 0x13e   : > { %v10148_v62 = vadd.f32 %v1571_v14, %v9960_v34  ;;  %v10151_v22 = vadd.f32 %v1612_v17, %v9962_v35  ;;  %v1573_v63 = vpop.f32.mrb[46].mxu0  ;;  %v1614_v25 = vpop.f32.mrb[46].mxu1  ;;  %v8829_v34 = vcombine.low %v4611_v20, %v4611_v20  ;;  %v8831_v35 = vcombine.low %v4612_v23, %v4612_v23 }
 0x13f   : > { %v1574_v1 = vpop.f32.mrb[47].mxu0  ;;  %v1615_v2 = vpop.f32.mrb[47].mxu1  ;;  %v8836_v6 = vcombine.high %v4614_v49, %v4614_v49  ;;  %v4615_v25 = vld [vmem:[%s10133_s10 + $0x20] sm:$0xff] }
 0x140   : > { %v4719_v5 = vsel %vm357_vm0, %v8831_v35, 0  ;;  %v4616_v1 = vld [vmem:[%s10133_s10 + $0x28] sm:$0xff] }
 0x141   : > { %8820 = vmatmul.mubr.msk.bf16.vlgmr.msra.gmra.mrb[152].mxu0 %vm353_vm1, %v10009_v21  ;;  %8822 = vmatmul.mubr.msk.bf16.vlgmr.msra.gmra.mrb[152].mxu1 %vm353_vm1, %v10009_v21 }
 0x142   : > { %4496 = vmatpush1.bf16.msra.mxu0 %v3910_v32  ;;  %4537 = vmatpush1.bf16.msra.mxu1 %v3916_v28 }
 0x143   : > { %4527 = vmatprep.mubr.bf16.mxu0 %v9448_v0  ;;  %4568 = vmatprep.mubr.bf16.mxu1 %v9448_v0 }
 0x144   : > { %v1651_v42 = vpop.f32.mrb[48].mxu0  ;;  %v1692_v43 = vpop.f32.mrb[48].mxu1  ;;  %8861 = vmatprep.subr.msk.bf16.mxu0 %vm357_vm0, %v8830_v33  ;;  %8863 = vmatprep.subr.msk.bf16.mxu1 %vm357_vm0, %v8832_v29 }
 0x145   : > { %v10164_v44 = vadd.f32 %v1651_v42, %v9974_v52  ;;  %v10167_v45 = vadd.f32 %v1692_v43, %v9976_v53  ;;  %v1653_v47 = vpop.f32.mrb[49].mxu0  ;;  %v1694_v51 = vpop.f32.mrb[49].mxu1  ;;  %v4713_v52 = vsel %vm357_vm0, %v8829_v34, 0  ;;  %v8834_v53 = vcombine.high %v4613_v48, %v4613_v48 }
 0x146   : > { %v10172_v15 = vadd.f32 %v1653_v47, %v9980_v54  ;;  %v10175_v16 = vadd.f32 %v1694_v51, %v9982_v55  ;;  %v1655_v56 = vpop.f32.mrb[50].mxu0  ;;  %v1696_v57 = vpop.f32.mrb[50].mxu1  ;;  %v8833_v54 = vcombine.low %v4613_v48, %v4613_v48  ;;  %v8835_v55 = vcombine.low %v4614_v49, %v4614_v49 }
 0x147   : > { %v1656_v18 = vpop.f32.mrb[51].mxu0  ;;  %v1697_v19 = vpop.f32.mrb[51].mxu1  ;;  %v8838_v42 = vcombine.high %v4615_v25, %v4615_v25  ;;  %v8840_v43 = vcombine.high %v4616_v1, %v4616_v1 }
 0x148   : > { %v4725_v34 = vsel %vm357_vm0, %v8833_v54, 0  ;;  %v4731_v35 = vsel %vm357_vm0, %v8835_v55, 0  ;;  %v4617_v18 = vld [vmem:[%s10133_s10 + $0x30] sm:$0xff]  ;;  %v4618_v19 = vld [vmem:[%s10133_s10 + $0x38] sm:$0xff] }
 0x149   : > { %8824 = vmatmul.mubr.msk.bf16.vlgmr.msra.gmra.mrb[156].mxu0 %vm353_vm1, %v10009_v21  ;;  %8826 = vmatmul.mubr.msk.bf16.vlgmr.msra.gmra.mrb[156].mxu1 %vm353_vm1, %v10009_v21 }
 0x14a   : > { %4809 = vmatpush1.bf16.msra.mxu0 %v4713_v52  ;;  %4850 = vmatpush1.bf16.msra.mxu1 %v4719_v5 }
 0x14b   : > { %4840 = vmatprep.mubr.bf16.mxu0 %v9448_v0  ;;  %4881 = vmatprep.mubr.bf16.mxu1 %v9448_v0 }
 0x14c   : > { %v1733_v14 = vpop.f32.mrb[52].mxu0  ;;  %v1774_v17 = vpop.f32.mrb[52].mxu1  ;;  %8865 = vmatprep.subr.msk.bf16.mxu0 %vm357_vm0, %v8834_v53  ;;  %8867 = vmatprep.subr.msk.bf16.mxu1 %vm357_vm0, %v8836_v6 }
 0x14d   : > { %v10188_v20 = vadd.f32 %v1733_v14, %v9994_v9  ;;  %v10191_v21 = vadd.f32 %v1774_v17, %v9996_v10  ;;  %v1735_v23 = vpop.f32.mrb[53].mxu0  ;;  %v1776_v63 = vpop.f32.mrb[53].mxu1  ;;  %v10204_v9 = vld [vmem:[%s11331_s3 + $0xa] sm:$0x3]  ;;  %v8844_v17 = vcombine.high %v4618_v19, %v4618_v19 }
 0x14e   : > { %v10196_v2 = vadd.f32 %v1735_v23, %v10000_v11  ;;  %v10199_v32 = vadd.f32 %v1776_v63, %v10002_v12  ;;  %v1737_v28 = vpop.f32.mrb[54].mxu0  ;;  %v1778_v33 = vpop.f32.mrb[54].mxu1  ;;  %v8837_v11 = vcombine.low %v4615_v25, %v4615_v25  ;;  %v8839_v12 = vcombine.low %v4616_v1, %v4616_v1 }
 0x14f   : > { %v1738_v29 = vpop.f32.mrb[55].mxu0  ;;  %v1779_v10 = vpop.f32.mrb[55].mxu1 }
 0x150   : > { %v4743_v14 = vsel %vm357_vm0, %v8839_v12, 0  ;;  %v4619_v29 = vld [vmem:[%s10133_s10 + $0x40] sm:$0xff]  ;;  %v4620_v10 = vld [vmem:[%s10133_s10 + $0x48] sm:$0xff] }
 0x151   : > { %8862 = vmatmul.mubr.msk.bf16.vlgmr.msra.gmra.mrb[160].mxu0 %vm353_vm1, %v10204_v9  ;;  %8864 = vmatmul.mubr.msk.bf16.vlgmr.msra.gmra.mrb[160].mxu1 %vm353_vm1, %v10204_v9 }
 0x152   : > { %4891 = vmatpush1.bf16.msra.mxu0 %v4725_v34  ;;  %4932 = vmatpush1.bf16.msra.mxu1 %v4731_v35 }
 0x153   : > { %4922 = vmatprep.mubr.bf16.mxu0 %v9448_v0  ;;  %4963 = vmatprep.mubr.bf16.mxu1 %v9448_v0 }
 0x154   : > { %v1815_v47 = vpop.f32.mrb[56].mxu0  ;;  %v1856_v51 = vpop.f32.mrb[56].mxu1  ;;  %8869 = vmatprep.subr.msk.bf16.mxu0 %vm357_vm0, %v8838_v42  ;;  %8871 = vmatprep.subr.msk.bf16.mxu1 %vm357_vm0, %v8840_v43 }
 0x155   : > { %v10217_v48 = vadd.f32 %v1815_v47, %v10019_v30  ;;  %v10220_v49 = vadd.f32 %v1856_v51, %v10021_v31  ;;  %v1817_v56 = vpop.f32.mrb[57].mxu0  ;;  %v1858_v57 = vpop.f32.mrb[57].mxu1  ;;  %v4737_v30 = vsel %vm357_vm0, %v8837_v11, 0  ;;  %v8842_v31 = vcombine.high %v4617_v18, %v4617_v18 }
 0x156   : > { %v10225_v52 = vadd.f32 %v1817_v56, %v10025_v36  ;;  %v10228_v5 = vadd.f32 %v1858_v57, %v10027_v37  ;;  %v1819_v53 = vpop.f32.mrb[58].mxu0  ;;  %v1860_v6 = vpop.f32.mrb[58].mxu1  ;;  %v8841_v36 = vcombine.low %v4617_v18, %v4617_v18  ;;  %v8843_v37 = vcombine.low %v4618_v19, %v4618_v19 }
 0x157   : > { %v1820_v54 = vpop.f32.mrb[59].mxu0  ;;  %v1861_v55 = vpop.f32.mrb[59].mxu1  ;;  %v8848_v51 = vcombine.high %v4620_v10, %v4620_v10 }
 0x158   : > { %v4755_v47 = vsel %vm357_vm0, %v8843_v37, 0  ;;  %v4621_v54 = vld [vmem:[%s10133_s10 + $0x50] sm:$0xff]  ;;  %v4622_v55 = vld [vmem:[%s10133_s10 + $0x58] sm:$0xff] }
 0x159   : > { %8866 = vmatmul.mubr.msk.bf16.vlgmr.msra.gmra.mrb[164].mxu0 %vm353_vm1, %v10204_v9  ;;  %8868 = vmatmul.mubr.msk.bf16.vlgmr.msra.gmra.mrb[164].mxu1 %vm353_vm1, %v10204_v9 }
 0x15a   : > { %4973 = vmatpush1.bf16.msra.mxu0 %v4737_v30  ;;  %5014 = vmatpush1.bf16.msra.mxu1 %v4743_v14 }
 0x15b   : > { %5004 = vmatprep.mubr.bf16.mxu0 %v9448_v0  ;;  %5045 = vmatprep.mubr.bf16.mxu1 %v9448_v0 }
 0x15c   : > { %v1897_v23 = vpop.f32.mrb[60].mxu0  ;;  %v1938_v63 = vpop.f32.mrb[60].mxu1  ;;  %8873 = vmatprep.subr.msk.bf16.mxu0 %vm357_vm0, %v8842_v31  ;;  %8875 = vmatprep.subr.msk.bf16.mxu1 %vm357_vm0, %v8844_v17 }
 0x15d   : > { %v10241_v25 = vadd.f32 %v1897_v23, %v10039_v58  ;;  %v10244_v1 = vadd.f32 %v1938_v63, %v10041_v59  ;;  %v1899_v28 = vpop.f32.mrb[61].mxu0  ;;  %v1940_v33 = vpop.f32.mrb[61].mxu1  ;;  %v4749_v58 = vsel %vm357_vm0, %v8841_v36, 0  ;;  %v8846_v59 = vcombine.high %v4619_v29, %v4619_v29 }
 0x15e   : > { %v10249_v34 = vadd.f32 %v1899_v28, %v10045_v60  ;;  %v10252_v35 = vadd.f32 %v1940_v33, %v10047_v61  ;;  %v1901_v42 = vpop.f32.mrb[62].mxu0  ;;  %v1942_v43 = vpop.f32.mrb[62].mxu1  ;;  %v8845_v60 = vcombine.low %v4619_v29, %v4619_v29  ;;  %v8847_v61 = vcombine.low %v4620_v10, %v4620_v10 }
 0x15f   : > { %v1902_v11 = vpop.f32.mrb[63].mxu0  ;;  %v1943_v12 = vpop.f32.mrb[63].mxu1  ;;  %v8852_v63 = vcombine.high %v4622_v55, %v4622_v55 }
 0x160   : > { %v4767_v23 = vsel %vm357_vm0, %v8847_v61, 0  ;;  %v4623_v11 = vld [vmem:[%s10133_s10 + $0x60] sm:$0xff]  ;;  %v4624_v12 = vld [vmem:[%s10133_s10 + $0x68] sm:$0xff] }
 0x161   : > { %8870 = vmatmul.mubr.msk.bf16.vlgmr.msra.gmra.mrb[168].mxu0 %vm353_vm1, %v10204_v9  ;;  %8872 = vmatmul.mubr.msk.bf16.vlgmr.msra.gmra.mrb[168].mxu1 %vm353_vm1, %v10204_v9 }
 0x162   : > { %5055 = vmatpush1.bf16.msra.mxu0 %v4749_v58  ;;  %5096 = vmatpush1.bf16.msra.mxu1 %v4755_v47 }
 0x163   : > { %5086 = vmatprep.mubr.bf16.mxu0 %v9448_v0  ;;  %5127 = vmatprep.mubr.bf16.mxu1 %v9448_v0 }
 0x164   : > { %v2178_v56 = vpop.f32.mrb[64].mxu0  ;;  %v2219_v57 = vpop.f32.mrb[64].mxu1  ;;  %8877 = vmatprep.subr.msk.bf16.mxu0 %vm357_vm0, %v8846_v59  ;;  %8879 = vmatprep.subr.msk.bf16.mxu1 %vm357_vm0, %v8848_v51 }
 0x165   : > { %v10265_v18 = vadd.f32 %v2178_v56, %v10062_v26  ;;  %v10268_v19 = vadd.f32 %v2219_v57, %v10065_v27  ;;  %v2180_v53 = vpop.f32.mrb[65].mxu0  ;;  %v2221_v6 = vpop.f32.mrb[65].mxu1  ;;  %v4761_v26 = vsel %vm357_vm0, %v8845_v60, 0  ;;  %v8850_v27 = vcombine.high %v4621_v54, %v4621_v54 }
 0x166   : > { %v10273_v30 = vadd.f32 %v2180_v53, %v10070_v40  ;;  %v10276_v14 = vadd.f32 %v2221_v6, %v10073_v41  ;;  %v2182_v31 = vpop.f32.mrb[66].mxu0  ;;  %v2223_v17 = vpop.f32.mrb[66].mxu1  ;;  %v8849_v40 = vcombine.low %v4621_v54, %v4621_v54  ;;  %v8851_v41 = vcombine.low %v4622_v55, %v4622_v55 }
 0x167   : > { %v2183_v36 = vpop.f32.mrb[67].mxu0  ;;  %v2224_v37 = vpop.f32.mrb[67].mxu1  ;;  %v8856_v57 = vcombine.high %v4624_v12, %v4624_v12 }
 0x168   : > { %v4779_v56 = vsel %vm357_vm0, %v8851_v41, 0  ;;  %v4625_v36 = vld [vmem:[%s10133_s10 + $0x70] sm:$0xff]  ;;  %v4626_v37 = vld [vmem:[%s10133_s10 + $0x78] sm:$0xff] }
 0x169   : > { %8874 = vmatmul.mubr.msk.bf16.vlgmr.msra.gmra.mrb[172].mxu0 %vm353_vm1, %v10204_v9  ;;  %8876 = vmatmul.mubr.msk.bf16.vlgmr.msra.gmra.mrb[172].mxu1 %vm353_vm1, %v10204_v9 }
 0x16a   : > { %5137 = vmatpush1.bf16.msra.mxu0 %v4761_v26  ;;  %5178 = vmatpush1.bf16.msra.mxu1 %v4767_v23 }
 0x16b   : > { %5168 = vmatprep.mubr.bf16.mxu0 %v9448_v0  ;;  %5209 = vmatprep.mubr.bf16.mxu1 %v9448_v0 }
 0x16c   : > { %v2260_v28 = vpop.f32.mrb[68].mxu0  ;;  %v2301_v33 = vpop.f32.mrb[68].mxu1  ;;  %8881 = vmatprep.subr.msk.bf16.mxu0 %vm357_vm0, %v8850_v27  ;;  %8883 = vmatprep.subr.msk.bf16.mxu1 %vm357_vm0, %v8852_v63 }
 0x16d   : > { %v10289_v29 = vadd.f32 %v2260_v28, %v10086_v3  ;;  %v10292_v10 = vadd.f32 %v2301_v33, %v10089_v4  ;;  %v2262_v42 = vpop.f32.mrb[69].mxu0  ;;  %v2303_v43 = vpop.f32.mrb[69].mxu1  ;;  %v4773_v3 = vsel %vm357_vm0, %v8849_v40, 0  ;;  %v8854_v4 = vcombine.high %v4623_v11, %v4623_v11 }
 0x16e   : > { %v10297_v58 = vadd.f32 %v2262_v42, %v10094_v24  ;;  %v10300_v47 = vadd.f32 %v2303_v43, %v10097_v13  ;;  %v2264_v59 = vpop.f32.mrb[70].mxu0  ;;  %v2305_v51 = vpop.f32.mrb[70].mxu1  ;;  %v8853_v24 = vcombine.low %v4623_v11, %v4623_v11  ;;  %v8855_v13 = vcombine.low %v4624_v12, %v4624_v12 }
 0x16f   : > { %v2265_v60 = vpop.f32.mrb[71].mxu0  ;;  %v2306_v61 = vpop.f32.mrb[71].mxu1  ;;  %v8858_v28 = vcombine.high %v4625_v36, %v4625_v36  ;;  %v8860_v33 = vcombine.high %v4626_v37, %v4626_v37 }
 0x170   : > { %v4791_v41 = vsel %vm357_vm0, %v8855_v13, 0  ;;  %v5501_v60 = vld [vmem:[%s10339_s17] sm:$0xff]  ;;  %v5502_v61 = vld [vmem:[%s10339_s17 + $0x8] sm:$0xff] }
 0x171   : > { %8878 = vmatmul.mubr.msk.bf16.vlgmr.msra.gmra.mrb[176].mxu0 %vm353_vm1, %v10204_v9  ;;  %8880 = vmatmul.mubr.msk.bf16.vlgmr.msra.gmra.mrb[176].mxu1 %vm353_vm1, %v10204_v9 }
 0x172   : > { %5219 = vmatpush1.bf16.msra.mxu0 %v4773_v3  ;;  %5260 = vmatpush1.bf16.msra.mxu1 %v4779_v56 }
 0x173   : > { %5250 = vmatprep.mubr.bf16.mxu0 %v9448_v0  ;;  %5291 = vmatprep.mubr.bf16.mxu1 %v9448_v0 }
 0x174   : > { %v2342_v53 = vpop.f32.mrb[72].mxu0  ;;  %v2383_v6 = vpop.f32.mrb[72].mxu1  ;;  %8885 = vmatprep.subr.msk.bf16.mxu0 %vm357_vm0, %v8854_v4  ;;  %8887 = vmatprep.subr.msk.bf16.mxu1 %vm357_vm0, %v8856_v57 }
 0x175   : > { %v10314_v54 = vadd.f32 %v2342_v53, %v10110_v38  ;;  %v10317_v55 = vadd.f32 %v2383_v6, %v10113_v39  ;;  %v2344_v31 = vpop.f32.mrb[73].mxu0  ;;  %v2385_v17 = vpop.f32.mrb[73].mxu1  ;;  %v4785_v39 = vsel %vm357_vm0, %v8853_v24, 0  ;;  %v8898_v6 = vcombine.high %v5502_v61, %v5502_v61 }
 0x176   : > { %v10322_v26 = vadd.f32 %v2344_v31, %v10118_v46  ;;  %v10325_v23 = vadd.f32 %v2385_v17, %v10121_v50  ;;  %v2346_v27 = vpop.f32.mrb[74].mxu0  ;;  %v2387_v63 = vpop.f32.mrb[74].mxu1  ;;  %v8857_v46 = vcombine.low %v4625_v36, %v4625_v36  ;;  %v8859_v50 = vcombine.low %v4626_v37, %v4626_v37 }
 0x177   : > { %v2347_v38 = vpop.f32.mrb[75].mxu0  ;;  %v2388_v40 = vpop.f32.mrb[75].mxu1 }
 0x178   : > { %v4803_v53 = vsel %vm357_vm0, %v8859_v50, 0  ;;  %v5503_v38 = vld [vmem:[%s10339_s17 + $0x10] sm:$0xff]  ;;  %v5504_v40 = vld [vmem:[%s10339_s17 + $0x18] sm:$0xff] }
 0x179   : > { %8882 = vmatmul.mubr.msk.bf16.vlgmr.msra.gmra.mrb[180].mxu0 %vm353_vm1, %v10204_v9  ;;  %8884 = vmatmul.mubr.msk.bf16.vlgmr.msra.gmra.mrb[180].mxu1 %vm353_vm1, %v10204_v9 }
 0x17a   : > { %5301 = vmatpush1.bf16.msra.mxu0 %v4785_v39  ;;  %5342 = vmatpush1.bf16.msra.mxu1 %v4791_v41 }
 0x17b   : > { %5332 = vmatprep.mubr.bf16.mxu0 %v9448_v0  ;;  %5373 = vmatprep.mubr.bf16.mxu1 %v9448_v0 }
 0x17c   : > { %v2424_v42 = vpop.f32.mrb[76].mxu0  ;;  %v2465_v43 = vpop.f32.mrb[76].mxu1  ;;  %8889 = vmatprep.subr.msk.bf16.mxu0 %vm357_vm0, %v8858_v28  ;;  %8891 = vmatprep.subr.msk.bf16.mxu1 %vm357_vm0, %v8860_v33 }
 0x17d   : > { %v10346_v11 = vadd.f32 %v2424_v42, %v10140_v7  ;;  %v10349_v12 = vadd.f32 %v2465_v43, %v10143_v8  ;;  %v2426_v59 = vpop.f32.mrb[77].mxu0  ;;  %v2467_v51 = vpop.f32.mrb[77].mxu1  ;;  %v4797_v7 = vsel %vm357_vm0, %v8857_v46, 0  ;;  %v8896_v8 = vcombine.high %v5501_v60, %v5501_v60 }
 0x17e   : > { %v10354_v3 = vadd.f32 %v2426_v59, %v10148_v62  ;;  %v10357_v56 = vadd.f32 %v2467_v51, %v10151_v22  ;;  %v2428_v4 = vpop.f32.mrb[78].mxu0  ;;  %v2469_v57 = vpop.f32.mrb[78].mxu1  ;;  %v8895_v62 = vcombine.low %v5501_v60, %v5501_v60  ;;  %v8897_v22 = vcombine.low %v5502_v61, %v5502_v61 }
 0x17f   : > { %v2429_v24 = vpop.f32.mrb[79].mxu0  ;;  %v2470_v13 = vpop.f32.mrb[79].mxu1  ;;  %v8902_v43 = vcombine.high %v5504_v40, %v5504_v40  ;;  %v5505_v57 = vld [vmem:[%s10339_s17 + $0x20] sm:$0xff] }
 0x180   : > { %v5609_v42 = vsel %vm357_vm0, %v8897_v22, 0  ;;  %v5506_v24 = vld [vmem:[%s10339_s17 + $0x28] sm:$0xff] }
 0x181   : > { %8886 = vmatmul.mubr.msk.bf16.vlgmr.msra.gmra.mrb[184].mxu0 %vm353_vm1, %v10204_v9  ;;  %8888 = vmatmul.mubr.msk.bf16.vlgmr.msra.gmra.mrb[184].mxu1 %vm353_vm1, %v10204_v9 }
 0x182   : > { %5383 = vmatpush1.bf16.msra.mxu0 %v4797_v7  ;;  %5424 = vmatpush1.bf16.msra.mxu1 %v4803_v53 }
 0x183   : > { %5414 = vmatprep.mubr.bf16.mxu0 %v9448_v0  ;;  %5455 = vmatprep.mubr.bf16.mxu1 %v9448_v0 }
 0x184   : > { %v2506_v31 = vpop.f32.mrb[80].mxu0  ;;  %v2547_v17 = vpop.f32.mrb[80].mxu1  ;;  %8927 = vmatprep.subr.msk.bf16.mxu0 %vm357_vm0, %v8896_v8  ;;  %8929 = vmatprep.subr.msk.bf16.mxu1 %vm357_vm0, %v8898_v6 }
 0x185   : > { %v10370_v36 = vadd.f32 %v2506_v31, %v10164_v44  ;;  %v10373_v37 = vadd.f32 %v2547_v17, %v10167_v45  ;;  %v2508_v27 = vpop.f32.mrb[81].mxu0  ;;  %v2549_v63 = vpop.f32.mrb[81].mxu1  ;;  %v5603_v44 = vsel %vm357_vm0, %v8895_v62, 0  ;;  %v8900_v45 = vcombine.high %v5503_v38, %v5503_v38 }
 0x186   : > { %v10378_v39 = vadd.f32 %v2508_v27, %v10172_v15  ;;  %v10381_v41 = vadd.f32 %v2549_v63, %v10175_v16  ;;  %v2510_v28 = vpop.f32.mrb[82].mxu0  ;;  %v2551_v33 = vpop.f32.mrb[82].mxu1  ;;  %v8899_v15 = vcombine.low %v5503_v38, %v5503_v38  ;;  %v8901_v16 = vcombine.low %v5504_v40, %v5504_v40 }
 0x187   : > { %v2511_v46 = vpop.f32.mrb[83].mxu0  ;;  %v2552_v50 = vpop.f32.mrb[83].mxu1  ;;  %v8904_v31 = vcombine.high %v5505_v57, %v5505_v57  ;;  %v8906_v17 = vcombine.high %v5506_v24, %v5506_v24 }
 0x188   : > { %v5615_v62 = vsel %vm357_vm0, %v8899_v15, 0  ;;  %v5621_v22 = vsel %vm357_vm0, %v8901_v16, 0  ;;  %v5507_v46 = vld [vmem:[%s10339_s17 + $0x30] sm:$0xff]  ;;  %v5508_v50 = vld [vmem:[%s10339_s17 + $0x38] sm:$0xff] }
 0x189   : > { %8890 = vmatmul.mubr.msk.bf16.vlgmr.msra.gmra.mrb[188].mxu0 %vm353_vm1, %v10204_v9  ;;  %8892 = vmatmul.mubr.msk.bf16.vlgmr.msra.gmra.mrb[188].mxu1 %vm353_vm1, %v10204_v9 }
 0x18a   : > { %5699 = vmatpush1.bf16.msra.mxu0 %v5603_v44  ;;  %5740 = vmatpush1.bf16.msra.mxu1 %v5609_v42 }
 0x18b   : > { %5730 = vmatprep.mubr.bf16.mxu0 %v9448_v0  ;;  %5771 = vmatprep.mubr.bf16.mxu1 %v9448_v0 }
 0x18c   : > { %v2588_v59 = vpop.f32.mrb[84].mxu0  ;;  %v2629_v51 = vpop.f32.mrb[84].mxu1  ;;  %8931 = vmatprep.subr.msk.bf16.mxu0 %vm357_vm0, %v8900_v45  ;;  %8933 = vmatprep.subr.msk.bf16.mxu1 %vm357_vm0, %v8902_v43 }
 0x18d   : > { %v10394_v60 = vadd.f32 %v2588_v59, %v10188_v20  ;;  %v10397_v9 = vadd.f32 %v2629_v51, %v10191_v21  ;;  %v2590_v61 = vpop.f32.mrb[85].mxu0  ;;  %v2631_v4 = vpop.f32.mrb[85].mxu1  ;;  %v10410_v20 = vld [vmem:[%s11331_s3 + $0xc] sm:$0x3]  ;;  %v8910_v51 = vcombine.high %v5508_v50, %v5508_v50 }
 0x18e   : > { %v10402_v13 = vadd.f32 %v2590_v61, %v10196_v2  ;;  %v10405_v7 = vadd.f32 %v2631_v4, %v10199_v32  ;;  %v2592_v53 = vpop.f32.mrb[86].mxu0  ;;  %v2633_v8 = vpop.f32.mrb[86].mxu1  ;;  %v8903_v2 = vcombine.low %v5505_v57, %v5505_v57  ;;  %v8905_v32 = vcombine.low %v5506_v24, %v5506_v24 }
 0x18f   : > { %v2593_v6 = vpop.f32.mrb[87].mxu0  ;;  %v2634_v21 = vpop.f32.mrb[87].mxu1 }
 0x190   : > { %v5633_v59 = vsel %vm357_vm0, %v8905_v32, 0  ;;  %v5509_v6 = vld [vmem:[%s10339_s17 + $0x40] sm:$0xff]  ;;  %v5510_v21 = vld [vmem:[%s10339_s17 + $0x48] sm:$0xff] }
 0x191   : > { %8928 = vmatmul.mubr.msk.bf16.vlgmr.msra.gmra.mrb[192].mxu0 %vm353_vm1, %v10410_v20  ;;  %8930 = vmatmul.mubr.msk.bf16.vlgmr.msra.gmra.mrb[192].mxu1 %vm353_vm1, %v10410_v20 }
 0x192   : > { %5781 = vmatpush1.bf16.msra.mxu0 %v5615_v62  ;;  %5822 = vmatpush1.bf16.msra.mxu1 %v5621_v22 }
 0x193   : > { %5812 = vmatprep.mubr.bf16.mxu0 %v9448_v0  ;;  %5853 = vmatprep.mubr.bf16.mxu1 %v9448_v0 }
 0x194   : > { %v2670_v27 = vpop.f32.mrb[88].mxu0  ;;  %v2711_v63 = vpop.f32.mrb[88].mxu1  ;;  %8935 = vmatprep.subr.msk.bf16.mxu0 %vm357_vm0, %v8904_v31  ;;  %8937 = vmatprep.subr.msk.bf16.mxu1 %vm357_vm0, %v8906_v17 }
 0x195   : > { %v10423_v38 = vadd.f32 %v2670_v27, %v10217_v48  ;;  %v10426_v40 = vadd.f32 %v2711_v63, %v10220_v49  ;;  %v2672_v28 = vpop.f32.mrb[89].mxu0  ;;  %v2713_v33 = vpop.f32.mrb[89].mxu1  ;;  %v5627_v48 = vsel %vm357_vm0, %v8903_v2, 0  ;;  %v8908_v49 = vcombine.high %v5507_v46, %v5507_v46 }
 0x196   : > { %v10431_v44 = vadd.f32 %v2672_v28, %v10225_v52  ;;  %v10434_v42 = vadd.f32 %v2713_v33, %v10228_v5  ;;  %v2674_v45 = vpop.f32.mrb[90].mxu0  ;;  %v2715_v43 = vpop.f32.mrb[90].mxu1  ;;  %v8907_v52 = vcombine.low %v5507_v46, %v5507_v46  ;;  %v8909_v5 = vcombine.low %v5508_v50, %v5508_v50 }
 0x197   : > { %v2675_v15 = vpop.f32.mrb[91].mxu0  ;;  %v2716_v16 = vpop.f32.mrb[91].mxu1  ;;  %v8914_v63 = vcombine.high %v5510_v21, %v5510_v21 }
 0x198   : > { %v5645_v27 = vsel %vm357_vm0, %v8909_v5, 0  ;;  %v5511_v15 = vld [vmem:[%s10339_s17 + $0x50] sm:$0xff]  ;;  %v5512_v16 = vld [vmem:[%s10339_s17 + $0x58] sm:$0xff] }
 0x199   : > { %8932 = vmatmul.mubr.msk.bf16.vlgmr.msra.gmra.mrb[196].mxu0 %vm353_vm1, %v10410_v20  ;;  %8934 = vmatmul.mubr.msk.bf16.vlgmr.msra.gmra.mrb[196].mxu1 %vm353_vm1, %v10410_v20 }
 0x19a   : > { %5863 = vmatpush1.bf16.msra.mxu0 %v5627_v48  ;;  %5904 = vmatpush1.bf16.msra.mxu1 %v5633_v59 }
 0x19b   : > { %5894 = vmatprep.mubr.bf16.mxu0 %v9448_v0  ;;  %5935 = vmatprep.mubr.bf16.mxu1 %v9448_v0 }
 0x19c   : > { %v2752_v61 = vpop.f32.mrb[92].mxu0  ;;  %v2793_v4 = vpop.f32.mrb[92].mxu1  ;;  %8939 = vmatprep.subr.msk.bf16.mxu0 %vm357_vm0, %v8908_v49  ;;  %8941 = vmatprep.subr.msk.bf16.mxu1 %vm357_vm0, %v8910_v51 }
 0x19d   : > { %v10447_v57 = vadd.f32 %v2752_v61, %v10241_v25  ;;  %v10450_v24 = vadd.f32 %v2793_v4, %v10244_v1  ;;  %v2754_v53 = vpop.f32.mrb[93].mxu0  ;;  %v2795_v8 = vpop.f32.mrb[93].mxu1  ;;  %v5639_v25 = vsel %vm357_vm0, %v8907_v52, 0  ;;  %v8912_v1 = vcombine.high %v5509_v6, %v5509_v6 }
 0x19e   : > { %v10455_v62 = vadd.f32 %v2754_v53, %v10249_v34  ;;  %v10458_v22 = vadd.f32 %v2795_v8, %v10252_v35  ;;  %v2756_v31 = vpop.f32.mrb[94].mxu0  ;;  %v2797_v17 = vpop.f32.mrb[94].mxu1  ;;  %v8911_v34 = vcombine.low %v5509_v6, %v5509_v6  ;;  %v8913_v35 = vcombine.low %v5510_v21, %v5510_v21 }
 0x19f   : > { %v2757_v2 = vpop.f32.mrb[95].mxu0  ;;  %v2798_v32 = vpop.f32.mrb[95].mxu1  ;;  %v8918_v4 = vcombine.high %v5512_v16, %v5512_v16 }
 0x1a0   : > { %v5657_v61 = vsel %vm357_vm0, %v8913_v35, 0  ;;  %v5513_v2 = vld [vmem:[%s10339_s17 + $0x60] sm:$0xff]  ;;  %v5514_v32 = vld [vmem:[%s10339_s17 + $0x68] sm:$0xff] }
 0x1a1   : > { %8936 = vmatmul.mubr.msk.bf16.vlgmr.msra.gmra.mrb[200].mxu0 %vm353_vm1, %v10410_v20  ;;  %8938 = vmatmul.mubr.msk.bf16.vlgmr.msra.gmra.mrb[200].mxu1 %vm353_vm1, %v10410_v20 }
 0x1a2   : > { %5945 = vmatpush1.bf16.msra.mxu0 %v5639_v25  ;;  %5986 = vmatpush1.bf16.msra.mxu1 %v5645_v27 }
 0x1a3   : > { %5976 = vmatprep.mubr.bf16.mxu0 %v9448_v0  ;;  %6017 = vmatprep.mubr.bf16.mxu1 %v9448_v0 }
 0x1a4   : > { %v3068_v28 = vpop.f32.mrb[96].mxu0  ;;  %v3109_v33 = vpop.f32.mrb[96].mxu1  ;;  %8943 = vmatprep.subr.msk.bf16.mxu0 %vm357_vm0, %v8912_v1  ;;  %8945 = vmatprep.subr.msk.bf16.mxu1 %vm357_vm0, %v8914_v63 }
 0x1a5   : > { %v10471_v46 = vadd.f32 %v3068_v28, %v10265_v18  ;;  %v10474_v50 = vadd.f32 %v3109_v33, %v10268_v19  ;;  %v3070_v45 = vpop.f32.mrb[97].mxu0  ;;  %v3111_v43 = vpop.f32.mrb[97].mxu1  ;;  %v5651_v18 = vsel %vm357_vm0, %v8911_v34, 0  ;;  %v8916_v19 = vcombine.high %v5511_v15, %v5511_v15 }
 0x1a6   : > { %v10479_v48 = vadd.f32 %v3070_v45, %v10273_v30  ;;  %v10482_v59 = vadd.f32 %v3111_v43, %v10276_v14  ;;  %v3072_v49 = vpop.f32.mrb[98].mxu0  ;;  %v3113_v51 = vpop.f32.mrb[98].mxu1  ;;  %v8915_v30 = vcombine.low %v5511_v15, %v5511_v15  ;;  %v8917_v14 = vcombine.low %v5512_v16, %v5512_v16 }
 0x1a7   : > { %v3073_v52 = vpop.f32.mrb[99].mxu0  ;;  %v3114_v5 = vpop.f32.mrb[99].mxu1  ;;  %v8922_v33 = vcombine.high %v5514_v32, %v5514_v32 }
 0x1a8   : > { %v5669_v28 = vsel %vm357_vm0, %v8917_v14, 0  ;;  %v5515_v52 = vld [vmem:[%s10339_s17 + $0x70] sm:$0xff]  ;;  %v5516_v5 = vld [vmem:[%s10339_s17 + $0x78] sm:$0xff] }
 0x1a9   : > { %8940 = vmatmul.mubr.msk.bf16.vlgmr.msra.gmra.mrb[204].mxu0 %vm353_vm1, %v10410_v20  ;;  %8942 = vmatmul.mubr.msk.bf16.vlgmr.msra.gmra.mrb[204].mxu1 %vm353_vm1, %v10410_v20 }
 0x1aa   : > { %6027 = vmatpush1.bf16.msra.mxu0 %v5651_v18  ;;  %6068 = vmatpush1.bf16.msra.mxu1 %v5657_v61 }
 0x1ab   : > { %6058 = vmatprep.mubr.bf16.mxu0 %v9448_v0  ;;  %6099 = vmatprep.mubr.bf16.mxu1 %v9448_v0 }
 0x1ac   : > { %v3150_v53 = vpop.f32.mrb[100].mxu0  ;;  %v3191_v8 = vpop.f32.mrb[100].mxu1  ;;  %8947 = vmatprep.subr.msk.bf16.mxu0 %vm357_vm0, %v8916_v19  ;;  %8949 = vmatprep.subr.msk.bf16.mxu1 %vm357_vm0, %v8918_v4 }
 0x1ad   : > { %v10495_v6 = vadd.f32 %v3150_v53, %v10289_v29  ;;  %v10498_v21 = vadd.f32 %v3191_v8, %v10292_v10  ;;  %v3152_v31 = vpop.f32.mrb[101].mxu0  ;;  %v3193_v17 = vpop.f32.mrb[101].mxu1  ;;  %v5663_v29 = vsel %vm357_vm0, %v8915_v30, 0  ;;  %v8920_v10 = vcombine.high %v5513_v2, %v5513_v2 }
 0x1ae   : > { %v10503_v25 = vadd.f32 %v3152_v31, %v10297_v58  ;;  %v10506_v27 = vadd.f32 %v3193_v17, %v10300_v47  ;;  %v3154_v1 = vpop.f32.mrb[102].mxu0  ;;  %v3195_v63 = vpop.f32.mrb[102].mxu1  ;;  %v8919_v58 = vcombine.low %v5513_v2, %v5513_v2  ;;  %v8921_v47 = vcombine.low %v5514_v32, %v5514_v32 }
 0x1af   : > { %v3155_v34 = vpop.f32.mrb[103].mxu0  ;;  %v3196_v35 = vpop.f32.mrb[103].mxu1  ;;  %v8924_v53 = vcombine.high %v5515_v52, %v5515_v52  ;;  %v8926_v8 = vcombine.high %v5516_v5, %v5516_v5 }
 0x1b0   : > { %v6388_v34 = vld [vmem:[%s10542_s27] sm:$0xff]  ;;  %v6389_v35 = vld [vmem:[%s10542_s27 + $0x8] sm:$0xff] }
 0x1b1   : > { %8944 = vmatmul.mubr.msk.bf16.vlgmr.msra.gmra.mrb[208].mxu0 %vm353_vm1, %v10410_v20  ;;  %8946 = vmatmul.mubr.msk.bf16.vlgmr.msra.gmra.mrb[208].mxu1 %vm353_vm1, %v10410_v20 }
 0x1b2   : > { %6109 = vmatpush1.bf16.msra.mxu0 %v5663_v29  ;;  %6150 = vmatpush1.bf16.msra.mxu1 %v5669_v28 }
 0x1b3   : > { %6140 = vmatprep.mubr.bf16.mxu0 %v9448_v0  ;;  %6181 = vmatprep.mubr.bf16.mxu1 %v9448_v0 }
 0x1b4   : > { %v3232_v45 = vpop.f32.mrb[104].mxu0  ;;  %v3273_v43 = vpop.f32.mrb[104].mxu1  ;;  %8951 = vmatprep.subr.msk.bf16.mxu0 %vm357_vm0, %v8920_v10  ;;  %8953 = vmatprep.subr.msk.bf16.mxu1 %vm357_vm0, %v8922_v33 }
 0x1b5   : > { %v10519_v15 = vadd.f32 %v3232_v45, %v10314_v54  ;;  %v10522_v16 = vadd.f32 %v3273_v43, %v10317_v55  ;;  %v3234_v49 = vpop.f32.mrb[105].mxu0  ;;  %v3275_v51 = vpop.f32.mrb[105].mxu1  ;;  %v5675_v54 = vsel %vm357_vm0, %v8919_v58, 0  ;;  %v5681_v55 = vsel %vm357_vm0, %v8921_v47, 0 }
 0x1b6   : > { %v10527_v18 = vadd.f32 %v3234_v49, %v10322_v26  ;;  %v10530_v61 = vadd.f32 %v3275_v51, %v10325_v23  ;;  %v3236_v19 = vpop.f32.mrb[106].mxu0  ;;  %v3277_v4 = vpop.f32.mrb[106].mxu1  ;;  %v8923_v26 = vcombine.low %v5515_v52, %v5515_v52  ;;  %v8925_v23 = vcombine.low %v5516_v5, %v5516_v5 }
 0x1b7   : > { %v3237_v30 = vpop.f32.mrb[107].mxu0  ;;  %v3278_v14 = vpop.f32.mrb[107].mxu1  ;;  %v8964_v43 = vcombine.high %v6389_v35, %v6389_v35 }
 0x1b8   : > { %v5693_v45 = vsel %vm357_vm0, %v8925_v23, 0  ;;  %v6390_v30 = vld [vmem:[%s10542_s27 + $0x10] sm:$0xff]  ;;  %v6391_v14 = vld [vmem:[%s10542_s27 + $0x18] sm:$0xff] }
 0x1b9   : > { %8948 = vmatmul.mubr.msk.bf16.vlgmr.msra.gmra.mrb[212].mxu0 %vm353_vm1, %v10410_v20  ;;  %8950 = vmatmul.mubr.msk.bf16.vlgmr.msra.gmra.mrb[212].mxu1 %vm353_vm1, %v10410_v20 }
 0x1ba   : > { %6191 = vmatpush1.bf16.msra.mxu0 %v5675_v54  ;;  %6232 = vmatpush1.bf16.msra.mxu1 %v5681_v55 }
 0x1bb   : > { %6222 = vmatprep.mubr.bf16.mxu0 %v9448_v0  ;;  %6263 = vmatprep.mubr.bf16.mxu1 %v9448_v0 }
 0x1bc   : > { %v3314_v31 = vpop.f32.mrb[108].mxu0  ;;  %v3355_v17 = vpop.f32.mrb[108].mxu1  ;;  %8955 = vmatprep.subr.msk.bf16.mxu0 %vm357_vm0, %v8924_v53  ;;  %8957 = vmatprep.subr.msk.bf16.mxu1 %vm357_vm0, %v8926_v8 }
 0x1bd   : > { %v10549_v2 = vadd.f32 %v3314_v31, %v10346_v11  ;;  %v10552_v32 = vadd.f32 %v3355_v17, %v10349_v12  ;;  %v3316_v1 = vpop.f32.mrb[109].mxu0  ;;  %v3357_v63 = vpop.f32.mrb[109].mxu1  ;;  %v5687_v11 = vsel %vm357_vm0, %v8923_v26, 0  ;;  %v8962_v12 = vcombine.high %v6388_v34, %v6388_v34 }
 0x1be   : > { %v10557_v29 = vadd.f32 %v3316_v1, %v10354_v3  ;;  %v10560_v28 = vadd.f32 %v3357_v63, %v10357_v56  ;;  %v3318_v10 = vpop.f32.mrb[110].mxu0  ;;  %v3359_v33 = vpop.f32.mrb[110].mxu1  ;;  %v8961_v3 = vcombine.low %v6388_v34, %v6388_v34  ;;  %v8963_v56 = vcombine.low %v6389_v35, %v6389_v35 }
 0x1bf   : > { %v3319_v58 = vpop.f32.mrb[111].mxu0  ;;  %v3360_v47 = vpop.f32.mrb[111].mxu1  ;;  %v8968_v17 = vcombine.high %v6391_v14, %v6391_v14  ;;  %v6392_v33 = vld [vmem:[%s10542_s27 + $0x20] sm:$0xff] }
 0x1c0   : > { %v6496_v31 = vsel %vm357_vm0, %v8963_v56, 0  ;;  %v6393_v58 = vld [vmem:[%s10542_s27 + $0x28] sm:$0xff] }
 0x1c1   : > { %8952 = vmatmul.mubr.msk.bf16.vlgmr.msra.gmra.mrb[216].mxu0 %vm353_vm1, %v10410_v20  ;;  %8954 = vmatmul.mubr.msk.bf16.vlgmr.msra.gmra.mrb[216].mxu1 %vm353_vm1, %v10410_v20 }
 0x1c2   : > { %6273 = vmatpush1.bf16.msra.mxu0 %v5687_v11  ;;  %6314 = vmatpush1.bf16.msra.mxu1 %v5693_v45 }
 0x1c3   : > { %6304 = vmatprep.mubr.bf16.mxu0 %v9448_v0  ;;  %6345 = vmatprep.mubr.bf16.mxu1 %v9448_v0 }
 0x1c4   : > { %v3396_v49 = vpop.f32.mrb[112].mxu0  ;;  %v3437_v51 = vpop.f32.mrb[112].mxu1  ;;  %8993 = vmatprep.subr.msk.bf16.mxu0 %vm357_vm0, %v8962_v12  ;;  %8995 = vmatprep.subr.msk.bf16.mxu1 %vm357_vm0, %v8964_v43 }
 0x1c5   : > { %v10573_v52 = vadd.f32 %v3396_v49, %v10370_v36  ;;  %v10576_v5 = vadd.f32 %v3437_v51, %v10373_v37  ;;  %v3398_v19 = vpop.f32.mrb[113].mxu0  ;;  %v3439_v4 = vpop.f32.mrb[113].mxu1  ;;  %v6490_v36 = vsel %vm357_vm0, %v8961_v3, 0  ;;  %v8966_v37 = vcombine.high %v6390_v30, %v6390_v30 }
 0x1c6   : > { %v10581_v54 = vadd.f32 %v3398_v19, %v10378_v39  ;;  %v10584_v55 = vadd.f32 %v3439_v4, %v10381_v41  ;;  %v3400_v53 = vpop.f32.mrb[114].mxu0  ;;  %v3441_v8 = vpop.f32.mrb[114].mxu1  ;;  %v8965_v39 = vcombine.low %v6390_v30, %v6390_v30  ;;  %v8967_v41 = vcombine.low %v6391_v14, %v6391_v14 }
 0x1c7   : > { %v3401_v26 = vpop.f32.mrb[115].mxu0  ;;  %v3442_v23 = vpop.f32.mrb[115].mxu1  ;;  %v8970_v49 = vcombine.high %v6392_v33, %v6392_v33  ;;  %v8972_v51 = vcombine.high %v6393_v58, %v6393_v58 }
 0x1c8   : > { %v6502_v3 = vsel %vm357_vm0, %v8965_v39, 0  ;;  %v6508_v56 = vsel %vm357_vm0, %v8967_v41, 0  ;;  %v6394_v26 = vld [vmem:[%s10542_s27 + $0x30] sm:$0xff]  ;;  %v6395_v23 = vld [vmem:[%s10542_s27 + $0x38] sm:$0xff] }
 0x1c9   : > { %8956 = vmatmul.mubr.msk.bf16.vlgmr.msra.gmra.mrb[220].mxu0 %vm353_vm1, %v10410_v20  ;;  %8958 = vmatmul.mubr.msk.bf16.vlgmr.msra.gmra.mrb[220].mxu1 %vm353_vm1, %v10410_v20 }
 0x1ca   : > { %6586 = vmatpush1.bf16.msra.mxu0 %v6490_v36  ;;  %6627 = vmatpush1.bf16.msra.mxu1 %v6496_v31 }
 0x1cb   : > { %6617 = vmatprep.mubr.bf16.mxu0 %v9448_v0  ;;  %6658 = vmatprep.mubr.bf16.mxu1 %v9448_v0 }
 0x1cc   : > { %v3478_v1 = vpop.f32.mrb[116].mxu0  ;;  %v3519_v63 = vpop.f32.mrb[116].mxu1  ;;  %8997 = vmatprep.subr.msk.bf16.mxu0 %vm357_vm0, %v8966_v37  ;;  %8999 = vmatprep.subr.msk.bf16.mxu1 %vm357_vm0, %v8968_v17 }
 0x1cd   : > { %v10597_v34 = vadd.f32 %v3478_v1, %v10394_v60  ;;  %v10600_v20 = vadd.f32 %v3519_v63, %v10397_v9  ;;  %v3480_v35 = vpop.f32.mrb[117].mxu0  ;;  %v3521_v10 = vpop.f32.mrb[117].mxu1  ;;  %v10613_v60 = vld [vmem:[%s11331_s3 + $0xe] sm:$0x3]  ;;  %v8976_v63 = vcombine.high %v6395_v23, %v6395_v23 }
 0x1ce   : > { %v10605_v47 = vadd.f32 %v3480_v35, %v10402_v13  ;;  %v10608_v11 = vadd.f32 %v3521_v10, %v10405_v7  ;;  %v3482_v45 = vpop.f32.mrb[118].mxu0  ;;  %v3523_v12 = vpop.f32.mrb[118].mxu1  ;;  %v8969_v13 = vcombine.low %v6392_v33, %v6392_v33  ;;  %v8971_v7 = vcombine.low %v6393_v58, %v6393_v58 }
 0x1cf   : > { %v3483_v43 = vpop.f32.mrb[119].mxu0  ;;  %v3524_v9 = vpop.f32.mrb[119].mxu1 }
 0x1d0   : > { %v6520_v1 = vsel %vm357_vm0, %v8971_v7, 0  ;;  %v6396_v43 = vld [vmem:[%s10542_s27 + $0x40] sm:$0xff]  ;;  %v6397_v9 = vld [vmem:[%s10542_s27 + $0x48] sm:$0xff] }
 0x1d1   : > { %8994 = vmatmul.mubr.msk.bf16.vlgmr.msra.gmra.mrb[224].mxu0 %vm353_vm1, %v10613_v60  ;;  %8996 = vmatmul.mubr.msk.bf16.vlgmr.msra.gmra.mrb[224].mxu1 %vm353_vm1, %v10613_v60 }
 0x1d2   : > { %6668 = vmatpush1.bf16.msra.mxu0 %v6502_v3  ;;  %6709 = vmatpush1.bf16.msra.mxu1 %v6508_v56 }
 0x1d3   : > { %6699 = vmatprep.mubr.bf16.mxu0 %v9448_v0  ;;  %6740 = vmatprep.mubr.bf16.mxu1 %v9448_v0 }
 0x1d4   : > { %v3560_v19 = vpop.f32.mrb[120].mxu0  ;;  %v3601_v4 = vpop.f32.mrb[120].mxu1  ;;  %9001 = vmatprep.subr.msk.bf16.mxu0 %vm357_vm0, %v8970_v49  ;;  %9003 = vmatprep.subr.msk.bf16.mxu1 %vm357_vm0, %v8972_v51 }
 0x1d5   : > { %v10626_v30 = vadd.f32 %v3560_v19, %v10423_v38  ;;  %v10629_v14 = vadd.f32 %v3601_v4, %v10426_v40  ;;  %v3562_v53 = vpop.f32.mrb[121].mxu0  ;;  %v3603_v8 = vpop.f32.mrb[121].mxu1  ;;  %v6514_v38 = vsel %vm357_vm0, %v8969_v13, 0  ;;  %v8974_v40 = vcombine.high %v6394_v26, %v6394_v26 }
 0x1d6   : > { %v10634_v36 = vadd.f32 %v3562_v53, %v10431_v44  ;;  %v10637_v31 = vadd.f32 %v3603_v8, %v10434_v42  ;;  %v3564_v37 = vpop.f32.mrb[122].mxu0  ;;  %v3605_v17 = vpop.f32.mrb[122].mxu1  ;;  %v8973_v44 = vcombine.low %v6394_v26, %v6394_v26  ;;  %v8975_v42 = vcombine.low %v6395_v23, %v6395_v23 }
 0x1d7   : > { %v3565_v39 = vpop.f32.mrb[123].mxu0  ;;  %v3606_v41 = vpop.f32.mrb[123].mxu1  ;;  %v8980_v4 = vcombine.high %v6397_v9, %v6397_v9 }
 0x1d8   : > { %v6532_v19 = vsel %vm357_vm0, %v8975_v42, 0  ;;  %v6398_v39 = vld [vmem:[%s10542_s27 + $0x50] sm:$0xff]  ;;  %v6399_v41 = vld [vmem:[%s10542_s27 + $0x58] sm:$0xff] }
 0x1d9   : > { %8998 = vmatmul.mubr.msk.bf16.vlgmr.msra.gmra.mrb[228].mxu0 %vm353_vm1, %v10613_v60  ;;  %9000 = vmatmul.mubr.msk.bf16.vlgmr.msra.gmra.mrb[228].mxu1 %vm353_vm1, %v10613_v60 }
 0x1da   : > { %6750 = vmatpush1.bf16.msra.mxu0 %v6514_v38  ;;  %6791 = vmatpush1.bf16.msra.mxu1 %v6520_v1 }
 0x1db   : > { %6781 = vmatprep.mubr.bf16.mxu0 %v9448_v0  ;;  %6822 = vmatprep.mubr.bf16.mxu1 %v9448_v0 }
 0x1dc   : > { %v3642_v35 = vpop.f32.mrb[124].mxu0  ;;  %v3683_v10 = vpop.f32.mrb[124].mxu1  ;;  %9005 = vmatprep.subr.msk.bf16.mxu0 %vm357_vm0, %v8974_v40  ;;  %9007 = vmatprep.subr.msk.bf16.mxu1 %vm357_vm0, %v8976_v63 }
 0x1dd   : > { %v10650_v33 = vadd.f32 %v3642_v35, %v10447_v57  ;;  %v10653_v58 = vadd.f32 %v3683_v10, %v10450_v24  ;;  %v3644_v45 = vpop.f32.mrb[125].mxu0  ;;  %v3685_v12 = vpop.f32.mrb[125].mxu1  ;;  %v6526_v57 = vsel %vm357_vm0, %v8973_v44, 0  ;;  %v8978_v24 = vcombine.high %v6396_v43, %v6396_v43 }
 0x1de   : > { %v10658_v3 = vadd.f32 %v3644_v45, %v10455_v62  ;;  %v10661_v56 = vadd.f32 %v3685_v12, %v10458_v22  ;;  %v3646_v49 = vpop.f32.mrb[126].mxu0  ;;  %v3687_v51 = vpop.f32.mrb[126].mxu1  ;;  %v8977_v62 = vcombine.low %v6396_v43, %v6396_v43  ;;  %v8979_v22 = vcombine.low %v6397_v9, %v6397_v9 }
 0x1df   : > { %v3647_v13 = vpop.f32.mrb[127].mxu0  ;;  %v3688_v7 = vpop.f32.mrb[127].mxu1  ;;  %v8982_v10 = vcombine.high %v6398_v39, %v6398_v39  ;;  %v8984_v45 = vcombine.high %v6399_v41, %v6399_v41 }
 0x1e0   : > { %v6544_v35 = vsel %vm357_vm0, %v8979_v22, 0  ;;  %v6400_v7 = vld [vmem:[%s10542_s27 + $0x60] sm:$0xff] }
 0x1e1   : > { %9002 = vmatmul.mubr.msk.bf16.vlgmr.msra.gmra.mrb[232].mxu0 %vm353_vm1, %v10613_v60  ;;  %9004 = vmatmul.mubr.msk.bf16.vlgmr.msra.gmra.mrb[232].mxu1 %vm353_vm1, %v10613_v60 }
 0x1e2   : > { %6832 = vmatpush1.bf16.msra.mxu0 %v6526_v57  ;;  %6873 = vmatpush1.bf16.msra.mxu1 %v6532_v19  ;;  %v6401_v57 = vld [vmem:[%s10542_s27 + $0x68] sm:$0xff] }
 0x1e3   : > { %6863 = vmatprep.mubr.bf16.mxu0 %v9448_v0  ;;  %6904 = vmatprep.mubr.bf16.mxu1 %v9448_v0 }
 0x1e4   : > { %v3955_v53 = vpop.f32.mrb[128].mxu0  ;;  %v3996_v8 = vpop.f32.mrb[128].mxu1  ;;  %9009 = vmatprep.subr.msk.bf16.mxu0 %vm357_vm0, %v8978_v24  ;;  %9011 = vmatprep.subr.msk.bf16.mxu1 %vm357_vm0, %v8980_v4 }
 0x1e5   : > { %v10674_v26 = vadd.f32 %v3955_v53, %v10471_v46  ;;  %v10677_v23 = vadd.f32 %v3996_v8, %v10474_v50  ;;  %v3957_v37 = vpop.f32.mrb[129].mxu0  ;;  %v3998_v17 = vpop.f32.mrb[129].mxu1  ;;  %v8160_v46 = vld [vmem:[%s11332_s4] sm:$0xf]  ;;  %v6538_v50 = vsel %vm357_vm0, %v8977_v62, 0 }
 0x1e6   : > { %v10682_v38 = vadd.f32 %v3957_v37, %v10479_v48  ;;  %v10685_v1 = vadd.f32 %v3998_v17, %v10482_v59  ;;  %v3959_v40 = vpop.f32.mrb[130].mxu0  ;;  %v4000_v63 = vpop.f32.mrb[130].mxu1  ;;  %8163 = vperm.xlu0 %9135, %v8160_v46   ;;  %v8981_v48 = vcombine.low %v6398_v39, %v6398_v39  ;;  %v8983_v59 = vcombine.low %v6399_v41, %v6399_v41 }
 0x1e7   : > { %v3960_v44 = vpop.f32.mrb[131].mxu0  ;;  %v4001_v42 = vpop.f32.mrb[131].mxu1  ;;  %v8988_v37 = vcombine.high %v6401_v57, %v6401_v57 }
 0x1e8   : > { %v6556_v8 = vsel %vm357_vm0, %v8983_v59, 0  ;;  %v6402_v44 = vld [vmem:[%s10542_s27 + $0x70] sm:$0xff]  ;;  %v6403_v42 = vld [vmem:[%s10542_s27 + $0x78] sm:$0xff] }
 0x1e9   : > { %9006 = vmatmul.mubr.msk.bf16.vlgmr.msra.gmra.mrb[236].mxu0 %vm353_vm1, %v10613_v60  ;;  %9008 = vmatmul.mubr.msk.bf16.vlgmr.msra.gmra.mrb[236].mxu1 %vm353_vm1, %v10613_v60 }
 0x1ea   : > { %6914 = vmatpush1.bf16.msra.mxu0 %v6538_v50  ;;  %6955 = vmatpush1.bf16.msra.mxu1 %v6544_v35 }
 0x1eb   : > { %6945 = vmatprep.mubr.bf16.mxu0 %v9448_v0  ;;  %6986 = vmatprep.mubr.bf16.mxu1 %v9448_v0 }
 0x1ec   : > { %v4037_v12 = vpop.f32.mrb[132].mxu0  ;;  %v4078_v43 = vpop.f32.mrb[132].mxu1  ;;  %9013 = vmatprep.subr.msk.bf16.mxu0 %vm357_vm0, %v8982_v10  ;;  %9015 = vmatprep.subr.msk.bf16.mxu1 %vm357_vm0, %v8984_v45 }
 0x1ed   : > { %v10701_v9 = vadd.f32 %v4037_v12, %v10495_v6  ;;  %v10704_v49 = vadd.f32 %v4078_v43, %v10498_v21  ;;  %v4039_v51 = vpop.f32.mrb[133].mxu0  ;;  %v4080_v13 = vpop.f32.mrb[133].mxu1  ;;  %v6550_v6 = vsel %vm357_vm0, %v8981_v48, 0  ;;  %v8986_v21 = vcombine.high %v6400_v7, %v6400_v7 }
 0x1ee   : > { %v10709_v19 = vadd.f32 %v4039_v51, %v10503_v25  ;;  %v10712_v24 = vadd.f32 %v4080_v13, %v10506_v27  ;;  %v4041_v4 = vpop.f32.mrb[134].mxu0  ;;  %v4082_v62 = vpop.f32.mrb[134].mxu1  ;;  %v8985_v25 = vcombine.low %v6400_v7, %v6400_v7  ;;  %v8987_v27 = vcombine.low %v6401_v57, %v6401_v57 }
 0x1ef   : > { %v4042_v22 = vpop.f32.mrb[135].mxu0  ;;  %v4083_v53 = vpop.f32.mrb[135].mxu1  ;;  %v8990_v12 = vcombine.high %v6402_v44, %v6402_v44  ;;  %v8992_v43 = vcombine.high %v6403_v42, %v6403_v42 }
 0x1f0   : > { %v7275_v22 = vld [vmem:[%s10748_s9] sm:$0xff]  ;;  %v7276_v53 = vld [vmem:[%s10748_s9 + $0x8] sm:$0xff] }
 0x1f1   : > { %9010 = vmatmul.mubr.msk.bf16.vlgmr.msra.gmra.mrb[240].mxu0 %vm353_vm1, %v10613_v60  ;;  %9012 = vmatmul.mubr.msk.bf16.vlgmr.msra.gmra.mrb[240].mxu1 %vm353_vm1, %v10613_v60 }
 0x1f2   : > { %6996 = vmatpush1.bf16.msra.mxu0 %v6550_v6  ;;  %7037 = vmatpush1.bf16.msra.mxu1 %v6556_v8 }
 0x1f3   : > { %7027 = vmatprep.mubr.bf16.mxu0 %v9448_v0  ;;  %7068 = vmatprep.mubr.bf16.mxu1 %v9448_v0 }
 0x1f4   : > { %v4119_v17 = vpop.f32.mrb[136].mxu0  ;;  %v4160_v39 = vpop.f32.mrb[136].mxu1  ;;  %9017 = vmatprep.subr.msk.bf16.mxu0 %vm357_vm0, %v8986_v21  ;;  %9019 = vmatprep.subr.msk.bf16.mxu1 %vm357_vm0, %v8988_v37 }
 0x1f5   : > { %v10725_v41 = vadd.f32 %v4119_v17, %v10519_v15  ;;  %v10728_v40 = vadd.f32 %v4160_v39, %v10522_v16  ;;  %v4121_v63 = vpop.f32.mrb[137].mxu0  ;;  %v4162_v46 = vpop.f32.mrb[137].mxu1  ;;  %v6562_v15 = vsel %vm357_vm0, %v8985_v25, 0  ;;  %v6568_v16 = vsel %vm357_vm0, %v8987_v27, 0 }
 0x1f6   : > { %v10733_v50 = vadd.f32 %v4121_v63, %v10527_v18  ;;  %v10736_v35 = vadd.f32 %v4162_v46, %v10530_v61  ;;  %v4123_v10 = vpop.f32.mrb[138].mxu0  ;;  %v4164_v45 = vpop.f32.mrb[138].mxu1  ;;  %v8989_v18 = vcombine.low %v6402_v44, %v6402_v44  ;;  %v8991_v61 = vcombine.low %v6403_v42, %v6403_v42 }
 0x1f7   : > { %v4124_v48 = vpop.f32.mrb[139].mxu0  ;;  %v4165_v59 = vpop.f32.mrb[139].mxu1  ;;  %v9030_v39 = vcombine.high %v7276_v53, %v7276_v53 }
 0x1f8   : > { %v6580_v17 = vsel %vm357_vm0, %v8991_v61, 0  ;;  %v7277_v48 = vld [vmem:[%s10748_s9 + $0x10] sm:$0xff]  ;;  %v7278_v59 = vld [vmem:[%s10748_s9 + $0x18] sm:$0xff] }
 0x1f9   : > { %9014 = vmatmul.mubr.msk.bf16.vlgmr.msra.gmra.mrb[244].mxu0 %vm353_vm1, %v10613_v60  ;;  %9016 = vmatmul.mubr.msk.bf16.vlgmr.msra.gmra.mrb[244].mxu1 %vm353_vm1, %v10613_v60 }
 0x1fa   : > { %7078 = vmatpush1.bf16.msra.mxu0 %v6562_v15  ;;  %7119 = vmatpush1.bf16.msra.mxu1 %v6568_v16 }
 0x1fb   : > { %7109 = vmatprep.mubr.bf16.mxu0 %v9448_v0  ;;  %7150 = vmatprep.mubr.bf16.mxu1 %v9448_v0 }
 0x1fc   : > { %v4201_v51 = vpop.f32.mrb[140].mxu0  ;;  %v4242_v13 = vpop.f32.mrb[140].mxu1  ;;  %9021 = vmatprep.subr.msk.bf16.mxu0 %vm357_vm0, %v8990_v12  ;;  %9023 = vmatprep.subr.msk.bf16.mxu1 %vm357_vm0, %v8992_v43 }
 0x1fd   : > { %v10755_v7 = vadd.f32 %v4201_v51, %v10549_v2  ;;  %v10758_v57 = vadd.f32 %v4242_v13, %v10552_v32  ;;  %v4203_v4 = vpop.f32.mrb[141].mxu0  ;;  %v4244_v62 = vpop.f32.mrb[141].mxu1  ;;  %v6574_v2 = vsel %vm357_vm0, %v8989_v18, 0  ;;  %v9028_v32 = vcombine.high %v7275_v22, %v7275_v22 }
 0x1fe   : > { %v10763_v6 = vadd.f32 %v4203_v4, %v10557_v29  ;;  %v10766_v8 = vadd.f32 %v4244_v62, %v10560_v28  ;;  %v4205_v21 = vpop.f32.mrb[142].mxu0  ;;  %v4246_v37 = vpop.f32.mrb[142].mxu1  ;;  %v9027_v29 = vcombine.low %v7275_v22, %v7275_v22  ;;  %v9029_v28 = vcombine.low %v7276_v53, %v7276_v53 }
 0x1ff   : > { %v4206_v25 = vpop.f32.mrb[143].mxu0  ;;  %v4247_v27 = vpop.f32.mrb[143].mxu1  ;;  %v9034_v13 = vcombine.high %v7278_v59, %v7278_v59  ;;  %v7279_v37 = vld [vmem:[%s10748_s9 + $0x20] sm:$0xff] }
 0x200   : > { %v7383_v51 = vsel %vm357_vm0, %v9029_v28, 0  ;;  %v7280_v25 = vld [vmem:[%s10748_s9 + $0x28] sm:$0xff] }
 0x201   : > { %9018 = vmatmul.mubr.msk.bf16.vlgmr.msra.gmra.mrb[248].mxu0 %vm353_vm1, %v10613_v60  ;;  %9020 = vmatmul.mubr.msk.bf16.vlgmr.msra.gmra.mrb[248].mxu1 %vm353_vm1, %v10613_v60 }
 0x202   : > { %7160 = vmatpush1.bf16.msra.mxu0 %v6574_v2  ;;  %7201 = vmatpush1.bf16.msra.mxu1 %v6580_v17 }
 0x203   : > { %7191 = vmatprep.mubr.bf16.mxu0 %v9448_v0  ;;  %7232 = vmatprep.mubr.bf16.mxu1 %v9448_v0 }
 0x204   : > { %v4283_v63 = vpop.f32.mrb[144].mxu0  ;;  %v4324_v46 = vpop.f32.mrb[144].mxu1  ;;  %9059 = vmatprep.subr.msk.bf16.mxu0 %vm357_vm0, %v9028_v32  ;;  %9061 = vmatprep.subr.msk.bf16.mxu1 %vm357_vm0, %v9030_v39 }
 0x205   : > { %v10779_v44 = vadd.f32 %v4283_v63, %v10573_v52  ;;  %v10782_v42 = vadd.f32 %v4324_v46, %v10576_v5  ;;  %v4285_v10 = vpop.f32.mrb[145].mxu0  ;;  %v4326_v45 = vpop.f32.mrb[145].mxu1  ;;  %v7377_v52 = vsel %vm357_vm0, %v9027_v29, 0  ;;  %v9032_v5 = vcombine.high %v7277_v48, %v7277_v48 }
 0x206   : > { %v10787_v15 = vadd.f32 %v4285_v10, %v10581_v54  ;;  %v10790_v16 = vadd.f32 %v4326_v45, %v10584_v55  ;;  %v4287_v12 = vpop.f32.mrb[146].mxu0  ;;  %v4328_v43 = vpop.f32.mrb[146].mxu1  ;;  %v9031_v54 = vcombine.low %v7277_v48, %v7277_v48  ;;  %v9033_v55 = vcombine.low %v7278_v59, %v7278_v59 }
 0x207   : > { %v4288_v18 = vpop.f32.mrb[147].mxu0  ;;  %v4329_v61 = vpop.f32.mrb[147].mxu1  ;;  %v9036_v63 = vcombine.high %v7279_v37, %v7279_v37  ;;  %v9038_v46 = vcombine.high %v7280_v25, %v7280_v25 }
 0x208   : > { %v7389_v29 = vsel %vm357_vm0, %v9031_v54, 0  ;;  %v7395_v28 = vsel %vm357_vm0, %v9033_v55, 0  ;;  %v7281_v18 = vld [vmem:[%s10748_s9 + $0x30] sm:$0xff]  ;;  %v7282_v61 = vld [vmem:[%s10748_s9 + $0x38] sm:$0xff] }
 0x209   : > { %9022 = vmatmul.mubr.msk.bf16.vlgmr.msra.gmra.mrb[252].mxu0 %vm353_vm1, %v10613_v60  ;;  %9024 = vmatmul.mubr.msk.bf16.vlgmr.msra.gmra.mrb[252].mxu1 %vm353_vm1, %v10613_v60 }
 0x20a   : > { %7473 = vmatpush1.bf16.msra.mxu0 %v7377_v52  ;;  %7514 = vmatpush1.bf16.msra.mxu1 %v7383_v51 }
 0x20b   : > { %7504 = vmatprep.mubr.bf16.mxu0 %v9448_v0  ;;  %7545 = vmatprep.mubr.bf16.mxu1 %v9448_v0 }
 0x20c   : > { %v4365_v4 = vpop.f32.mrb[148].mxu0  ;;  %v4406_v62 = vpop.f32.mrb[148].mxu1  ;;  %9063 = vmatprep.subr.msk.bf16.mxu0 %vm357_vm0, %v9032_v5  ;;  %9065 = vmatprep.subr.msk.bf16.mxu1 %vm357_vm0, %v9034_v13 }
 0x20d   : > { %v10803_v22 = vadd.f32 %v4365_v4, %v10597_v34  ;;  %v10806_v60 = vadd.f32 %v4406_v62, %v10600_v20  ;;  %v4367_v53 = vpop.f32.mrb[149].mxu0  ;;  %v4408_v21 = vpop.f32.mrb[149].mxu1  ;;  %v10819_v34 = vld [vmem:[%s11331_s3 + $0x10] sm:$0x3]  ;;  %v9042_v62 = vcombine.high %v7282_v61, %v7282_v61 }
 0x20e   : > { %v10811_v27 = vadd.f32 %v4367_v53, %v10605_v47  ;;  %v10814_v2 = vadd.f32 %v4408_v21, %v10608_v11  ;;  %v4369_v17 = vpop.f32.mrb[150].mxu0  ;;  %v4410_v32 = vpop.f32.mrb[150].mxu1  ;;  %v9035_v47 = vcombine.low %v7279_v37, %v7279_v37  ;;  %v9037_v11 = vcombine.low %v7280_v25, %v7280_v25 }
 0x20f   : > { %v4370_v39 = vpop.f32.mrb[151].mxu0  ;;  %v4411_v20 = vpop.f32.mrb[151].mxu1 }
 0x210   : > { %v7407_v4 = vsel %vm357_vm0, %v9037_v11, 0  ;;  %v7283_v39 = vld [vmem:[%s10748_s9 + $0x40] sm:$0xff]  ;;  %v7284_v20 = vld [vmem:[%s10748_s9 + $0x48] sm:$0xff] }
 0x211   : > { %9060 = vmatmul.mubr.msk.bf16.vlgmr.msra.gmra.mrb[0].mxu0 %vm353_vm1, %v10819_v34  ;;  %9062 = vmatmul.mubr.msk.bf16.vlgmr.msra.gmra.mrb[0].mxu1 %vm353_vm1, %v10819_v34 }
 0x212   : > { %7555 = vmatpush1.bf16.msra.mxu0 %v7389_v29  ;;  %7596 = vmatpush1.bf16.msra.mxu1 %v7395_v28 }
 0x213   : > { %7586 = vmatprep.mubr.bf16.mxu0 %v9448_v0  ;;  %7627 = vmatprep.mubr.bf16.mxu1 %v9448_v0 }
 0x214   : > { %v4447_v10 = vpop.f32.mrb[152].mxu0  ;;  %v4488_v45 = vpop.f32.mrb[152].mxu1  ;;  %9067 = vmatprep.subr.msk.bf16.mxu0 %vm357_vm0, %v9036_v63  ;;  %9069 = vmatprep.subr.msk.bf16.mxu1 %vm357_vm0, %v9038_v46 }
 0x215   : > { %v10832_v48 = vadd.f32 %v4447_v10, %v10626_v30  ;;  %v10835_v59 = vadd.f32 %v4488_v45, %v10629_v14  ;;  %v4449_v12 = vpop.f32.mrb[153].mxu0  ;;  %v4490_v43 = vpop.f32.mrb[153].mxu1  ;;  %v7401_v30 = vsel %vm357_vm0, %v9035_v47, 0  ;;  %v9040_v14 = vcombine.high %v7281_v18, %v7281_v18 }
 0x216   : > { %v10840_v52 = vadd.f32 %v4449_v12, %v10634_v36  ;;  %v10843_v51 = vadd.f32 %v4490_v43, %v10637_v31  ;;  %v4451_v5 = vpop.f32.mrb[154].mxu0  ;;  %v4492_v13 = vpop.f32.mrb[154].mxu1  ;;  %v9039_v36 = vcombine.low %v7281_v18, %v7281_v18  ;;  %v9041_v31 = vcombine.low %v7282_v61, %v7282_v61 }
 0x217   : > { %v4452_v54 = vpop.f32.mrb[155].mxu0  ;;  %v4493_v55 = vpop.f32.mrb[155].mxu1  ;;  %v9046_v45 = vcombine.high %v7284_v20, %v7284_v20 }
 0x218   : > { %v7419_v10 = vsel %vm357_vm0, %v9041_v31, 0  ;;  %v7285_v54 = vld [vmem:[%s10748_s9 + $0x50] sm:$0xff]  ;;  %v7286_v55 = vld [vmem:[%s10748_s9 + $0x58] sm:$0xff] }
 0x219   : > { %9064 = vmatmul.mubr.msk.bf16.vlgmr.msra.gmra.mrb[4].mxu0 %vm353_vm1, %v10819_v34  ;;  %9066 = vmatmul.mubr.msk.bf16.vlgmr.msra.gmra.mrb[4].mxu1 %vm353_vm1, %v10819_v34 }
 0x21a   : > { %7637 = vmatpush1.bf16.msra.mxu0 %v7401_v30  ;;  %7678 = vmatpush1.bf16.msra.mxu1 %v7407_v4 }
 0x21b   : > { %7668 = vmatprep.mubr.bf16.mxu0 %v9448_v0  ;;  %7709 = vmatprep.mubr.bf16.mxu1 %v9448_v0 }
 0x21c   : > { %v4529_v53 = vpop.f32.mrb[156].mxu0  ;;  %v4570_v21 = vpop.f32.mrb[156].mxu1  ;;  %9071 = vmatprep.subr.msk.bf16.mxu0 %vm357_vm0, %v9040_v14  ;;  %9073 = vmatprep.subr.msk.bf16.mxu1 %vm357_vm0, %v9042_v62 }
 0x21d   : > { %v10856_v37 = vadd.f32 %v4529_v53, %v10650_v33  ;;  %v10859_v25 = vadd.f32 %v4570_v21, %v10653_v58  ;;  %v4531_v17 = vpop.f32.mrb[157].mxu0  ;;  %v4572_v32 = vpop.f32.mrb[157].mxu1  ;;  %v7413_v33 = vsel %vm357_vm0, %v9039_v36, 0  ;;  %v9044_v58 = vcombine.high %v7283_v39, %v7283_v39 }
 0x21e   : > { %v10864_v29 = vadd.f32 %v4531_v17, %v10658_v3  ;;  %v10867_v28 = vadd.f32 %v4572_v32, %v10661_v56  ;;  %v4533_v63 = vpop.f32.mrb[158].mxu0  ;;  %v4574_v46 = vpop.f32.mrb[158].mxu1  ;;  %v9043_v3 = vcombine.low %v7283_v39, %v7283_v39  ;;  %v9045_v56 = vcombine.low %v7284_v20, %v7284_v20 }
 0x21f   : > { %v4534_v47 = vpop.f32.mrb[159].mxu0  ;;  %v4575_v11 = vpop.f32.mrb[159].mxu1  ;;  %v9050_v21 = vcombine.high %v7286_v55, %v7286_v55 }
 0x220   : > { %v7431_v53 = vsel %vm357_vm0, %v9045_v56, 0  ;;  %v7287_v47 = vld [vmem:[%s10748_s9 + $0x60] sm:$0xff]  ;;  %v7288_v11 = vld [vmem:[%s10748_s9 + $0x68] sm:$0xff] }
 0x221   : > { %9068 = vmatmul.mubr.msk.bf16.vlgmr.msra.gmra.mrb[8].mxu0 %vm353_vm1, %v10819_v34  ;;  %9070 = vmatmul.mubr.msk.bf16.vlgmr.msra.gmra.mrb[8].mxu1 %vm353_vm1, %v10819_v34 }
 0x222   : > { %7719 = vmatpush1.bf16.msra.mxu0 %v7413_v33  ;;  %7760 = vmatpush1.bf16.msra.mxu1 %v7419_v10 }
 0x223   : > { %7750 = vmatprep.mubr.bf16.mxu0 %v9448_v0  ;;  %7791 = vmatprep.mubr.bf16.mxu1 %v9448_v0 }
 0x224   : > { %v4842_v12 = vpop.f32.mrb[160].mxu0  ;;  %v4883_v43 = vpop.f32.mrb[160].mxu1  ;;  %9075 = vmatprep.subr.msk.bf16.mxu0 %vm357_vm0, %v9044_v58  ;;  %9077 = vmatprep.subr.msk.bf16.mxu1 %vm357_vm0, %v9046_v45 }
 0x225   : > { %v10880_v18 = vadd.f32 %v4842_v12, %v10674_v26  ;;  %v10883_v61 = vadd.f32 %v4883_v43, %v10677_v23  ;;  %v4844_v5 = vpop.f32.mrb[161].mxu0  ;;  %v4885_v13 = vpop.f32.mrb[161].mxu1  ;;  %v7425_v26 = vsel %vm357_vm0, %v9043_v3, 0  ;;  %v9048_v23 = vcombine.high %v7285_v54, %v7285_v54 }
 0x226   : > { %v10888_v30 = vadd.f32 %v4844_v5, %v10682_v38  ;;  %v10891_v4 = vadd.f32 %v4885_v13, %v10685_v1  ;;  %v4846_v14 = vpop.f32.mrb[162].mxu0  ;;  %v4887_v62 = vpop.f32.mrb[162].mxu1  ;;  %v9047_v38 = vcombine.low %v7285_v54, %v7285_v54  ;;  %v9049_v1 = vcombine.low %v7286_v55, %v7286_v55 }
 0x227   : > { %v4847_v36 = vpop.f32.mrb[163].mxu0  ;;  %v4888_v31 = vpop.f32.mrb[163].mxu1  ;;  %v9054_v43 = vcombine.high %v7288_v11, %v7288_v11 }
 0x228   : > { %v7443_v12 = vsel %vm357_vm0, %v9049_v1, 0  ;;  %v7289_v36 = vld [vmem:[%s10748_s9 + $0x70] sm:$0xff]  ;;  %v7290_v31 = vld [vmem:[%s10748_s9 + $0x78] sm:$0xff] }
 0x229   : > { %9072 = vmatmul.mubr.msk.bf16.vlgmr.msra.gmra.mrb[12].mxu0 %vm353_vm1, %v10819_v34  ;;  %9074 = vmatmul.mubr.msk.bf16.vlgmr.msra.gmra.mrb[12].mxu1 %vm353_vm1, %v10819_v34 }
 0x22a   : > { %7801 = vmatpush1.bf16.msra.mxu0 %v7425_v26  ;;  %7842 = vmatpush1.bf16.msra.mxu1 %v7431_v53 }
 0x22b   : > { %7832 = vmatprep.mubr.bf16.mxu0 %v9448_v0  ;;  %7873 = vmatprep.mubr.bf16.mxu1 %v9448_v0 }
 0x22c   : > { %v4924_v17 = vpop.f32.mrb[164].mxu0  ;;  %v4965_v32 = vpop.f32.mrb[164].mxu1  ;;  %9079 = vmatprep.subr.msk.bf16.mxu0 %vm357_vm0, %v9048_v23  ;;  %9081 = vmatprep.subr.msk.bf16.mxu1 %vm357_vm0, %v9050_v21 }
 0x22d   : > { %v10904_v39 = vadd.f32 %v4924_v17, %v10701_v9  ;;  %v10907_v20 = vadd.f32 %v4965_v32, %v10704_v49  ;;  %v4926_v63 = vpop.f32.mrb[165].mxu0  ;;  %v4967_v46 = vpop.f32.mrb[165].mxu1  ;;  %v7437_v9 = vsel %vm357_vm0, %v9047_v38, 0  ;;  %v9052_v49 = vcombine.high %v7287_v47, %v7287_v47 }
 0x22e   : > { %v10912_v33 = vadd.f32 %v4926_v63, %v10709_v19  ;;  %v10915_v10 = vadd.f32 %v4967_v46, %v10712_v24  ;;  %v4928_v58 = vpop.f32.mrb[166].mxu0  ;;  %v4969_v45 = vpop.f32.mrb[166].mxu1  ;;  %v9051_v19 = vcombine.low %v7287_v47, %v7287_v47  ;;  %v9053_v24 = vcombine.low %v7288_v11, %v7288_v11 }
 0x22f   : > { %v4929_v3 = vpop.f32.mrb[167].mxu0  ;;  %v4970_v56 = vpop.f32.mrb[167].mxu1  ;;  %v9058_v32 = vcombine.high %v7290_v31, %v7290_v31 }
 0x230   : > { %v7455_v17 = vsel %vm357_vm0, %v9053_v24, 0 }
 0x231   : > { %9076 = vmatmul.mubr.msk.bf16.vlgmr.msra.gmra.mrb[16].mxu0 %vm353_vm1, %v10819_v34  ;;  %9078 = vmatmul.mubr.msk.bf16.vlgmr.msra.gmra.mrb[16].mxu1 %vm353_vm1, %v10819_v34 }
 0x232   : > { %7883 = vmatpush1.bf16.msra.mxu0 %v7437_v9  ;;  %7924 = vmatpush1.bf16.msra.mxu1 %v7443_v12 }
 0x233   : > { %7914 = vmatprep.mubr.bf16.mxu0 %v9448_v0  ;;  %7955 = vmatprep.mubr.bf16.mxu1 %v9448_v0 }
 0x234   : > { %v5006_v5 = vpop.f32.mrb[168].mxu0  ;;  %v5047_v13 = vpop.f32.mrb[168].mxu1  ;;  %9083 = vmatprep.subr.msk.bf16.mxu0 %vm357_vm0, %v9052_v49  ;;  %9085 = vmatprep.subr.msk.bf16.mxu1 %vm357_vm0, %v9054_v43 }
 0x235   : > { %v10928_v54 = vadd.f32 %v5006_v5, %v10725_v41  ;;  %v10931_v55 = vadd.f32 %v5047_v13, %v10728_v40  ;;  %v5008_v14 = vpop.f32.mrb[169].mxu0  ;;  %v5049_v62 = vpop.f32.mrb[169].mxu1  ;;  %v7449_v41 = vsel %vm357_vm0, %v9051_v19, 0  ;;  %v9056_v40 = vcombine.high %v7289_v36, %v7289_v36 }
 0x236   : > { %v10936_v26 = vadd.f32 %v5008_v14, %v10733_v50  ;;  %v10939_v53 = vadd.f32 %v5049_v62, %v10736_v35  ;;  %v5010_v23 = vpop.f32.mrb[170].mxu0  ;;  %v5051_v21 = vpop.f32.mrb[170].mxu1  ;;  %v9055_v50 = vcombine.low %v7289_v36, %v7289_v36  ;;  %v9057_v35 = vcombine.low %v7290_v31, %v7290_v31 }
 0x237   : > { %v5011_v38 = vpop.f32.mrb[171].mxu0  ;;  %v5052_v1 = vpop.f32.mrb[171].mxu1 }
 0x238   : > { %v7461_v19 = vsel %vm357_vm0, %v9055_v50, 0 }
 0x239   : > { %9080 = vmatmul.mubr.msk.bf16.vlgmr.msra.gmra.mrb[20].mxu0 %vm353_vm1, %v10819_v34  ;;  %9082 = vmatmul.mubr.msk.bf16.vlgmr.msra.gmra.mrb[20].mxu1 %vm353_vm1, %v10819_v34 }
 0x23a   : > { %7965 = vmatpush1.bf16.msra.mxu0 %v7449_v41  ;;  %8006 = vmatpush1.bf16.msra.mxu1 %v7455_v17 }
 0x23b   : > { %7996 = vmatprep.mubr.bf16.mxu0 %v9448_v0  ;;  %8037 = vmatprep.mubr.bf16.mxu1 %v9448_v0 }
 0x23c   : > { %v5088_v63 = vpop.f32.mrb[172].mxu0  ;;  %v5129_v46 = vpop.f32.mrb[172].mxu1  ;;  %9087 = vmatprep.subr.msk.bf16.mxu0 %vm357_vm0, %v9056_v40  ;;  %9089 = vmatprep.subr.msk.bf16.mxu1 %vm357_vm0, %v9058_v32 }
 0x23d   : > { %v10952_v47 = vadd.f32 %v5088_v63, %v10755_v7  ;;  %v10955_v11 = vadd.f32 %v5129_v46, %v10758_v57  ;;  %v5090_v58 = vpop.f32.mrb[173].mxu0  ;;  %v5131_v45 = vpop.f32.mrb[173].mxu1  ;;  %v7467_v7 = vsel %vm357_vm0, %v9057_v35, 0 }
 0x23e   : > { %v10958_v3 = vadd.f32 %v5090_v58, %v10763_v6  ;;  %v10961_v56 = vadd.f32 %v5131_v45, %v10766_v8  ;;  %v5092_v9 = vpop.f32.mrb[174].mxu0  ;;  %v5133_v12 = vpop.f32.mrb[174].mxu1 }
 0x23f   : > { %v5093_v49 = vpop.f32.mrb[175].mxu0  ;;  %v5134_v43 = vpop.f32.mrb[175].mxu1 }
 0x241   : > { %9084 = vmatmul.mubr.msk.bf16.vlgmr.msra.gmra.mrb[24].mxu0 %vm353_vm1, %v10819_v34  ;;  %9086 = vmatmul.mubr.msk.bf16.vlgmr.msra.gmra.mrb[24].mxu1 %vm353_vm1, %v10819_v34 }
 0x242   : > { %8047 = vmatpush1.bf16.msra.mxu0 %v7461_v19  ;;  %8088 = vmatpush1.bf16.msra.mxu1 %v7467_v7 }
 0x243   : > { %8078 = vmatprep.mubr.bf16.mxu0 %v9448_v0  ;;  %8119 = vmatprep.mubr.bf16.mxu1 %v9448_v0 }
 0x244   : > { %v5170_v57 = vpop.f32.mrb[176].mxu0  ;;  %v5211_v6 = vpop.f32.mrb[176].mxu1 }
 0x245   : > { %v10972_v8 = vadd.f32 %v5170_v57, %v10779_v44  ;;  %v10975_v24 = vadd.f32 %v5211_v6, %v10782_v42  ;;  %v5172_v5 = vpop.f32.mrb[177].mxu0  ;;  %v5213_v13 = vpop.f32.mrb[177].mxu1 }
 0x246   : > { %v10978_v14 = vadd.f32 %v5172_v5, %v10787_v15  ;;  %v10981_v62 = vadd.f32 %v5213_v13, %v10790_v16  ;;  %v5174_v36 = vpop.f32.mrb[178].mxu0  ;;  %v5215_v31 = vpop.f32.mrb[178].mxu1 }
 0x247   : > { %v5175_v23 = vpop.f32.mrb[179].mxu0  ;;  %v5216_v0 = vpop.f32.mrb[179].mxu1 }
 0x249   : > { %9088 = vmatmul.mubr.msk.bf16.vlgmr.msra.gmra.mrb[28].mxu0 %vm353_vm1, %v10819_v34  ;;  %9090 = vmatmul.mubr.msk.bf16.vlgmr.msra.gmra.mrb[28].mxu1 %vm353_vm1, %v10819_v34 }
 0x24c   : > { %v5252_v44 = vpop.f32.mrb[180].mxu0  ;;  %v5293_v42 = vpop.f32.mrb[180].mxu1 }
 0x24d   : > { %v10988_v21 = vadd.f32 %v5252_v44, %v10803_v22  ;;  %v10991_v15 = vadd.f32 %v5293_v42, %v10806_v60  ;;  %v5254_v16 = vpop.f32.mrb[181].mxu0  ;;  %v5295_v38 = vpop.f32.mrb[181].mxu1 }
 0x24e   : > { %v10994_v1 = vadd.f32 %v5254_v16, %v10811_v27  ;;  %v10997_v41 = vadd.f32 %v5295_v38, %v10814_v2  ;;  %v5256_v17 = vpop.f32.mrb[182].mxu0  ;;  %v5297_v40 = vpop.f32.mrb[182].mxu1 }
 0x24f   : > { %v5257_v32 = vpop.f32.mrb[183].mxu0  ;;  %v5298_v34 = vpop.f32.mrb[183].mxu1 }
 0x254   : > { %v5334_v50 = vpop.f32.mrb[184].mxu0  ;;  %v5375_v35 = vpop.f32.mrb[184].mxu1 }
 0x255   : > { %v11000_v22 = vadd.f32 %v5334_v50, %v10832_v48  ;;  %v11003_v60 = vadd.f32 %v5375_v35, %v10835_v59  ;;  %v5336_v63 = vpop.f32.mrb[185].mxu0  ;;  %v5377_v46 = vpop.f32.mrb[185].mxu1 }
 0x256   : > { %v11006_v27 = vadd.f32 %v5336_v63, %v10840_v52  ;;  %v11009_v2 = vadd.f32 %v5377_v46, %v10843_v51  ;;  %v5338_v58 = vpop.f32.mrb[186].mxu0  ;;  %v5379_v45 = vpop.f32.mrb[186].mxu1 }
 0x257   : > { %v5339_v9 = vpop.f32.mrb[187].mxu0  ;;  %v5380_v12 = vpop.f32.mrb[187].mxu1 }
 0x25c   : > { %v5416_v49 = vpop.f32.mrb[188].mxu0  ;;  %v5457_v43 = vpop.f32.mrb[188].mxu1 }
 0x25d   : > { %v11012_v48 = vadd.f32 %v5416_v49, %v10856_v37  ;;  %v11015_v59 = vadd.f32 %v5457_v43, %v10859_v25  ;;  %v5418_v19 = vpop.f32.mrb[189].mxu0  ;;  %v5459_v7 = vpop.f32.mrb[189].mxu1 }
 0x25e   : > { %v11018_v52 = vadd.f32 %v5418_v19, %v10864_v29  ;;  %v11021_v51 = vadd.f32 %v5459_v7, %v10867_v28  ;;  %v5420_v57 = vpop.f32.mrb[190].mxu0  ;;  %v5461_v6 = vpop.f32.mrb[190].mxu1 }
 0x25f   : > { %v5421_v5 = vpop.f32.mrb[191].mxu0  ;;  %v5462_v13 = vpop.f32.mrb[191].mxu1 }
 0x264   : > { %v5732_v36 = vpop.f32.mrb[192].mxu0  ;;  %v5773_v31 = vpop.f32.mrb[192].mxu1 }
 0x265   : > { %v11024_v37 = vadd.f32 %v5732_v36, %v10880_v18  ;;  %v11027_v25 = vadd.f32 %v5773_v31, %v10883_v61  ;;  %v5734_v23 = vpop.f32.mrb[193].mxu0  ;;  %v5775_v0 = vpop.f32.mrb[193].mxu1 }
 0x266   : > { %v11030_v29 = vadd.f32 %v5734_v23, %v10888_v30  ;;  %v11033_v28 = vadd.f32 %v5775_v0, %v10891_v4  ;;  %v5736_v44 = vpop.f32.mrb[194].mxu0  ;;  %v5777_v42 = vpop.f32.mrb[194].mxu1 }
 0x267   : > { %v5737_v16 = vpop.f32.mrb[195].mxu0  ;;  %v5778_v38 = vpop.f32.mrb[195].mxu1 }
 0x26c   : > { %v5814_v17 = vpop.f32.mrb[196].mxu0  ;;  %v5855_v40 = vpop.f32.mrb[196].mxu1 }
 0x26d   : > { %v11036_v18 = vadd.f32 %v5814_v17, %v10904_v39  ;;  %v11039_v61 = vadd.f32 %v5855_v40, %v10907_v20  ;;  %v5816_v32 = vpop.f32.mrb[197].mxu0  ;;  %v5857_v34 = vpop.f32.mrb[197].mxu1 }
 0x26e   : > { %v11042_v30 = vadd.f32 %v5816_v32, %v10912_v33  ;;  %v11045_v4 = vadd.f32 %v5857_v34, %v10915_v10  ;;  %v5818_v50 = vpop.f32.mrb[198].mxu0  ;;  %v5859_v35 = vpop.f32.mrb[198].mxu1 }
 0x26f   : > { %v5819_v63 = vpop.f32.mrb[199].mxu0  ;;  %v5860_v46 = vpop.f32.mrb[199].mxu1 }
 0x274   : > { %v5896_v58 = vpop.f32.mrb[200].mxu0  ;;  %v5937_v45 = vpop.f32.mrb[200].mxu1 }
 0x275   : > { %v11048_v39 = vadd.f32 %v5896_v58, %v10928_v54  ;;  %v11051_v20 = vadd.f32 %v5937_v45, %v10931_v55  ;;  %v5898_v9 = vpop.f32.mrb[201].mxu0  ;;  %v5939_v12 = vpop.f32.mrb[201].mxu1 }
 0x276   : > { %v11054_v33 = vadd.f32 %v5898_v9, %v10936_v26  ;;  %v11057_v10 = vadd.f32 %v5939_v12, %v10939_v53  ;;  %v5900_v49 = vpop.f32.mrb[202].mxu0  ;;  %v5941_v43 = vpop.f32.mrb[202].mxu1 }
 0x277   : > { %v5901_v19 = vpop.f32.mrb[203].mxu0  ;;  %v5942_v7 = vpop.f32.mrb[203].mxu1 }
 0x27c   : > { %v5978_v57 = vpop.f32.mrb[204].mxu0  ;;  %v6019_v6 = vpop.f32.mrb[204].mxu1 }
 0x27d   : > { %v11060_v54 = vadd.f32 %v5978_v57, %v10952_v47  ;;  %v11063_v55 = vadd.f32 %v6019_v6, %v10955_v11  ;;  %v5980_v5 = vpop.f32.mrb[205].mxu0  ;;  %v6021_v13 = vpop.f32.mrb[205].mxu1 }
 0x27e   : > { %v11066_v26 = vadd.f32 %v5980_v5, %v10958_v3  ;;  %v11069_v53 = vadd.f32 %v6021_v13, %v10961_v56  ;;  %v5982_v36 = vpop.f32.mrb[206].mxu0  ;;  %v6023_v31 = vpop.f32.mrb[206].mxu1 }
 0x27f   : > { %v5983_v23 = vpop.f32.mrb[207].mxu0  ;;  %v6024_v0 = vpop.f32.mrb[207].mxu1 }
 0x284   : > { %v6060_v44 = vpop.f32.mrb[208].mxu0  ;;  %v6101_v42 = vpop.f32.mrb[208].mxu1 }
 0x285   : > { %v11072_v47 = vadd.f32 %v6060_v44, %v10972_v8  ;;  %v11075_v11 = vadd.f32 %v6101_v42, %v10975_v24  ;;  %v6062_v16 = vpop.f32.mrb[209].mxu0  ;;  %v6103_v38 = vpop.f32.mrb[209].mxu1 }
 0x286   : > { %v11078_v3 = vadd.f32 %v6062_v16, %v10978_v14  ;;  %v11081_v56 = vadd.f32 %v6103_v38, %v10981_v62  ;;  %v6064_v17 = vpop.f32.mrb[210].mxu0  ;;  %v6105_v40 = vpop.f32.mrb[210].mxu1 }
 0x287   : > { %v6065_v32 = vpop.f32.mrb[211].mxu0  ;;  %v6106_v34 = vpop.f32.mrb[211].mxu1 }
 0x28c   : > { %v6142_v50 = vpop.f32.mrb[212].mxu0  ;;  %v6183_v35 = vpop.f32.mrb[212].mxu1 }
 0x28d   : > { %v11084_v8 = vadd.f32 %v6142_v50, %v10988_v21  ;;  %v11087_v24 = vadd.f32 %v6183_v35, %v10991_v15  ;;  %v6144_v63 = vpop.f32.mrb[213].mxu0  ;;  %v6185_v46 = vpop.f32.mrb[213].mxu1 }
 0x28e   : > { %v11090_v14 = vadd.f32 %v6144_v63, %v10994_v1  ;;  %v11093_v62 = vadd.f32 %v6185_v46, %v10997_v41  ;;  %v6146_v58 = vpop.f32.mrb[214].mxu0  ;;  %v6187_v45 = vpop.f32.mrb[214].mxu1 }
 0x28f   : > { %v6147_v9 = vpop.f32.mrb[215].mxu0  ;;  %v6188_v12 = vpop.f32.mrb[215].mxu1 }
 0x294   : > { %v6224_v49 = vpop.f32.mrb[216].mxu0  ;;  %v6265_v43 = vpop.f32.mrb[216].mxu1 }
 0x295   : > { %v11096_v21 = vadd.f32 %v6224_v49, %v11000_v22  ;;  %v11099_v15 = vadd.f32 %v6265_v43, %v11003_v60  ;;  %v6226_v19 = vpop.f32.mrb[217].mxu0  ;;  %v6267_v7 = vpop.f32.mrb[217].mxu1 }
 0x296   : > { %v11102_v1 = vadd.f32 %v6226_v19, %v11006_v27  ;;  %v11105_v41 = vadd.f32 %v6267_v7, %v11009_v2  ;;  %v6228_v57 = vpop.f32.mrb[218].mxu0  ;;  %v6269_v6 = vpop.f32.mrb[218].mxu1 }
 0x297   : > { %v6229_v5 = vpop.f32.mrb[219].mxu0  ;;  %v6270_v13 = vpop.f32.mrb[219].mxu1 }
 0x29c   : > { %v6306_v36 = vpop.f32.mrb[220].mxu0  ;;  %v6347_v31 = vpop.f32.mrb[220].mxu1 }
 0x29d   : > { %v11108_v22 = vadd.f32 %v6306_v36, %v11012_v48  ;;  %v11111_v60 = vadd.f32 %v6347_v31, %v11015_v59  ;;  %v6308_v23 = vpop.f32.mrb[221].mxu0  ;;  %v6349_v0 = vpop.f32.mrb[221].mxu1 }
 0x29e   : > { %v11114_v27 = vadd.f32 %v6308_v23, %v11018_v52  ;;  %v11117_v2 = vadd.f32 %v6349_v0, %v11021_v51  ;;  %v6310_v44 = vpop.f32.mrb[222].mxu0  ;;  %v6351_v42 = vpop.f32.mrb[222].mxu1 }
 0x29f   : > { %v6311_v16 = vpop.f32.mrb[223].mxu0  ;;  %v6352_v38 = vpop.f32.mrb[223].mxu1 }
 0x2a4   : > { %v6619_v17 = vpop.f32.mrb[224].mxu0  ;;  %v6660_v40 = vpop.f32.mrb[224].mxu1 }
 0x2a5   : > { %v11120_v48 = vadd.f32 %v6619_v17, %v11024_v37  ;;  %v11123_v59 = vadd.f32 %v6660_v40, %v11027_v25  ;;  %v6621_v32 = vpop.f32.mrb[225].mxu0  ;;  %v6662_v34 = vpop.f32.mrb[225].mxu1 }
 0x2a6   : > { %v11126_v52 = vadd.f32 %v6621_v32, %v11030_v29  ;;  %v11129_v51 = vadd.f32 %v6662_v34, %v11033_v28  ;;  %v6623_v50 = vpop.f32.mrb[226].mxu0  ;;  %v6664_v35 = vpop.f32.mrb[226].mxu1 }
 0x2a7   : > { %v6624_v63 = vpop.f32.mrb[227].mxu0  ;;  %v6665_v46 = vpop.f32.mrb[227].mxu1 }
 0x2ac   : > { %v6701_v58 = vpop.f32.mrb[228].mxu0  ;;  %v6742_v45 = vpop.f32.mrb[228].mxu1 }
 0x2ad   : > { %v11132_v37 = vadd.f32 %v6701_v58, %v11036_v18  ;;  %v11135_v25 = vadd.f32 %v6742_v45, %v11039_v61  ;;  %v6703_v9 = vpop.f32.mrb[229].mxu0  ;;  %v6744_v12 = vpop.f32.mrb[229].mxu1 }
 0x2ae   : > { %v11138_v29 = vadd.f32 %v6703_v9, %v11042_v30  ;;  %v11141_v28 = vadd.f32 %v6744_v12, %v11045_v4  ;;  %v6705_v49 = vpop.f32.mrb[230].mxu0  ;;  %v6746_v43 = vpop.f32.mrb[230].mxu1 }
 0x2af   : > { %v6706_v19 = vpop.f32.mrb[231].mxu0  ;;  %v6747_v7 = vpop.f32.mrb[231].mxu1 }
 0x2b4   : > { %v6783_v57 = vpop.f32.mrb[232].mxu0  ;;  %v6824_v6 = vpop.f32.mrb[232].mxu1 }
 0x2b5   : > { %v11144_v18 = vadd.f32 %v6783_v57, %v11048_v39  ;;  %v11147_v61 = vadd.f32 %v6824_v6, %v11051_v20  ;;  %v6785_v5 = vpop.f32.mrb[233].mxu0  ;;  %v6826_v13 = vpop.f32.mrb[233].mxu1 }
 0x2b6   : > { %v11150_v30 = vadd.f32 %v6785_v5, %v11054_v33  ;;  %v11153_v4 = vadd.f32 %v6826_v13, %v11057_v10  ;;  %v6787_v36 = vpop.f32.mrb[234].mxu0  ;;  %v6828_v31 = vpop.f32.mrb[234].mxu1 }
 0x2b7   : > { %v6788_v23 = vpop.f32.mrb[235].mxu0  ;;  %v6829_v0 = vpop.f32.mrb[235].mxu1 }
 0x2bc   : > { %v6865_v44 = vpop.f32.mrb[236].mxu0  ;;  %v6906_v42 = vpop.f32.mrb[236].mxu1 }
 0x2bd   : > { %v11156_v39 = vadd.f32 %v6865_v44, %v11060_v54  ;;  %v11159_v20 = vadd.f32 %v6906_v42, %v11063_v55  ;;  %v6867_v16 = vpop.f32.mrb[237].mxu0  ;;  %v6908_v38 = vpop.f32.mrb[237].mxu1 }
 0x2be   : > { %v11162_v33 = vadd.f32 %v6867_v16, %v11066_v26  ;;  %v11165_v10 = vadd.f32 %v6908_v38, %v11069_v53  ;;  %v6869_v17 = vpop.f32.mrb[238].mxu0  ;;  %v6910_v40 = vpop.f32.mrb[238].mxu1 }
 0x2bf   : > { %v6870_v32 = vpop.f32.mrb[239].mxu0  ;;  %v6911_v34 = vpop.f32.mrb[239].mxu1 }
 0x2c4   : > { %v6947_v50 = vpop.f32.mrb[240].mxu0  ;;  %v6988_v35 = vpop.f32.mrb[240].mxu1 }
 0x2c5   : > { %v11168_v54 = vadd.f32 %v6947_v50, %v11072_v47  ;;  %v11171_v55 = vadd.f32 %v6988_v35, %v11075_v11  ;;  %v6949_v63 = vpop.f32.mrb[241].mxu0  ;;  %v6990_v46 = vpop.f32.mrb[241].mxu1 }
 0x2c6   : > { %v11174_v26 = vadd.f32 %v6949_v63, %v11078_v3  ;;  %v11177_v53 = vadd.f32 %v6990_v46, %v11081_v56  ;;  %v6951_v58 = vpop.f32.mrb[242].mxu0  ;;  %v6992_v45 = vpop.f32.mrb[242].mxu1 }
 0x2c7   : > { %v6952_v9 = vpop.f32.mrb[243].mxu0  ;;  %v6993_v12 = vpop.f32.mrb[243].mxu1  ;;  %v9449_v58 = vmov 1983009808  }
 0x2c8   : > { %v8265_v45 = vunpack.c.l.s4 %v9449_v58 }
 0x2ca   : > { %v8266_v12 = vunpack.c.0.s8 %v8265_v45 }
 0x2cc   : > { %v7029_v49 = vpop.f32.mrb[244].mxu0  ;;  %v7070_v43 = vpop.f32.mrb[244].mxu1 }
 0x2cd   : > { %v11180_v47 = vadd.f32 %v7029_v49, %v11084_v8  ;;  %v11183_v11 = vadd.f32 %v7070_v43, %v11087_v24  ;;  %v7031_v19 = vpop.f32.mrb[245].mxu0  ;;  %v7072_v7 = vpop.f32.mrb[245].mxu1 }
 0x2ce   : > { %v11186_v3 = vadd.f32 %v7031_v19, %v11090_v14  ;;  %v11189_v56 = vadd.f32 %v7072_v7, %v11093_v62  ;;  %v7033_v57 = vpop.f32.mrb[246].mxu0  ;;  %v7074_v6 = vpop.f32.mrb[246].mxu1 }
 0x2cf   : > { %v7034_v5 = vpop.f32.mrb[247].mxu0  ;;  %v7075_v13 = vpop.f32.mrb[247].mxu1 }
 0x2d4   : > { %v7111_v36 = vpop.f32.mrb[248].mxu0  ;;  %v7152_v31 = vpop.f32.mrb[248].mxu1 }
 0x2d5   : > { %v11192_v8 = vadd.f32 %v7111_v36, %v11096_v21  ;;  %v11195_v24 = vadd.f32 %v7152_v31, %v11099_v15  ;;  %v7113_v23 = vpop.f32.mrb[249].mxu0  ;;  %v7154_v0 = vpop.f32.mrb[249].mxu1 }
 0x2d6   : > { %v11198_v14 = vadd.f32 %v7113_v23, %v11102_v1  ;;  %v11201_v62 = vadd.f32 %v7154_v0, %v11105_v41  ;;  %v7115_v44 = vpop.f32.mrb[250].mxu0  ;;  %v7156_v42 = vpop.f32.mrb[250].mxu1 }
 0x2d7   : > { %v7116_v16 = vpop.f32.mrb[251].mxu0  ;;  %v7157_v38 = vpop.f32.mrb[251].mxu1 }
 0x2dc   : > { %v7193_v17 = vpop.f32.mrb[252].mxu0  ;;  %v7234_v40 = vpop.f32.mrb[252].mxu1 }
 0x2dd   : > { %v11204_v21 = vadd.f32 %v7193_v17, %v11108_v22  ;;  %v11207_v15 = vadd.f32 %v7234_v40, %v11111_v60  ;;  %v7195_v32 = vpop.f32.mrb[253].mxu0  ;;  %v7236_v34 = vpop.f32.mrb[253].mxu1  ;;  %v8267_v22 = vlaneseq }
 0x2de   : > { %v11210_v1 = vadd.f32 %v7195_v32, %v11114_v27  ;;  %v11213_v41 = vadd.f32 %v7236_v34, %v11117_v2  ;;  %v7197_v50 = vpop.f32.mrb[254].mxu0  ;;  %v7238_v35 = vpop.f32.mrb[254].mxu1 }
 0x2df   : > { %v7198_v63 = vpop.f32.mrb[255].mxu0  ;;  %v7239_v46 = vpop.f32.mrb[255].mxu1  ;;  %v8268_v2 = vshrl.u32 %v8267_v22, 7 }
 0x2e0   : > { %v11220_v60 = vpop.permute.xlu0 %8163 }
 0x2e1   : > { %v11230_v44 = vsub.s32 %v8266_v12, %v8268_v2 }
 0x2e4   : > { %v7506_v27 = vpop.f32.mrb[0].mxu0  ;;  %v7547_v9 = vpop.f32.mrb[0].mxu1 }
 0x2e5   : > { %v8128_v49 = vadd.f32 %v7506_v27, %v11120_v48  ;;  %v8130_v43 = vadd.f32 %v7547_v9, %v11123_v59  ;;  %v7508_v19 = vpop.f32.mrb[1].mxu0  ;;  %v7549_v7 = vpop.f32.mrb[1].mxu1 }
 0x2e6   : > { %v8129_v57 = vadd.f32 %v7508_v19, %v11126_v52  ;;  %v8131_v6 = vadd.f32 %v7549_v7, %v11129_v51  ;;  %v7510_v5 = vpop.f32.mrb[2].mxu0  ;;  %v7551_v13 = vpop.f32.mrb[2].mxu1 }
 0x2e7   : > { %v7511_v36 = vpop.f32.mrb[3].mxu0  ;;  %v7552_v31 = vpop.f32.mrb[3].mxu1  ;;  %v8166_v23 = vadd.f32 %v11220_v60, %v8128_v49  ;;  %v8168_v0 = vadd.f32 %v11220_v60, %v8130_v43 }
 0x2e8   : > { %v8167_v48 = vadd.f32 %v11220_v60, %v8129_v57  ;;  %v8169_v59 = vadd.f32 %v11220_v60, %v8131_v6 }
 0x2ea   : > { %v9091_v52 = vpack.c.bf16 %v8167_v48, %v8166_v23  ;;  %v9092_v42 = vpack.c.bf16 %v8169_v59, %v8168_v0 }
 0x2ec   : > { %v7588_v51 = vpop.f32.mrb[4].mxu0  ;;  %v7629_v16 = vpop.f32.mrb[4].mxu1  ;;  %v8270_v38 = vrot.slane %v9091_v52, %v11230_v44  ;;  %v8277_v17 = vrot.slane %v9092_v42, %v11230_v44 }
 0x2ed   : > { %v8132_v40 = vadd.f32 %v7588_v51, %v11132_v37  ;;  %v8134_v32 = vadd.f32 %v7629_v16, %v11135_v25  ;;  %v7590_v34 = vpop.f32.mrb[5].mxu0  ;;  %v7631_v50 = vpop.f32.mrb[5].mxu1 }
 0x2ee   : > { %v8133_v35 = vadd.f32 %v7590_v34, %v11138_v29  ;;  %v8135_v63 = vadd.f32 %v7631_v50, %v11141_v28  ;;  %v8278_v46 = vcombine.low %v8270_v38, %v8277_v17  ;;  %v7592_v58 = vpop.f32.mrb[6].mxu0  ;;  %v7633_v45 = vpop.f32.mrb[6].mxu1 }
 0x2ef   : > { %v8170_v22 = vadd.f32 %v11220_v60, %v8132_v40  ;;  %v8172_v37 = vadd.f32 %v11220_v60, %v8134_v32  ;;  %v7593_v25 = vpop.f32.mrb[7].mxu0  ;;  %v7634_v27 = vpop.f32.mrb[7].mxu1 }
 0x2f0   : > { %v8171_v9 = vadd.f32 %v11220_v60, %v8133_v35  ;;  %v8173_v12 = vadd.f32 %v11220_v60, %v8135_v63  ;;  %8406 = vst [vmem:[%s11241_s15] sm:$0xff] %v8278_v46 }
 0x2f2   : > { %v9093_v2 = vpack.c.bf16 %v8171_v9, %v8170_v22  ;;  %v9094_v49 = vpack.c.bf16 %v8173_v12, %v8172_v37 }
 0x2f4   : > { %v8287_v29 = vrot.slane %v9093_v2, %v11230_v44  ;;  %v8294_v28 = vrot.slane %v9094_v49, %v11230_v44  ;;  %v7670_v43 = vpop.f32.mrb[8].mxu0  ;;  %v7711_v19 = vpop.f32.mrb[8].mxu1 }
 0x2f5   : > { %v8136_v7 = vadd.f32 %v7670_v43, %v11144_v18  ;;  %v8138_v57 = vadd.f32 %v7711_v19, %v11147_v61  ;;  %v7672_v6 = vpop.f32.mrb[9].mxu0  ;;  %v7713_v5 = vpop.f32.mrb[9].mxu1 }
 0x2f6   : > { %v8295_v13 = vcombine.low %v8287_v29, %v8294_v28  ;;  %v8137_v36 = vadd.f32 %v7672_v6, %v11150_v30  ;;  %v8139_v31 = vadd.f32 %v7713_v5, %v11153_v4  ;;  %v7674_v23 = vpop.f32.mrb[10].mxu0  ;;  %v7715_v0 = vpop.f32.mrb[10].mxu1 }
 0x2f7   : > { %v8174_v48 = vadd.f32 %v11220_v60, %v8136_v7  ;;  %v8176_v59 = vadd.f32 %v11220_v60, %v8138_v57  ;;  %v7675_v52 = vpop.f32.mrb[11].mxu0  ;;  %v7716_v42 = vpop.f32.mrb[11].mxu1 }
 0x2f8   : > { %8407 = vst [vmem:[%s11241_s15 + $0x8] sm:$0xff] %v8295_v13  ;;  %v8175_v18 = vadd.f32 %v11220_v60, %v8137_v36  ;;  %v8177_v61 = vadd.f32 %v11220_v60, %v8139_v31 }
 0x2fa   : > { %v9095_v51 = vpack.c.bf16 %v8175_v18, %v8174_v48  ;;  %v9096_v16 = vpack.c.bf16 %v8177_v61, %v8176_v59 }
 0x2fc   : > { %v8304_v38 = vrot.slane %v9095_v51, %v11230_v44  ;;  %v8311_v30 = vrot.slane %v9096_v16, %v11230_v44  ;;  %v7752_v4 = vpop.f32.mrb[12].mxu0  ;;  %v7793_v17 = vpop.f32.mrb[12].mxu1 }
 0x2fd   : > { %v8140_v40 = vadd.f32 %v7752_v4, %v11156_v39  ;;  %v8142_v32 = vadd.f32 %v7793_v17, %v11159_v20  ;;  %v7754_v34 = vpop.f32.mrb[13].mxu0  ;;  %v7795_v50 = vpop.f32.mrb[13].mxu1 }
 0x2fe   : > { %v8312_v35 = vcombine.low %v8304_v38, %v8311_v30  ;;  %v8141_v63 = vadd.f32 %v7754_v34, %v11162_v33  ;;  %v8143_v46 = vadd.f32 %v7795_v50, %v11165_v10  ;;  %v7756_v58 = vpop.f32.mrb[14].mxu0  ;;  %v7797_v45 = vpop.f32.mrb[14].mxu1 }
 0x2ff   : > { %v8178_v22 = vadd.f32 %v11220_v60, %v8140_v40  ;;  %v8180_v37 = vadd.f32 %v11220_v60, %v8142_v32  ;;  %v7757_v25 = vpop.f32.mrb[15].mxu0  ;;  %v7798_v27 = vpop.f32.mrb[15].mxu1 }
 0x300   : > { %8408 = vst [vmem:[%s11241_s15 + $0x10] sm:$0xff] %v8312_v35  ;;  %v8179_v39 = vadd.f32 %v11220_v60, %v8141_v63  ;;  %v8181_v20 = vadd.f32 %v11220_v60, %v8143_v46 }
 0x302   : > { %v9097_v9 = vpack.c.bf16 %v8179_v39, %v8178_v22  ;;  %v9098_v12 = vpack.c.bf16 %v8181_v20, %v8180_v37 }
 0x304   : > { %v8321_v2 = vrot.slane %v9097_v9, %v11230_v44  ;;  %v8328_v33 = vrot.slane %v9098_v12, %v11230_v44  ;;  %v7834_v10 = vpop.f32.mrb[16].mxu0  ;;  %v7875_v49 = vpop.f32.mrb[16].mxu1 }
 0x305   : > { %v8144_v29 = vadd.f32 %v7834_v10, %v11168_v54  ;;  %v8146_v28 = vadd.f32 %v7875_v49, %v11171_v55  ;;  %v7836_v43 = vpop.f32.mrb[17].mxu0  ;;  %v7877_v19 = vpop.f32.mrb[17].mxu1 }
 0x306   : > { %v8329_v7 = vcombine.low %v8321_v2, %v8328_v33  ;;  %v8145_v57 = vadd.f32 %v7836_v43, %v11174_v26  ;;  %v8147_v6 = vadd.f32 %v7877_v19, %v11177_v53  ;;  %v7838_v5 = vpop.f32.mrb[18].mxu0  ;;  %v7879_v13 = vpop.f32.mrb[18].mxu1 }
 0x307   : > { %v8182_v36 = vadd.f32 %v11220_v60, %v8144_v29  ;;  %v8184_v31 = vadd.f32 %v11220_v60, %v8146_v28  ;;  %v7839_v23 = vpop.f32.mrb[19].mxu0  ;;  %v7880_v0 = vpop.f32.mrb[19].mxu1 }
 0x308   : > { %8409 = vst [vmem:[%s11241_s15 + $0x18] sm:$0xff] %v8329_v7  ;;  %v8183_v54 = vadd.f32 %v11220_v60, %v8145_v57  ;;  %v8185_v55 = vadd.f32 %v11220_v60, %v8147_v6 }
 0x30a   : > { %v9099_v48 = vpack.c.bf16 %v8183_v54, %v8182_v36  ;;  %v9100_v59 = vpack.c.bf16 %v8185_v55, %v8184_v31 }
 0x30c   : > { %v8338_v52 = vrot.slane %v9099_v48, %v11230_v44  ;;  %v8345_v26 = vrot.slane %v9100_v59, %v11230_v44  ;;  %v7916_v53 = vpop.f32.mrb[20].mxu0  ;;  %v7957_v42 = vpop.f32.mrb[20].mxu1 }
 0x30d   : > { %v8148_v18 = vadd.f32 %v7916_v53, %v11180_v47  ;;  %v8150_v61 = vadd.f32 %v7957_v42, %v11183_v11  ;;  %v7918_v51 = vpop.f32.mrb[21].mxu0  ;;  %v7959_v16 = vpop.f32.mrb[21].mxu1 }
 0x30e   : > { %v8346_v38 = vcombine.low %v8338_v52, %v8345_v26  ;;  %v8149_v30 = vadd.f32 %v7918_v51, %v11186_v3  ;;  %v8151_v4 = vadd.f32 %v7959_v16, %v11189_v56  ;;  %v7920_v17 = vpop.f32.mrb[22].mxu0  ;;  %v7961_v40 = vpop.f32.mrb[22].mxu1 }
 0x30f   : > { %v8186_v32 = vadd.f32 %v11220_v60, %v8148_v18  ;;  %v8188_v34 = vadd.f32 %v11220_v60, %v8150_v61  ;;  %v7921_v50 = vpop.f32.mrb[23].mxu0  ;;  %v7962_v35 = vpop.f32.mrb[23].mxu1 }
 0x310   : > { %8410 = vst [vmem:[%s11241_s15 + $0x20] sm:$0xff] %v8346_v38  ;;  %v8187_v47 = vadd.f32 %v11220_v60, %v8149_v30  ;;  %v8189_v11 = vadd.f32 %v11220_v60, %v8151_v4 }
 0x312   : > { %v9101_v63 = vpack.c.bf16 %v8187_v47, %v8186_v32  ;;  %v9102_v46 = vpack.c.bf16 %v8189_v11, %v8188_v34 }
 0x314   : > { %v8355_v58 = vrot.slane %v9101_v63, %v11230_v44  ;;  %v8362_v3 = vrot.slane %v9102_v46, %v11230_v44  ;;  %v7998_v56 = vpop.f32.mrb[24].mxu0  ;;  %v8039_v45 = vpop.f32.mrb[24].mxu1 }
 0x315   : > { %v8152_v22 = vadd.f32 %v7998_v56, %v11192_v8  ;;  %v8154_v37 = vadd.f32 %v8039_v45, %v11195_v24  ;;  %v8000_v25 = vpop.f32.mrb[25].mxu0  ;;  %v8041_v27 = vpop.f32.mrb[25].mxu1 }
 0x316   : > { %v8363_v39 = vcombine.low %v8355_v58, %v8362_v3  ;;  %v8153_v20 = vadd.f32 %v8000_v25, %v11198_v14  ;;  %v8155_v9 = vadd.f32 %v8041_v27, %v11201_v62  ;;  %v8002_v12 = vpop.f32.mrb[26].mxu0  ;;  %v8043_v2 = vpop.f32.mrb[26].mxu1 }
 0x317   : > { %v8190_v33 = vadd.f32 %v11220_v60, %v8152_v22  ;;  %v8192_v10 = vadd.f32 %v11220_v60, %v8154_v37  ;;  %v8003_v49 = vpop.f32.mrb[27].mxu0  ;;  %v8044_v29 = vpop.f32.mrb[27].mxu1 }
 0x318   : > { %8411 = vst [vmem:[%s11241_s15 + $0x28] sm:$0xff] %v8363_v39  ;;  %v8191_v8 = vadd.f32 %v11220_v60, %v8153_v20  ;;  %v8193_v24 = vadd.f32 %v11220_v60, %v8155_v9 }
 0x31a   : > { %v9103_v28 = vpack.c.bf16 %v8191_v8, %v8190_v33  ;;  %v9104_v43 = vpack.c.bf16 %v8193_v24, %v8192_v10 }
 0x31c   : > { %v8372_v19 = vrot.slane %v9103_v28, %v11230_v44  ;;  %v8379_v14 = vrot.slane %v9104_v43, %v11230_v44  ;;  %v8080_v62 = vpop.f32.mrb[28].mxu0  ;;  %v8121_v7 = vpop.f32.mrb[28].mxu1 }
 0x31d   : > { %v8156_v57 = vadd.f32 %v8080_v62, %v11204_v21  ;;  %v8158_v6 = vadd.f32 %v8121_v7, %v11207_v15  ;;  %v8082_v5 = vpop.f32.mrb[29].mxu0  ;;  %v8123_v13 = vpop.f32.mrb[29].mxu1 }
 0x31e   : > { %v8380_v36 = vcombine.low %v8372_v19, %v8379_v14  ;;  %v8157_v31 = vadd.f32 %v8082_v5, %v11210_v1  ;;  %v8159_v23 = vadd.f32 %v8123_v13, %v11213_v41  ;;  %v8084_v0 = vpop.f32.mrb[30].mxu0  ;;  %v8125_v54 = vpop.f32.mrb[30].mxu1 }
 0x31f   : > { %v8194_v55 = vadd.f32 %v11220_v60, %v8156_v57  ;;  %v8196_v48 = vadd.f32 %v11220_v60, %v8158_v6  ;;  %v8085_v59 = vpop.f32.mrb[31].mxu0  ;;  %v8126_v52 = vpop.f32.mrb[31].mxu1 }
 0x320   : > { %8412 = vst [vmem:[%s11241_s15 + $0x30] sm:$0xff] %v8380_v36  ;;  %v8195_v21 = vadd.f32 %v11220_v60, %v8157_v31  ;;  %v8197_v15 = vadd.f32 %v11220_v60, %v8159_v23 }
 0x322   : > { %v9105_v26 = vpack.c.bf16 %v8195_v21, %v8194_v55  ;;  %v9106_v53 = vpack.c.bf16 %v8197_v15, %v8196_v48 }
 0x324   : > { %v8389_v1 = vrot.slane %v9105_v26, %v11230_v44  ;;  %v8396_v42 = vrot.slane %v9106_v53, %v11230_v44 }
 0x326   : > { %v8397_v41 = vcombine.low %v8389_v1, %v8396_v42 }
 0x328   : > { %8413 = vst [vmem:[%s11241_s15 + $0x38] sm:$0xff] %v8397_v41 }
 0x329 PF: > { %s15_s20 = sadd.s32 1, %s9446_s20   ;;  %s11335_s18 = smov %s9442_s19 }
 0x32a   : > { %p12_p5 = scmp.ge.s32.totalorder %s15_s20, 18   ;;  %s11336_s19 = smov %s11338_s21 }
 0x32c   :  { %14 = sbr.rel (!%p12_p5) target bundleno = 2 (0x2), region = 84 }

</bundles_post_ra>
